<compile_context>
chip_gen: v7x
topology: tpu7x:2x2x1
jax: 0.10.0
libtpu: 0.0.40
codegen_flags: <defaults>
</compile_context>

<pallas_src>
import functools

import jax
import jax.numpy as jnp
import numpy as np
from jax.experimental import pallas as pl
from jax.experimental.pallas import tpu as pltpu

_VMEM_LIMIT = 32 * 1024 * 1024
_F32 = jnp.float32
_BF16 = jnp.bfloat16


# ------------------------------------------------------------------
# In-kernel helpers (traced; operate on small VMEM-resident values).
# All reshapes keep the lane (last) dim unchanged; all slices are static.
# ------------------------------------------------------------------
def _pad_hw1(x):
    """Zero-pad a (H, W, C) value by 1 on both spatial dims -> (H+2, W+2, C)."""
    H, W, C = x.shape
    zr = jnp.zeros((1, W, C), x.dtype)
    x = jnp.concatenate([zr, x, zr], axis=0)
    zc = jnp.zeros((H + 2, 1, C), x.dtype)
    return jnp.concatenate([zc, x, zc], axis=1)


def _im2col_s2k4(x):
    """im2col for Conv2d(kernel=4, stride=2, pad=1).

    x: (H, W, C) -> (OH*OW, 16*C), columns ordered (di*4 + dj)*C + c.
    Stride-2 tap selection is done with contiguous slice + leading/sublane
    reshape + static index (no strided loads)."""
    H, W, C = x.shape
    OH, OW = H // 2, W // 2
    xp = _pad_hw1(x)                                         # (H+2, W+2, C)
    Wp = W + 2
    rows = [xp[0:H].reshape(OH, 2, Wp, C),                   # row offsets {0, 1}
            xp[2:H + 2].reshape(OH, 2, Wp, C)]               # row offsets {2, 3}
    taps = []
    for di in range(4):
        slab = rows[di // 2][:, di % 2]                      # (OH, Wp, C)
        cols = [slab[:, 0:W].reshape(OH, OW, 2, C),          # col offsets {0, 1}
                slab[:, 2:W + 2].reshape(OH, OW, 2, C)]      # col offsets {2, 3}
        for dj in range(4):
            taps.append(cols[dj // 2][:, :, dj % 2])         # (OH, OW, C)
    pat = jnp.concatenate(taps, axis=-1)                     # (OH, OW, 16*C)
    return pat.reshape(OH * OW, 16 * C)


def _im2col_s1k3(x):
    """im2col for a 3x3 stride-1 pad-1 window: (H, W, C) -> (H*W, 9*C),
    columns ordered (ty*3 + tx)*C + c (used by the sub-pixel deconv)."""
    H, W, C = x.shape
    xp = _pad_hw1(x)
    taps = [xp[ty:ty + H, tx:tx + W, :] for ty in range(3) for tx in range(3)]
    pat = jnp.concatenate(taps, axis=-1)                     # (H, W, 9*C)
    return pat.reshape(H * W, 9 * C)


def _interleave_phases(y, H, W, OC):
    """(H*W, 4*OC) with columns (2*py+px)*OC + oc  ->  (2H, 2W, OC) spatial."""
    ph = [y[:, p * OC:(p + 1) * OC].reshape(H, W, 1, OC) for p in range(4)]
    top = jnp.concatenate([ph[0], ph[1]], axis=2).reshape(H, 1, 2 * W, OC)
    bot = jnp.concatenate([ph[2], ph[3]], axis=2).reshape(H, 1, 2 * W, OC)
    return jnp.concatenate([top, bot], axis=1).reshape(2 * H, 2 * W, OC)


# ------------------------------------------------------------------
# The fused forward kernel (one batch element per grid program)
# ------------------------------------------------------------------
def _vae_fwd_kernel(x_ref, eps_ref,
                    e1w, e1b, e2w, e2b, e3w, e3b,
                    hw, hb, diw, dib,
                    d1w, d1b, d2w, d2b, d3w, d3b,
                    recon_ref, mu_ref, lv_ref, *, img_size, latent_dim):
    H = img_size
    s = H // 8
    L = latent_dim

    def mxu(a, w_ref):                       # bf16 MXU operands, f32 accumulation
        return jnp.dot(a.astype(_BF16), w_ref[...], preferred_element_type=_F32)

    # ---------------- encoder: 3 x [Conv2d(4,2,1) + ReLU] ----------------
    x = x_ref[...]                                                     # (H, W, 1) f32
    a1 = jnp.maximum(mxu(_im2col_s2k4(x), e1w) + e1b[...], 0.0)
    a1 = a1.reshape(H // 2, H // 2, 32)
    a2 = jnp.maximum(mxu(_im2col_s2k4(a1), e2w) + e2b[...], 0.0)
    a2 = a2.reshape(H // 4, H // 4, 64)
    a3 = jnp.maximum(mxu(_im2col_s2k4(a2), e3w) + e3b[...], 0.0)       # (s*s, 128)

    # ---- fused fc_mu | fc_logvar head, reparameterize, decoder_input ----
    hwv = hw[...]                                                      # (s*s*128, 2L) bf16
    a3b = a3.astype(_BF16)
    ml = hb[...]                                                       # (1, 2L) f32
    for r in range(s * s):                   # nn.Flatten as a K-split accumulation
        ml = ml + jnp.dot(a3b[r:r + 1, :], hwv[r * 128:(r + 1) * 128, :],
                          preferred_element_type=_F32)
    mu = ml[:, :L]
    lv = ml[:, L:]
    mu_ref[...] = mu
    lv_ref[...] = lv
    z = mu + eps_ref[...] * jnp.exp(0.5 * lv)                          # (1, L) f32

    d = mxu(z, diw) + dib[...]                                         # (1, s*s*128) f32
    drows = []
    for hh in range(s):                      # nn.Unflatten -> (s, s, 128), lane dim fixed
        cols = [d[:, (hh * s + ww) * 128:(hh * s + ww + 1) * 128] for ww in range(s)]
        drows.append(jnp.concatenate(cols, axis=0).reshape(1, s, 128))
    d0 = jnp.concatenate(drows, axis=0)                                # (s, s, 128)

    # -------- decoder: 3 x ConvTranspose2d(4,2,1), one phase-wide matmul each --------
    y1 = jnp.maximum(mxu(_im2col_s1k3(d0), d1w) + d1b[...], 0.0)       # (s*s, 4*64)
    d1 = _interleave_phases(y1, s, s, 64)                              # (2s, 2s, 64)
    y2 = jnp.maximum(mxu(_im2col_s1k3(d1), d2w) + d2b[...], 0.0)       # ((2s)^2, 4*32)
    d2 = _interleave_phases(y2, 2 * s, 2 * s, 32)                      # (4s, 4s, 32)
    y3 = jax.nn.sigmoid(mxu(_im2col_s1k3(d2), d3w) + d3b[...])         # ((4s)^2, 4)
    recon_ref[...] = _interleave_phases(y3, 4 * s, 4 * s, 1)           # (8s, 8s, 1) f32


# ------------------------------------------------------------------
# Wrapper: one pallas_call for the whole forward pass
# ------------------------------------------------------------------
def vae_gan_forward(params, x_nchw, eps):
    """x_nchw: (N, 1, H, W) f32; eps: (N, latent). Returns (recon_x, mu, logvar)."""
    B, _, H, W = x_nchw.shape
    L = eps.shape[-1]
    s = H // 8
    x = x_nchw.reshape(B, H, W, 1)          # NCHW -> NHWC is a pure reshape for C == 1
    eps3 = eps.reshape(B, 1, L)

    w_names = ("e1w", "e1b", "e2w", "e2b", "e3w", "e3b",
               "hw", "hb", "diw", "dib",
               "d1w", "d1b", "d2w", "d2b", "d3w", "d3b")
    weights = [params[n] for n in w_names]

    def full(shape):                        # whole-array block, grid-invariant
        return pl.BlockSpec(shape, lambda b: (0,) * len(shape))

    def per_b(shape):                       # one batch element per grid program
        return pl.BlockSpec((None,) + shape, lambda b: (b,) + (0,) * len(shape))

    macs = ((H // 2) ** 2 * 16 * 32 + (H // 4) ** 2 * 16 * 32 * 64
            + s * s * 16 * 64 * 128 + s * s * 128 * 2 * L + L * s * s * 128
            + s * s * 9 * 128 * 4 * 64 + 4 * s * s * 9 * 64 * 4 * 32
            + 16 * s * s * 9 * 32 * 4)
    in_bytes = sum(int(np.prod(a.shape)) * a.dtype.itemsize for a in [x, eps3] + weights)
    out_bytes = (B * H * W + 2 * B * L) * 4
    cost = pl.CostEstimate(flops=2 * B * macs,
                           transcendentals=B * (L + H * W),
                           bytes_accessed=in_bytes + out_bytes)

    kernel = functools.partial(_vae_fwd_kernel, img_size=H, latent_dim=L)
    recon, mu, lv = pl.pallas_call(
        kernel,
        out_shape=(jax.ShapeDtypeStruct((B, H, W, 1), jnp.float32),
                   jax.ShapeDtypeStruct((B, 1, L), jnp.float32),
                   jax.ShapeDtypeStruct((B, 1, L), jnp.float32)),
        grid=(B,),
        in_specs=[per_b((H, W, 1)), per_b((1, L))] + [full(w.shape) for w in weights],
        out_specs=(per_b((H, W, 1)), per_b((1, L)), per_b((1, L))),
        compiler_params=pltpu.CompilerParams(
            dimension_semantics=("parallel",),
            vmem_limit_bytes=_VMEM_LIMIT),
        cost_estimate=cost,
    )(x, eps3, *weights)
    return recon.reshape(B, 1, H, W), mu.reshape(B, L), lv.reshape(B, L)


# ------------------------------------------------------------------
# VAE_GAN parameters (PyTorch layouts) + one-time re-pack
# ------------------------------------------------------------------
def init_torch_params(key, latent_dim, img_size):
    """Random parameters in the PyTorch module's native layouts."""
    s = img_size // 8
    feat = 128 * s * s
    ks = jax.random.split(key, 18)

    def w(k, shape, scale=0.05):
        return scale * jax.random.normal(k, shape, jnp.float32)

    return {
        # encoder Conv2d: (OC, IC, KH, KW)
        "enc1_w": w(ks[0], (32, 1, 4, 4)),   "enc1_b": w(ks[9], (32,)),
        "enc2_w": w(ks[1], (64, 32, 4, 4)),  "enc2_b": w(ks[10], (64,)),
        "enc3_w": w(ks[2], (128, 64, 4, 4)), "enc3_b": w(ks[11], (128,)),
        # Linear: (out, in)
        "mu_w": w(ks[3], (latent_dim, feat)),     "mu_b": w(ks[12], (latent_dim,)),
        "lv_w": w(ks[4], (latent_dim, feat)),     "lv_b": w(ks[13], (latent_dim,)),
        "dec_in_w": w(ks[5], (feat, latent_dim)), "dec_in_b": w(ks[14], (feat,)),
        # decoder ConvTranspose2d: (IC, OC, KH, KW)
        "dec1_w": w(ks[6], (128, 64, 4, 4)), "dec1_b": w(ks[15], (64,)),
        "dec2_w": w(ks[7], (64, 32, 4, 4)),  "dec2_b": w(ks[16], (32,)),
        "dec3_w": w(ks[8], (32, 1, 4, 4)),   "dec3_b": w(ks[17], (1,)),
    }


def _pack_conv_w(w_pt):
    """PyTorch Conv2d weight (OC, IC, KH, KW) -> (KH*KW*IC, OC) im2col layout."""
    OC, IC, KH, KW = w_pt.shape
    return jnp.transpose(w_pt, (2, 3, 1, 0)).reshape(KH * KW * IC, OC)


def _pack_deconv_w9(w_pt):
    """PyTorch ConvTranspose2d(4,2,1) weight (IC, OC, 4, 4) -> (9*IC, 4*OC).

    Row t*IC+ic is 3x3-im2col tap t = ty*3+tx of the input; column p*OC+oc is the
    sub-pixel output phase p = 2*py+px. Taps a phase never reads stay zero."""
    w = np.asarray(w_pt, np.float32)
    IC, OC = w.shape[:2]
    kmap = {(0, 0): 3, (0, 1): 1, (1, 1): 2, (1, 2): 0}   # (phase_bit, tap) -> kernel idx
    out = np.zeros((9, IC, 4, OC), np.float32)
    for py in (0, 1):
        for px in (0, 1):
            p = 2 * py + px
            for ty in range(3):
                for tx in range(3):
                    if (py, ty) in kmap and (px, tx) in kmap:
                        out[ty * 3 + tx, :, p, :] = w[:, :, kmap[(py, ty)], kmap[(px, tx)]]
    return jnp.asarray(out.reshape(9 * IC, 4 * OC))


def prepare_params(tp, latent_dim, img_size):
    """One-time re-pack of PyTorch-layout weights into matmul-ready layouts."""
    s = img_size // 8
    C = 128
    feat = C * s * s
    L = latent_dim
    bf = lambda a: jnp.asarray(a, _BF16)
    row = lambda a: jnp.asarray(a, _F32).reshape(1, -1)

    # fc weights: permute feature axis from PyTorch's (c, h, w) flatten order to (h, w, c)
    mu_w = tp["mu_w"].reshape(L, C, s, s).transpose(2, 3, 1, 0).reshape(feat, L)
    lv_w = tp["lv_w"].reshape(L, C, s, s).transpose(2, 3, 1, 0).reshape(feat, L)
    dec_in_w = tp["dec_in_w"].reshape(C, s, s, L).transpose(3, 1, 2, 0).reshape(L, feat)
    dec_in_b = tp["dec_in_b"].reshape(C, s, s).transpose(1, 2, 0).reshape(feat)

    return {
        "e1w": bf(_pack_conv_w(tp["enc1_w"])), "e1b": row(tp["enc1_b"]),
        "e2w": bf(_pack_conv_w(tp["enc2_w"])), "e2b": row(tp["enc2_b"]),
        "e3w": bf(_pack_conv_w(tp["enc3_w"])), "e3b": row(tp["enc3_b"]),
        "hw": bf(jnp.concatenate([mu_w, lv_w], axis=1)),           # fc_mu | fc_logvar
        "hb": row(jnp.concatenate([tp["mu_b"], tp["lv_b"]])),
        "diw": bf(dec_in_w), "dib": row(dec_in_b),
        "d1w": bf(_pack_deconv_w9(tp["dec1_w"])), "d1b": row(jnp.tile(tp["dec1_b"], 4)),
        "d2w": bf(_pack_deconv_w9(tp["dec2_w"])), "d2b": row(jnp.tile(tp["dec2_b"], 4)),
        "d3w": bf(_pack_deconv_w9(tp["dec3_w"])), "d3b": row(jnp.tile(tp["dec3_b"], 4)),
    }


# ------------------------------------------------------------------
# Pure-XLA f32 reference (NCHW, PyTorch-layout params) for validation
# ------------------------------------------------------------------
def reference_forward(tp, x, eps):
    def conv(x, w, b, stride, pad):
        y = jax.lax.conv_general_dilated(
            x, w, (stride, stride), [(pad, pad), (pad, pad)],
            dimension_numbers=("NCHW", "OIHW", "NCHW"))
        return y + b[None, :, None, None]

    def deconv(x, w, b, stride, pad):
        n, ic, hh, ww = x.shape
        kh, kw = w.shape[2], w.shape[3]
        xd = jnp.zeros((n, ic, (hh - 1) * stride + 1, (ww - 1) * stride + 1),
                       x.dtype).at[:, :, ::stride, ::stride].set(x)
        w_conv = jnp.flip(w, (2, 3)).transpose(1, 0, 2, 3)
        y = jax.lax.conv_general_dilated(
            xd, w_conv, (1, 1),
            [(kh - 1 - pad, kh - 1 - pad), (kw - 1 - pad, kw - 1 - pad)],
            dimension_numbers=("NCHW", "OIHW", "NCHW"))
        return y + b[None, :, None, None]

    h = jax.nn.relu(conv(x, tp["enc1_w"], tp["enc1_b"], 2, 1))
    h = jax.nn.relu(conv(h, tp["enc2_w"], tp["enc2_b"], 2, 1))
    h = jax.nn.relu(conv(h, tp["enc3_w"], tp["enc3_b"], 2, 1))
    hf = h.reshape(h.shape[0], -1)
    mu = hf @ tp["mu_w"].T + tp["mu_b"]
    lv = hf @ tp["lv_w"].T + tp["lv_b"]
    z = mu + eps * jnp.exp(0.5 * lv)
    d = z @ tp["dec_in_w"].T + tp["dec_in_b"]
    d = d.reshape(d.shape[0], 128, h.shape[2], h.shape[3])
    d = jax.nn.relu(deconv(d, tp["dec1_w"], tp["dec1_b"], 2, 1))
    d = jax.nn.relu(deconv(d, tp["dec2_w"], tp["dec2_b"], 2, 1))
    recon = jax.nn.sigmoid(deconv(d, tp["dec3_w"], tp["dec3_b"], 2, 1))
    return recon, mu, lv


# ------------------------------------------------------------------
if __name__ == "__main__":
    latent_dim = 32
    img_size = 16
    batch = 2

    key = jax.random.PRNGKey(0)
    k_param, k_x, k_eps = jax.random.split(key, 3)

    torch_params = init_torch_params(k_param, latent_dim, img_size)
    params = prepare_params(torch_params, latent_dim, img_size)

    x = jax.random.uniform(k_x, (batch, 1, img_size, img_size), jnp.float32)
    # TODO(synk): torch.randn_like inside reparameterize() is module-internal RNG;
    # eps is passed in explicitly so the result can be checked against a fixed reference.
    eps = jax.random.normal(k_eps, (batch, latent_dim), jnp.float32)

    fwd = jax.jit(vae_gan_forward)
    recon_x, mu, logvar = fwd(params, x, eps)
    jax.block_until_ready((recon_x, mu, logvar))

    assert recon_x.shape == (batch, 1, img_size, img_size), recon_x.shape
    assert mu.shape == (batch, latent_dim), mu.shape
    assert logvar.shape == (batch, latent_dim), logvar.shape
    assert bool(jnp.all(jnp.isfinite(recon_x)))
    assert bool(jnp.all((recon_x >= 0.0) & (recon_x <= 1.0)))  # sigmoid output

    # End-to-end numerical check against a pure-XLA f32 reference
    # (bf16 MXU operands -> loose-but-meaningful tolerance).
    ref_recon, ref_mu, ref_lv = jax.jit(reference_forward)(torch_params, x, eps)
    assert float(jnp.max(jnp.abs(mu - ref_mu))) < 5e-2
    assert float(jnp.max(jnp.abs(logvar - ref_lv))) < 5e-2
    assert float(jnp.max(jnp.abs(recon_x - ref_recon))) < 5e-2

    print("KERNEL_OK")
</pallas_src>

<mosaic_0001>
module attributes {stable_mosaic.version = 11 : i64} {
  func.func @_vae_fwd_kernel(%arg0: i32, %arg1: memref<1x16x16x1xf32, #tpu.memory_space<vmem>>, %arg2: memref<1x1x32xf32, #tpu.memory_space<vmem>>, %arg3: memref<16x32xbf16, #tpu.memory_space<vmem>>, %arg4: memref<1x32xf32, #tpu.memory_space<vmem>>, %arg5: memref<512x64xbf16, #tpu.memory_space<vmem>>, %arg6: memref<1x64xf32, #tpu.memory_space<vmem>>, %arg7: memref<1024x128xbf16, #tpu.memory_space<vmem>>, %arg8: memref<1x128xf32, #tpu.memory_space<vmem>>, %arg9: memref<512x64xbf16, #tpu.memory_space<vmem>>, %arg10: memref<1x64xf32, #tpu.memory_space<vmem>>, %arg11: memref<32x512xbf16, #tpu.memory_space<vmem>>, %arg12: memref<1x512xf32, #tpu.memory_space<vmem>>, %arg13: memref<1152x256xbf16, #tpu.memory_space<vmem>>, %arg14: memref<1x256xf32, #tpu.memory_space<vmem>>, %arg15: memref<576x128xbf16, #tpu.memory_space<vmem>>, %arg16: memref<1x128xf32, #tpu.memory_space<vmem>>, %arg17: memref<288x4xbf16, #tpu.memory_space<vmem>>, %arg18: memref<1x4xf32, #tpu.memory_space<vmem>>, %arg19: memref<1x16x16x1xf32, #tpu.memory_space<vmem>>, %arg20: memref<1x1x32xf32, #tpu.memory_space<vmem>>, %arg21: memref<1x1x32xf32, #tpu.memory_space<vmem>>) attributes {dimension_semantics = [#tpu.dimension_semantics<parallel>], iteration_bounds = array<i64: 2>, scalar_prefetch = 0 : i64, scratch_operands = 0 : i64, tpu.core_type = #tpu.core_type<tc>, window_params = [{transform_indices = @transform_0, window_bounds = array<i64: 1, 16, 16, 1>}, {transform_indices = @transform_1, window_bounds = array<i64: 1, 1, 32>}, {pipeline_mode = #tpu.pipeline_mode<synchronous>, transform_indices = @transform_2, window_bounds = array<i64: 16, 32>}, {pipeline_mode = #tpu.pipeline_mode<synchronous>, transform_indices = @transform_3, window_bounds = array<i64: 1, 32>}, {pipeline_mode = #tpu.pipeline_mode<synchronous>, transform_indices = @transform_4, window_bounds = array<i64: 512, 64>}, {pipeline_mode = #tpu.pipeline_mode<synchronous>, transform_indices = @transform_5, window_bounds = array<i64: 1, 64>}, {pipeline_mode = #tpu.pipeline_mode<synchronous>, transform_indices = @transform_6, window_bounds = array<i64: 1024, 128>}, {pipeline_mode = #tpu.pipeline_mode<synchronous>, transform_indices = @transform_7, window_bounds = array<i64: 1, 128>}, {pipeline_mode = #tpu.pipeline_mode<synchronous>, transform_indices = @transform_8, window_bounds = array<i64: 512, 64>}, {pipeline_mode = #tpu.pipeline_mode<synchronous>, transform_indices = @transform_9, window_bounds = array<i64: 1, 64>}, {pipeline_mode = #tpu.pipeline_mode<synchronous>, transform_indices = @transform_10, window_bounds = array<i64: 32, 512>}, {pipeline_mode = #tpu.pipeline_mode<synchronous>, transform_indices = @transform_11, window_bounds = array<i64: 1, 512>}, {pipeline_mode = #tpu.pipeline_mode<synchronous>, transform_indices = @transform_12, window_bounds = array<i64: 1152, 256>}, {pipeline_mode = #tpu.pipeline_mode<synchronous>, transform_indices = @transform_13, window_bounds = array<i64: 1, 256>}, {pipeline_mode = #tpu.pipeline_mode<synchronous>, transform_indices = @transform_14, window_bounds = array<i64: 576, 128>}, {pipeline_mode = #tpu.pipeline_mode<synchronous>, transform_indices = @transform_15, window_bounds = array<i64: 1, 128>}, {pipeline_mode = #tpu.pipeline_mode<synchronous>, transform_indices = @transform_16, window_bounds = array<i64: 288, 4>}, {pipeline_mode = #tpu.pipeline_mode<synchronous>, transform_indices = @transform_17, window_bounds = array<i64: 1, 4>}, {transform_indices = @transform_18, window_bounds = array<i64: 1, 16, 16, 1>}, {transform_indices = @transform_19, window_bounds = array<i64: 1, 1, 32>}, {transform_indices = @transform_20, window_bounds = array<i64: 1, 1, 32>}]} {
    %c0 = arith.constant 0 : index
    %c0_0 = arith.constant 0 : index
    %c0_1 = arith.constant 0 : index
    %c0_2 = arith.constant 0 : index
    %0 = vector.load %arg1[%c0, %c0_0, %c0_1, %c0_2] : memref<1x16x16x1xf32, #tpu.memory_space<vmem>>, vector<1x16x16x1xf32>
    %1 = vector.shape_cast %0 : vector<1x16x16x1xf32> to vector<16x16x1xf32>
    %cst = arith.constant 0.000000e+00 : f32
    %2 = vector.broadcast %cst : f32 to vector<1x16x1xf32>
    %3 = tpu.concatenate %2, %1, %2 in 0 : vector<1x16x1xf32>, vector<16x16x1xf32>, vector<1x16x1xf32> -> vector<18x16x1xf32>
    %cst_3 = arith.constant 0.000000e+00 : f32
    %4 = vector.broadcast %cst_3 : f32 to vector<18x1x1xf32>
    %5 = tpu.concatenate %4, %3, %4 in 1 : vector<18x1x1xf32>, vector<18x16x1xf32>, vector<18x1x1xf32> -> vector<18x18x1xf32>
    %6 = vector.extract_strided_slice %5 {offsets = [0, 0, 0], sizes = [16, 18, 1], strides = [1, 1, 1]} : vector<18x18x1xf32> to vector<16x18x1xf32>
    %7 = vector.shape_cast %6 : vector<16x18x1xf32> to vector<8x2x18x1xf32>
    %8 = vector.extract_strided_slice %5 {offsets = [2, 0, 0], sizes = [16, 18, 1], strides = [1, 1, 1]} : vector<18x18x1xf32> to vector<16x18x1xf32>
    %9 = vector.shape_cast %8 : vector<16x18x1xf32> to vector<8x2x18x1xf32>
    %10 = vector.extract_strided_slice %7 {offsets = [0, 0, 0, 0], sizes = [8, 1, 18, 1], strides = [1, 1, 1, 1]} : vector<8x2x18x1xf32> to vector<8x1x18x1xf32>
    %11 = vector.shape_cast %10 : vector<8x1x18x1xf32> to vector<8x18x1xf32>
    %12 = vector.extract_strided_slice %11 {offsets = [0, 0, 0], sizes = [8, 16, 1], strides = [1, 1, 1]} : vector<8x18x1xf32> to vector<8x16x1xf32>
    %13 = vector.shape_cast %12 : vector<8x16x1xf32> to vector<8x8x2x1xf32>
    %14 = vector.extract_strided_slice %11 {offsets = [0, 2, 0], sizes = [8, 16, 1], strides = [1, 1, 1]} : vector<8x18x1xf32> to vector<8x16x1xf32>
    %15 = vector.shape_cast %14 : vector<8x16x1xf32> to vector<8x8x2x1xf32>
    %16 = vector.extract_strided_slice %13 {offsets = [0, 0, 0, 0], sizes = [8, 8, 1, 1], strides = [1, 1, 1, 1]} : vector<8x8x2x1xf32> to vector<8x8x1x1xf32>
    %17 = vector.shape_cast %16 : vector<8x8x1x1xf32> to vector<8x8x1xf32>
    %18 = vector.extract_strided_slice %13 {offsets = [0, 0, 1, 0], sizes = [8, 8, 1, 1], strides = [1, 1, 1, 1]} : vector<8x8x2x1xf32> to vector<8x8x1x1xf32>
    %19 = vector.shape_cast %18 : vector<8x8x1x1xf32> to vector<8x8x1xf32>
    %20 = vector.extract_strided_slice %15 {offsets = [0, 0, 0, 0], sizes = [8, 8, 1, 1], strides = [1, 1, 1, 1]} : vector<8x8x2x1xf32> to vector<8x8x1x1xf32>
    %21 = vector.shape_cast %20 : vector<8x8x1x1xf32> to vector<8x8x1xf32>
    %22 = vector.extract_strided_slice %15 {offsets = [0, 0, 1, 0], sizes = [8, 8, 1, 1], strides = [1, 1, 1, 1]} : vector<8x8x2x1xf32> to vector<8x8x1x1xf32>
    %23 = vector.shape_cast %22 : vector<8x8x1x1xf32> to vector<8x8x1xf32>
    %24 = vector.extract_strided_slice %7 {offsets = [0, 1, 0, 0], sizes = [8, 1, 18, 1], strides = [1, 1, 1, 1]} : vector<8x2x18x1xf32> to vector<8x1x18x1xf32>
    %25 = vector.shape_cast %24 : vector<8x1x18x1xf32> to vector<8x18x1xf32>
    %26 = vector.extract_strided_slice %25 {offsets = [0, 0, 0], sizes = [8, 16, 1], strides = [1, 1, 1]} : vector<8x18x1xf32> to vector<8x16x1xf32>
    %27 = vector.shape_cast %26 : vector<8x16x1xf32> to vector<8x8x2x1xf32>
    %28 = vector.extract_strided_slice %25 {offsets = [0, 2, 0], sizes = [8, 16, 1], strides = [1, 1, 1]} : vector<8x18x1xf32> to vector<8x16x1xf32>
    %29 = vector.shape_cast %28 : vector<8x16x1xf32> to vector<8x8x2x1xf32>
    %30 = vector.extract_strided_slice %27 {offsets = [0, 0, 0, 0], sizes = [8, 8, 1, 1], strides = [1, 1, 1, 1]} : vector<8x8x2x1xf32> to vector<8x8x1x1xf32>
    %31 = vector.shape_cast %30 : vector<8x8x1x1xf32> to vector<8x8x1xf32>
    %32 = vector.extract_strided_slice %27 {offsets = [0, 0, 1, 0], sizes = [8, 8, 1, 1], strides = [1, 1, 1, 1]} : vector<8x8x2x1xf32> to vector<8x8x1x1xf32>
    %33 = vector.shape_cast %32 : vector<8x8x1x1xf32> to vector<8x8x1xf32>
    %34 = vector.extract_strided_slice %29 {offsets = [0, 0, 0, 0], sizes = [8, 8, 1, 1], strides = [1, 1, 1, 1]} : vector<8x8x2x1xf32> to vector<8x8x1x1xf32>
    %35 = vector.shape_cast %34 : vector<8x8x1x1xf32> to vector<8x8x1xf32>
    %36 = vector.extract_strided_slice %29 {offsets = [0, 0, 1, 0], sizes = [8, 8, 1, 1], strides = [1, 1, 1, 1]} : vector<8x8x2x1xf32> to vector<8x8x1x1xf32>
    %37 = vector.shape_cast %36 : vector<8x8x1x1xf32> to vector<8x8x1xf32>
    %38 = vector.extract_strided_slice %9 {offsets = [0, 0, 0, 0], sizes = [8, 1, 18, 1], strides = [1, 1, 1, 1]} : vector<8x2x18x1xf32> to vector<8x1x18x1xf32>
    %39 = vector.shape_cast %38 : vector<8x1x18x1xf32> to vector<8x18x1xf32>
    %40 = vector.extract_strided_slice %39 {offsets = [0, 0, 0], sizes = [8, 16, 1], strides = [1, 1, 1]} : vector<8x18x1xf32> to vector<8x16x1xf32>
    %41 = vector.shape_cast %40 : vector<8x16x1xf32> to vector<8x8x2x1xf32>
    %42 = vector.extract_strided_slice %39 {offsets = [0, 2, 0], sizes = [8, 16, 1], strides = [1, 1, 1]} : vector<8x18x1xf32> to vector<8x16x1xf32>
    %43 = vector.shape_cast %42 : vector<8x16x1xf32> to vector<8x8x2x1xf32>
    %44 = vector.extract_strided_slice %41 {offsets = [0, 0, 0, 0], sizes = [8, 8, 1, 1], strides = [1, 1, 1, 1]} : vector<8x8x2x1xf32> to vector<8x8x1x1xf32>
    %45 = vector.shape_cast %44 : vector<8x8x1x1xf32> to vector<8x8x1xf32>
    %46 = vector.extract_strided_slice %41 {offsets = [0, 0, 1, 0], sizes = [8, 8, 1, 1], strides = [1, 1, 1, 1]} : vector<8x8x2x1xf32> to vector<8x8x1x1xf32>
    %47 = vector.shape_cast %46 : vector<8x8x1x1xf32> to vector<8x8x1xf32>
    %48 = vector.extract_strided_slice %43 {offsets = [0, 0, 0, 0], sizes = [8, 8, 1, 1], strides = [1, 1, 1, 1]} : vector<8x8x2x1xf32> to vector<8x8x1x1xf32>
    %49 = vector.shape_cast %48 : vector<8x8x1x1xf32> to vector<8x8x1xf32>
    %50 = vector.extract_strided_slice %43 {offsets = [0, 0, 1, 0], sizes = [8, 8, 1, 1], strides = [1, 1, 1, 1]} : vector<8x8x2x1xf32> to vector<8x8x1x1xf32>
    %51 = vector.shape_cast %50 : vector<8x8x1x1xf32> to vector<8x8x1xf32>
    %52 = vector.extract_strided_slice %9 {offsets = [0, 1, 0, 0], sizes = [8, 1, 18, 1], strides = [1, 1, 1, 1]} : vector<8x2x18x1xf32> to vector<8x1x18x1xf32>
    %53 = vector.shape_cast %52 : vector<8x1x18x1xf32> to vector<8x18x1xf32>
    %54 = vector.extract_strided_slice %53 {offsets = [0, 0, 0], sizes = [8, 16, 1], strides = [1, 1, 1]} : vector<8x18x1xf32> to vector<8x16x1xf32>
    %55 = vector.shape_cast %54 : vector<8x16x1xf32> to vector<8x8x2x1xf32>
    %56 = vector.extract_strided_slice %53 {offsets = [0, 2, 0], sizes = [8, 16, 1], strides = [1, 1, 1]} : vector<8x18x1xf32> to vector<8x16x1xf32>
    %57 = vector.shape_cast %56 : vector<8x16x1xf32> to vector<8x8x2x1xf32>
    %58 = vector.extract_strided_slice %55 {offsets = [0, 0, 0, 0], sizes = [8, 8, 1, 1], strides = [1, 1, 1, 1]} : vector<8x8x2x1xf32> to vector<8x8x1x1xf32>
    %59 = vector.shape_cast %58 : vector<8x8x1x1xf32> to vector<8x8x1xf32>
    %60 = vector.extract_strided_slice %55 {offsets = [0, 0, 1, 0], sizes = [8, 8, 1, 1], strides = [1, 1, 1, 1]} : vector<8x8x2x1xf32> to vector<8x8x1x1xf32>
    %61 = vector.shape_cast %60 : vector<8x8x1x1xf32> to vector<8x8x1xf32>
    %62 = vector.extract_strided_slice %57 {offsets = [0, 0, 0, 0], sizes = [8, 8, 1, 1], strides = [1, 1, 1, 1]} : vector<8x8x2x1xf32> to vector<8x8x1x1xf32>
    %63 = vector.shape_cast %62 : vector<8x8x1x1xf32> to vector<8x8x1xf32>
    %64 = vector.extract_strided_slice %57 {offsets = [0, 0, 1, 0], sizes = [8, 8, 1, 1], strides = [1, 1, 1, 1]} : vector<8x8x2x1xf32> to vector<8x8x1x1xf32>
    %65 = vector.shape_cast %64 : vector<8x8x1x1xf32> to vector<8x8x1xf32>
    %66 = tpu.concatenate %17, %19, %21, %23, %31, %33, %35, %37, %45, %47, %49, %51, %59, %61, %63, %65 in 2 : vector<8x8x1xf32>, vector<8x8x1xf32>, vector<8x8x1xf32>, vector<8x8x1xf32>, vector<8x8x1xf32>, vector<8x8x1xf32>, vector<8x8x1xf32>, vector<8x8x1xf32>, vector<8x8x1xf32>, vector<8x8x1xf32>, vector<8x8x1xf32>, vector<8x8x1xf32>, vector<8x8x1xf32>, vector<8x8x1xf32>, vector<8x8x1xf32>, vector<8x8x1xf32> -> vector<8x8x16xf32>
    %67 = vector.shape_cast %66 : vector<8x8x16xf32> to vector<64x16xf32>
    %68 = arith.truncf %67 : vector<64x16xf32> to vector<64x16xbf16>
    %c0_4 = arith.constant 0 : index
    %c0_5 = arith.constant 0 : index
    %69 = vector.load %arg3[%c0_4, %c0_5] : memref<16x32xbf16, #tpu.memory_space<vmem>>, vector<16x32xbf16>
    %cst_6 = arith.constant dense<0.000000e+00> : vector<64x32xf32>
    %70 = tpu.matmul %68, %69, %cst_6 {dimension_numbers = #tpu.dot_dimension_numbers<[1], [0], [0], [1], [0, 0, 1, 1], [], []>} : vector<64x16xbf16>, vector<16x32xbf16>, vector<64x32xf32> -> vector<64x32xf32>
    %c0_7 = arith.constant 0 : index
    %c0_8 = arith.constant 0 : index
    %71 = vector.load %arg4[%c0_7, %c0_8] : memref<1x32xf32, #tpu.memory_space<vmem>>, vector<1x32xf32>
    %72 = vector.broadcast %71 : vector<1x32xf32> to vector<64x32xf32>
    %73 = arith.addf %70, %72 : vector<64x32xf32>
    %cst_9 = arith.constant 0.000000e+00 : f32
    %74 = vector.broadcast %cst_9 : f32 to vector<64x32xf32>
    %75 = arith.maximumf %73, %74 : vector<64x32xf32>
    %76 = vector.shape_cast %75 : vector<64x32xf32> to vector<8x8x32xf32>
    %cst_10 = arith.constant 0.000000e+00 : f32
    %77 = vector.broadcast %cst_10 : f32 to vector<1x8x32xf32>
    %78 = tpu.concatenate %77, %76, %77 in 0 : vector<1x8x32xf32>, vector<8x8x32xf32>, vector<1x8x32xf32> -> vector<10x8x32xf32>
    %cst_11 = arith.constant 0.000000e+00 : f32
    %79 = vector.broadcast %cst_11 : f32 to vector<10x1x32xf32>
    %80 = tpu.concatenate %79, %78, %79 in 1 : vector<10x1x32xf32>, vector<10x8x32xf32>, vector<10x1x32xf32> -> vector<10x10x32xf32>
    %81 = vector.extract_strided_slice %80 {offsets = [0, 0, 0], sizes = [8, 10, 32], strides = [1, 1, 1]} : vector<10x10x32xf32> to vector<8x10x32xf32>
    %82 = vector.shape_cast %81 : vector<8x10x32xf32> to vector<4x2x10x32xf32>
    %83 = vector.extract_strided_slice %80 {offsets = [2, 0, 0], sizes = [8, 10, 32], strides = [1, 1, 1]} : vector<10x10x32xf32> to vector<8x10x32xf32>
    %84 = vector.shape_cast %83 : vector<8x10x32xf32> to vector<4x2x10x32xf32>
    %85 = vector.extract_strided_slice %82 {offsets = [0, 0, 0, 0], sizes = [4, 1, 10, 32], strides = [1, 1, 1, 1]} : vector<4x2x10x32xf32> to vector<4x1x10x32xf32>
    %86 = vector.shape_cast %85 : vector<4x1x10x32xf32> to vector<4x10x32xf32>
    %87 = vector.extract_strided_slice %86 {offsets = [0, 0, 0], sizes = [4, 8, 32], strides = [1, 1, 1]} : vector<4x10x32xf32> to vector<4x8x32xf32>
    %88 = vector.shape_cast %87 : vector<4x8x32xf32> to vector<4x4x2x32xf32>
    %89 = vector.extract_strided_slice %86 {offsets = [0, 2, 0], sizes = [4, 8, 32], strides = [1, 1, 1]} : vector<4x10x32xf32> to vector<4x8x32xf32>
    %90 = vector.shape_cast %89 : vector<4x8x32xf32> to vector<4x4x2x32xf32>
    %91 = vector.extract_strided_slice %88 {offsets = [0, 0, 0, 0], sizes = [4, 4, 1, 32], strides = [1, 1, 1, 1]} : vector<4x4x2x32xf32> to vector<4x4x1x32xf32>
    %92 = vector.shape_cast %91 : vector<4x4x1x32xf32> to vector<4x4x32xf32>
    %93 = vector.extract_strided_slice %88 {offsets = [0, 0, 1, 0], sizes = [4, 4, 1, 32], strides = [1, 1, 1, 1]} : vector<4x4x2x32xf32> to vector<4x4x1x32xf32>
    %94 = vector.shape_cast %93 : vector<4x4x1x32xf32> to vector<4x4x32xf32>
    %95 = vector.extract_strided_slice %90 {offsets = [0, 0, 0, 0], sizes = [4, 4, 1, 32], strides = [1, 1, 1, 1]} : vector<4x4x2x32xf32> to vector<4x4x1x32xf32>
    %96 = vector.shape_cast %95 : vector<4x4x1x32xf32> to vector<4x4x32xf32>
    %97 = vector.extract_strided_slice %90 {offsets = [0, 0, 1, 0], sizes = [4, 4, 1, 32], strides = [1, 1, 1, 1]} : vector<4x4x2x32xf32> to vector<4x4x1x32xf32>
    %98 = vector.shape_cast %97 : vector<4x4x1x32xf32> to vector<4x4x32xf32>
    %99 = vector.extract_strided_slice %82 {offsets = [0, 1, 0, 0], sizes = [4, 1, 10, 32], strides = [1, 1, 1, 1]} : vector<4x2x10x32xf32> to vector<4x1x10x32xf32>
    %100 = vector.shape_cast %99 : vector<4x1x10x32xf32> to vector<4x10x32xf32>
    %101 = vector.extract_strided_slice %100 {offsets = [0, 0, 0], sizes = [4, 8, 32], strides = [1, 1, 1]} : vector<4x10x32xf32> to vector<4x8x32xf32>
    %102 = vector.shape_cast %101 : vector<4x8x32xf32> to vector<4x4x2x32xf32>
    %103 = vector.extract_strided_slice %100 {offsets = [0, 2, 0], sizes = [4, 8, 32], strides = [1, 1, 1]} : vector<4x10x32xf32> to vector<4x8x32xf32>
    %104 = vector.shape_cast %103 : vector<4x8x32xf32> to vector<4x4x2x32xf32>
    %105 = vector.extract_strided_slice %102 {offsets = [0, 0, 0, 0], sizes = [4, 4, 1, 32], strides = [1, 1, 1, 1]} : vector<4x4x2x32xf32> to vector<4x4x1x32xf32>
    %106 = vector.shape_cast %105 : vector<4x4x1x32xf32> to vector<4x4x32xf32>
    %107 = vector.extract_strided_slice %102 {offsets = [0, 0, 1, 0], sizes = [4, 4, 1, 32], strides = [1, 1, 1, 1]} : vector<4x4x2x32xf32> to vector<4x4x1x32xf32>
    %108 = vector.shape_cast %107 : vector<4x4x1x32xf32> to vector<4x4x32xf32>
    %109 = vector.extract_strided_slice %104 {offsets = [0, 0, 0, 0], sizes = [4, 4, 1, 32], strides = [1, 1, 1, 1]} : vector<4x4x2x32xf32> to vector<4x4x1x32xf32>
    %110 = vector.shape_cast %109 : vector<4x4x1x32xf32> to vector<4x4x32xf32>
    %111 = vector.extract_strided_slice %104 {offsets = [0, 0, 1, 0], sizes = [4, 4, 1, 32], strides = [1, 1, 1, 1]} : vector<4x4x2x32xf32> to vector<4x4x1x32xf32>
    %112 = vector.shape_cast %111 : vector<4x4x1x32xf32> to vector<4x4x32xf32>
    %113 = vector.extract_strided_slice %84 {offsets = [0, 0, 0, 0], sizes = [4, 1, 10, 32], strides = [1, 1, 1, 1]} : vector<4x2x10x32xf32> to vector<4x1x10x32xf32>
    %114 = vector.shape_cast %113 : vector<4x1x10x32xf32> to vector<4x10x32xf32>
    %115 = vector.extract_strided_slice %114 {offsets = [0, 0, 0], sizes = [4, 8, 32], strides = [1, 1, 1]} : vector<4x10x32xf32> to vector<4x8x32xf32>
    %116 = vector.shape_cast %115 : vector<4x8x32xf32> to vector<4x4x2x32xf32>
    %117 = vector.extract_strided_slice %114 {offsets = [0, 2, 0], sizes = [4, 8, 32], strides = [1, 1, 1]} : vector<4x10x32xf32> to vector<4x8x32xf32>
    %118 = vector.shape_cast %117 : vector<4x8x32xf32> to vector<4x4x2x32xf32>
    %119 = vector.extract_strided_slice %116 {offsets = [0, 0, 0, 0], sizes = [4, 4, 1, 32], strides = [1, 1, 1, 1]} : vector<4x4x2x32xf32> to vector<4x4x1x32xf32>
    %120 = vector.shape_cast %119 : vector<4x4x1x32xf32> to vector<4x4x32xf32>
    %121 = vector.extract_strided_slice %116 {offsets = [0, 0, 1, 0], sizes = [4, 4, 1, 32], strides = [1, 1, 1, 1]} : vector<4x4x2x32xf32> to vector<4x4x1x32xf32>
    %122 = vector.shape_cast %121 : vector<4x4x1x32xf32> to vector<4x4x32xf32>
    %123 = vector.extract_strided_slice %118 {offsets = [0, 0, 0, 0], sizes = [4, 4, 1, 32], strides = [1, 1, 1, 1]} : vector<4x4x2x32xf32> to vector<4x4x1x32xf32>
    %124 = vector.shape_cast %123 : vector<4x4x1x32xf32> to vector<4x4x32xf32>
    %125 = vector.extract_strided_slice %118 {offsets = [0, 0, 1, 0], sizes = [4, 4, 1, 32], strides = [1, 1, 1, 1]} : vector<4x4x2x32xf32> to vector<4x4x1x32xf32>
    %126 = vector.shape_cast %125 : vector<4x4x1x32xf32> to vector<4x4x32xf32>
    %127 = vector.extract_strided_slice %84 {offsets = [0, 1, 0, 0], sizes = [4, 1, 10, 32], strides = [1, 1, 1, 1]} : vector<4x2x10x32xf32> to vector<4x1x10x32xf32>
    %128 = vector.shape_cast %127 : vector<4x1x10x32xf32> to vector<4x10x32xf32>
    %129 = vector.extract_strided_slice %128 {offsets = [0, 0, 0], sizes = [4, 8, 32], strides = [1, 1, 1]} : vector<4x10x32xf32> to vector<4x8x32xf32>
    %130 = vector.shape_cast %129 : vector<4x8x32xf32> to vector<4x4x2x32xf32>
    %131 = vector.extract_strided_slice %128 {offsets = [0, 2, 0], sizes = [4, 8, 32], strides = [1, 1, 1]} : vector<4x10x32xf32> to vector<4x8x32xf32>
    %132 = vector.shape_cast %131 : vector<4x8x32xf32> to vector<4x4x2x32xf32>
    %133 = vector.extract_strided_slice %130 {offsets = [0, 0, 0, 0], sizes = [4, 4, 1, 32], strides = [1, 1, 1, 1]} : vector<4x4x2x32xf32> to vector<4x4x1x32xf32>
    %134 = vector.shape_cast %133 : vector<4x4x1x32xf32> to vector<4x4x32xf32>
    %135 = vector.extract_strided_slice %130 {offsets = [0, 0, 1, 0], sizes = [4, 4, 1, 32], strides = [1, 1, 1, 1]} : vector<4x4x2x32xf32> to vector<4x4x1x32xf32>
    %136 = vector.shape_cast %135 : vector<4x4x1x32xf32> to vector<4x4x32xf32>
    %137 = vector.extract_strided_slice %132 {offsets = [0, 0, 0, 0], sizes = [4, 4, 1, 32], strides = [1, 1, 1, 1]} : vector<4x4x2x32xf32> to vector<4x4x1x32xf32>
    %138 = vector.shape_cast %137 : vector<4x4x1x32xf32> to vector<4x4x32xf32>
    %139 = vector.extract_strided_slice %132 {offsets = [0, 0, 1, 0], sizes = [4, 4, 1, 32], strides = [1, 1, 1, 1]} : vector<4x4x2x32xf32> to vector<4x4x1x32xf32>
    %140 = vector.shape_cast %139 : vector<4x4x1x32xf32> to vector<4x4x32xf32>
    %141 = tpu.concatenate %92, %94, %96, %98, %106, %108, %110, %112, %120, %122, %124, %126, %134, %136, %138, %140 in 2 : vector<4x4x32xf32>, vector<4x4x32xf32>, vector<4x4x32xf32>, vector<4x4x32xf32>, vector<4x4x32xf32>, vector<4x4x32xf32>, vector<4x4x32xf32>, vector<4x4x32xf32>, vector<4x4x32xf32>, vector<4x4x32xf32>, vector<4x4x32xf32>, vector<4x4x32xf32>, vector<4x4x32xf32>, vector<4x4x32xf32>, vector<4x4x32xf32>, vector<4x4x32xf32> -> vector<4x4x512xf32>
    %142 = vector.shape_cast %141 : vector<4x4x512xf32> to vector<16x512xf32>
    %143 = arith.truncf %142 : vector<16x512xf32> to vector<16x512xbf16>
    %c0_12 = arith.constant 0 : index
    %c0_13 = arith.constant 0 : index
    %144 = vector.load %arg5[%c0_12, %c0_13] : memref<512x64xbf16, #tpu.memory_space<vmem>>, vector<512x64xbf16>
    %cst_14 = arith.constant dense<0.000000e+00> : vector<16x64xf32>
    %145 = tpu.matmul %143, %144, %cst_14 {dimension_numbers = #tpu.dot_dimension_numbers<[1], [0], [0], [1], [0, 0, 1, 1], [], []>} : vector<16x512xbf16>, vector<512x64xbf16>, vector<16x64xf32> -> vector<16x64xf32>
    %c0_15 = arith.constant 0 : index
    %c0_16 = arith.constant 0 : index
    %146 = vector.load %arg6[%c0_15, %c0_16] : memref<1x64xf32, #tpu.memory_space<vmem>>, vector<1x64xf32>
    %147 = vector.broadcast %146 : vector<1x64xf32> to vector<16x64xf32>
    %148 = arith.addf %145, %147 : vector<16x64xf32>
    %cst_17 = arith.constant 0.000000e+00 : f32
    %149 = vector.broadcast %cst_17 : f32 to vector<16x64xf32>
    %150 = arith.maximumf %148, %149 : vector<16x64xf32>
    %151 = vector.shape_cast %150 : vector<16x64xf32> to vector<4x4x64xf32>
    %cst_18 = arith.constant 0.000000e+00 : f32
    %152 = vector.broadcast %cst_18 : f32 to vector<1x4x64xf32>
    %153 = tpu.concatenate %152, %151, %152 in 0 : vector<1x4x64xf32>, vector<4x4x64xf32>, vector<1x4x64xf32> -> vector<6x4x64xf32>
    %cst_19 = arith.constant 0.000000e+00 : f32
    %154 = vector.broadcast %cst_19 : f32 to vector<6x1x64xf32>
    %155 = tpu.concatenate %154, %153, %154 in 1 : vector<6x1x64xf32>, vector<6x4x64xf32>, vector<6x1x64xf32> -> vector<6x6x64xf32>
    %156 = vector.extract_strided_slice %155 {offsets = [0, 0, 0], sizes = [4, 6, 64], strides = [1, 1, 1]} : vector<6x6x64xf32> to vector<4x6x64xf32>
    %157 = vector.shape_cast %156 : vector<4x6x64xf32> to vector<2x2x6x64xf32>
    %158 = vector.extract_strided_slice %155 {offsets = [2, 0, 0], sizes = [4, 6, 64], strides = [1, 1, 1]} : vector<6x6x64xf32> to vector<4x6x64xf32>
    %159 = vector.shape_cast %158 : vector<4x6x64xf32> to vector<2x2x6x64xf32>
    %160 = vector.extract_strided_slice %157 {offsets = [0, 0, 0, 0], sizes = [2, 1, 6, 64], strides = [1, 1, 1, 1]} : vector<2x2x6x64xf32> to vector<2x1x6x64xf32>
    %161 = vector.shape_cast %160 : vector<2x1x6x64xf32> to vector<2x6x64xf32>
    %162 = vector.extract_strided_slice %161 {offsets = [0, 0, 0], sizes = [2, 4, 64], strides = [1, 1, 1]} : vector<2x6x64xf32> to vector<2x4x64xf32>
    %163 = vector.shape_cast %162 : vector<2x4x64xf32> to vector<2x2x2x64xf32>
    %164 = vector.extract_strided_slice %161 {offsets = [0, 2, 0], sizes = [2, 4, 64], strides = [1, 1, 1]} : vector<2x6x64xf32> to vector<2x4x64xf32>
    %165 = vector.shape_cast %164 : vector<2x4x64xf32> to vector<2x2x2x64xf32>
    %166 = vector.extract_strided_slice %163 {offsets = [0, 0, 0, 0], sizes = [2, 2, 1, 64], strides = [1, 1, 1, 1]} : vector<2x2x2x64xf32> to vector<2x2x1x64xf32>
    %167 = vector.shape_cast %166 : vector<2x2x1x64xf32> to vector<2x2x64xf32>
    %168 = vector.extract_strided_slice %163 {offsets = [0, 0, 1, 0], sizes = [2, 2, 1, 64], strides = [1, 1, 1, 1]} : vector<2x2x2x64xf32> to vector<2x2x1x64xf32>
    %169 = vector.shape_cast %168 : vector<2x2x1x64xf32> to vector<2x2x64xf32>
    %170 = vector.extract_strided_slice %165 {offsets = [0, 0, 0, 0], sizes = [2, 2, 1, 64], strides = [1, 1, 1, 1]} : vector<2x2x2x64xf32> to vector<2x2x1x64xf32>
    %171 = vector.shape_cast %170 : vector<2x2x1x64xf32> to vector<2x2x64xf32>
    %172 = vector.extract_strided_slice %165 {offsets = [0, 0, 1, 0], sizes = [2, 2, 1, 64], strides = [1, 1, 1, 1]} : vector<2x2x2x64xf32> to vector<2x2x1x64xf32>
    %173 = vector.shape_cast %172 : vector<2x2x1x64xf32> to vector<2x2x64xf32>
    %174 = vector.extract_strided_slice %157 {offsets = [0, 1, 0, 0], sizes = [2, 1, 6, 64], strides = [1, 1, 1, 1]} : vector<2x2x6x64xf32> to vector<2x1x6x64xf32>
    %175 = vector.shape_cast %174 : vector<2x1x6x64xf32> to vector<2x6x64xf32>
    %176 = vector.extract_strided_slice %175 {offsets = [0, 0, 0], sizes = [2, 4, 64], strides = [1, 1, 1]} : vector<2x6x64xf32> to vector<2x4x64xf32>
    %177 = vector.shape_cast %176 : vector<2x4x64xf32> to vector<2x2x2x64xf32>
    %178 = vector.extract_strided_slice %175 {offsets = [0, 2, 0], sizes = [2, 4, 64], strides = [1, 1, 1]} : vector<2x6x64xf32> to vector<2x4x64xf32>
    %179 = vector.shape_cast %178 : vector<2x4x64xf32> to vector<2x2x2x64xf32>
    %180 = vector.extract_strided_slice %177 {offsets = [0, 0, 0, 0], sizes = [2, 2, 1, 64], strides = [1, 1, 1, 1]} : vector<2x2x2x64xf32> to vector<2x2x1x64xf32>
    %181 = vector.shape_cast %180 : vector<2x2x1x64xf32> to vector<2x2x64xf32>
    %182 = vector.extract_strided_slice %177 {offsets = [0, 0, 1, 0], sizes = [2, 2, 1, 64], strides = [1, 1, 1, 1]} : vector<2x2x2x64xf32> to vector<2x2x1x64xf32>
    %183 = vector.shape_cast %182 : vector<2x2x1x64xf32> to vector<2x2x64xf32>
    %184 = vector.extract_strided_slice %179 {offsets = [0, 0, 0, 0], sizes = [2, 2, 1, 64], strides = [1, 1, 1, 1]} : vector<2x2x2x64xf32> to vector<2x2x1x64xf32>
    %185 = vector.shape_cast %184 : vector<2x2x1x64xf32> to vector<2x2x64xf32>
    %186 = vector.extract_strided_slice %179 {offsets = [0, 0, 1, 0], sizes = [2, 2, 1, 64], strides = [1, 1, 1, 1]} : vector<2x2x2x64xf32> to vector<2x2x1x64xf32>
    %187 = vector.shape_cast %186 : vector<2x2x1x64xf32> to vector<2x2x64xf32>
    %188 = vector.extract_strided_slice %159 {offsets = [0, 0, 0, 0], sizes = [2, 1, 6, 64], strides = [1, 1, 1, 1]} : vector<2x2x6x64xf32> to vector<2x1x6x64xf32>
    %189 = vector.shape_cast %188 : vector<2x1x6x64xf32> to vector<2x6x64xf32>
    %190 = vector.extract_strided_slice %189 {offsets = [0, 0, 0], sizes = [2, 4, 64], strides = [1, 1, 1]} : vector<2x6x64xf32> to vector<2x4x64xf32>
    %191 = vector.shape_cast %190 : vector<2x4x64xf32> to vector<2x2x2x64xf32>
    %192 = vector.extract_strided_slice %189 {offsets = [0, 2, 0], sizes = [2, 4, 64], strides = [1, 1, 1]} : vector<2x6x64xf32> to vector<2x4x64xf32>
    %193 = vector.shape_cast %192 : vector<2x4x64xf32> to vector<2x2x2x64xf32>
    %194 = vector.extract_strided_slice %191 {offsets = [0, 0, 0, 0], sizes = [2, 2, 1, 64], strides = [1, 1, 1, 1]} : vector<2x2x2x64xf32> to vector<2x2x1x64xf32>
    %195 = vector.shape_cast %194 : vector<2x2x1x64xf32> to vector<2x2x64xf32>
    %196 = vector.extract_strided_slice %191 {offsets = [0, 0, 1, 0], sizes = [2, 2, 1, 64], strides = [1, 1, 1, 1]} : vector<2x2x2x64xf32> to vector<2x2x1x64xf32>
    %197 = vector.shape_cast %196 : vector<2x2x1x64xf32> to vector<2x2x64xf32>
    %198 = vector.extract_strided_slice %193 {offsets = [0, 0, 0, 0], sizes = [2, 2, 1, 64], strides = [1, 1, 1, 1]} : vector<2x2x2x64xf32> to vector<2x2x1x64xf32>
    %199 = vector.shape_cast %198 : vector<2x2x1x64xf32> to vector<2x2x64xf32>
    %200 = vector.extract_strided_slice %193 {offsets = [0, 0, 1, 0], sizes = [2, 2, 1, 64], strides = [1, 1, 1, 1]} : vector<2x2x2x64xf32> to vector<2x2x1x64xf32>
    %201 = vector.shape_cast %200 : vector<2x2x1x64xf32> to vector<2x2x64xf32>
    %202 = vector.extract_strided_slice %159 {offsets = [0, 1, 0, 0], sizes = [2, 1, 6, 64], strides = [1, 1, 1, 1]} : vector<2x2x6x64xf32> to vector<2x1x6x64xf32>
    %203 = vector.shape_cast %202 : vector<2x1x6x64xf32> to vector<2x6x64xf32>
    %204 = vector.extract_strided_slice %203 {offsets = [0, 0, 0], sizes = [2, 4, 64], strides = [1, 1, 1]} : vector<2x6x64xf32> to vector<2x4x64xf32>
    %205 = vector.shape_cast %204 : vector<2x4x64xf32> to vector<2x2x2x64xf32>
    %206 = vector.extract_strided_slice %203 {offsets = [0, 2, 0], sizes = [2, 4, 64], strides = [1, 1, 1]} : vector<2x6x64xf32> to vector<2x4x64xf32>
    %207 = vector.shape_cast %206 : vector<2x4x64xf32> to vector<2x2x2x64xf32>
    %208 = vector.extract_strided_slice %205 {offsets = [0, 0, 0, 0], sizes = [2, 2, 1, 64], strides = [1, 1, 1, 1]} : vector<2x2x2x64xf32> to vector<2x2x1x64xf32>
    %209 = vector.shape_cast %208 : vector<2x2x1x64xf32> to vector<2x2x64xf32>
    %210 = vector.extract_strided_slice %205 {offsets = [0, 0, 1, 0], sizes = [2, 2, 1, 64], strides = [1, 1, 1, 1]} : vector<2x2x2x64xf32> to vector<2x2x1x64xf32>
    %211 = vector.shape_cast %210 : vector<2x2x1x64xf32> to vector<2x2x64xf32>
    %212 = vector.extract_strided_slice %207 {offsets = [0, 0, 0, 0], sizes = [2, 2, 1, 64], strides = [1, 1, 1, 1]} : vector<2x2x2x64xf32> to vector<2x2x1x64xf32>
    %213 = vector.shape_cast %212 : vector<2x2x1x64xf32> to vector<2x2x64xf32>
    %214 = vector.extract_strided_slice %207 {offsets = [0, 0, 1, 0], sizes = [2, 2, 1, 64], strides = [1, 1, 1, 1]} : vector<2x2x2x64xf32> to vector<2x2x1x64xf32>
    %215 = vector.shape_cast %214 : vector<2x2x1x64xf32> to vector<2x2x64xf32>
    %216 = tpu.concatenate %167, %169, %171, %173, %181, %183, %185, %187, %195, %197, %199, %201, %209, %211, %213, %215 in 2 : vector<2x2x64xf32>, vector<2x2x64xf32>, vector<2x2x64xf32>, vector<2x2x64xf32>, vector<2x2x64xf32>, vector<2x2x64xf32>, vector<2x2x64xf32>, vector<2x2x64xf32>, vector<2x2x64xf32>, vector<2x2x64xf32>, vector<2x2x64xf32>, vector<2x2x64xf32>, vector<2x2x64xf32>, vector<2x2x64xf32>, vector<2x2x64xf32>, vector<2x2x64xf32> -> vector<2x2x1024xf32>
    %217 = vector.shape_cast %216 : vector<2x2x1024xf32> to vector<4x1024xf32>
    %218 = arith.truncf %217 : vector<4x1024xf32> to vector<4x1024xbf16>
    %c0_20 = arith.constant 0 : index
    %c0_21 = arith.constant 0 : index
    %219 = vector.load %arg7[%c0_20, %c0_21] : memref<1024x128xbf16, #tpu.memory_space<vmem>>, vector<1024x128xbf16>
    %cst_22 = arith.constant dense<0.000000e+00> : vector<4x128xf32>
    %220 = tpu.matmul %218, %219, %cst_22 {dimension_numbers = #tpu.dot_dimension_numbers<[1], [0], [0], [1], [0, 0, 1, 1], [], []>} : vector<4x1024xbf16>, vector<1024x128xbf16>, vector<4x128xf32> -> vector<4x128xf32>
    %c0_23 = arith.constant 0 : index
    %c0_24 = arith.constant 0 : index
    %221 = vector.load %arg8[%c0_23, %c0_24] : memref<1x128xf32, #tpu.memory_space<vmem>>, vector<1x128xf32>
    %222 = vector.broadcast %221 : vector<1x128xf32> to vector<4x128xf32>
    %223 = arith.addf %220, %222 : vector<4x128xf32>
    %cst_25 = arith.constant 0.000000e+00 : f32
    %224 = vector.broadcast %cst_25 : f32 to vector<4x128xf32>
    %225 = arith.maximumf %223, %224 : vector<4x128xf32>
    %c0_26 = arith.constant 0 : index
    %c0_27 = arith.constant 0 : index
    %226 = vector.load %arg9[%c0_26, %c0_27] : memref<512x64xbf16, #tpu.memory_space<vmem>>, vector<512x64xbf16>
    %227 = arith.truncf %225 : vector<4x128xf32> to vector<4x128xbf16>
    %c0_28 = arith.constant 0 : index
    %c0_29 = arith.constant 0 : index
    %228 = vector.load %arg10[%c0_28, %c0_29] : memref<1x64xf32, #tpu.memory_space<vmem>>, vector<1x64xf32>
    %229 = vector.extract_strided_slice %227 {offsets = [0, 0], sizes = [1, 128], strides = [1, 1]} : vector<4x128xbf16> to vector<1x128xbf16>
    %230 = vector.extract_strided_slice %226 {offsets = [0, 0], sizes = [128, 64], strides = [1, 1]} : vector<512x64xbf16> to vector<128x64xbf16>
    %cst_30 = arith.constant dense<0.000000e+00> : vector<1x64xf32>
    %231 = tpu.matmul %229, %230, %cst_30 {dimension_numbers = #tpu.dot_dimension_numbers<[1], [0], [0], [1], [0, 0, 1, 1], [], []>} : vector<1x128xbf16>, vector<128x64xbf16>, vector<1x64xf32> -> vector<1x64xf32>
    %232 = arith.addf %228, %231 : vector<1x64xf32>
    %233 = vector.extract_strided_slice %227 {offsets = [1, 0], sizes = [1, 128], strides = [1, 1]} : vector<4x128xbf16> to vector<1x128xbf16>
    %234 = vector.extract_strided_slice %226 {offsets = [128, 0], sizes = [128, 64], strides = [1, 1]} : vector<512x64xbf16> to vector<128x64xbf16>
    %cst_31 = arith.constant dense<0.000000e+00> : vector<1x64xf32>
    %235 = tpu.matmul %233, %234, %cst_31 {dimension_numbers = #tpu.dot_dimension_numbers<[1], [0], [0], [1], [0, 0, 1, 1], [], []>} : vector<1x128xbf16>, vector<128x64xbf16>, vector<1x64xf32> -> vector<1x64xf32>
    %236 = arith.addf %232, %235 : vector<1x64xf32>
    %237 = vector.extract_strided_slice %227 {offsets = [2, 0], sizes = [1, 128], strides = [1, 1]} : vector<4x128xbf16> to vector<1x128xbf16>
    %238 = vector.extract_strided_slice %226 {offsets = [256, 0], sizes = [128, 64], strides = [1, 1]} : vector<512x64xbf16> to vector<128x64xbf16>
    %cst_32 = arith.constant dense<0.000000e+00> : vector<1x64xf32>
    %239 = tpu.matmul %237, %238, %cst_32 {dimension_numbers = #tpu.dot_dimension_numbers<[1], [0], [0], [1], [0, 0, 1, 1], [], []>} : vector<1x128xbf16>, vector<128x64xbf16>, vector<1x64xf32> -> vector<1x64xf32>
    %240 = arith.addf %236, %239 : vector<1x64xf32>
    %241 = vector.extract_strided_slice %227 {offsets = [3, 0], sizes = [1, 128], strides = [1, 1]} : vector<4x128xbf16> to vector<1x128xbf16>
    %242 = vector.extract_strided_slice %226 {offsets = [384, 0], sizes = [128, 64], strides = [1, 1]} : vector<512x64xbf16> to vector<128x64xbf16>
    %cst_33 = arith.constant dense<0.000000e+00> : vector<1x64xf32>
    %243 = tpu.matmul %241, %242, %cst_33 {dimension_numbers = #tpu.dot_dimension_numbers<[1], [0], [0], [1], [0, 0, 1, 1], [], []>} : vector<1x128xbf16>, vector<128x64xbf16>, vector<1x64xf32> -> vector<1x64xf32>
    %244 = arith.addf %240, %243 : vector<1x64xf32>
    %245 = vector.extract_strided_slice %244 {offsets = [0, 0], sizes = [1, 32], strides = [1, 1]} : vector<1x64xf32> to vector<1x32xf32>
    %246 = vector.extract_strided_slice %244 {offsets = [0, 32], sizes = [1, 32], strides = [1, 1]} : vector<1x64xf32> to vector<1x32xf32>
    %c0_34 = arith.constant 0 : index
    %c0_35 = arith.constant 0 : index
    %c0_36 = arith.constant 0 : index
    %247 = vector.load %arg20[%c0_34, %c0_35, %c0_36] : memref<1x1x32xf32, #tpu.memory_space<vmem>>, vector<1x1x32xf32>
    %248 = vector.shape_cast %247 : vector<1x1x32xf32> to vector<1x32xf32>
    %249 = vector.shape_cast %245 : vector<1x32xf32> to vector<1x1x32xf32>
    tpu.vector_store %arg20[%c0_34, %c0_35, %c0_36], %249 {strides = array<i32>} : memref<1x1x32xf32, #tpu.memory_space<vmem>>, vector<1x1x32xf32>,
    %c0_37 = arith.constant 0 : index
    %c0_38 = arith.constant 0 : index
    %c0_39 = arith.constant 0 : index
    %250 = vector.load %arg21[%c0_37, %c0_38, %c0_39] : memref<1x1x32xf32, #tpu.memory_space<vmem>>, vector<1x1x32xf32>
    %251 = vector.shape_cast %250 : vector<1x1x32xf32> to vector<1x32xf32>
    %252 = vector.shape_cast %246 : vector<1x32xf32> to vector<1x1x32xf32>
    tpu.vector_store %arg21[%c0_37, %c0_38, %c0_39], %252 {strides = array<i32>} : memref<1x1x32xf32, #tpu.memory_space<vmem>>, vector<1x1x32xf32>,
    %c0_40 = arith.constant 0 : index
    %c0_41 = arith.constant 0 : index
    %c0_42 = arith.constant 0 : index
    %253 = vector.load %arg2[%c0_40, %c0_41, %c0_42] : memref<1x1x32xf32, #tpu.memory_space<vmem>>, vector<1x1x32xf32>
    %254 = vector.shape_cast %253 : vector<1x1x32xf32> to vector<1x32xf32>
    %cst_43 = arith.constant 5.000000e-01 : f32
    %255 = vector.broadcast %cst_43 : f32 to vector<1x32xf32>
    %256 = arith.mulf %255, %246 : vector<1x32xf32>
    %257 = math.exp %256 : vector<1x32xf32>
    %258 = arith.mulf %254, %257 : vector<1x32xf32>
    %259 = arith.addf %245, %258 : vector<1x32xf32>
    %260 = arith.truncf %259 : vector<1x32xf32> to vector<1x32xbf16>
    %c0_44 = arith.constant 0 : index
    %c0_45 = arith.constant 0 : index
    %261 = vector.load %arg11[%c0_44, %c0_45] : memref<32x512xbf16, #tpu.memory_space<vmem>>, vector<32x512xbf16>
    %cst_46 = arith.constant dense<0.000000e+00> : vector<1x512xf32>
    %262 = tpu.matmul %260, %261, %cst_46 {dimension_numbers = #tpu.dot_dimension_numbers<[1], [0], [0], [1], [0, 0, 1, 1], [], []>} : vector<1x32xbf16>, vector<32x512xbf16>, vector<1x512xf32> -> vector<1x512xf32>
    %c0_47 = arith.constant 0 : index
    %c0_48 = arith.constant 0 : index
    %263 = vector.load %arg12[%c0_47, %c0_48] : memref<1x512xf32, #tpu.memory_space<vmem>>, vector<1x512xf32>
    %264 = arith.addf %262, %263 : vector<1x512xf32>
    %265 = vector.extract_strided_slice %264 {offsets = [0, 0], sizes = [1, 128], strides = [1, 1]} : vector<1x512xf32> to vector<1x128xf32>
    %266 = vector.extract_strided_slice %264 {offsets = [0, 128], sizes = [1, 128], strides = [1, 1]} : vector<1x512xf32> to vector<1x128xf32>
    %267 = tpu.concatenate %265, %266 in 0 : vector<1x128xf32>, vector<1x128xf32> -> vector<2x128xf32>
    %268 = vector.shape_cast %267 : vector<2x128xf32> to vector<1x2x128xf32>
    %269 = vector.extract_strided_slice %264 {offsets = [0, 256], sizes = [1, 128], strides = [1, 1]} : vector<1x512xf32> to vector<1x128xf32>
    %270 = vector.extract_strided_slice %264 {offsets = [0, 384], sizes = [1, 128], strides = [1, 1]} : vector<1x512xf32> to vector<1x128xf32>
    %271 = tpu.concatenate %269, %270 in 0 : vector<1x128xf32>, vector<1x128xf32> -> vector<2x128xf32>
    %272 = vector.shape_cast %271 : vector<2x128xf32> to vector<1x2x128xf32>
    %273 = tpu.concatenate %268, %272 in 0 : vector<1x2x128xf32>, vector<1x2x128xf32> -> vector<2x2x128xf32>
    %cst_49 = arith.constant 0.000000e+00 : f32
    %274 = vector.broadcast %cst_49 : f32 to vector<1x2x128xf32>
    %275 = tpu.concatenate %274, %273, %274 in 0 : vector<1x2x128xf32>, vector<2x2x128xf32>, vector<1x2x128xf32> -> vector<4x2x128xf32>
    %cst_50 = arith.constant 0.000000e+00 : f32
    %276 = vector.broadcast %cst_50 : f32 to vector<4x1x128xf32>
    %277 = tpu.concatenate %276, %275, %276 in 1 : vector<4x1x128xf32>, vector<4x2x128xf32>, vector<4x1x128xf32> -> vector<4x4x128xf32>
    %278 = vector.extract_strided_slice %277 {offsets = [0, 0, 0], sizes = [2, 2, 128], strides = [1, 1, 1]} : vector<4x4x128xf32> to vector<2x2x128xf32>
    %279 = vector.extract_strided_slice %277 {offsets = [0, 1, 0], sizes = [2, 2, 128], strides = [1, 1, 1]} : vector<4x4x128xf32> to vector<2x2x128xf32>
    %280 = vector.extract_strided_slice %277 {offsets = [0, 2, 0], sizes = [2, 2, 128], strides = [1, 1, 1]} : vector<4x4x128xf32> to vector<2x2x128xf32>
    %281 = vector.extract_strided_slice %277 {offsets = [1, 0, 0], sizes = [2, 2, 128], strides = [1, 1, 1]} : vector<4x4x128xf32> to vector<2x2x128xf32>
    %282 = vector.extract_strided_slice %277 {offsets = [1, 1, 0], sizes = [2, 2, 128], strides = [1, 1, 1]} : vector<4x4x128xf32> to vector<2x2x128xf32>
    %283 = vector.extract_strided_slice %277 {offsets = [1, 2, 0], sizes = [2, 2, 128], strides = [1, 1, 1]} : vector<4x4x128xf32> to vector<2x2x128xf32>
    %284 = vector.extract_strided_slice %277 {offsets = [2, 0, 0], sizes = [2, 2, 128], strides = [1, 1, 1]} : vector<4x4x128xf32> to vector<2x2x128xf32>
    %285 = vector.extract_strided_slice %277 {offsets = [2, 1, 0], sizes = [2, 2, 128], strides = [1, 1, 1]} : vector<4x4x128xf32> to vector<2x2x128xf32>
    %286 = vector.extract_strided_slice %277 {offsets = [2, 2, 0], sizes = [2, 2, 128], strides = [1, 1, 1]} : vector<4x4x128xf32> to vector<2x2x128xf32>
    %287 = tpu.concatenate %278, %279, %280, %281, %282, %283, %284, %285, %286 in 2 : vector<2x2x128xf32>, vector<2x2x128xf32>, vector<2x2x128xf32>, vector<2x2x128xf32>, vector<2x2x128xf32>, vector<2x2x128xf32>, vector<2x2x128xf32>, vector<2x2x128xf32>, vector<2x2x128xf32> -> vector<2x2x1152xf32>
    %288 = vector.shape_cast %287 : vector<2x2x1152xf32> to vector<4x1152xf32>
    %289 = arith.truncf %288 : vector<4x1152xf32> to vector<4x1152xbf16>
    %c0_51 = arith.constant 0 : index
    %c0_52 = arith.constant 0 : index
    %290 = vector.load %arg13[%c0_51, %c0_52] : memref<1152x256xbf16, #tpu.memory_space<vmem>>, vector<1152x256xbf16>
    %cst_53 = arith.constant dense<0.000000e+00> : vector<4x256xf32>
    %291 = tpu.matmul %289, %290, %cst_53 {dimension_numbers = #tpu.dot_dimension_numbers<[1], [0], [0], [1], [0, 0, 1, 1], [], []>} : vector<4x1152xbf16>, vector<1152x256xbf16>, vector<4x256xf32> -> vector<4x256xf32>
    %c0_54 = arith.constant 0 : index
    %c0_55 = arith.constant 0 : index
    %292 = vector.load %arg14[%c0_54, %c0_55] : memref<1x256xf32, #tpu.memory_space<vmem>>, vector<1x256xf32>
    %293 = vector.broadcast %292 : vector<1x256xf32> to vector<4x256xf32>
    %294 = arith.addf %291, %293 : vector<4x256xf32>
    %cst_56 = arith.constant 0.000000e+00 : f32
    %295 = vector.broadcast %cst_56 : f32 to vector<4x256xf32>
    %296 = arith.maximumf %294, %295 : vector<4x256xf32>
    %297 = vector.extract_strided_slice %296 {offsets = [0, 0], sizes = [4, 64], strides = [1, 1]} : vector<4x256xf32> to vector<4x64xf32>
    %298 = vector.shape_cast %297 : vector<4x64xf32> to vector<2x2x1x64xf32>
    %299 = vector.extract_strided_slice %296 {offsets = [0, 64], sizes = [4, 64], strides = [1, 1]} : vector<4x256xf32> to vector<4x64xf32>
    %300 = vector.shape_cast %299 : vector<4x64xf32> to vector<2x2x1x64xf32>
    %301 = vector.extract_strided_slice %296 {offsets = [0, 128], sizes = [4, 64], strides = [1, 1]} : vector<4x256xf32> to vector<4x64xf32>
    %302 = vector.shape_cast %301 : vector<4x64xf32> to vector<2x2x1x64xf32>
    %303 = vector.extract_strided_slice %296 {offsets = [0, 192], sizes = [4, 64], strides = [1, 1]} : vector<4x256xf32> to vector<4x64xf32>
    %304 = vector.shape_cast %303 : vector<4x64xf32> to vector<2x2x1x64xf32>
    %305 = tpu.concatenate %298, %300 in 2 : vector<2x2x1x64xf32>, vector<2x2x1x64xf32> -> vector<2x2x2x64xf32>
    %306 = vector.shape_cast %305 : vector<2x2x2x64xf32> to vector<2x1x4x64xf32>
    %307 = tpu.concatenate %302, %304 in 2 : vector<2x2x1x64xf32>, vector<2x2x1x64xf32> -> vector<2x2x2x64xf32>
    %308 = vector.shape_cast %307 : vector<2x2x2x64xf32> to vector<2x1x4x64xf32>
    %309 = tpu.concatenate %306, %308 in 1 : vector<2x1x4x64xf32>, vector<2x1x4x64xf32> -> vector<2x2x4x64xf32>
    %310 = vector.shape_cast %309 : vector<2x2x4x64xf32> to vector<4x4x64xf32>
    %cst_57 = arith.constant 0.000000e+00 : f32
    %311 = vector.broadcast %cst_57 : f32 to vector<1x4x64xf32>
    %312 = tpu.concatenate %311, %310, %311 in 0 : vector<1x4x64xf32>, vector<4x4x64xf32>, vector<1x4x64xf32> -> vector<6x4x64xf32>
    %cst_58 = arith.constant 0.000000e+00 : f32
    %313 = vector.broadcast %cst_58 : f32 to vector<6x1x64xf32>
    %314 = tpu.concatenate %313, %312, %313 in 1 : vector<6x1x64xf32>, vector<6x4x64xf32>, vector<6x1x64xf32> -> vector<6x6x64xf32>
    %315 = vector.extract_strided_slice %314 {offsets = [0, 0, 0], sizes = [4, 4, 64], strides = [1, 1, 1]} : vector<6x6x64xf32> to vector<4x4x64xf32>
    %316 = vector.extract_strided_slice %314 {offsets = [0, 1, 0], sizes = [4, 4, 64], strides = [1, 1, 1]} : vector<6x6x64xf32> to vector<4x4x64xf32>
    %317 = vector.extract_strided_slice %314 {offsets = [0, 2, 0], sizes = [4, 4, 64], strides = [1, 1, 1]} : vector<6x6x64xf32> to vector<4x4x64xf32>
    %318 = vector.extract_strided_slice %314 {offsets = [1, 0, 0], sizes = [4, 4, 64], strides = [1, 1, 1]} : vector<6x6x64xf32> to vector<4x4x64xf32>
    %319 = vector.extract_strided_slice %314 {offsets = [1, 1, 0], sizes = [4, 4, 64], strides = [1, 1, 1]} : vector<6x6x64xf32> to vector<4x4x64xf32>
    %320 = vector.extract_strided_slice %314 {offsets = [1, 2, 0], sizes = [4, 4, 64], strides = [1, 1, 1]} : vector<6x6x64xf32> to vector<4x4x64xf32>
    %321 = vector.extract_strided_slice %314 {offsets = [2, 0, 0], sizes = [4, 4, 64], strides = [1, 1, 1]} : vector<6x6x64xf32> to vector<4x4x64xf32>
    %322 = vector.extract_strided_slice %314 {offsets = [2, 1, 0], sizes = [4, 4, 64], strides = [1, 1, 1]} : vector<6x6x64xf32> to vector<4x4x64xf32>
    %323 = vector.extract_strided_slice %314 {offsets = [2, 2, 0], sizes = [4, 4, 64], strides = [1, 1, 1]} : vector<6x6x64xf32> to vector<4x4x64xf32>
    %324 = tpu.concatenate %315, %316, %317, %318, %319, %320, %321, %322, %323 in 2 : vector<4x4x64xf32>, vector<4x4x64xf32>, vector<4x4x64xf32>, vector<4x4x64xf32>, vector<4x4x64xf32>, vector<4x4x64xf32>, vector<4x4x64xf32>, vector<4x4x64xf32>, vector<4x4x64xf32> -> vector<4x4x576xf32>
    %325 = vector.shape_cast %324 : vector<4x4x576xf32> to vector<16x576xf32>
    %326 = arith.truncf %325 : vector<16x576xf32> to vector<16x576xbf16>
    %c0_59 = arith.constant 0 : index
    %c0_60 = arith.constant 0 : index
    %327 = vector.load %arg15[%c0_59, %c0_60] : memref<576x128xbf16, #tpu.memory_space<vmem>>, vector<576x128xbf16>
    %cst_61 = arith.constant dense<0.000000e+00> : vector<16x128xf32>
    %328 = tpu.matmul %326, %327, %cst_61 {dimension_numbers = #tpu.dot_dimension_numbers<[1], [0], [0], [1], [0, 0, 1, 1], [], []>} : vector<16x576xbf16>, vector<576x128xbf16>, vector<16x128xf32> -> vector<16x128xf32>
    %c0_62 = arith.constant 0 : index
    %c0_63 = arith.constant 0 : index
    %329 = vector.load %arg16[%c0_62, %c0_63] : memref<1x128xf32, #tpu.memory_space<vmem>>, vector<1x128xf32>
    %330 = vector.broadcast %329 : vector<1x128xf32> to vector<16x128xf32>
    %331 = arith.addf %328, %330 : vector<16x128xf32>
    %cst_64 = arith.constant 0.000000e+00 : f32
    %332 = vector.broadcast %cst_64 : f32 to vector<16x128xf32>
    %333 = arith.maximumf %331, %332 : vector<16x128xf32>
    %334 = vector.extract_strided_slice %333 {offsets = [0, 0], sizes = [16, 32], strides = [1, 1]} : vector<16x128xf32> to vector<16x32xf32>
    %335 = vector.shape_cast %334 : vector<16x32xf32> to vector<4x4x1x32xf32>
    %336 = vector.extract_strided_slice %333 {offsets = [0, 32], sizes = [16, 32], strides = [1, 1]} : vector<16x128xf32> to vector<16x32xf32>
    %337 = vector.shape_cast %336 : vector<16x32xf32> to vector<4x4x1x32xf32>
    %338 = vector.extract_strided_slice %333 {offsets = [0, 64], sizes = [16, 32], strides = [1, 1]} : vector<16x128xf32> to vector<16x32xf32>
    %339 = vector.shape_cast %338 : vector<16x32xf32> to vector<4x4x1x32xf32>
    %340 = vector.extract_strided_slice %333 {offsets = [0, 96], sizes = [16, 32], strides = [1, 1]} : vector<16x128xf32> to vector<16x32xf32>
    %341 = vector.shape_cast %340 : vector<16x32xf32> to vector<4x4x1x32xf32>
    %342 = tpu.concatenate %335, %337 in 2 : vector<4x4x1x32xf32>, vector<4x4x1x32xf32> -> vector<4x4x2x32xf32>
    %343 = vector.shape_cast %342 : vector<4x4x2x32xf32> to vector<4x1x8x32xf32>
    %344 = tpu.concatenate %339, %341 in 2 : vector<4x4x1x32xf32>, vector<4x4x1x32xf32> -> vector<4x4x2x32xf32>
    %345 = vector.shape_cast %344 : vector<4x4x2x32xf32> to vector<4x1x8x32xf32>
    %346 = tpu.concatenate %343, %345 in 1 : vector<4x1x8x32xf32>, vector<4x1x8x32xf32> -> vector<4x2x8x32xf32>
    %347 = vector.shape_cast %346 : vector<4x2x8x32xf32> to vector<8x8x32xf32>
    %cst_65 = arith.constant 0.000000e+00 : f32
    %348 = vector.broadcast %cst_65 : f32 to vector<1x8x32xf32>
    %349 = tpu.concatenate %348, %347, %348 in 0 : vector<1x8x32xf32>, vector<8x8x32xf32>, vector<1x8x32xf32> -> vector<10x8x32xf32>
    %cst_66 = arith.constant 0.000000e+00 : f32
    %350 = vector.broadcast %cst_66 : f32 to vector<10x1x32xf32>
    %351 = tpu.concatenate %350, %349, %350 in 1 : vector<10x1x32xf32>, vector<10x8x32xf32>, vector<10x1x32xf32> -> vector<10x10x32xf32>
    %352 = vector.extract_strided_slice %351 {offsets = [0, 0, 0], sizes = [8, 8, 32], strides = [1, 1, 1]} : vector<10x10x32xf32> to vector<8x8x32xf32>
    %353 = vector.extract_strided_slice %351 {offsets = [0, 1, 0], sizes = [8, 8, 32], strides = [1, 1, 1]} : vector<10x10x32xf32> to vector<8x8x32xf32>
    %354 = vector.extract_strided_slice %351 {offsets = [0, 2, 0], sizes = [8, 8, 32], strides = [1, 1, 1]} : vector<10x10x32xf32> to vector<8x8x32xf32>
    %355 = vector.extract_strided_slice %351 {offsets = [1, 0, 0], sizes = [8, 8, 32], strides = [1, 1, 1]} : vector<10x10x32xf32> to vector<8x8x32xf32>
    %356 = vector.extract_strided_slice %351 {offsets = [1, 1, 0], sizes = [8, 8, 32], strides = [1, 1, 1]} : vector<10x10x32xf32> to vector<8x8x32xf32>
    %357 = vector.extract_strided_slice %351 {offsets = [1, 2, 0], sizes = [8, 8, 32], strides = [1, 1, 1]} : vector<10x10x32xf32> to vector<8x8x32xf32>
    %358 = vector.extract_strided_slice %351 {offsets = [2, 0, 0], sizes = [8, 8, 32], strides = [1, 1, 1]} : vector<10x10x32xf32> to vector<8x8x32xf32>
    %359 = vector.extract_strided_slice %351 {offsets = [2, 1, 0], sizes = [8, 8, 32], strides = [1, 1, 1]} : vector<10x10x32xf32> to vector<8x8x32xf32>
    %360 = vector.extract_strided_slice %351 {offsets = [2, 2, 0], sizes = [8, 8, 32], strides = [1, 1, 1]} : vector<10x10x32xf32> to vector<8x8x32xf32>
    %361 = tpu.concatenate %352, %353, %354, %355, %356, %357, %358, %359, %360 in 2 : vector<8x8x32xf32>, vector<8x8x32xf32>, vector<8x8x32xf32>, vector<8x8x32xf32>, vector<8x8x32xf32>, vector<8x8x32xf32>, vector<8x8x32xf32>, vector<8x8x32xf32>, vector<8x8x32xf32> -> vector<8x8x288xf32>
    %362 = vector.shape_cast %361 : vector<8x8x288xf32> to vector<64x288xf32>
    %363 = arith.truncf %362 : vector<64x288xf32> to vector<64x288xbf16>
    %c0_67 = arith.constant 0 : index
    %c0_68 = arith.constant 0 : index
    %364 = vector.load %arg17[%c0_67, %c0_68] : memref<288x4xbf16, #tpu.memory_space<vmem>>, vector<288x4xbf16>
    %cst_69 = arith.constant dense<0.000000e+00> : vector<64x4xf32>
    %365 = tpu.matmul %363, %364, %cst_69 {dimension_numbers = #tpu.dot_dimension_numbers<[1], [0], [0], [1], [0, 0, 1, 1], [], []>} : vector<64x288xbf16>, vector<288x4xbf16>, vector<64x4xf32> -> vector<64x4xf32>
    %c0_70 = arith.constant 0 : index
    %c0_71 = arith.constant 0 : index
    %366 = vector.load %arg18[%c0_70, %c0_71] : memref<1x4xf32, #tpu.memory_space<vmem>>, vector<1x4xf32>
    %367 = vector.broadcast %366 : vector<1x4xf32> to vector<64x4xf32>
    %368 = arith.addf %365, %367 : vector<64x4xf32>
    %369 = arith.negf %368 : vector<64x4xf32>
    %370 = math.exp %369 : vector<64x4xf32>
    %cst_72 = arith.constant 1.000000e+00 : f32
    %371 = vector.broadcast %cst_72 : f32 to vector<64x4xf32>
    %372 = arith.addf %371, %370 : vector<64x4xf32>
    %373 = arith.divf %371, %372 : vector<64x4xf32>
    %374 = vector.extract_strided_slice %373 {offsets = [0, 0], sizes = [64, 1], strides = [1, 1]} : vector<64x4xf32> to vector<64x1xf32>
    %375 = vector.shape_cast %374 : vector<64x1xf32> to vector<8x8x1x1xf32>
    %376 = vector.extract_strided_slice %373 {offsets = [0, 1], sizes = [64, 1], strides = [1, 1]} : vector<64x4xf32> to vector<64x1xf32>
    %377 = vector.shape_cast %376 : vector<64x1xf32> to vector<8x8x1x1xf32>
    %378 = vector.extract_strided_slice %373 {offsets = [0, 2], sizes = [64, 1], strides = [1, 1]} : vector<64x4xf32> to vector<64x1xf32>
    %379 = vector.shape_cast %378 : vector<64x1xf32> to vector<8x8x1x1xf32>
    %380 = vector.extract_strided_slice %373 {offsets = [0, 3], sizes = [64, 1], strides = [1, 1]} : vector<64x4xf32> to vector<64x1xf32>
    %381 = vector.shape_cast %380 : vector<64x1xf32> to vector<8x8x1x1xf32>
    %382 = tpu.concatenate %375, %377 in 2 : vector<8x8x1x1xf32>, vector<8x8x1x1xf32> -> vector<8x8x2x1xf32>
    %383 = vector.shape_cast %382 : vector<8x8x2x1xf32> to vector<8x1x16x1xf32>
    %384 = tpu.concatenate %379, %381 in 2 : vector<8x8x1x1xf32>, vector<8x8x1x1xf32> -> vector<8x8x2x1xf32>
    %385 = vector.shape_cast %384 : vector<8x8x2x1xf32> to vector<8x1x16x1xf32>
    %386 = tpu.concatenate %383, %385 in 1 : vector<8x1x16x1xf32>, vector<8x1x16x1xf32> -> vector<8x2x16x1xf32>
    %387 = vector.shape_cast %386 : vector<8x2x16x1xf32> to vector<16x16x1xf32>
    %c0_73 = arith.constant 0 : index
    %c0_74 = arith.constant 0 : index
    %c0_75 = arith.constant 0 : index
    %c0_76 = arith.constant 0 : index
    %388 = vector.load %arg19[%c0_73, %c0_74, %c0_75, %c0_76] : memref<1x16x16x1xf32, #tpu.memory_space<vmem>>, vector<1x16x16x1xf32>
    %389 = vector.shape_cast %388 : vector<1x16x16x1xf32> to vector<16x16x1xf32>
    %390 = vector.shape_cast %387 : vector<16x16x1xf32> to vector<1x16x16x1xf32>
    tpu.vector_store %arg19[%c0_73, %c0_74, %c0_75, %c0_76], %390 {strides = array<i32>} : memref<1x16x16x1xf32, #tpu.memory_space<vmem>>, vector<1x16x16x1xf32>,
    return
  }
  func.func @transform_0(%arg0: i32) -> (i32, i32, i32, i32) {
    %c0_i32 = arith.constant 0 : i32
    %c0_i32_0 = arith.constant 0 : i32
    %c0_i32_1 = arith.constant 0 : i32
    %c0_i32_2 = arith.constant 0 : i32
    return %arg0, %c0_i32, %c0_i32_0, %c0_i32_1 : i32, i32, i32, i32
  }
  func.func @transform_1(%arg0: i32) -> (i32, i32, i32) {
    %c0_i32 = arith.constant 0 : i32
    %c0_i32_0 = arith.constant 0 : i32
    %c0_i32_1 = arith.constant 0 : i32
    return %arg0, %c0_i32, %c0_i32_0 : i32, i32, i32
  }
  func.func @transform_2(%arg0: i32) -> (i32, i32) {
    %c0_i32 = arith.constant 0 : i32
    %c0_i32_0 = arith.constant 0 : i32
    %c0_i32_1 = arith.constant 0 : i32
    return %c0_i32, %c0_i32_0 : i32, i32
  }
  func.func @transform_3(%arg0: i32) -> (i32, i32) {
    %c0_i32 = arith.constant 0 : i32
    %c0_i32_0 = arith.constant 0 : i32
    %c0_i32_1 = arith.constant 0 : i32
    return %c0_i32, %c0_i32_0 : i32, i32
  }
  func.func @transform_4(%arg0: i32) -> (i32, i32) {
    %c0_i32 = arith.constant 0 : i32
    %c0_i32_0 = arith.constant 0 : i32
    %c0_i32_1 = arith.constant 0 : i32
    return %c0_i32, %c0_i32_0 : i32, i32
  }
  func.func @transform_5(%arg0: i32) -> (i32, i32) {
    %c0_i32 = arith.constant 0 : i32
    %c0_i32_0 = arith.constant 0 : i32
    %c0_i32_1 = arith.constant 0 : i32
    return %c0_i32, %c0_i32_0 : i32, i32
  }
  func.func @transform_6(%arg0: i32) -> (i32, i32) {
    %c0_i32 = arith.constant 0 : i32
    %c0_i32_0 = arith.constant 0 : i32
    %c0_i32_1 = arith.constant 0 : i32
    return %c0_i32, %c0_i32_0 : i32, i32
  }
  func.func @transform_7(%arg0: i32) -> (i32, i32) {
    %c0_i32 = arith.constant 0 : i32
    %c0_i32_0 = arith.constant 0 : i32
    %c0_i32_1 = arith.constant 0 : i32
    return %c0_i32, %c0_i32_0 : i32, i32
  }
  func.func @transform_8(%arg0: i32) -> (i32, i32) {
    %c0_i32 = arith.constant 0 : i32
    %c0_i32_0 = arith.constant 0 : i32
    %c0_i32_1 = arith.constant 0 : i32
    return %c0_i32, %c0_i32_0 : i32, i32
  }
  func.func @transform_9(%arg0: i32) -> (i32, i32) {
    %c0_i32 = arith.constant 0 : i32
    %c0_i32_0 = arith.constant 0 : i32
    %c0_i32_1 = arith.constant 0 : i32
    return %c0_i32, %c0_i32_0 : i32, i32
  }
  func.func @transform_10(%arg0: i32) -> (i32, i32) {
    %c0_i32 = arith.constant 0 : i32
    %c0_i32_0 = arith.constant 0 : i32
    %c0_i32_1 = arith.constant 0 : i32
    return %c0_i32, %c0_i32_0 : i32, i32
  }
  func.func @transform_11(%arg0: i32) -> (i32, i32) {
    %c0_i32 = arith.constant 0 : i32
    %c0_i32_0 = arith.constant 0 : i32
    %c0_i32_1 = arith.constant 0 : i32
    return %c0_i32, %c0_i32_0 : i32, i32
  }
  func.func @transform_12(%arg0: i32) -> (i32, i32) {
    %c0_i32 = arith.constant 0 : i32
    %c0_i32_0 = arith.constant 0 : i32
    %c0_i32_1 = arith.constant 0 : i32
    return %c0_i32, %c0_i32_0 : i32, i32
  }
  func.func @transform_13(%arg0: i32) -> (i32, i32) {
    %c0_i32 = arith.constant 0 : i32
    %c0_i32_0 = arith.constant 0 : i32
    %c0_i32_1 = arith.constant 0 : i32
    return %c0_i32, %c0_i32_0 : i32, i32
  }
  func.func @transform_14(%arg0: i32) -> (i32, i32) {
    %c0_i32 = arith.constant 0 : i32
    %c0_i32_0 = arith.constant 0 : i32
    %c0_i32_1 = arith.constant 0 : i32
    return %c0_i32, %c0_i32_0 : i32, i32
  }
  func.func @transform_15(%arg0: i32) -> (i32, i32) {
    %c0_i32 = arith.constant 0 : i32
    %c0_i32_0 = arith.constant 0 : i32
    %c0_i32_1 = arith.constant 0 : i32
    return %c0_i32, %c0_i32_0 : i32, i32
  }
  func.func @transform_16(%arg0: i32) -> (i32, i32) {
    %c0_i32 = arith.constant 0 : i32
    %c0_i32_0 = arith.constant 0 : i32
    %c0_i32_1 = arith.constant 0 : i32
    return %c0_i32, %c0_i32_0 : i32, i32
  }
  func.func @transform_17(%arg0: i32) -> (i32, i32) {
    %c0_i32 = arith.constant 0 : i32
    %c0_i32_0 = arith.constant 0 : i32
    %c0_i32_1 = arith.constant 0 : i32
    return %c0_i32, %c0_i32_0 : i32, i32
  }
  func.func @transform_18(%arg0: i32) -> (i32, i32, i32, i32) {
    %c0_i32 = arith.constant 0 : i32
    %c0_i32_0 = arith.constant 0 : i32
    %c0_i32_1 = arith.constant 0 : i32
    %c0_i32_2 = arith.constant 0 : i32
    return %arg0, %c0_i32, %c0_i32_0, %c0_i32_1 : i32, i32, i32, i32
  }
  func.func @transform_19(%arg0: i32) -> (i32, i32, i32) {
    %c0_i32 = arith.constant 0 : i32
    %c0_i32_0 = arith.constant 0 : i32
    %c0_i32_1 = arith.constant 0 : i32
    return %arg0, %c0_i32, %c0_i32_0 : i32, i32, i32
  }
  func.func @transform_20(%arg0: i32) -> (i32, i32, i32) {
    %c0_i32 = arith.constant 0 : i32
    %c0_i32_0 = arith.constant 0 : i32
    %c0_i32_1 = arith.constant 0 : i32
    return %arg0, %c0_i32, %c0_i32_0 : i32, i32, i32
  }
}

</mosaic_0001>

<bundles_post_ra>
// kernel: vae_gan_forward.1
= control target key start
LH: loop header
LB: loop body
LE: loop exit
PB: predicated region body
PF: predicated region fallthrough
CT: control target
= control target key end

     0   :  { %s20580_s0 = inlined_call_operand.vmem [shape: f32[2,16,16,1], index: 0, kind: input, shape index: {}]   ;;  %s20581_s1 = inlined_call_operand.vmem [shape: f32[2,1,32], index: 1, kind: input, shape index: {}]   ;;  %s20582_s2 = inlined_call_operand.vmem [shape: bf16[16,32], index: 2, kind: input, shape index: {}]   ;;  %s20583_s3 = inlined_call_operand.hbm [shape: f32[1,32], index: 3, kind: input, shape index: {}]   ;;  %s20584_s4 = inlined_call_operand.vmem [shape: bf16[512,64], index: 4, kind: input, shape index: {}]   ;;  %s20585_s5 = inlined_call_operand.vmem [shape: f32[1,64], index: 5, kind: input, shape index: {}]   ;;  %s20586_s6 = inlined_call_operand.hbm [shape: bf16[1024,128], index: 6, kind: input, shape index: {}]   ;;  %s20587_s7 = inlined_call_operand.vmem [shape: f32[1,128], index: 7, kind: input, shape index: {}]   ;;  %s20588_s8 = inlined_call_operand.vmem [shape: bf16[512,64], index: 8, kind: input, shape index: {}]   ;;  %s20589_s9 = inlined_call_operand.vmem [shape: f32[1,64], index: 9, kind: input, shape index: {}]   ;;  %s20590_s10 = inlined_call_operand.hbm [shape: bf16[32,512], index: 10, kind: input, shape index: {}]   ;;  %s20591_s11 = inlined_call_operand.vmem [shape: f32[1,512], index: 11, kind: input, shape index: {}]   ;;  %s20592_s12 = inlined_call_operand.vmem [shape: bf16[1152,256], index: 12, kind: input, shape index: {}]   ;;  %s20593_s13 = inlined_call_operand.hbm [shape: f32[1,256], index: 13, kind: input, shape index: {}]   ;;  %s20594_s14 = inlined_call_operand.vmem [shape: bf16[576,128], index: 14, kind: input, shape index: {}]   ;;  %s20595_s15 = inlined_call_operand.hbm [shape: f32[1,128], index: 15, kind: input, shape index: {}]   ;;  %s20596_s16 = inlined_call_operand.vmem [shape: bf16[288,4], index: 16, kind: input, shape index: {}]   ;;  %s20597_s17 = inlined_call_operand.hbm [shape: f32[1,4], index: 17, kind: input, shape index: {}]   ;;  %s20598_s18 = inlined_call_operand.vmem [shape: f32[2,16,16,1], index: 18, kind: output, shape index: {0}]   ;;  %s20599_s19 = inlined_call_operand.hbm [shape: f32[2,1,32], index: 19, kind: output, shape index: {1}]   ;;  %s20600_s20 = inlined_call_operand.hbm [shape: f32[2,1,32], index: 20, kind: output, shape index: {2}]  }
   0x1   :  { %20851 = sst [smem:[#allocation161_spill]] %s20580_s0 }
   0x2   :  { %20852 = sst [smem:[#allocation162_spill]] %s20581_s1 }
   0x3   :  { %20853 = sst [smem:[#allocation163_spill]] %s20582_s2 }
   0x4   :  { %20854 = sst [smem:[#allocation164_spill]] %s20583_s3 }
   0x5   :  { %20855 = sst [smem:[#allocation165_spill]] %s20584_s4 }
   0x6   :  { %20856 = sst [smem:[#allocation166_spill]] %s20596_s16 }
   0x7   :  { %20857 = sst [smem:[#allocation167_spill]] %s20598_s18 }
   0x8   :  { %20858 = sst [smem:[#allocation168_spill]] %s20599_s19 }
   0x9   :  { %20859 = sst [smem:[#allocation169_spill]] %s20600_s20 }
   0xa   :  { %26 = vsyncpa [#allocation3], 0 }
   0xb   :  { %27 = vsyncpa [#allocation6], 0 }
   0xc   :  { %28 = vsyncpa [#allocation9], 0 }
   0xd   :  { %29 = vsyncpa [#allocation12], 0 }
   0xe   :  { %30 = vsyncpa [#allocation4], 0 }
   0xf   :  { %32 = vsyncpa [#allocation4 + $0x1], 0 }
  0x10   :  { %33 = vsyncpa [#allocation15], 0 }
  0x11   :  { %35 = vsyncpa [#allocation15 + $0x1], 0  ;;  %s14126_s1 = smov 0   ;;  %s14128_s22 = smov 0  }
  0x12   :  { %s14130_s23 = smov 0   ;;  %s14132_s24 = smov 0  }
  0x13 LB: > { %20860 = sst [smem:[#allocation22_spill]] %s13970_s1  ;;  %s14147_s2 = sadd.s32 4294967295, %s13982_s24   ;;  %s13982_s24 = sphi %s14132_s24, %s21565_s24   ;;  %s13978_s23 = sphi %s14130_s23, %s21570_s23   ;;  %s13974_s22 = sphi %s14128_s22, %s21569_s22   ;;  %s13970_s1 = sphi %s14126_s1, %s21568_s1  }
  0x14   : > { %20861 = sst [smem:[#allocation23_spill]] %s13978_s23  ;;  %s11883_s25 = sadd.s32 4294967294, %s13982_s24  }
  0x15   : > { %20862 = sst [smem:[#allocation24_spill]] %s13982_s24  ;;  %s14151_s3 = sadd.s32 1, %s13982_s24  }
  0x16   : > { %20863 = sst [smem:[#allocation25_spill]] %s14151_s3  ;;  %s462_s26 = sadd.s32 1, %s13978_s23 }
  0x17   : > { %s459_s27 = ssub.s32 %s13982_s24, %s14151_s3  ;;  %p472_p0 = scmp.ne.s32.totalorder %s13978_s23, %s13974_s22 }
  0x18   : > { %p460_p1 = scmp.eq.s32.totalorder %s459_s27, 0  ;;  %p473_p2 = scmp.eq.s32.totalorder %s14147_s2, 1 }
  0x19   : > { %p478_p3 = scmp.ne.s32.totalorder %s13974_s22, %s13970_s1  ;;  %p479_p4 = scmp.eq.s32.totalorder %s11883_s25, 1 }
  0x1a   : > { %s14162_s28 = scalar_select %p460_p1, %s13978_s23, %s462_s26  }
  0x1b   : > { %p14164_p5 = por %p473_p2, %p472_p0  ;;  %p14168_p6 = por %p479_p4, %p478_p3 }
  0x1c   : > { %20864 = sst [smem:[#allocation26_spill]] %s14162_s28  ;;  %p11884_p7 = scmp.ge.s32.totalorder %s13982_s24, 1 }
  0x1d   : > { %s20865_s4 = scalar_select %p14164_p5, 1, 0 }
  0x1e   : > { %s20867_s29 = scalar_select %p14168_p6, 1, 0 }
  0x1f   : > { %20866 = sst [smem:[#allocation27_spill]] %s20865_s4  ;;  %p512_p8 = scmp.lt.s32.totalorder %s13982_s24, 3 }
  0x20   : > { %20868 = sst [smem:[#allocation28_spill]] %s20867_s29  ;;  %p20610_p9 = scmp.eq.s32.totalorder %s14147_s2, 0 }
  0x21   : > { %p14175_p10 = pnand %p11884_p7, %p512_p8  ;;  %s13984_s0 = smov [#allocation5]  }
  0x22   : > { %s544_s21 = sshll.u32 %s13984_s0, 4  ;;  %s13985_s26 = smov [#allocation8]   ;;  %s14181_s21 = int_to_ptr.vmem [resolvable:$true] %s544_s21 }
  0x23   : > { %s20869_s30 = scalar_select %p14175_p10, 1, 0 }
  0x24   : > { %p12733_p11 = pneg %p14175_p10  ;;  %s586_s27 = sshll.u32 %s13985_s26, 4  ;;  %s14189_s27 = int_to_ptr.vmem [resolvable:$true] %s586_s27 }
  0x25   : > { %s13986_s28 = smov [#allocation2]   ;;  %s13704_s0 = scalar_lea.hbm %s20586_s6, 8192 }
  0x26   : > { %p14185_p12 = pnand %p20610_p9, %p12733_p11  ;;  %s14191_s23 = sshll.u32 %s13986_s28, 4  ;;  %s529_s23 = int_to_ptr.vmem [resolvable:$true] %s14191_s23 }
  0x27   : > { %p13705_p13 = scmp.ne.s32.totalorder %s20586_s6, %s13704_s0  ;;  %p13711_p3 = scmp.lt.u32.totalorder %s13704_s0, %s20586_s6 }
  0x28   : > { %p14201_p0 = pneg %p14185_p12 }
  0x2a   : > { %p13707_p1 = pnand %p14201_p0, %p13705_p13 }
  0x2c   : > { %p13708_p2 = pneg %p13707_p1 }
  0x2e   : > { %p13713_p4 = pnand %p13711_p3, %p13708_p2 }
  0x30   : > { %13716 = shalt.err (!%p13713_p4)
}
  0x31   : > { %s13717_s1 = scalar_lea.vmem %s14181_s21, 8192  ;;  %p13725_p9 = scmp.lt.s32.totalorder %s14181_s21, %s14181_s21 }
  0x32   : > { %p13718_p7 = scmp.ne.s32.totalorder %s14181_s21, %s13717_s1  ;;  %p13726_p6 = scmp.lt.s32.totalorder %s13717_s1, %s13717_s1 }
  0x34   : > { %p13720_p8 = pnand %p13718_p7, %p14201_p0  ;;  %p13727_p13 = por %p13726_p6, %p13725_p9 }
  0x36   : > { %p13721_p11 = pneg %p13720_p8 }
  0x38   : > { %p13728_p1 = pnand %p13727_p13, %p13721_p11 }
  0x3a   : > { %13731 = shalt.err (!%p13728_p1)
}
  0x3b   : > { %s13987_s24 = smov 64   ;;  %s13988_s3 = smov 4  }
  0x3c   : > { %12739 = dma.hbm_to_vmem [thread:$0]  (!%p14185_p12), %s20586_s6, 8192, %s14181_s21, [#allocation6], %s13987_s24, %s13987_s24, %s13988_s3  }
  0x3d   : > { %s13732_s19 = scalar_lea.hbm %s20593_s13, 32 }
  0x3e   : > { %p13733_p6 = scmp.ne.s32.totalorder %s20593_s13, %s13732_s19  ;;  %p13739_p3 = scmp.lt.u32.totalorder %s13732_s19, %s20593_s13 }
  0x40   : > { %p13735_p9 = pnand %p13733_p6, %p14201_p0 }
  0x42   : > { %p13736_p2 = pneg %p13735_p9 }
  0x44   : > { %p13741_p4 = pnand %p13739_p3, %p13736_p2 }
  0x46   : > { %13744 = shalt.err (!%p13741_p4)
}
  0x47   : > { %s13745_s21 = scalar_lea.vmem %s14189_s27, 32  ;;  %p13753_p13 = scmp.lt.s32.totalorder %s14189_s27, %s14189_s27 }
  0x48   : > { %p13746_p7 = scmp.ne.s32.totalorder %s14189_s27, %s13745_s21  ;;  %p13754_p1 = scmp.lt.s32.totalorder %s13745_s21, %s13745_s21 }
  0x4a   : > { %p13748_p8 = pnand %p13746_p7, %p14201_p0  ;;  %p13755_p6 = por %p13754_p1, %p13753_p13 }
  0x4c   : > { %p13749_p11 = pneg %p13748_p8 }
  0x4e   : > { %p13756_p9 = pnand %p13755_p6, %p13749_p11 }
  0x50   : > { %13759 = shalt.err (!%p13756_p9)
}
  0x51   : > { %12745 = dma.hbm_to_vmem [thread:$0]  (!%p14185_p12), %s20593_s13, 32, %s14189_s27, [#allocation9]  }
  0x52   : > { %s20872_s24 = sld [smem:[#allocation164_spill]] }
  0x58   : > { %s20873_s3 = smov %s20872_s24  ;;  %s13760_s29 = scalar_lea.hbm %s20872_s24, 16 }
  0x59   : > { %p13761_p2 = scmp.ne.s32.totalorder %s20873_s3, %s13760_s29  ;;  %p13767_p7 = scmp.lt.u32.totalorder %s13760_s29, %s20873_s3 }
  0x5b   : > { %p13763_p3 = pnand %p13761_p2, %p14201_p0 }
  0x5d   : > { %p13764_p4 = pneg %p13763_p3 }
  0x5f   : > { %p13769_p8 = pnand %p13767_p7, %p13764_p4 }
  0x61   : > { %13772 = shalt.err (!%p13769_p8)
}
  0x62   : > { %s13773_s21 = scalar_lea.vmem %s529_s23, 16  ;;  %s13780_s27 = scalar_lea.vmem %s529_s23, 32 }
  0x63   : > { %p13774_p11 = scmp.ne.s32.totalorder %s529_s23, %s13773_s21  ;;  %p13781_p6 = scmp.lt.s32.totalorder %s529_s23, %s529_s23 }
  0x64   : > { %p13782_p9 = scmp.lt.s32.totalorder %s13780_s27, %s13773_s21 }
  0x65   : > { %p13776_p13 = pnand %p13774_p11, %p14201_p0 }
  0x66   : > { %p13783_p5 = por %p13782_p9, %p13781_p6 }
  0x67   : > { %p13777_p1 = pneg %p13776_p13 }
  0x69   : > { %p13784_p10 = pnand %p13783_p5, %p13777_p1 }
  0x6b   : > { %13787 = shalt.err (!%p13784_p10)
}
  0x6c   : > { %12736 = dma.hbm_to_vmem [thread:$0]  (!%p14185_p12), %s20873_s3, 16, %s529_s23, [#allocation3]  }
  0x6d   : > { %s13989_s19 = smov [#allocation7]   ;;  %s13788_s0 = scalar_lea.hbm %s20590_s10, 1024 }
  0x6e   : > { %s566_s4 = sshll.u32 %s13989_s19, 4  ;;  %p13789_p2 = scmp.ne.s32.totalorder %s20590_s10, %s13788_s0  ;;  %s567_s4 = int_to_ptr.vmem [resolvable:$true] %s566_s4 }
  0x6f   : > { %p13795_p3 = scmp.lt.u32.totalorder %s13788_s0, %s20590_s10 }
  0x70   : > { %p13791_p5 = pnand %p13789_p2, %p14201_p0 }
  0x72   : > { %p13792_p10 = pneg %p13791_p5 }
  0x74   : > { %p13797_p4 = pnand %p13795_p3, %p13792_p10 }
  0x76   : > { %13800 = shalt.err (!%p13797_p4)
}
  0x77   : > { %s13801_s23 = scalar_lea.vmem %s567_s4, 1024  ;;  %p13809_p13 = scmp.lt.s32.totalorder %s567_s4, %s567_s4 }
  0x78   : > { %p13802_p7 = scmp.ne.s32.totalorder %s567_s4, %s13801_s23  ;;  %p13810_p1 = scmp.lt.s32.totalorder %s13801_s23, %s13801_s23 }
  0x7a   : > { %p13804_p8 = pnand %p13802_p7, %p14201_p0  ;;  %p13811_p6 = por %p13810_p1, %p13809_p13 }
  0x7c   : > { %p13805_p11 = pneg %p13804_p8 }
  0x7e   : > { %p13812_p9 = pnand %p13811_p6, %p13805_p11 }
  0x80   : > { %13815 = shalt.err (!%p13812_p9)
}
  0x81   : > { %s13990_s27 = smov 256   ;;  %s13991_s16 = smov 16  }
  0x82   : > { %12742 = dma.hbm_to_vmem [thread:$0]  (!%p14185_p12), %s20590_s10, 1024, %s567_s4, [#allocation6], %s13990_s27, %s13990_s27, %s13991_s16  }
  0x83   : > { %s13992_s24 = smov [#allocation10]   ;;  %s13993_s0 = smov [#allocation11]  }
  0x84   : > { %s600_s29 = sshll.u32 %s13992_s24, 4  ;;  %s614_s26 = sshll.u32 %s13993_s0, 4  ;;  %s601_s29 = int_to_ptr.vmem [resolvable:$true] %s600_s29  ;;  %s14282_s26 = int_to_ptr.vmem [resolvable:$true] %s614_s26 }
  0x85   : > { %s13816_s21 = scalar_lea.hbm %s20595_s15, 16 }
  0x86   : > { %p13817_p2 = scmp.ne.s32.totalorder %s20595_s15, %s13816_s21  ;;  %p13823_p3 = scmp.lt.u32.totalorder %s13816_s21, %s20595_s15 }
  0x88   : > { %p13819_p5 = pnand %p13817_p2, %p14201_p0 }
  0x8a   : > { %p13820_p10 = pneg %p13819_p5 }
  0x8c   : > { %p13825_p4 = pnand %p13823_p3, %p13820_p10 }
  0x8e   : > { %13828 = shalt.err (!%p13825_p4)
}
  0x8f   : > { %s13829_s27 = scalar_lea.vmem %s601_s29, 16  ;;  %s13836_s16 = scalar_lea.vmem %s601_s29, 32 }
  0x90   : > { %p13830_p7 = scmp.ne.s32.totalorder %s601_s29, %s13829_s27  ;;  %p13837_p13 = scmp.lt.s32.totalorder %s601_s29, %s601_s29 }
  0x91   : > { %p13838_p1 = scmp.lt.s32.totalorder %s13836_s16, %s13829_s27 }
  0x92   : > { %p13832_p8 = pnand %p13830_p7, %p14201_p0 }
  0x93   : > { %p13839_p6 = por %p13838_p1, %p13837_p13 }
  0x94   : > { %p13833_p11 = pneg %p13832_p8 }
  0x96   : > { %p13840_p9 = pnand %p13839_p6, %p13833_p11 }
  0x98   : > { %13843 = shalt.err (!%p13840_p9)
}
  0x99   : > { %12748 = dma.hbm_to_vmem [thread:$0]  (!%p14185_p12), %s20595_s15, 16, %s601_s29, [#allocation9]  }
  0x9a   : > { %s13844_s28 = scalar_lea.hbm %s20597_s17, 16 }
  0x9b   : > { %p13845_p2 = scmp.ne.s32.totalorder %s20597_s17, %s13844_s28  ;;  %p13851_p3 = scmp.lt.u32.totalorder %s13844_s28, %s20597_s17 }
  0x9d   : > { %p13847_p5 = pnand %p13845_p2, %p14201_p0 }
  0x9f   : > { %p13848_p10 = pneg %p13847_p5 }
  0xa1   : > { %p13853_p4 = pnand %p13851_p3, %p13848_p10 }
  0xa3   : > { %13856 = shalt.err (!%p13853_p4)
}
  0xa4   : > { %s13857_s29 = scalar_lea.vmem %s14282_s26, 16  ;;  %s13864_s4 = scalar_lea.vmem %s14282_s26, 32 }
  0xa5   : > { %p13858_p7 = scmp.ne.s32.totalorder %s14282_s26, %s13857_s29  ;;  %p13865_p13 = scmp.lt.s32.totalorder %s14282_s26, %s14282_s26 }
  0xa6   : > { %p13866_p1 = scmp.lt.s32.totalorder %s13864_s4, %s13857_s29 }
  0xa7   : > { %p13860_p8 = pnand %p13858_p7, %p14201_p0 }
  0xa8   : > { %p13867_p6 = por %p13866_p1, %p13865_p13 }
  0xa9   : > { %p13861_p11 = pneg %p13860_p8 }
  0xab   : > { %p13868_p9 = pnand %p13867_p6, %p13861_p11 }
  0xad   : > { %13871 = shalt.err (!%p13868_p9)
}
  0xae   : > { %12751 = dma.hbm_to_vmem [thread:$0]  (!%p14185_p12), %s20597_s17, 16, %s14282_s26, [#allocation12]  }
  0xaf   : > { %p20874_p2 = scmp.ne.s32.totalorder %s20869_s30, 0 }
  0xb1   : > { %641 = sbr.rel (%p20874_p2) target bundleno = 4406 (0x1136), region = 92 }
  0xb8   : > { %p20875_p0 = scmp.eq.s32.totalorder %s14147_s2, 0 }
  0xba   : > { %13945 = dma.done.wait (%p20875_p0), [#allocation3], 16   ;;  %p20876_p5 = pmov %p20875_p0 }
  0xbb   : > { %p20877_p10 = pmov %p20875_p0 }
  0xbc   : > { %13947 = vsyncadd (%p20876_p5), [#allocation3], 4294967280 }
  0xbd   : > { %13949 = dma.done.wait (%p20877_p10), [#allocation6], 9216   ;;  %p20878_p3 = pmov %p20875_p0 }
  0xbe   : > { %p20879_p4 = pmov %p20875_p0 }
  0xbf   : > { %13951 = vsyncadd (%p20878_p3), [#allocation6], 4294958080 }
  0xc0   : > { %13953 = dma.done.wait (%p20879_p4), [#allocation9], 48   ;;  %p20880_p12 = pmov %p20875_p0 }
  0xc1   : > { %p20881_p7 = pmov %p20875_p0 }
  0xc2   : > { %13955 = vsyncadd (%p20880_p12), [#allocation9], 4294967248 }
  0xc3   : > { %13957 = dma.done.wait (%p20881_p7), [#allocation12], 16   ;;  %p20882_p8 = pmov %p20875_p0 }
  0xc4   : > { %p730_p11 = scmp.lt.s32.totalorder %s14147_s2, 1  ;;  %v939_v0 = vlaneseq  ;;  %v13994_v1 = vmov 1983009808   ;;  %vm20828_vm0 = vcmask 1040384   ;;  %v20618_v5 = vmov 0.0   ;;  %s20884_s3 = sld [smem:[#allocation161_spill]] }
  0xc5   : > { %13959 = vsyncadd (%p20882_p8), [#allocation12], 4294967280  ;;  %v937_v2 = vunpack.c.l.s4 %v13994_v1  ;;  %v810_v6 = vrot.slane %v20618_v5, 7  ;;  %vm20827_vm1 = vcmask 1041409   ;;  %vm20826_vm2 = vcmask 1042434   ;;  %s13996_s24 = smov 4  }
  0xc6   : > { %s14346_s20 = scalar_select %p730_p11, %s14147_s2, 1  ;;  %v14348_v3 = vshrl.u32 %v939_v0, 7  ;;  %vm20829_vm3 = vcmask 1043459   ;;  %vm1920_vm4 = vcmask 1044484   ;;  %vm1922_vm5 = vcmask 1045509  }
  0xc7   : > { %v938_v4 = vunpack.c.0.s8 %v937_v2  ;;  %v14366_v9 = vsel %vm20828_vm0, 0.0, %v810_v6  ;;  %v952_v10 = vcombine.high %v810_v6, %v810_v6  ;;  %v14369_v11 = vsel %vm20828_vm0, %v810_v6, 0.0  ;;  %s13997_s0 = smov 1   ;;  %s13998_s28 = smov 5  }
  0xc8   : > { %20883 = vst [vmem:[#allocation29_spill] sm:$0xff] %v14348_v3  ;;  %s12290_s30 = sshll.u32 %s14346_s20, 8  ;;  %v14363_v8 = vsub.s32 0, %v14348_v3  ;;  %20885 = vst [vmem:[#allocation30_spill] sm:$0xff] %v14366_v9  ;;  %v935_v15 = vcombine.high %v14366_v9, %v14366_v9  ;;  %v14386_v18 = vsub.s32 1, %v14348_v3  ;;  %vm1924_vm6 = vcmask 1046534  }
  0xc9   : > { %v14360_v7 = vsub.s32 %v938_v4, %v14348_v3  ;;  %20886 = vst [vmem:[#allocation31_spill] sm:$0xff] %v14369_v11  ;;  %vm1926_vm7 = vcmask 1047559   ;;  %s13999_s1 = smov 2   ;;  %s14000_s21 = smov 3   ;;  %vm3733_vm8 = vcmask 7168   ;;  %vm3742_vm9 = vcmask 15360  }
  0xca   : > { %s14357_s19 = scalar_lea.vmem %s20884_s3, %s12290_s30  ;;  %s14001_s23 = smov 6   ;;  %vm3751_vm10 = vcmask 23552   ;;  %vm3760_vm11 = vcmask 31744   ;;  %vm3769_vm12 = vcmask 39936   ;;  %vm3778_vm13 = vcmask 48128  }
  0xcb   : > { %v756_v12 = vld [vmem:[%s14357_s19 + $0x60] sm:$0xff]  ;;  %v14373_v13 = vld [vmem:[%s14357_s19 + $0x68] sm:$0xff]  ;;  %v14380_v16 = vrot.slane %v14366_v9, %v14360_v7  ;;  %v14383_v17 = vrot.slane %v810_v6, %v14360_v7  ;;  %v14398_v25 = vrot.slane %v14369_v11, %v14360_v7  ;;  %v14406_v30 = vrot.slane %v952_v10, %v14360_v7  ;;  %s14002_s18 = smov 7   ;;  %s14003_s29 = smov 8  }
  0xcc   : > { %20887 = vst [vmem:[#allocation32_spill] sm:$0xff] %v14373_v13  ;;  %v760_v14 = vld [vmem:[%s14357_s19 + $0x80] sm:$0xff]  ;;  %v14389_v19 = vld [vmem:[%s14357_s19 + $0x88] sm:$0xff]  ;;  %v830_v20 = vrot.slane %v756_v12, 7  ;;  %v20621_v21 = vrot.slane %v14373_v13, 7  ;;  %s14004_s4 = smov 9  }
  0xcd   : > { %20888 = vst [vmem:[#allocation33_spill] sm:$0xff] %v14380_v16  ;;  %20889 = vst [vmem:[#allocation34_spill] sm:$0xff] %v14389_v19  ;;  %v836_v22 = vrot.slane %v760_v14, 7  ;;  %v752_v23 = vld [vmem:[%s14357_s19 + $0x40] sm:$0xff]  ;;  %v14394_v24 = vld [vmem:[%s14357_s19 + $0x48] sm:$0xff]  ;;  %v20620_v26 = vrot.slane %v14389_v19, 7 }
  0xce   : > { %20890 = vst [vmem:[#allocation35_spill] sm:$0xff] %v14394_v24  ;;  %v824_v27 = vrot.slane %v752_v23, 7  ;;  %v20622_v28 = vrot.slane %v14394_v24, 7  ;;  %v14403_v29 = vld [vmem:[%s14357_s19 + $0x20] sm:$0xff]  ;;  %v832_v31 = vsel %vm20828_vm0, %v830_v20, %v20621_v21  ;;  %v900_v32 = vsel %vm20828_vm0, 0.0, %v830_v20  ;;  %s14005_s27 = smov 10  }
  0xcf   : > { %v902_v33 = vsel %vm20828_vm0, 0.0, %v836_v22  ;;  %v838_v35 = vsel %vm20828_vm0, %v836_v22, %v20620_v26  ;;  %v1381_v36 = vcombine.high %v900_v32, %v900_v32  ;;  %v14418_v37 = vrot.slane %v900_v32, %v14360_v7  ;;  %s14006_s16 = smov 11   ;;  %s14007_s25 = smov 12  }
  0xd0   : > { %v1398_v38 = vcombine.high %v832_v31, %v832_v31  ;;  %v14421_v39 = vrot.slane %v832_v31, %v14360_v7  ;;  %v1415_v40 = vcombine.high %v902_v33, %v902_v33  ;;  %v14424_v41 = vrot.slane %v902_v33, %v14360_v7  ;;  %s14008_s26 = smov 13   ;;  %s14009_s3 = smov 14  }
  0xd1   : > { %v1432_v42 = vcombine.high %v838_v35, %v838_v35  ;;  %v14427_v43 = vrot.slane %v1381_v36, %v14360_v7  ;;  %v14431_v44 = vcombine.high %v14418_v37, %v14418_v37  ;;  %v14437_v46 = vrot.slane %v838_v35, %v14360_v7 }
  0xd2   : > { %20891 = vst [vmem:[#allocation36_spill] sm:$0xff] %v14424_v41  ;;  %v14434_v45 = vrot.slane %v1398_v38, %v14360_v7  ;;  %v14441_v47 = vcombine.high %v14421_v39, %v14421_v39  ;;  %v14444_v48 = vrot.slane %v1415_v40, %v14360_v7  ;;  %v14448_v49 = vcombine.high %v14424_v41, %v14424_v41 }
  0xd3   : > { %20892 = vst [vmem:[#allocation37_spill] sm:$0xff] %v14437_v46  ;;  %v14451_v50 = vrot.slane %v1432_v42, %v14360_v7  ;;  %v14455_v51 = vcombine.high %v14427_v43, %v14427_v43  ;;  %v14463_v53 = vcombine.high %v14437_v46, %v14437_v46  ;;  %v2644_v54 = vrot.slane %v14418_v37, %v14363_v8 }
  0xd4   : > { %20893 = vst [vmem:[#allocation38_spill] sm:$0xff] %v14444_v48  ;;  %20894 = vst [vmem:[#allocation39_spill] sm:$0xff] %v14448_v49  ;;  %v14459_v52 = vcombine.high %v14434_v45, %v14434_v45  ;;  %v14469_v55 = vcombine.high %v14444_v48, %v14444_v48  ;;  %v14477_v57 = vrot.slane %v14431_v44, %v14363_v8  ;;  %v898_v33 = vsel %vm20828_vm0, 0.0, %v824_v27 }
  0xd5   : > { %20895 = vst [vmem:[#allocation40_spill] sm:$0xff] %v14451_v50  ;;  %20896 = vst [vmem:[#allocation41_spill] sm:$0xff] %v14463_v53  ;;  %v14473_v56 = vcombine.high %v14451_v50, %v14451_v50  ;;  %v14481_v58 = vrot.slane %v14427_v43, %v14363_v8  ;;  %v14485_v59 = vrot.slane %v14455_v51, %v14363_v8  ;;  %vm3787_vm14 = vcmask 56320  }
  0xd6   : > { %20897 = vst [vmem:[#allocation42_spill] sm:$0xff] %v14469_v55  ;;  %20899 = vst [vmem:[#allocation44_spill] sm:$0xff] %v14477_v57  ;;  %v14489_v60 = vrot.slane %v14421_v39, %v14363_v8  ;;  %v14493_v61 = vrot.slane %v14441_v47, %v14363_v8  ;;  %v14497_v62 = vrot.slane %v14434_v45, %v14363_v8  ;;  %vm3796_vm15 = vcmask 64512  }
  0xd7   : > { %20898 = vst [vmem:[#allocation43_spill] sm:$0xff] %v14473_v56  ;;  %20900 = vst [vmem:[#allocation45_spill] sm:$0xff] %v14481_v58  ;;  %v14501_v63 = vrot.slane %v14459_v52, %v14363_v8  ;;  %v2676_v0 = vrot.slane %v14424_v41, %v14363_v8  ;;  %v14507_v1 = vrot.slane %v14448_v49, %v14363_v8 }
  0xd8   : > { %20901 = vst [vmem:[#allocation46_spill] sm:$0xff] %v14485_v59  ;;  %20902 = vst [vmem:[#allocation47_spill] sm:$0xff] %v14489_v60  ;;  %v14511_v2 = vrot.slane %v14444_v48, %v14363_v8  ;;  %v14515_v4 = vrot.slane %v14469_v55, %v14363_v8  ;;  %v14519_v6 = vrot.slane %v14437_v46, %v14363_v8 }
  0xd9   : > { %20903 = vst [vmem:[#allocation48_spill] sm:$0xff] %v14493_v61  ;;  %20904 = vst [vmem:[#allocation49_spill] sm:$0xff] %v14497_v62  ;;  %v14523_v10 = vrot.slane %v14463_v53, %v14363_v8  ;;  %v14527_v12 = vrot.slane %v14451_v50, %v14363_v8  ;;  %v14531_v14 = vrot.slane %v14473_v56, %v14363_v8 }
  0xda   : > { %20905 = vst [vmem:[#allocation50_spill] sm:$0xff] %v14501_v63  ;;  %20906 = vst [vmem:[#allocation51_spill] sm:$0xff] %v14507_v1  ;;  %v2822_v20 = vsel %vm20827_vm1, %v14477_v57, %v2644_v54  ;;  %v2829_v22 = vsel %vm20827_vm1, %v14507_v1, %v2676_v0  ;;  %v826_v23 = vsel %vm20828_vm0, %v824_v27, %v20622_v28  ;;  %v750_v57 = vld [vmem:[%s14357_s19 + $0x30] sm:$0xff] }
  0xdb   : > { %20907 = vst [vmem:[#allocation52_spill] sm:$0xff] %v14511_v2  ;;  %20908 = vst [vmem:[#allocation53_spill] sm:$0xff] %v14515_v4  ;;  %v2823_v31 = vsel %vm20826_vm2, %v14481_v58, %v2822_v20  ;;  %v2830_v32 = vsel %vm20826_vm2, %v14511_v2, %v2829_v22  ;;  %v1364_v35 = vcombine.high %v826_v23, %v826_v23  ;;  %v14817_v58 = vld [vmem:[%s14357_s19 + $0x18] sm:$0xff]  ;;  %v821_v24 = vrot.slane %v750_v57, 7 }
  0xdc   : > { %20909 = vst [vmem:[#allocation54_spill] sm:$0xff] %v14519_v6  ;;  %20910 = vst [vmem:[#allocation55_spill] sm:$0xff] %v14523_v10  ;;  %v2824_v36 = vsel %vm20829_vm3, %v14485_v59, %v2823_v31  ;;  %v2831_v38 = vsel %vm20829_vm3, %v14515_v4, %v2830_v32  ;;  %v1347_v40 = vcombine.high %v898_v33, %v898_v33  ;;  %v746_v59 = vld [vmem:[%s14357_s19 + $0x10] sm:$0xff] }
  0xdd   : > { %20911 = vst [vmem:[#allocation56_spill] sm:$0xff] %v14527_v12  ;;  %20912 = vst [vmem:[#allocation57_spill] sm:$0xff] %v14531_v14  ;;  %v14550_v42 = vrot.slane %v898_v33, %v14360_v7  ;;  %v2825_v54 = vsel %vm1920_vm4, %v14489_v60, %v2824_v36  ;;  %v2832_v0 = vsel %vm1920_vm4, %v14519_v6, %v2831_v38  ;;  %v14574_v36 = vld [vmem:[%s14357_s19 + $0x28] sm:$0xff] }
  0xde   : > { %v14557_v27 = vrot.slane %v826_v23, %v14360_v7  ;;  %v14560_v20 = vrot.slane %v1364_v35, %v14360_v7  ;;  %v2826_v22 = vsel %vm1922_vm5, %v14493_v61, %v2825_v54  ;;  %v2833_v31 = vsel %vm1922_vm5, %v14523_v10, %v2832_v0  ;;  %20913 = vst [vmem:[#allocation58_spill] sm:$0xff] %v14574_v36  ;;  %v772_v23 = vld [vmem:[%s14357_s19 + $0xe0] sm:$0xff]  ;;  %v14586_v0 = vld [vmem:[%s14357_s19 + $0xe8] sm:$0xff] }
  0xdf   : > { %v14567_v32 = vrot.slane %v1347_v40, %v14360_v7  ;;  %v14571_v33 = vcombine.high %v14550_v42, %v14550_v42  ;;  %v2827_v35 = vsel %vm1924_vm6, %v14497_v62, %v2826_v22  ;;  %v2834_v38 = vsel %vm1924_vm6, %v14527_v12, %v2833_v31  ;;  %20914 = vst [vmem:[#allocation59_spill] sm:$0xff] %v14586_v0 }
  0xe0   : > { %v14583_v54 = vcombine.high %v14557_v27, %v14557_v27  ;;  %v14592_v40 = vrot.slane %v935_v15, %v14360_v7  ;;  %v14596_v5 = vsel %vm1926_vm7, %v14501_v63, %v2827_v35  ;;  %v14600_v22 = vsel %vm1926_vm7, %v14531_v14, %v2834_v38 }
  0xe1   : > { %20915 = vst [vmem:[#allocation60_spill] sm:$0xff] %v14596_v5  ;;  %20916 = vst [vmem:[#allocation61_spill] sm:$0xff] %v14600_v22  ;;  %v14604_v31 = vcombine.high %v14567_v32, %v14567_v32  ;;  %v2612_v26 = vrot.slane %v14550_v42, %v14363_v8  ;;  %v14612_v15 = vcombine.high %v14560_v20, %v14560_v20  ;;  %v20639_v9 = vrot.slane %v14574_v36, 7 }
  0xe2   : > { %v14616_v35 = vrot.slane %v14571_v33, %v14363_v8  ;;  %v14620_v38 = vrot.slane %v14567_v32, %v14363_v8  ;;  %v14628_v34 = vrot.slane %v14557_v27, %v14363_v8  ;;  %v14632_v21 = vrot.slane %v14583_v54, %v14363_v8 }
  0xe3   : > { %v14624_v28 = vrot.slane %v14604_v31, %v14363_v8  ;;  %v14636_v11 = vrot.slane %v14560_v20, %v14363_v8  ;;  %v20923_v14 = vrot.slane %v14403_v29, 7  ;;  %v854_v10 = vrot.slane %v772_v23, 7 }
  0xe4   : > { %20917 = vst [vmem:[#allocation62_spill] sm:$0xff] %v14616_v35  ;;  %20918 = vst [vmem:[#allocation63_spill] sm:$0xff] %v14620_v38  ;;  %v2815_v3 = vsel %vm20827_vm1, %v14616_v35, %v2612_v26  ;;  %v14652_v19 = vrot.slane %v14612_v15, %v14363_v8  ;;  %v20935_v46 = vrot.slane %v14586_v0, 7  ;;  %v967_v62 = vcombine.high %v14383_v17, %v14383_v17 }
  0xe5   : > { %20919 = vst [vmem:[#allocation64_spill] sm:$0xff] %v14624_v28  ;;  %20920 = vst [vmem:[#allocation65_spill] sm:$0xff] %v14628_v34  ;;  %v896_v12 = vsel %vm20828_vm0, 0.0, %v20923_v14  ;;  %v2816_v6 = vsel %vm20826_vm2, %v14620_v38, %v2815_v3  ;;  %v820_v23 = vsel %vm20828_vm0, %v20923_v14, %v20639_v9  ;;  %v908_v3 = vsel %vm20828_vm0, 0.0, %v854_v10 }
  0xe6   : > { %20921 = vst [vmem:[#allocation66_spill] sm:$0xff] %v14632_v21  ;;  %20922 = vst [vmem:[#allocation67_spill] sm:$0xff] %v14636_v11  ;;  %v1313_v4 = vcombine.high %v896_v12, %v896_v12  ;;  %v14647_v2 = vrot.slane %v896_v12, %v14360_v7  ;;  %v2817_v26 = vsel %vm20829_vm3, %v14624_v28, %v2816_v6 }
  0xe7   : > { %20925 = vst [vmem:[#allocation69_spill] sm:$0xff] %v14652_v19  ;;  %v2818_v12 = vsel %vm1920_vm4, %v14628_v34, %v2817_v26  ;;  %v1330_v50 = vcombine.high %v820_v23, %v820_v23  ;;  %v14674_v29 = vrot.slane %v820_v23, %v14360_v7  ;;  %v14680_v26 = vcombine.high %v14380_v16, %v14380_v16  ;;  %v14832_v34 = vld [vmem:[%s14357_s19 + $0x38] sm:$0xff] }
  0xe8   : > { %20924 = vst [vmem:[#allocation68_spill] sm:$0xff] %v14647_v2  ;;  %v14665_v1 = vrot.slane %v1313_v4, %v14360_v7  ;;  %v14669_v56 = vcombine.high %v14647_v2, %v14647_v2  ;;  %v2819_v6 = vsel %vm1922_vm5, %v14632_v21, %v2818_v12  ;;  %v2580_v14 = vrot.slane %v14647_v2, %v14363_v8 }
  0xe9   : > { %20928 = vst [vmem:[#allocation72_spill] sm:$0xff] %v14674_v29  ;;  %v2820_v4 = vsel %vm1924_vm6, %v14636_v11, %v2819_v6  ;;  %v14689_v53 = vrot.slane %v1330_v50, %v14360_v7  ;;  %v14701_v22 = vcombine.high %v14674_v29, %v14674_v29  ;;  %v856_v50 = vsel %vm20828_vm0, %v854_v10, %v20935_v46 }
  0xea   : > { %20926 = vst [vmem:[#allocation70_spill] sm:$0xff] %v14665_v1  ;;  %20927 = vst [vmem:[#allocation71_spill] sm:$0xff] %v14669_v56  ;;  %v14686_v9 = vcombine.high %v14665_v1, %v14665_v1  ;;  %v14693_v23 = vrot.slane %v14669_v56, %v14363_v8  ;;  %v14697_v12 = vsel %vm1926_vm7, %v14652_v19, %v2820_v4 }
  0xeb   : > { %20930 = vst [vmem:[#allocation74_spill] sm:$0xff] %v14689_v53  ;;  %20932 = vst [vmem:[#allocation76_spill] sm:$0xff] %v14697_v12  ;;  %v14705_v6 = vrot.slane %v14665_v1, %v14363_v8  ;;  %v12854_v55 = vpack.i.bf16 %v14596_v5, %v14697_v12  ;;  %v14714_v48 = vcombine.high %v14689_v53, %v14689_v53 }
  0xec   : > { %20929 = vst [vmem:[#allocation73_spill] sm:$0xff] %v14686_v9  ;;  %20931 = vst [vmem:[#allocation75_spill] sm:$0xff] %v14693_v23  ;;  %v14718_v4 = vrot.slane %v14686_v9, %v14363_v8  ;;  %v14722_v49 = vrot.slane %v14674_v29, %v14363_v8  ;;  %v14726_v0 = vrot.slane %v14701_v22, %v14363_v8 }
  0xed   : > { %20933 = vst [vmem:[#allocation77_spill] sm:$0xff] %v14701_v22  ;;  %20934 = vst [vmem:[#allocation78_spill] sm:$0xff] %v14705_v6  ;;  %v14730_v46 = vrot.slane %v14689_v53, %v14363_v8  ;;  %v2808_v10 = vsel %vm20827_vm1, %v14693_v23, %v2580_v14  ;;  %v951_v5 = vcombine.high %v14592_v40, %v14592_v40  ;;  %12855 = vrot.lane.b32.xlu1 %v12854_v55, %s13996_s24 }
  0xee   : > { %20936 = vst [vmem:[#allocation79_spill] sm:$0xff] %v14714_v48  ;;  %20937 = vst [vmem:[#allocation80_spill] sm:$0xff] %v14718_v4  ;;  %v14739_v41 = vrot.slane %v14714_v48, %v14363_v8  ;;  %v2809_v63 = vsel %vm20826_vm2, %v14705_v6, %v2808_v10  ;;  %v1517_v61 = vcombine.high %v908_v3, %v908_v3 }
  0xef   : > { %20938 = vst [vmem:[#allocation81_spill] sm:$0xff] %v14722_v49  ;;  %20939 = vst [vmem:[#allocation82_spill] sm:$0xff] %v14726_v0  ;;  %v2810_v14 = vsel %vm20829_vm3, %v14718_v4, %v2809_v63  ;;  %v14748_v23 = vrot.slane %v908_v3, %v14360_v7  ;;  %v1534_v36 = vcombine.high %v856_v50, %v856_v50 }
  0xf0   : > { %20940 = vst [vmem:[#allocation83_spill] sm:$0xff] %v14730_v46  ;;  %20941 = vst [vmem:[#allocation84_spill] sm:$0xff] %v14739_v41  ;;  %v14751_v55 = vrot.slane %v856_v50, %v14360_v7  ;;  %v2811_v60 = vsel %vm1920_vm4, %v14722_v49, %v2810_v14  ;;  %v968_v10 = vcombine.high %v14406_v30, %v14406_v30 }
  0xf1   : > { %20942 = vst [vmem:[#allocation85_spill] sm:$0xff] %v14748_v23  ;;  %v14758_v6 = vrot.slane %v1517_v61, %v14360_v7  ;;  %v14761_v19 = vrot.slane %v951_v5, %v14363_v8  ;;  %v2812_v63 = vsel %vm1922_vm5, %v14726_v0, %v2811_v60  ;;  %v14767_v3 = vcombine.high %v14748_v23, %v14748_v23 }
  0xf2   : > { %20943 = vst [vmem:[#allocation86_spill] sm:$0xff] %v14751_v55  ;;  %v14770_v50 = vrot.slane %v1534_v36, %v14360_v7  ;;  %v14773_v14 = vrot.slane %v967_v62, %v14363_v8  ;;  %v2813_v61 = vsel %vm1924_vm6, %v14730_v46, %v2812_v63  ;;  %v14783_v60 = vcombine.high %v14751_v55, %v14751_v55 }
  0xf3   : > { %20944 = vst [vmem:[#allocation87_spill] sm:$0xff] %v14758_v6  ;;  %20945 = vst [vmem:[#allocation88_spill] sm:$0xff] %v14761_v19  ;;  %v14779_v49 = vcombine.high %v14758_v6, %v14758_v6  ;;  %v1988_v0 = vrot.slane %v14380_v16, %v14386_v18  ;;  %v14789_v36 = vsel %vm1926_vm7, %v14739_v41, %v2813_v61 }
  0xf4   : > { %20946 = vst [vmem:[#allocation89_spill] sm:$0xff] %v14767_v3  ;;  %20947 = vst [vmem:[#allocation90_spill] sm:$0xff] %v14770_v50  ;;  %v14792_v4 = vrot.slane %v968_v10, %v14363_v8  ;;  %v14796_v63 = vrot.slane %v14680_v26, %v14386_v18  ;;  %v14800_v46 = vrot.slane %v14592_v40, %v14386_v18 }
  0xf5   : > { %20948 = vst [vmem:[#allocation91_spill] sm:$0xff] %v14773_v14  ;;  %20949 = vst [vmem:[#allocation92_spill] sm:$0xff] %v14779_v49  ;;  %v14807_v11 = vcombine.high %v14770_v50, %v14770_v50  ;;  %v14810_v61 = vrot.slane %v951_v5, %v14386_v18  ;;  %v14814_v41 = vrot.slane %v14383_v17, %v14386_v18 }
  0xf6   : > { %20950 = vst [vmem:[#allocation93_spill] sm:$0xff] %v14783_v60  ;;  %20951 = vst [vmem:[#allocation94_spill] sm:$0xff] %v14789_v36  ;;  %v14821_v21 = vrot.slane %v967_v62, %v14386_v18  ;;  %v14825_v16 = vrot.slane %v14406_v30, %v14386_v18  ;;  %v2241_v12 = vsel %vm20827_vm1, %v14796_v63, %v1988_v0 }
  0xf7   : > { %20952 = vst [vmem:[#allocation95_spill] sm:$0xff] %v14792_v4  ;;  %20953 = vst [vmem:[#allocation96_spill] sm:$0xff] %v14796_v63  ;;  %v3108_v5 = vrot.slane %v14748_v23, %v14386_v18  ;;  %v2242_v28 = vsel %vm20826_vm2, %v14800_v46, %v2241_v12  ;;  %v14838_v38 = vrot.slane %v14767_v3, %v14386_v18 }
  0xf8   : > { %20954 = vst [vmem:[#allocation97_spill] sm:$0xff] %v14800_v46  ;;  %20955 = vst [vmem:[#allocation98_spill] sm:$0xff] %v14807_v11  ;;  %v14842_v62 = vrot.slane %v14758_v6, %v14386_v18  ;;  %v14846_v35 = vrot.slane %v14779_v49, %v14386_v18  ;;  %v14849_v0 = vrot.slane %v968_v10, %v14386_v18  ;;  %v815_v6 = vrot.slane %v746_v59, 7 }
  0xf9   : > { %20956 = vst [vmem:[#allocation99_spill] sm:$0xff] %v14810_v61  ;;  %20957 = vst [vmem:[#allocation100_spill] sm:$0xff] %v14814_v41  ;;  %v14853_v23 = vsel %vm20829_vm3, %v14810_v61, %v2242_v28  ;;  %v14857_v12 = vrot.slane %v14751_v55, %v14386_v18  ;;  %v14861_v3 = vrot.slane %v14783_v60, %v14386_v18  ;;  %v20689_v60 = vrot.slane %v14817_v58, 7 }
  0xfa   : > { %20958 = vst [vmem:[#allocation101_spill] sm:$0xff] %v14821_v21  ;;  %20959 = vst [vmem:[#allocation102_spill] sm:$0xff] %v14825_v16  ;;  %v2244_v49 = vsel %vm1920_vm4, %v14814_v41, %v14853_v23  ;;  %v14868_v10 = vrot.slane %v14770_v50, %v14386_v18  ;;  %v3186_v28 = vsel %vm20827_vm1, %v14838_v38, %v3108_v5  ;;  %v20690_v41 = vrot.slane %v14832_v34, 7 }
  0xfb   : > { %20960 = vst [vmem:[#allocation103_spill] sm:$0xff] %v14838_v38  ;;  %20961 = vst [vmem:[#allocation104_spill] sm:$0xff] %v14842_v62  ;;  %v2245_v55 = vsel %vm1922_vm5, %v14821_v21, %v2244_v49  ;;  %v3187_v13 = vsel %vm20826_vm2, %v14842_v62, %v3186_v28  ;;  %v895_v59 = vsel %vm20828_vm0, 0.0, %v815_v6  ;;  %v817_v57 = vsel %vm20828_vm0, %v815_v6, %v20689_v60 }
  0xfc   : > { %20962 = vst [vmem:[#allocation105_spill] sm:$0xff] %v14846_v35  ;;  %20963 = vst [vmem:[#allocation106_spill] sm:$0xff] %v14849_v0  ;;  %v3188_v50 = vsel %vm20829_vm3, %v14846_v35, %v3187_v13  ;;  %v2246_v49 = vsel %vm1924_vm6, %v14825_v16, %v2245_v55  ;;  %v897_v28 = vsel %vm20828_vm0, 0.0, %v821_v24  ;;  %v823_v13 = vsel %vm20828_vm0, %v821_v24, %v20690_v41 }
  0xfd   : > { %20964 = vst [vmem:[#allocation107_spill] sm:$0xff] %v14853_v23  ;;  %20965 = vst [vmem:[#allocation108_spill] sm:$0xff] %v14857_v12  ;;  %v14879_v23 = vrot.slane %v14807_v11, %v14386_v18  ;;  %v3189_v5 = vsel %vm1920_vm4, %v14857_v12, %v3188_v50  ;;  %v969_v35 = vcombine.high %v895_v59, %v895_v59 }
  0xfe   : > { %20966 = vst [vmem:[#allocation109_spill] sm:$0xff] %v14861_v3  ;;  %20967 = vst [vmem:[#allocation110_spill] sm:$0xff] %v14868_v10  ;;  %v3190_v62 = vsel %vm1922_vm5, %v14861_v3, %v3189_v5  ;;  %v14899_v38 = vrot.slane %v895_v59, %v14360_v7  ;;  %v986_v50 = vcombine.high %v817_v57, %v817_v57 }
  0xff   : > { %20968 = vst [vmem:[#allocation111_spill] sm:$0xff] %v14879_v23  ;;  %v3191_v55 = vsel %vm1924_vm6, %v14868_v10, %v3190_v62  ;;  %v14904_v12 = vrot.slane %v817_v57, %v14360_v7  ;;  %v1003_v6 = vcombine.high %v897_v28, %v897_v28  ;;  %v14908_v60 = vsel %vm1926_vm7, %v14849_v0, %v2246_v49 }
 0x100   : > { %20969 = vst [vmem:[#allocation112_spill] sm:$0xff] %v14899_v38  ;;  %20970 = vst [vmem:[#allocation113_spill] sm:$0xff] %v14908_v60  ;;  %v14911_v5 = vrot.slane %v969_v35, %v14360_v7  ;;  %v14915_v24 = vcombine.high %v14899_v38, %v14899_v38  ;;  %v14918_v59 = vrot.slane %v897_v28, %v14360_v7 }
 0x101   : > { %v14922_v62 = vsel %vm1926_vm7, %v14879_v23, %v3191_v55  ;;  %v14925_v57 = vrot.slane %v986_v50, %v14360_v7  ;;  %v1001_v49 = vcombine.high %v14904_v12, %v14904_v12  ;;  %v14930_v35 = vrot.slane %v1003_v6, %v14360_v7 }
 0x102   : > { %20971 = vst [vmem:[#allocation114_spill] sm:$0xff] %v14918_v59  ;;  %20972 = vst [vmem:[#allocation115_spill] sm:$0xff] %v14922_v62  ;;  %v985_v41 = vcombine.high %v14911_v5, %v14911_v5  ;;  %v14936_v28 = vcombine.high %v14918_v59, %v14918_v59  ;;  %v1020_v10 = vcombine.high %v823_v13, %v823_v13 }
 0x103   : > { %v14939_v55 = vrot.slane %v823_v13, %v14360_v7  ;;  %v1002_v50 = vcombine.high %v14925_v57, %v14925_v57  ;;  %v14945_v23 = vcombine.high %v14930_v35, %v14930_v35  ;;  %v14948_v6 = vrot.slane %v1001_v49, %v14363_v8 }
 0x104   : > { %v2020_v3 = vrot.slane %v14899_v38, %v14386_v18  ;;  %v14953_v62 = vrot.slane %v1020_v10, %v14360_v7  ;;  %v14960_v11 = vrot.slane %v985_v41, %v14363_v8  ;;  %v14964_v0 = vrot.slane %v14915_v24, %v14386_v18 }
 0x105   : > { %20973 = vst [vmem:[#allocation116_spill] sm:$0xff] %v14948_v6  ;;  %v14957_v13 = vcombine.high %v14939_v55, %v14939_v55  ;;  %v14968_v16 = vrot.slane %v14911_v5, %v14386_v18  ;;  %v14971_v38 = vrot.slane %v985_v41, %v14386_v18  ;;  %v14975_v10 = vrot.slane %v14904_v12, %v14386_v18 }
 0x106   : > { %20974 = vst [vmem:[#allocation117_spill] sm:$0xff] %v14953_v62  ;;  %20976 = vst [vmem:[#allocation119_spill] sm:$0xff] %v14960_v11  ;;  %v14978_v21 = vrot.slane %v1001_v49, %v14386_v18  ;;  %v14982_v61 = vcombine.high %v14953_v62, %v14953_v62  ;;  %v14986_v46 = vrot.slane %v14925_v57, %v14386_v18 }
 0x107   : > { %20975 = vst [vmem:[#allocation118_spill] sm:$0xff] %v14957_v13  ;;  %v14989_v63 = vrot.slane %v1002_v50, %v14386_v18  ;;  %v2052_v41 = vrot.slane %v14918_v59, %v14386_v18  ;;  %v14995_v48 = vrot.slane %v14936_v28, %v14386_v18  ;;  %v14999_v49 = vrot.slane %v14930_v35, %v14386_v18 }
 0x108   : > { %20977 = vst [vmem:[#allocation120_spill] sm:$0xff] %v14978_v21  ;;  %20978 = vst [vmem:[#allocation121_spill] sm:$0xff] %v14982_v61  ;;  %v15003_v53 = vrot.slane %v14945_v23, %v14386_v18  ;;  %v15007_v22 = vrot.slane %v14939_v55, %v14386_v18  ;;  %v15011_v29 = vrot.slane %v14957_v13, %v14386_v18 }
 0x109   : > { %20979 = vst [vmem:[#allocation122_spill] sm:$0xff] %v14989_v63  ;;  %v15015_v59 = vrot.slane %v14953_v62, %v14386_v18  ;;  %v15019_v9 = vrot.slane %v14982_v61, %v14386_v18  ;;  %v2248_v1 = vsel %vm20827_vm1, %v14964_v0, %v2020_v3  ;;  %v2255_v2 = vsel %vm20827_vm1, %v14995_v48, %v2052_v41 }
 0x10a   : > { %v2249_v56 = vsel %vm20826_vm2, %v14968_v16, %v2248_v1  ;;  %v15028_v36 = vrot.slane %v1002_v50, %v14363_v8  ;;  %v2948_v62 = vrot.slane %v14550_v42, %v14386_v18  ;;  %v2256_v13 = vsel %vm20826_vm2, %v14999_v49, %v2255_v2 }
 0x10b   : > { %v2250_v61 = vsel %vm20829_vm3, %v14971_v38, %v2249_v56  ;;  %v15038_v1 = vrot.slane %v14571_v33, %v14386_v18  ;;  %v15042_v3 = vrot.slane %v14567_v32, %v14386_v18  ;;  %v2257_v42 = vsel %vm20829_vm3, %v15003_v53, %v2256_v13 }
 0x10c   : > { %20980 = vst [vmem:[#allocation123_spill] sm:$0xff] %v15028_v36  ;;  %v2251_v50 = vsel %vm1920_vm4, %v14975_v10, %v2250_v61  ;;  %v15050_v56 = vrot.slane %v14604_v31, %v14386_v18  ;;  %v15054_v2 = vrot.slane %v14557_v27, %v14386_v18  ;;  %v2258_v32 = vsel %vm1920_vm4, %v15007_v22, %v2257_v42  ;;  %v754_v31 = vld [vmem:[%s14357_s19 + $0x50] sm:$0xff] }
 0x10d   : > { %20981 = vst [vmem:[#allocation124_spill] sm:$0xff] %v15038_v1  ;;  %20982 = vst [vmem:[#allocation125_spill] sm:$0xff] %v15042_v3  ;;  %v2252_v33 = vsel %vm1922_vm5, %v14978_v21, %v2251_v50  ;;  %v15062_v61 = vrot.slane %v14583_v54, %v14386_v18  ;;  %v15066_v13 = vrot.slane %v14560_v20, %v14386_v18  ;;  %v15080_v54 = vld [vmem:[%s14357_s19 + $0x58] sm:$0xff] }
 0x10e   : > { %20983 = vst [vmem:[#allocation126_spill] sm:$0xff] %v15050_v56  ;;  %20984 = vst [vmem:[#allocation127_spill] sm:$0xff] %v15054_v2  ;;  %v2253_v41 = vsel %vm1924_vm6, %v14986_v46, %v2252_v33  ;;  %v2259_v27 = vsel %vm1922_vm5, %v15011_v29, %v2258_v32  ;;  %v15075_v50 = vrot.slane %v14612_v15, %v14386_v18 }
 0x10f   : > { %20985 = vst [vmem:[#allocation128_spill] sm:$0xff] %v15062_v61  ;;  %20986 = vst [vmem:[#allocation129_spill] sm:$0xff] %v15066_v13  ;;  %v2980_v42 = vrot.slane %v14418_v37, %v14386_v18  ;;  %v15084_v20 = vsel %vm1926_vm7, %v14989_v63, %v2253_v41  ;;  %v2260_v21 = vsel %vm1924_vm6, %v15015_v59, %v2259_v27 }
 0x110   : > { %20987 = vst [vmem:[#allocation130_spill] sm:$0xff] %v15075_v50  ;;  %20988 = vst [vmem:[#allocation131_spill] sm:$0xff] %v15084_v20  ;;  %v15090_v33 = vrot.slane %v14431_v44, %v14386_v18  ;;  %v15094_v15 = vrot.slane %v14427_v43, %v14386_v18  ;;  %v15098_v37 = vsel %vm1926_vm7, %v15019_v9, %v2260_v21  ;;  %v827_v44 = vrot.slane %v754_v31, 7 }
 0x111   : > { %20991 = vst [vmem:[#allocation134_spill] sm:$0xff] %v15098_v37  ;;  %v12839_v32 = vpack.i.bf16 %v15084_v20, %v14908_v60  ;;  %v15104_v41 = vrot.slane %v14455_v51, %v14386_v18  ;;  %v15108_v27 = vrot.slane %v14421_v39, %v14386_v18  ;;  %v15114_v43 = vrot.slane %v14441_v47, %v14386_v18 }
 0x112   : > { %20989 = vst [vmem:[#allocation132_spill] sm:$0xff] %v15090_v33  ;;  %20990 = vst [vmem:[#allocation133_spill] sm:$0xff] %v15094_v15  ;;  %v15118_v21 = vrot.slane %v14434_v45, %v14386_v18  ;;  %v15122_v60 = vrot.slane %v14459_v52, %v14386_v18  ;;  %v3151_v39 = vsel %vm20827_vm1, %v15038_v1, %v2948_v62  ;;  %v20722_v47 = vrot.slane %v15080_v54, 7 }
 0x113   : > { %20992 = vst [vmem:[#allocation135_spill] sm:$0xff] %v15104_v41  ;;  %20993 = vst [vmem:[#allocation136_spill] sm:$0xff] %v15108_v27  ;;  %12840 = vrot.lane.b32.xlu0 %v12839_v32, %s13997_s0  ;;  %v3158_v51 = vsel %vm20827_vm1, %v15090_v33, %v2980_v42  ;;  %v3152_v45 = vsel %vm20826_vm2, %v15042_v3, %v3151_v39  ;;  %v20997_v52 = vrot.slane %v14817_v58, 7  ;;  %v899_v39 = vsel %vm20828_vm0, 0.0, %v827_v44 }
 0x114   : > { %20994 = vst [vmem:[#allocation137_spill] sm:$0xff] %v15114_v43  ;;  %20995 = vst [vmem:[#allocation138_spill] sm:$0xff] %v15118_v21  ;;  %v3159_v20 = vsel %vm20826_vm2, %v15094_v15, %v3158_v51  ;;  %v15139_v32 = vrot.slane %v14680_v26, %v14363_v8  ;;  %v3153_v62 = vsel %vm20829_vm3, %v15050_v56, %v3152_v45 }
 0x115   : > { %20996 = vst [vmem:[#allocation139_spill] sm:$0xff] %v15122_v60  ;;  %v912_v63 = vsel %vm20828_vm0, %v20997_v52, 0.0  ;;  %v3160_v31 = vsel %vm20829_vm3, %v15104_v41, %v3159_v20  ;;  %v829_v42 = vsel %vm20828_vm0, %v827_v44, %v20722_v47  ;;  %v3154_v58 = vsel %vm1920_vm4, %v15054_v2, %v3153_v62 }
 0x116   : > { %20998 = vst [vmem:[#allocation140_spill] sm:$0xff] %v15139_v32  ;;  %v3161_v51 = vsel %vm1920_vm4, %v15108_v27, %v3160_v31  ;;  %v1037_v26 = vcombine.high %v899_v39, %v899_v39  ;;  %v15154_v52 = vrot.slane %v899_v39, %v14360_v7  ;;  %v3155_v45 = vsel %vm1922_vm5, %v15062_v61, %v3154_v58 }
 0x117   : > { %v3162_v20 = vsel %vm1922_vm5, %v15114_v43, %v3161_v51  ;;  %v1054_v41 = vcombine.high %v829_v42, %v829_v42  ;;  %v15161_v47 = vrot.slane %v829_v42, %v14360_v7  ;;  %v3156_v44 = vsel %vm1924_vm6, %v15066_v13, %v3155_v45  ;;  %v744_v43 = vld [vmem:[%s14357_s19] sm:$0xff] }
 0x118   : > { %20999 = vst [vmem:[#allocation141_spill] sm:$0xff] %v15154_v52  ;;  %v3163_v62 = vsel %vm1924_vm6, %v15118_v21, %v3162_v20  ;;  %v15168_v31 = vrot.slane %v1037_v26, %v14360_v7  ;;  %v15172_v39 = vcombine.high %v15154_v52, %v15154_v52  ;;  %v15176_v58 = vsel %vm1926_vm7, %v15075_v50, %v3156_v44 }
 0x119   : > { %21000 = vst [vmem:[#allocation142_spill] sm:$0xff] %v15176_v58  ;;  %v15180_v42 = vsel %vm1926_vm7, %v15122_v60, %v3163_v62  ;;  %v15183_v51 = vrot.slane %v1054_v41, %v14360_v7  ;;  %v15187_v26 = vcombine.high %v15161_v47, %v15161_v47  ;;  %v2084_v44 = vrot.slane %v15154_v52, %v14386_v18 }
 0x11a   : > { %21001 = vst [vmem:[#allocation143_spill] sm:$0xff] %v15180_v42  ;;  %v12864_v45 = vpack.i.bf16 %v15180_v42, %v15176_v58  ;;  %v15193_v20 = vcombine.high %v15168_v31, %v15168_v31  ;;  %v15199_v62 = vrot.slane %v15172_v39, %v14386_v18  ;;  %v15207_v60 = vrot.slane %v15168_v31, %v14386_v18 }
 0x11b   : > { %v15203_v41 = vcombine.high %v15183_v51, %v15183_v51  ;;  %v15211_v42 = vrot.slane %v15161_v47, %v14386_v18  ;;  %v15215_v58 = vrot.slane %v15187_v26, %v14386_v18  ;;  %v15224_v50 = vrot.slane %v15183_v51, %v14386_v18 }
 0x11c   : > { %12865 = vrot.lane.b32.xlu1 %v12864_v45, %s13998_s28  ;;  %v15220_v52 = vrot.slane %v15193_v20, %v14386_v18  ;;  %v2262_v21 = vsel %vm20827_vm1, %v15199_v62, %v2084_v44  ;;  %v15229_v13 = vrot.slane %v912_v63, %v14360_v7  ;;  %v15240_v27 = vrot.slane %v14592_v40, %v14363_v8 }
 0x11d   : > { %v15234_v61 = vrot.slane %v15203_v41, %v14386_v18  ;;  %v2263_v45 = vsel %vm20826_vm2, %v15207_v60, %v2262_v21  ;;  %v15244_v2 = vrot.slane %v14383_v17, %v14363_v8  ;;  %v15250_v44 = vrot.slane %v14406_v30, %v14363_v8 }
 0x11e   : > { %21002 = vst [vmem:[#allocation144_spill] sm:$0xff] %v15240_v27  ;;  %v2264_v63 = vsel %vm20829_vm3, %v15220_v52, %v2263_v45  ;;  %v15254_v56 = vrot.slane %v14915_v24, %v14363_v8  ;;  %v15258_v21 = vrot.slane %v14911_v5, %v14363_v8  ;;  %v15264_v17 = vrot.slane %v14904_v12, %v14363_v8  ;;  %v15275_v24 = vld [vmem:[%s14357_s19 + $0x8] sm:$0xff] }
 0x11f   : > { %21003 = vst [vmem:[#allocation145_spill] sm:$0xff] %v15244_v2  ;;  %21004 = vst [vmem:[#allocation146_spill] sm:$0xff] %v15250_v44  ;;  %v2265_v40 = vsel %vm1920_vm4, %v15211_v42, %v2264_v63  ;;  %v15268_v45 = vrot.slane %v14925_v57, %v14363_v8  ;;  %v15272_v30 = vrot.slane %v14398_v25, %v14363_v8  ;;  %v812_v3 = vrot.slane %v744_v43, 7 }
 0x120   : > { %21005 = vst [vmem:[#allocation147_spill] sm:$0xff] %v15254_v56  ;;  %21006 = vst [vmem:[#allocation148_spill] sm:$0xff] %v15258_v21  ;;  %v2266_v5 = vsel %vm1922_vm5, %v15215_v58, %v2265_v40  ;;  %v2328_v63 = vrot.slane %v15229_v13, %v14363_v8  ;;  %v2353_v12 = vsel %vm20827_vm1, %v15240_v27, %v15139_v32 }
 0x121   : > { %21007 = vst [vmem:[#allocation149_spill] sm:$0xff] %v15264_v17  ;;  %21008 = vst [vmem:[#allocation150_spill] sm:$0xff] %v15268_v45  ;;  %v2360_v57 = vsel %vm20827_vm1, %v15258_v21, %v15254_v56  ;;  %v2267_v15 = vsel %vm1924_vm6, %v15224_v50, %v2266_v5  ;;  %v15291_v33 = vsel %vm20826_vm2, %v14761_v19, %v2353_v12  ;;  %v20746_v5 = vrot.slane %v15275_v24, 7  ;;  %v21027_v56 = vld [vmem:[#allocation94_spill] sm:$0xff] }
 0x122   : > { %21009 = vst [vmem:[#allocation151_spill] sm:$0xff] %v15272_v30  ;;  %21010 = vst [vmem:[#allocation152_spill] sm:$0xff] %v15291_v33  ;;  %v2361_v40 = vsel %vm20826_vm2, %v14960_v11, %v2360_v57  ;;  %v15297_v1 = vsel %vm1926_vm7, %v15234_v61, %v2267_v15  ;;  %v2355_v27 = vsel %vm20829_vm3, %v15244_v2, %v15291_v33  ;;  %v894_v15 = vsel %vm20828_vm0, 0.0, %v812_v3 }
 0x123   : > { %21011 = vst [vmem:[#allocation153_spill] sm:$0xff] %v15297_v1  ;;  %v2362_v32 = vsel %vm20829_vm3, %v15264_v17, %v2361_v40  ;;  %v12844_v12 = vpack.i.bf16 %v15297_v1, %v15098_v37  ;;  %v2356_v57 = vsel %vm1920_vm4, %v14773_v14, %v2355_v27  ;;  %v814_v40 = vsel %vm20828_vm0, %v812_v3, %v20746_v5 }
 0x124   : > { %v2363_v43 = vsel %vm1920_vm4, %v14948_v6, %v2362_v32  ;;  %v2357_v19 = vsel %vm1922_vm5, %v15250_v44, %v2356_v57  ;;  %v1279_v2 = vcombine.high %v894_v15, %v894_v15  ;;  %v15325_v14 = vrot.slane %v894_v15, %v14360_v7 }
 0x125   : > { %v2364_v33 = vsel %vm1922_vm5, %v15268_v45, %v2363_v43  ;;  %12845 = vrot.lane.b32.xlu0 %v12844_v12, %s13997_s0  ;;  %v2358_v27 = vsel %vm1924_vm6, %v14792_v4, %v2357_v19  ;;  %v1296_v57 = vcombine.high %v814_v40, %v814_v40  ;;  %v1303_v12 = vrot.slane %v814_v40, %v14360_v7 }
 0x126   : > { %v2365_v32 = vsel %vm1924_vm6, %v15028_v36, %v2364_v33  ;;  %v15329_v43 = vsel %vm1926_vm7, %v15272_v30, %v2358_v27  ;;  %v1293_v3 = vrot.slane %v1279_v2, %v14360_v7  ;;  %v1294_v33 = vcombine.high %v15325_v14, %v15325_v14 }
 0x127   : > { %21012 = vst [vmem:[#allocation154_spill] sm:$0xff] %v15329_v43  ;;  %v15332_v44 = vsel %vm1926_vm7, %v2328_v63, %v2365_v32  ;;  %v1310_v15 = vrot.slane %v1296_v57, %v14360_v7  ;;  %v2548_v5 = vrot.slane %v15325_v14, %v14363_v8  ;;  %v1311_v30 = vcombine.high %v1303_v12, %v1303_v12 }
 0x128   : > { %21013 = vst [vmem:[#allocation155_spill] sm:$0xff] %v15332_v44  ;;  %v12869_v19 = vpack.i.bf16 %v15332_v44, %v15329_v43  ;;  %v1295_v27 = vcombine.high %v1293_v3, %v1293_v3  ;;  %v15344_v63 = vrot.slane %v1293_v3, %v14363_v8  ;;  %v15347_v2 = vrot.slane %v1303_v12, %v14363_v8 }
 0x129   : > { %v1312_v40 = vcombine.high %v1310_v15, %v1310_v15  ;;  %v15351_v32 = vrot.slane %v1294_v33, %v14363_v8  ;;  %v15354_v57 = vrot.slane %v1310_v15, %v14363_v8  ;;  %v21016_v43 = vrot.slane %v14832_v34, 7 }
 0x12a   : > { %21014 = vst [vmem:[#allocation156_spill] sm:$0xff] %v15347_v2  ;;  %12870 = vrot.lane.b32.xlu1 %v12869_v19, %s13999_s1  ;;  %v15360_v1 = vrot.slane %v1295_v27, %v14363_v8  ;;  %v15363_v44 = vrot.slane %v1311_v30, %v14363_v8  ;;  %v21018_v37 = vrot.slane %v15080_v54, 7  ;;  %v15381_v6 = vrot.slane %v14936_v28, %v14363_v8  ;;  %v21020_v28 = vld [vmem:[#allocation118_spill] sm:$0xff] }
 0x12b   : > { %21015 = vst [vmem:[#allocation157_spill] sm:$0xff] %v15354_v57  ;;  %v914_v4 = vsel %vm20828_vm0, %v21016_v43, 0.0  ;;  %v15372_v45 = vrot.slane %v1312_v40, %v14363_v8  ;;  %v2801_v34 = vsel %vm20827_vm1, %v15351_v32, %v2548_v5  ;;  %v15395_v5 = vrot.slane %v14939_v55, %v14363_v8 }
 0x12c   : > { %21017 = vst [vmem:[#allocation158_spill] sm:$0xff] %v15363_v44  ;;  %v916_v19 = vsel %vm20828_vm0, %v21018_v37, 0.0  ;;  %v15369_v36 = vrot.slane %v914_v4, %v14360_v7  ;;  %v2802_v54 = vsel %vm20826_vm2, %v15344_v63, %v2801_v34  ;;  %v15387_v4 = vrot.slane %v14930_v35, %v14363_v8  ;;  %v21021_v34 = vld [vmem:[#allocation117_spill] sm:$0xff] }
 0x12d   : > { %v15377_v43 = vrot.slane %v916_v19, %v14360_v7  ;;  %v15391_v37 = vrot.slane %v14945_v23, %v14363_v8  ;;  %v2803_v19 = vsel %vm20829_vm3, %v15360_v1, %v2802_v54  ;;  %v15401_v17 = vrot.slane %v21020_v28, %v14363_v8  ;;  %v21022_v35 = vld [vmem:[#allocation121_spill] sm:$0xff] }
 0x12e   : > { %21019 = vst [vmem:[#allocation159_spill] sm:$0xff] %v15387_v4  ;;  %v15405_v11 = vrot.slane %v21021_v34, %v14363_v8  ;;  %v15409_v21 = vrot.slane %v21022_v35, %v14363_v8  ;;  %v2804_v23 = vsel %vm1920_vm4, %v15347_v2, %v2803_v19  ;;  %v15415_v55 = vrot.slane %v15172_v39, %v14363_v8 }
 0x12f   : > { %v15419_v54 = vrot.slane %v15168_v31, %v14363_v8  ;;  %v15423_v28 = vrot.slane %v15193_v20, %v14363_v8  ;;  %v2805_v34 = vsel %vm1922_vm5, %v15363_v44, %v2804_v23  ;;  %v15429_v35 = vrot.slane %v15161_v47, %v14363_v8 }
 0x130   : > { %21023 = vst [vmem:[#allocation118_spill] sm:$0xff] %v15415_v55  ;;  %v15433_v19 = vrot.slane %v15187_v26, %v14363_v8  ;;  %v15437_v39 = vrot.slane %v15183_v51, %v14363_v8  ;;  %v2806_v31 = vsel %vm1924_vm6, %v15354_v57, %v2805_v34  ;;  %v15443_v20 = vrot.slane %v15203_v41, %v14363_v8 }
 0x131   : > { %21024 = vst [vmem:[#allocation117_spill] sm:$0xff] %v15419_v54  ;;  %v2332_v23 = vrot.slane %v15369_v36, %v14363_v8  ;;  %v2336_v47 = vrot.slane %v15377_v43, %v14363_v8  ;;  %v2807_v26 = vsel %vm1926_vm7, %v15372_v45, %v2806_v31  ;;  %v2367_v51 = vsel %vm20827_vm1, %v15387_v4, %v15381_v6 }
 0x132   : > { %21025 = vst [vmem:[#allocation121_spill] sm:$0xff] %v15437_v39  ;;  %21026 = vst [vmem:[#allocation160_spill] sm:$0xff] %v15443_v20  ;;  %v2374_v34 = vsel %vm20827_vm1, %v15419_v54, %v15415_v55  ;;  %v2884_v41 = vrot.slane %v15325_v14, %v14386_v18  ;;  %v12849_v57 = vpack.i.bf16 %v21027_v56, %v2807_v26 }
 0x133   : > { %v2368_v44 = vsel %vm20826_vm2, %v15391_v37, %v2367_v51  ;;  %v2375_v2 = vsel %vm20826_vm2, %v15423_v28, %v2374_v34  ;;  %v15465_v31 = vrot.slane %v1294_v33, %v14386_v18  ;;  %v15472_v55 = vrot.slane %v1293_v3, %v14386_v18  ;;  %v21029_v34 = vld [vmem:[#allocation71_spill] sm:$0xff] }
 0x134   : > { %v2369_v4 = vsel %vm20829_vm3, %v15395_v5, %v2368_v44  ;;  %v2376_v54 = vsel %vm20829_vm3, %v15429_v35, %v2375_v2  ;;  %v15475_v14 = vrot.slane %v1295_v27, %v14386_v18  ;;  %12850 = vrot.lane.b32.xlu0 %v12849_v57, %s13996_s24  ;;  %v15483_v51 = vrot.slane %v1303_v12, %v14386_v18 }
 0x135   : > { %v2370_v26 = vsel %vm1920_vm4, %v15401_v17, %v2369_v4  ;;  %v2377_v33 = vsel %vm1920_vm4, %v15433_v19, %v2376_v54  ;;  %v15486_v44 = vrot.slane %v1311_v30, %v14386_v18  ;;  %v15493_v2 = vrot.slane %v1310_v15, %v14386_v18  ;;  %v21028_v30 = vld [vmem:[#allocation68_spill] sm:$0xff] }
 0x136   : > { %v2371_v3 = vsel %vm1922_vm5, %v15405_v11, %v2370_v26  ;;  %v2378_v27 = vsel %vm1922_vm5, %v15437_v39, %v2377_v33  ;;  %v15496_v57 = vrot.slane %v1312_v40, %v14386_v18  ;;  %v2916_v54 = vrot.slane %v21028_v30, %v14386_v18  ;;  %v21031_v40 = vld [vmem:[#allocation70_spill] sm:$0xff] }
 0x137   : > { %v2372_v4 = vsel %vm1924_vm6, %v15409_v21, %v2371_v3  ;;  %v2379_v12 = vsel %vm1924_vm6, %v15443_v20, %v2378_v27  ;;  %v15506_v26 = vrot.slane %v21029_v34, %v14386_v18  ;;  %v15516_v56 = vrot.slane %v21031_v40, %v14386_v18  ;;  %v21032_v3 = vld [vmem:[#allocation73_spill] sm:$0xff]  ;;  %v21033_v34 = vld [vmem:[#allocation72_spill] sm:$0xff]  ;;  %v21036_v40 = vld [vmem:[#allocation79_spill] sm:$0xff] }
 0x138   : > { %v15509_v33 = vsel %vm1926_vm7, %v2332_v23, %v2372_v4  ;;  %v15512_v15 = vsel %vm1926_vm7, %v2336_v47, %v2379_v12  ;;  %v15520_v27 = vrot.slane %v21032_v3, %v14386_v18  ;;  %v15526_v20 = vrot.slane %v21033_v34, %v14386_v18  ;;  %v21034_v23 = vld [vmem:[#allocation77_spill] sm:$0xff]  ;;  %v21035_v47 = vld [vmem:[#allocation74_spill] sm:$0xff] }
 0x139   : > { %21030 = vst [vmem:[#allocation68_spill] sm:$0xff] %v15512_v15  ;;  %v12874_v30 = vpack.i.bf16 %v15512_v15, %v15509_v33  ;;  %v15530_v4 = vrot.slane %v21034_v23, %v14386_v18  ;;  %v15534_v12 = vrot.slane %v21035_v47, %v14386_v18  ;;  %v15538_v39 = vrot.slane %v21036_v40, %v14386_v18 }
 0x13a   : > { %v3137_v3 = vsel %vm20827_vm1, %v15465_v31, %v2884_v41  ;;  %v3144_v15 = vsel %vm20827_vm1, %v15506_v26, %v2916_v54  ;;  %v2444_v34 = vrot.slane %v15369_v36, %v14386_v18  ;;  %v2448_v40 = vrot.slane %v15377_v43, %v14386_v18 }
 0x13b   : > { %12875 = vrot.lane.b32.xlu1 %v12874_v30, %s13999_s1  ;;  %v3138_v23 = vsel %vm20826_vm2, %v15472_v55, %v3137_v3  ;;  %v3145_v47 = vsel %vm20826_vm2, %v15516_v56, %v3144_v15  ;;  %v2479_v41 = vsel %vm20827_vm1, %v14999_v49, %v14995_v48  ;;  %v2486_v15 = vsel %vm20827_vm1, %v15207_v60, %v15199_v62 }
 0x13c   : > { %v3139_v54 = vsel %vm20829_vm3, %v15475_v14, %v3138_v23  ;;  %v3146_v36 = vsel %vm20829_vm3, %v15520_v27, %v3145_v47  ;;  %v2480_v30 = vsel %vm20826_vm2, %v15003_v53, %v2479_v41  ;;  %v2487_v49 = vsel %vm20826_vm2, %v15220_v52, %v2486_v15 }
 0x13d   : > { %v3140_v43 = vsel %vm1920_vm4, %v15483_v51, %v3139_v54  ;;  %v3147_v3 = vsel %vm1920_vm4, %v15526_v20, %v3146_v36  ;;  %v2481_v48 = vsel %vm20829_vm3, %v15007_v22, %v2480_v30  ;;  %v2488_v62 = vsel %vm20829_vm3, %v15211_v42, %v2487_v49  ;;  %v21044_v49 = vld [vmem:[#allocation35_spill] sm:$0xff] }
 0x13e   : > { %v3141_v23 = vsel %vm1922_vm5, %v15486_v44, %v3140_v43  ;;  %v3148_v53 = vsel %vm1922_vm5, %v15530_v4, %v3147_v3  ;;  %v2482_v60 = vsel %vm1920_vm4, %v15011_v29, %v2481_v48  ;;  %v2489_v41 = vsel %vm1920_vm4, %v15215_v58, %v2488_v62  ;;  %v21040_v3 = vld [vmem:[#allocation96_spill] sm:$0xff] }
 0x13f   : > { %v3142_v47 = vsel %vm1924_vm6, %v15493_v2, %v3141_v23  ;;  %v3149_v22 = vsel %vm1924_vm6, %v15534_v12, %v3148_v53  ;;  %v2483_v52 = vsel %vm1922_vm5, %v15015_v59, %v2482_v60  ;;  %v2490_v36 = vsel %vm1922_vm5, %v15224_v50, %v2489_v41  ;;  %v21041_v50 = vld [vmem:[#allocation97_spill] sm:$0xff]  ;;  %v21046_v60 = vld [vmem:[#allocation100_spill] sm:$0xff] }
 0x140   : > { %v3143_v54 = vsel %vm1926_vm7, %v15496_v57, %v3142_v47  ;;  %v15593_v29 = vsel %vm1926_vm7, %v15538_v39, %v3149_v22  ;;  %v2484_v42 = vsel %vm1924_vm6, %v15019_v9, %v2483_v52  ;;  %v2491_v58 = vsel %vm1924_vm6, %v15234_v61, %v2490_v36  ;;  %v21042_v61 = vld [vmem:[#allocation99_spill] sm:$0xff]  ;;  %v21047_v62 = vld [vmem:[#allocation32_spill] sm:$0xff] }
 0x141   : > { %21037 = vst [vmem:[#allocation71_spill] sm:$0xff] %v15593_v29  ;;  %v12859_v30 = vpack.i.bf16 %v15593_v29, %v3143_v54  ;;  %v15601_v59 = vsel %vm1926_vm7, %v2444_v34, %v2484_v42  ;;  %v15607_v15 = vrot.slane %v14398_v25, %v14386_v18  ;;  %v15610_v43 = vsel %vm1926_vm7, %v2448_v40, %v2491_v58  ;;  %v21050_v54 = vld [vmem:[#allocation120_spill] sm:$0xff]  ;;  %v21140_v29 = vld [vmem:[#allocation153_spill] sm:$0xff] }
 0x142   : > { %21039 = vst [vmem:[#allocation73_spill] sm:$0xff] %v15610_v43  ;;  %v2440_v9 = vrot.slane %v15229_v13, %v14386_v18  ;;  %v2465_v48 = vsel %vm20827_vm1, %v21041_v50, %v21040_v3  ;;  %v2472_v34 = vsel %vm20827_vm1, %v14968_v16, %v14964_v0  ;;  %v12884_v25 = vpack.i.bf16 %v15610_v43, %v15601_v59  ;;  %v21053_v3 = vld [vmem:[#allocation102_spill] sm:$0xff] }
 0x143   : > { %21038 = vst [vmem:[#allocation70_spill] sm:$0xff] %v15607_v15  ;;  %12860 = vrot.lane.b32.xlu0 %v12859_v30, %s13998_s28  ;;  %v15625_v40 = vsel %vm20826_vm2, %v21042_v61, %v2465_v48  ;;  %v2473_v13 = vsel %vm20826_vm2, %v14971_v38, %v2472_v34  ;;  %v21045_v23 = vrot.slane %v21044_v49, 7  ;;  %v21048_v47 = vrot.slane %v21047_v62, 7  ;;  %v21049_v38 = vld [vmem:[#allocation101_spill] sm:$0xff]  ;;  %v21052_v30 = vld [vmem:[#allocation63_spill] sm:$0xff] }
 0x144   : > { %21043 = vst [vmem:[#allocation72_spill] sm:$0xff] %v15625_v40  ;;  %v2467_v16 = vsel %vm20829_vm3, %v21046_v60, %v15625_v40  ;;  %v2474_v0 = vsel %vm20829_vm3, %v14975_v10, %v2473_v13  ;;  %12885 = vrot.lane.b32.xlu1 %v12884_v25, %s14000_s21  ;;  %v21051_v10 = vld [vmem:[#allocation62_spill] sm:$0xff]  ;;  %v21054_v25 = vld [vmem:[#allocation64_spill] sm:$0xff] }
 0x145   : > { %v915_v53 = vsel %vm20828_vm0, %v21045_v23, 0.0  ;;  %v917_v22 = vsel %vm20828_vm0, %v21048_v47, 0.0  ;;  %v2468_v41 = vsel %vm1920_vm4, %v21049_v38, %v2467_v16  ;;  %v2475_v42 = vsel %vm1920_vm4, %v21050_v54, %v2474_v0  ;;  %v21055_v13 = vld [vmem:[#allocation106_spill] sm:$0xff]  ;;  %v21057_v16 = vld [vmem:[#allocation65_spill] sm:$0xff]  ;;  %v21060_v38 = vld [vmem:[#allocation44_spill] sm:$0xff] }
 0x146   : > { %v15641_v52 = vrot.slane %v915_v53, %v14360_v7  ;;  %v15649_v36 = vrot.slane %v917_v22, %v14360_v7  ;;  %v3263_v58 = vsel %vm20827_vm1, %v21052_v30, %v21051_v10  ;;  %v2469_v50 = vsel %vm1922_vm5, %v21053_v3, %v2468_v41  ;;  %v21056_v23 = vld [vmem:[#allocation122_spill] sm:$0xff]  ;;  %v21061_v41 = vld [vmem:[#allocation45_spill] sm:$0xff]  ;;  %v21062_v10 = vld [vmem:[#allocation67_spill] sm:$0xff] }
 0x147   : > { %v2476_v48 = vsel %vm1922_vm5, %v14986_v46, %v2475_v42  ;;  %v3264_v61 = vsel %vm20826_vm2, %v21054_v25, %v3263_v58  ;;  %v2470_v49 = vsel %vm1924_vm6, %v21055_v13, %v2469_v50  ;;  %v21059_v47 = vld [vmem:[#allocation66_spill] sm:$0xff]  ;;  %v3270_v54 = vsel %vm20827_vm1, %v21061_v41, %v21060_v38  ;;  %v21071_v41 = vld [vmem:[#allocation49_spill] sm:$0xff] }
 0x148   : > { %v3228_v34 = vrot.slane %v15641_v52, %v14363_v8  ;;  %v2477_v53 = vsel %vm1924_vm6, %v21056_v23, %v2476_v48  ;;  %v3232_v60 = vrot.slane %v15649_v36, %v14363_v8  ;;  %v3265_v0 = vsel %vm20829_vm3, %v21057_v16, %v3264_v61  ;;  %v21063_v58 = vld [vmem:[#allocation46_spill] sm:$0xff]  ;;  %v21065_v48 = vld [vmem:[#allocation69_spill] sm:$0xff]  ;;  %v21066_v61 = vld [vmem:[#allocation47_spill] sm:$0xff] }
 0x149   : > { %v15672_v46 = vsel %vm1926_vm7, %v15607_v15, %v2470_v49  ;;  %v15675_v62 = vsel %vm1926_vm7, %v2440_v9, %v2477_v53  ;;  %v3266_v22 = vsel %vm1920_vm4, %v21059_v47, %v3265_v0  ;;  %v3271_v3 = vsel %vm20826_vm2, %v21063_v58, %v3270_v54  ;;  %v21067_v49 = vld [vmem:[#allocation58_spill] sm:$0xff]  ;;  %v21103_v15 = vld [vmem:[#allocation112_spill] sm:$0xff] }
 0x14a   : > { %21058 = vst [vmem:[#allocation77_spill] sm:$0xff] %v15672_v46  ;;  %v12879_v42 = vpack.i.bf16 %v15675_v62, %v15672_v46  ;;  %v3267_v30 = vsel %vm1922_vm5, %v21062_v10, %v3266_v22  ;;  %v21064_v50 = vrot.slane %v15275_v24, 7  ;;  %v3272_v13 = vsel %vm20829_vm3, %v21066_v61, %v3271_v3  ;;  %v21070_v24 = vld [vmem:[#allocation48_spill] sm:$0xff]  ;;  %v21074_v3 = vld [vmem:[#allocation50_spill] sm:$0xff] }
 0x14b   : > { %v3268_v25 = vsel %vm1924_vm6, %v21065_v48, %v3267_v30  ;;  %v21068_v23 = vrot.slane %v21067_v49, 7  ;;  %v3273_v47 = vsel %vm1920_vm4, %v21070_v24, %v3272_v13  ;;  %v3249_v38 = vsel %vm20827_vm1, %v15344_v63, %v15351_v32  ;;  %v21073_v30 = vld [vmem:[#allocation78_spill] sm:$0xff]  ;;  %v21075_v63 = vld [vmem:[#allocation156_spill] sm:$0xff]  ;;  %v21079_v49 = vld [vmem:[#allocation81_spill] sm:$0xff] }
 0x14c   : > { %v911_v9 = vsel %vm20828_vm0, %v21064_v50, 0.0  ;;  %12880 = vrot.lane.b32.xlu0 %v12879_v42, %s14000_s21  ;;  %v15703_v0 = vsel %vm1926_vm7, %v3228_v34, %v3268_v25  ;;  %v3274_v54 = vsel %vm1922_vm5, %v21071_v41, %v3273_v47  ;;  %v3250_v34 = vsel %vm20826_vm2, %v15360_v1, %v3249_v38  ;;  %v21072_v42 = vld [vmem:[#allocation75_spill] sm:$0xff]  ;;  %v21076_v48 = vld [vmem:[#allocation80_spill] sm:$0xff]  ;;  %v21078_v1 = vld [vmem:[#allocation158_spill] sm:$0xff] }
 0x14d   : > { %v913_v53 = vsel %vm20828_vm0, %v21068_v23, 0.0  ;;  %v15699_v16 = vrot.slane %v911_v9, %v14360_v7  ;;  %21069 = vst [vmem:[#allocation74_spill] sm:$0xff] %v15703_v0  ;;  %v3256_v58 = vsel %vm20827_vm1, %v21073_v30, %v21072_v42  ;;  %v3275_v50 = vsel %vm1924_vm6, %v21074_v3, %v3274_v54  ;;  %v21080_v47 = vld [vmem:[#allocation157_spill] sm:$0xff]  ;;  %v21081_v41 = vld [vmem:[#allocation82_spill] sm:$0xff]  ;;  %v21082_v42 = vld [vmem:[#allocation83_spill] sm:$0xff] }
 0x14e   : > { %v15708_v22 = vrot.slane %v913_v53, %v14360_v7  ;;  %v3251_v32 = vsel %vm20829_vm3, %v21075_v63, %v3250_v34  ;;  %v3257_v25 = vsel %vm20826_vm2, %v21076_v48, %v3256_v58  ;;  %v15731_v61 = vsel %vm1926_vm7, %v3232_v60, %v3275_v50  ;;  %v21084_v58 = vld [vmem:[#allocation125_spill] sm:$0xff]  ;;  %v21085_v50 = vld [vmem:[#allocation132_spill] sm:$0xff]  ;;  %v21104_v46 = vld [vmem:[#allocation114_spill] sm:$0xff] }
 0x14f   : > { %v3220_v10 = vrot.slane %v15699_v16, %v14363_v8  ;;  %21077 = vst [vmem:[#allocation79_spill] sm:$0xff] %v15731_v61  ;;  %v3252_v13 = vsel %vm1920_vm4, %v21078_v1, %v3251_v32  ;;  %v3258_v23 = vsel %vm20829_vm3, %v21079_v49, %v3257_v25  ;;  %v3340_v53 = vrot.slane %v15641_v52, %v14386_v18  ;;  %v21083_v52 = vld [vmem:[#allocation124_spill] sm:$0xff]  ;;  %v21086_v63 = vld [vmem:[#allocation133_spill] sm:$0xff]  ;;  %v21088_v25 = vld [vmem:[#allocation126_spill] sm:$0xff] }
 0x150   : > { %v3224_v9 = vrot.slane %v15708_v22, %v14363_v8  ;;  %v12894_v24 = vpack.i.bf16 %v15731_v61, %v15703_v0  ;;  %v3253_v38 = vsel %vm1922_vm5, %v21080_v47, %v3252_v13  ;;  %v3259_v54 = vsel %vm1920_vm4, %v21081_v41, %v3258_v23  ;;  %v21087_v48 = vld [vmem:[#allocation84_spill] sm:$0xff]  ;;  %v21089_v13 = vld [vmem:[#allocation135_spill] sm:$0xff] }
 0x151   : > { %v3344_v60 = vrot.slane %v15649_v36, %v14386_v18  ;;  %v3254_v34 = vsel %vm1924_vm6, %v15372_v45, %v3253_v38  ;;  %v3260_v30 = vsel %vm1922_vm5, %v21082_v42, %v3259_v54  ;;  %v3375_v3 = vsel %vm20827_vm1, %v21084_v58, %v21083_v52  ;;  %v21091_v47 = vld [vmem:[#allocation127_spill] sm:$0xff]  ;;  %v21092_v41 = vld [vmem:[#allocation136_spill] sm:$0xff]  ;;  %v758_v54 = vld [vmem:[%s14357_s19 + $0x70] sm:$0xff] }
 0x152   : > { %v3382_v32 = vsel %vm20827_vm1, %v21086_v63, %v21085_v50  ;;  %12895 = vrot.lane.b32.xlu1 %v12894_v24, %s14001_s23  ;;  %v3255_v36 = vsel %vm1926_vm7, %v3220_v10, %v3254_v34  ;;  %v3261_v45 = vsel %vm1924_vm6, %v21087_v48, %v3260_v30  ;;  %v3376_v1 = vsel %vm20826_vm2, %v21088_v25, %v3375_v3  ;;  %v21093_v42 = vld [vmem:[#allocation128_spill] sm:$0xff]  ;;  %v21094_v52 = vld [vmem:[#allocation137_spill] sm:$0xff]  ;;  %v15783_v3 = vld [vmem:[%s14357_s19 + $0x78] sm:$0xff] }
 0x153   : > { %v3383_v49 = vsel %vm20826_vm2, %v21089_v13, %v3382_v32  ;;  %v15766_v23 = vsel %vm1926_vm7, %v3224_v9, %v3261_v45  ;;  %v3377_v38 = vsel %vm20829_vm3, %v21091_v47, %v3376_v1  ;;  %v3332_v10 = vrot.slane %v15699_v16, %v14386_v18  ;;  %v762_v50 = vld [vmem:[%s14357_s19 + $0x90] sm:$0xff]  ;;  %v15797_v25 = vld [vmem:[%s14357_s19 + $0x98] sm:$0xff] }
 0x154   : > { %21090 = vst [vmem:[#allocation96_spill] sm:$0xff] %v15766_v23  ;;  %v3384_v24 = vsel %vm20829_vm3, %v21092_v41, %v3383_v49  ;;  %v12889_v34 = vpack.i.bf16 %v15766_v23, %v3255_v36  ;;  %v3378_v30 = vsel %vm1920_vm4, %v21093_v42, %v3377_v38  ;;  %v3336_v9 = vrot.slane %v15708_v22, %v14386_v18  ;;  %v21095_v63 = vld [vmem:[#allocation129_spill] sm:$0xff]  ;;  %v21096_v48 = vld [vmem:[#allocation138_spill] sm:$0xff]  ;;  %v21098_v13 = vld [vmem:[#allocation139_spill] sm:$0xff] }
 0x155   : > { %v3385_v58 = vsel %vm1920_vm4, %v21094_v52, %v3384_v24  ;;  %v3379_v32 = vsel %vm1922_vm5, %v21095_v63, %v3378_v30  ;;  %v3361_v36 = vsel %vm20827_vm1, %v15472_v55, %v15465_v31  ;;  %v3368_v45 = vsel %vm20827_vm1, %v15516_v56, %v15506_v26  ;;  %v21097_v22 = vld [vmem:[#allocation130_spill] sm:$0xff]  ;;  %v21108_v0 = vld [vmem:[#allocation159_spill] sm:$0xff] }
 0x156   : > { %v3386_v16 = vsel %vm1922_vm5, %v21096_v48, %v3385_v58  ;;  %12890 = vrot.lane.b32.xlu0 %v12889_v34, %s14001_s23  ;;  %v3380_v1 = vsel %vm1924_vm6, %v21097_v22, %v3379_v32  ;;  %v3362_v47 = vsel %vm20826_vm2, %v15475_v14, %v3361_v36  ;;  %v3369_v55 = vsel %vm20826_vm2, %v15520_v27, %v3368_v45 }
 0x157   : > { %v3387_v49 = vsel %vm1924_vm6, %v21098_v13, %v3386_v16  ;;  %v15809_v31 = vsel %vm1926_vm7, %v3340_v53, %v3380_v1  ;;  %v3363_v26 = vsel %vm20829_vm3, %v15483_v51, %v3362_v47  ;;  %v3370_v38 = vsel %vm20829_vm3, %v15526_v20, %v3369_v55 }
 0x158   : > { %21099 = vst [vmem:[#allocation97_spill] sm:$0xff] %v15809_v31  ;;  %v15812_v56 = vsel %vm1926_vm7, %v3344_v60, %v3387_v49  ;;  %v3364_v14 = vsel %vm1920_vm4, %v15486_v44, %v3363_v26  ;;  %v3371_v27 = vsel %vm1920_vm4, %v15530_v4, %v3370_v38  ;;  %v833_v53 = vrot.slane %v758_v54, 7 }
 0x159   : > { %21100 = vst [vmem:[#allocation99_spill] sm:$0xff] %v15812_v56  ;;  %v12909_v41 = vpack.i.bf16 %v15812_v56, %v15809_v31  ;;  %v3365_v60 = vsel %vm1922_vm5, %v15493_v2, %v3364_v14  ;;  %v3372_v24 = vsel %vm1922_vm5, %v15534_v12, %v3371_v27  ;;  %v20770_v51 = vrot.slane %v15783_v3, 7  ;;  %v21106_v31 = vld [vmem:[#allocation147_spill] sm:$0xff] }
 0x15a   : > { %v839_v34 = vrot.slane %v762_v50, 7  ;;  %v3366_v20 = vsel %vm1924_vm6, %v15496_v57, %v3365_v60  ;;  %v3373_v44 = vsel %vm1924_vm6, %v15538_v39, %v3372_v24  ;;  %v20769_v4 = vrot.slane %v15797_v25, 7 }
 0x15b   : > { %12910 = vrot.lane.b32.xlu1 %v12909_v41, %s14002_s18  ;;  %v901_v54 = vsel %vm20828_vm0, 0.0, %v833_v53  ;;  %v3367_v2 = vsel %vm1926_vm7, %v3332_v10, %v3366_v20  ;;  %v15838_v12 = vsel %vm1926_vm7, %v3336_v9, %v3373_v44  ;;  %v835_v42 = vsel %vm20828_vm0, %v833_v53, %v20770_v51 }
 0x15c   : > { %21101 = vst [vmem:[#allocation35_spill] sm:$0xff] %v15838_v12  ;;  %v903_v30 = vsel %vm20828_vm0, 0.0, %v839_v34  ;;  %v12899_v57 = vpack.i.bf16 %v15838_v12, %v3367_v2  ;;  %v841_v39 = vsel %vm20828_vm0, %v839_v34, %v20769_v4  ;;  %v1071_v52 = vcombine.high %v901_v54, %v901_v54  ;;  %v21107_v12 = vld [vmem:[#allocation148_spill] sm:$0xff] }
 0x15d   : > { %v15849_v58 = vrot.slane %v901_v54, %v14360_v7  ;;  %v1088_v10 = vcombine.high %v835_v42, %v835_v42  ;;  %v15852_v9 = vrot.slane %v835_v42, %v14360_v7  ;;  %v1105_v50 = vcombine.high %v903_v30, %v903_v30 }
 0x15e   : > { %v15855_v63 = vrot.slane %v903_v30, %v14360_v7  ;;  %12900 = vrot.lane.b32.xlu0 %v12899_v57, %s14002_s18  ;;  %v15859_v32 = vrot.slane %v1071_v52, %v14360_v7  ;;  %v1122_v16 = vcombine.high %v841_v39, %v841_v39  ;;  %v15864_v36 = vrot.slane %v841_v39, %v14360_v7 }
 0x15f   : > { %v1086_v48 = vcombine.high %v15849_v58, %v15849_v58  ;;  %v15867_v45 = vrot.slane %v1088_v10, %v14360_v7  ;;  %v15871_v22 = vcombine.high %v15852_v9, %v15852_v9  ;;  %v15874_v1 = vrot.slane %v1105_v50, %v14360_v7 }
 0x160   : > { %21102 = vst [vmem:[#allocation100_spill] sm:$0xff] %v15855_v63  ;;  %v15878_v13 = vcombine.high %v15855_v63, %v15855_v63  ;;  %v1087_v49 = vcombine.high %v15859_v32, %v15859_v32  ;;  %v15883_v47 = vrot.slane %v1122_v16, %v14360_v7  ;;  %v15887_v55 = vcombine.high %v15864_v36, %v15864_v36 }
 0x161   : > { %v2116_v26 = vrot.slane %v15849_v58, %v14386_v18  ;;  %v1104_v38 = vcombine.high %v15867_v45, %v15867_v45  ;;  %v15895_v41 = vcombine.high %v15874_v1, %v15874_v1  ;;  %v15898_v14 = vrot.slane %v1086_v48, %v14386_v18 }
 0x162   : > { %v15902_v27 = vrot.slane %v15859_v32, %v14386_v18  ;;  %v15906_v53 = vcombine.high %v15883_v47, %v15883_v47  ;;  %v15909_v60 = vrot.slane %v1087_v49, %v14386_v18  ;;  %v15913_v24 = vrot.slane %v15852_v9, %v14386_v18 }
 0x163   : > { %v15917_v34 = vrot.slane %v15871_v22, %v14386_v18  ;;  %v15921_v20 = vrot.slane %v15867_v45, %v14386_v18  ;;  %v15924_v44 = vrot.slane %v1104_v38, %v14386_v18  ;;  %v2148_v54 = vrot.slane %v15855_v63, %v14386_v18 }
 0x164   : > { %v15930_v2 = vrot.slane %v15878_v13, %v14386_v18  ;;  %v15934_v42 = vrot.slane %v15874_v1, %v14386_v18  ;;  %v15938_v30 = vrot.slane %v15895_v41, %v14386_v18  ;;  %v15942_v57 = vrot.slane %v15864_v36, %v14386_v18 }
 0x165   : > { %v15946_v39 = vrot.slane %v15887_v55, %v14386_v18  ;;  %v15950_v52 = vrot.slane %v15883_v47, %v14386_v18  ;;  %v15954_v10 = vrot.slane %v15906_v53, %v14386_v18  ;;  %v2269_v50 = vsel %vm20827_vm1, %v15898_v14, %v2116_v26 }
 0x166   : > { %v2276_v16 = vsel %vm20827_vm1, %v15930_v2, %v2148_v54  ;;  %v2270_v4 = vsel %vm20826_vm2, %v15902_v27, %v2269_v50  ;;  %v1693_v40 = vrot.slane %v21103_v15, %v14363_v8  ;;  %v1725_v56 = vrot.slane %v21104_v46, %v14363_v8  ;;  %v21105_v54 = vld [vmem:[#allocation141_spill] sm:$0xff] }
 0x167   : > { %v2277_v51 = vsel %vm20826_vm2, %v15934_v42, %v2276_v16  ;;  %v2271_v63 = vsel %vm20829_vm3, %v15909_v60, %v2270_v4  ;;  %v1757_v61 = vrot.slane %v21105_v54, %v14363_v8  ;;  %v1789_v50 = vrot.slane %v15849_v58, %v14363_v8 }
 0x168   : > { %v2278_v26 = vsel %vm20829_vm3, %v15938_v30, %v2277_v51  ;;  %v2272_v16 = vsel %vm1920_vm4, %v15913_v24, %v2271_v63  ;;  %v1928_v46 = vsel %vm20827_vm1, %v21106_v31, %v1693_v40  ;;  %v1935_v4 = vsel %vm20827_vm1, %v15381_v6, %v1725_v56  ;;  %v21109_v31 = vld [vmem:[#allocation119_spill] sm:$0xff] }
 0x169   : > { %v2279_v15 = vsel %vm1920_vm4, %v15942_v57, %v2278_v26  ;;  %v2273_v51 = vsel %vm1922_vm5, %v15917_v34, %v2272_v16  ;;  %v1929_v58 = vsel %vm20826_vm2, %v21107_v12, %v1928_v46  ;;  %v1936_v63 = vsel %vm20826_vm2, %v21108_v0, %v1935_v4  ;;  %v21111_v0 = vld [vmem:[#allocation149_spill] sm:$0xff] }
 0x16a   : > { %v2280_v54 = vsel %vm1922_vm5, %v15946_v39, %v2279_v15  ;;  %v2274_v26 = vsel %vm1924_vm6, %v15921_v20, %v2273_v51  ;;  %v1930_v6 = vsel %vm20829_vm3, %v21109_v31, %v1929_v58  ;;  %v1937_v56 = vsel %vm20829_vm3, %v15391_v37, %v1936_v63  ;;  %v21112_v51 = vld [vmem:[#allocation116_spill] sm:$0xff]  ;;  %v21113_v63 = vld [vmem:[#allocation150_spill] sm:$0xff] }
 0x16b   : > { %v2281_v40 = vsel %vm1924_vm6, %v15950_v52, %v2280_v54  ;;  %v16002_v16 = vsel %vm1926_vm7, %v15924_v44, %v2274_v26  ;;  %v1931_v15 = vsel %vm1920_vm4, %v21111_v0, %v1930_v6  ;;  %v1938_v46 = vsel %vm1920_vm4, %v15395_v5, %v1937_v56  ;;  %v21114_v6 = vld [vmem:[#allocation123_spill] sm:$0xff] }
 0x16c   : > { %v16006_v12 = vsel %vm1926_vm7, %v15954_v10, %v2281_v40  ;;  %v1932_v37 = vsel %vm1922_vm5, %v21112_v51, %v1931_v15  ;;  %v1939_v54 = vsel %vm1922_vm5, %v15401_v17, %v1938_v46  ;;  %v1793_v58 = vrot.slane %v1086_v48, %v14363_v8  ;;  %v21117_v15 = vld [vmem:[#allocation118_spill] sm:$0xff] }
 0x16d   : > { %21110 = vst [vmem:[#allocation32_spill] sm:$0xff] %v16006_v12  ;;  %v12914_v4 = vpack.i.bf16 %v16006_v12, %v16002_v16  ;;  %v1933_v26 = vsel %vm1924_vm6, %v21113_v63, %v1932_v37  ;;  %v1940_v40 = vsel %vm1924_vm6, %v15405_v11, %v1939_v54  ;;  %v1797_v5 = vrot.slane %v15859_v32, %v14363_v8 }
 0x16e   : > { %v1801_v31 = vrot.slane %v1087_v49, %v14363_v8  ;;  %v16029_v56 = vsel %vm1926_vm7, %v21114_v6, %v1933_v26  ;;  %v16033_v17 = vsel %vm1926_vm7, %v15409_v21, %v1940_v40  ;;  %v1805_v48 = vrot.slane %v15852_v9, %v14363_v8 }
 0x16f   : > { %12915 = vrot.lane.b32.xlu1 %v12914_v4, %s13997_s0  ;;  %21115 = vst [vmem:[#allocation101_spill] sm:$0xff] %v16029_v56  ;;  %21116 = vst [vmem:[#allocation120_spill] sm:$0xff] %v16033_v17  ;;  %v1809_v11 = vrot.slane %v15871_v22, %v14363_v8  ;;  %v12904_v32 = vpack.i.bf16 %v16033_v17, %v16029_v56  ;;  %v1813_v49 = vrot.slane %v15867_v45, %v14363_v8  ;;  %v21118_v4 = vld [vmem:[#allocation117_spill] sm:$0xff] }
 0x170   : > { %v1817_v0 = vrot.slane %v1104_v38, %v14363_v8  ;;  %v1942_v46 = vsel %vm20827_vm1, %v21117_v15, %v1757_v61  ;;  %v1949_v9 = vsel %vm20827_vm1, %v1793_v58, %v1789_v50  ;;  %v21119_v51 = vrot.slane %v15783_v3, 7  ;;  %v21122_v50 = vld [vmem:[#allocation131_spill] sm:$0xff] }
 0x171   : > { %v1943_v21 = vsel %vm20826_vm2, %v21118_v4, %v1942_v46  ;;  %v21120_v37 = vrot.slane %v15797_v25, 7  ;;  %12905 = vrot.lane.b32.xlu0 %v12904_v32, %s14003_s29  ;;  %v1950_v45 = vsel %vm20826_vm2, %v1797_v5, %v1949_v9  ;;  %v21121_v25 = vld [vmem:[#allocation134_spill] sm:$0xff]  ;;  %v16074_v40 = vrot.slane %v15878_v13, %v14363_v8  ;;  %v21128_v9 = vld [vmem:[#allocation121_spill] sm:$0xff] }
 0x172   : > { %v918_v22 = vsel %vm20828_vm0, %v21119_v51, 0.0  ;;  %v1944_v61 = vsel %vm20829_vm3, %v15423_v28, %v1943_v21  ;;  %v21123_v63 = vpack.i.bf16 %v21121_v25, %v21122_v50  ;;  %v1951_v28 = vsel %vm20829_vm3, %v1801_v31, %v1950_v45  ;;  %v766_v32 = vld [vmem:[%s14357_s19 + $0xb0] sm:$0xff]  ;;  %v16093_v13 = vld [vmem:[%s14357_s19 + $0xb8] sm:$0xff] }
 0x173   : > { %v920_v54 = vsel %vm20828_vm0, %v21120_v37, 0.0  ;;  %v16060_v38 = vrot.slane %v918_v22, %v14360_v7  ;;  %v1945_v26 = vsel %vm1920_vm4, %v15429_v35, %v1944_v61  ;;  %21124 = vst [vmem:[#allocation62_spill] sm:$0xff] %v16074_v40  ;;  %v16078_v6 = vrot.slane %v15874_v1, %v14363_v8  ;;  %v770_v21 = vld [vmem:[%s14357_s19 + $0xd0] sm:$0xff]  ;;  %v16108_v22 = vld [vmem:[%s14357_s19 + $0xd8] sm:$0xff] }
 0x174   : > { %v16063_v3 = vrot.slane %v920_v54, %v14360_v7  ;;  %12925 = vrot.lane.b32.xlu1 %v21123_v63, %s14004_s4  ;;  %v1946_v15 = vsel %vm1922_vm5, %v15433_v19, %v1945_v26  ;;  %v1952_v46 = vsel %vm1920_vm4, %v1805_v48, %v1951_v28  ;;  %v16086_v4 = vrot.slane %v15895_v41, %v14363_v8 }
 0x175   : > { %21125 = vst [vmem:[#allocation63_spill] sm:$0xff] %v16078_v6  ;;  %v16090_v35 = vrot.slane %v15864_v36, %v14363_v8  ;;  %v1947_v1 = vsel %vm1924_vm6, %v21128_v9, %v1946_v15  ;;  %v1953_v51 = vsel %vm1922_vm5, %v1809_v11, %v1952_v46  ;;  %v16101_v19 = vrot.slane %v15887_v55, %v14363_v8  ;;  %v21131_v36 = vld [vmem:[#allocation160_spill] sm:$0xff] }
 0x176   : > { %21126 = vst [vmem:[#allocation102_spill] sm:$0xff] %v16086_v4  ;;  %v16105_v41 = vrot.slane %v15883_v47, %v14363_v8  ;;  %v16112_v37 = vsel %vm1926_vm7, %v21131_v36, %v1947_v1  ;;  %v1954_v54 = vsel %vm1924_vm6, %v1813_v49, %v1953_v51  ;;  %v16117_v61 = vrot.slane %v15906_v53, %v14363_v8 }
 0x177   : > { %21127 = vst [vmem:[#allocation64_spill] sm:$0xff] %v16090_v35  ;;  %21129 = vst [vmem:[#allocation106_spill] sm:$0xff] %v16101_v19  ;;  %v2340_v55 = vrot.slane %v16060_v38, %v14363_v8  ;;  %v16122_v45 = vsel %vm1926_vm7, %v1817_v0, %v1954_v54  ;;  %v2344_v47 = vrot.slane %v16063_v3, %v14363_v8  ;;  %v845_v28 = vrot.slane %v766_v32, 7 }
 0x178   : > { %21130 = vst [vmem:[#allocation122_spill] sm:$0xff] %v16105_v41  ;;  %21132 = vst [vmem:[#allocation65_spill] sm:$0xff] %v16112_v37  ;;  %v2381_v25 = vsel %vm20827_vm1, %v1797_v5, %v1793_v58  ;;  %v2388_v50 = vsel %vm20827_vm1, %v16078_v6, %v16074_v40  ;;  %v12919_v63 = vpack.i.bf16 %v16122_v45, %v16112_v37  ;;  %v20781_v58 = vrot.slane %v16093_v13, 7 }
 0x179   : > { %21133 = vst [vmem:[#allocation66_spill] sm:$0xff] %v16117_v61  ;;  %21134 = vst [vmem:[#allocation44_spill] sm:$0xff] %v16122_v45  ;;  %v2382_v53 = vsel %vm20826_vm2, %v1801_v31, %v2381_v25  ;;  %v2389_v26 = vsel %vm20826_vm2, %v16086_v4, %v2388_v50  ;;  %v851_v5 = vrot.slane %v770_v21, 7  ;;  %v20780_v31 = vrot.slane %v16108_v22, 7 }
 0x17a   : > { %v2383_v15 = vsel %vm20829_vm3, %v1805_v48, %v2382_v53  ;;  %v2390_v46 = vsel %vm20829_vm3, %v16090_v35, %v2389_v26  ;;  %12920 = vrot.lane.b32.xlu0 %v12919_v63, %s14003_s29  ;;  %v905_v51 = vsel %vm20828_vm0, 0.0, %v845_v28  ;;  %v847_v21 = vsel %vm20828_vm0, %v845_v28, %v20781_v58 }
 0x17b   : > { %v2384_v9 = vsel %vm1920_vm4, %v1809_v11, %v2383_v15  ;;  %v2391_v1 = vsel %vm1920_vm4, %v16101_v19, %v2390_v46  ;;  %v907_v36 = vsel %vm20828_vm0, 0.0, %v851_v5  ;;  %v853_v25 = vsel %vm20828_vm0, %v851_v5, %v20780_v31 }
 0x17c   : > { %v2385_v32 = vsel %vm1922_vm5, %v1813_v49, %v2384_v9  ;;  %v2392_v48 = vsel %vm1922_vm5, %v16105_v41, %v2391_v1  ;;  %v1139_v50 = vcombine.high %v905_v51, %v905_v51  ;;  %v16165_v53 = vrot.slane %v905_v51, %v14360_v7 }
 0x17d   : > { %v2386_v11 = vsel %vm1924_vm6, %v1817_v0, %v2385_v32  ;;  %v2393_v54 = vsel %vm1924_vm6, %v16117_v61, %v2392_v48  ;;  %v1156_v26 = vcombine.high %v847_v21, %v847_v21  ;;  %v16173_v15 = vrot.slane %v847_v21, %v14360_v7 }
 0x17e   : > { %v16159_v49 = vsel %vm1926_vm7, %v2340_v55, %v2386_v11  ;;  %v16162_v63 = vsel %vm1926_vm7, %v2344_v47, %v2393_v54  ;;  %21137 = vst [vmem:[#allocation46_spill] sm:$0xff] %v16165_v53  ;;  %v16170_v28 = vrot.slane %v1139_v50, %v14360_v7  ;;  %v1173_v46 = vcombine.high %v907_v36, %v907_v36 }
 0x17f   : > { %21135 = vst [vmem:[#allocation45_spill] sm:$0xff] %v16159_v49  ;;  %21136 = vst [vmem:[#allocation67_spill] sm:$0xff] %v16162_v63  ;;  %v12934_v0 = vpack.i.bf16 %v16162_v63, %v16159_v49  ;;  %v16177_v55 = vcombine.high %v16165_v53, %v16165_v53  ;;  %v16180_v47 = vrot.slane %v1156_v26, %v14360_v7 }
 0x180   : > { %v16183_v5 = vrot.slane %v907_v36, %v14360_v7  ;;  %v1190_v9 = vcombine.high %v853_v25, %v853_v25  ;;  %v16188_v1 = vcombine.high %v16170_v28, %v16170_v28  ;;  %v16192_v51 = vcombine.high %v16173_v15, %v16173_v15 }
 0x181   : > { %12935 = vrot.lane.b32.xlu1 %v12934_v0, %s13999_s1  ;;  %v16195_v32 = vrot.slane %v1173_v46, %v14360_v7  ;;  %v16198_v48 = vrot.slane %v853_v25, %v14360_v7  ;;  %v16202_v21 = vcombine.high %v16180_v47, %v16180_v47  ;;  %v2180_v54 = vrot.slane %v16165_v53, %v14386_v18  ;;  %v21139_v53 = vld [vmem:[#allocation155_spill] sm:$0xff] }
 0x182   : > { %21138 = vst [vmem:[#allocation69_spill] sm:$0xff] %v16183_v5  ;;  %v16206_v36 = vcombine.high %v16183_v5, %v16183_v5  ;;  %v16209_v11 = vrot.slane %v1190_v9, %v14360_v7  ;;  %v16223_v26 = vrot.slane %v16177_v55, %v14386_v18  ;;  %v16227_v0 = vrot.slane %v16170_v28, %v14386_v18 }
 0x183   : > { %v16215_v50 = vcombine.high %v16195_v32, %v16195_v32  ;;  %v16219_v25 = vcombine.high %v16198_v48, %v16198_v48  ;;  %v16235_v9 = vrot.slane %v16188_v1, %v14386_v18  ;;  %v16239_v31 = vrot.slane %v16173_v15, %v14386_v18 }
 0x184   : > { %v16231_v46 = vcombine.high %v16209_v11, %v16209_v11  ;;  %v16243_v58 = vrot.slane %v16192_v51, %v14386_v18  ;;  %v16247_v45 = vrot.slane %v16180_v47, %v14386_v18  ;;  %v16251_v17 = vrot.slane %v16202_v21, %v14386_v18 }
 0x185   : > { %v2212_v37 = vrot.slane %v16183_v5, %v14386_v18  ;;  %v16257_v56 = vrot.slane %v16206_v36, %v14386_v18  ;;  %v16261_v63 = vrot.slane %v16195_v32, %v14386_v18  ;;  %v16265_v12 = vrot.slane %v16215_v50, %v14386_v18 }
 0x186   : > { %v16269_v61 = vrot.slane %v16198_v48, %v14386_v18  ;;  %v16273_v41 = vrot.slane %v16219_v25, %v14386_v18  ;;  %v16277_v5 = vrot.slane %v16209_v11, %v14386_v18  ;;  %v16281_v19 = vrot.slane %v16231_v46, %v14386_v18 }
 0x187   : > { %v2283_v35 = vsel %vm20827_vm1, %v16223_v26, %v2180_v54  ;;  %v2290_v4 = vsel %vm20827_vm1, %v16257_v56, %v2212_v37  ;;  %v12944_v23 = vpack.i.bf16 %v15509_v33, %v21139_v53  ;;  %v12939_v43 = vpack.i.bf16 %v16002_v16, %v21140_v29 }
 0x188   : > { %v2284_v6 = vsel %vm20826_vm2, %v16227_v0, %v2283_v35  ;;  %v2291_v40 = vsel %vm20826_vm2, %v16261_v63, %v2290_v4  ;;  %v2452_v37 = vrot.slane %v16060_v38, %v14386_v18  ;;  %v2456_v35 = vrot.slane %v16063_v3, %v14386_v18 }
 0x189   : > { %v2285_v49 = vsel %vm20829_vm3, %v16235_v9, %v2284_v6  ;;  %v2292_v54 = vsel %vm20829_vm3, %v16265_v12, %v2291_v40  ;;  %12945 = vrot.lane.b32.xlu1 %v12944_v23, %s14005_s27  ;;  %v2493_v29 = vsel %vm20827_vm1, %v15902_v27, %v15898_v14  ;;  %v2500_v16 = vsel %vm20827_vm1, %v15934_v42, %v15930_v2 }
 0x18a   : > { %v2286_v4 = vsel %vm1920_vm4, %v16239_v31, %v2285_v49  ;;  %v2293_v33 = vsel %vm1920_vm4, %v16269_v61, %v2292_v54  ;;  %v2494_v40 = vsel %vm20826_vm2, %v15909_v60, %v2493_v29  ;;  %v2501_v23 = vsel %vm20826_vm2, %v15938_v30, %v2500_v16 }
 0x18b   : > { %v2287_v38 = vsel %vm1922_vm5, %v16243_v58, %v2286_v4  ;;  %v2294_v3 = vsel %vm1922_vm5, %v16273_v41, %v2293_v33  ;;  %v2495_v27 = vsel %vm20829_vm3, %v15913_v24, %v2494_v40  ;;  %v2502_v2 = vsel %vm20829_vm3, %v15942_v57, %v2501_v23  ;;  %v21160_v23 = vld [vmem:[#allocation68_spill] sm:$0xff] }
 0x18c   : > { %v2288_v6 = vsel %vm1924_vm6, %v16247_v45, %v2287_v38  ;;  %v2295_v14 = vsel %vm1924_vm6, %v16277_v5, %v2294_v3  ;;  %v2496_v30 = vsel %vm1920_vm4, %v15917_v34, %v2495_v27  ;;  %v2503_v49 = vsel %vm1920_vm4, %v15946_v39, %v2502_v2  ;;  %v16424_v3 = vld [vmem:[%s14357_s19 + $0xa8] sm:$0xff] }
 0x18d   : > { %v16332_v42 = vsel %vm1926_vm7, %v16251_v17, %v2288_v6  ;;  %v16336_v60 = vsel %vm1926_vm7, %v16281_v19, %v2295_v14  ;;  %v2497_v57 = vsel %vm1922_vm5, %v15921_v20, %v2496_v30  ;;  %v2504_v53 = vsel %vm1922_vm5, %v15950_v52, %v2503_v49 }
 0x18e   : > { %21141 = vst [vmem:[#allocation47_spill] sm:$0xff] %v16332_v42  ;;  %21142 = vst [vmem:[#allocation58_spill] sm:$0xff] %v16336_v60  ;;  %v12929_v24 = vpack.i.bf16 %v16336_v60, %v16332_v42  ;;  %v21143_v54 = vrot.slane %v16093_v13, 7  ;;  %v2498_v33 = vsel %vm1924_vm6, %v15924_v44, %v2497_v57  ;;  %v2505_v34 = vsel %vm1924_vm6, %v15954_v10, %v2504_v53  ;;  %v21184_v60 = vld [vmem:[#allocation89_spill] sm:$0xff]  ;;  %v21185_v42 = vld [vmem:[#allocation87_spill] sm:$0xff] }
 0x18f   : > { %v21144_v39 = vrot.slane %v16108_v22, 7  ;;  %v16363_v20 = vsel %vm1926_vm7, %v2452_v37, %v2498_v33  ;;  %v16366_v52 = vsel %vm1926_vm7, %v2456_v35, %v2505_v34  ;;  %v16373_v10 = vrot.slane %v16177_v55, %v14363_v8 }
 0x190   : > { %v922_v4 = vsel %vm20828_vm0, %v21143_v54, 0.0  ;;  %12930 = vrot.lane.b32.xlu0 %v12929_v24, %s13997_s0  ;;  %21145 = vst [vmem:[#allocation48_spill] sm:$0xff] %v16366_v52  ;;  %v12954_v13 = vpack.i.bf16 %v16366_v52, %v16363_v20  ;;  %v16379_v22 = vrot.slane %v16170_v28, %v14363_v8  ;;  %v16383_v37 = vrot.slane %v16188_v1, %v14363_v8 }
 0x191   : > { %v924_v29 = vsel %vm20828_vm0, %v21144_v39, 0.0  ;;  %v16359_v16 = vrot.slane %v922_v4, %v14360_v7  ;;  %21146 = vst [vmem:[#allocation49_spill] sm:$0xff] %v16373_v10  ;;  %v16387_v35 = vrot.slane %v16173_v15, %v14363_v8  ;;  %v16391_v38 = vrot.slane %v16192_v51, %v14363_v8 }
 0x192   : > { %v16369_v44 = vrot.slane %v924_v29, %v14360_v7  ;;  %21147 = vst [vmem:[#allocation75_spill] sm:$0xff] %v16379_v22  ;;  %21148 = vst [vmem:[#allocation78_spill] sm:$0xff] %v16383_v37  ;;  %v16395_v55 = vrot.slane %v16180_v47, %v14363_v8  ;;  %v16399_v28 = vrot.slane %v16202_v21, %v14363_v8  ;;  %12955 = vrot.lane.b32.xlu1 %v12954_v13, %s14000_s21 }
 0x193   : > { %21149 = vst [vmem:[#allocation50_spill] sm:$0xff] %v16387_v35  ;;  %21150 = vst [vmem:[#allocation156_spill] sm:$0xff] %v16391_v38  ;;  %v16403_v1 = vrot.slane %v16206_v36, %v14363_v8  ;;  %v16408_v15 = vrot.slane %v16195_v32, %v14363_v8  ;;  %v16412_v51 = vrot.slane %v16215_v50, %v14363_v8  ;;  %v764_v36 = vld [vmem:[%s14357_s19 + $0xa0] sm:$0xff]  ;;  %v20801_v30 = vrot.slane %v16424_v3, 7 }
 0x194   : > { %21151 = vst [vmem:[#allocation80_spill] sm:$0xff] %v16395_v55  ;;  %21152 = vst [vmem:[#allocation158_spill] sm:$0xff] %v16399_v28  ;;  %v16416_v47 = vrot.slane %v16198_v48, %v14363_v8  ;;  %v16420_v21 = vrot.slane %v16219_v25, %v14363_v8  ;;  %12940 = vrot.lane.b32.xlu0 %v12939_v43, %s14004_s4  ;;  %v16429_v32 = vrot.slane %v16209_v11, %v14363_v8 }
 0x195   : > { %21153 = vst [vmem:[#allocation81_spill] sm:$0xff] %v16403_v1  ;;  %21154 = vst [vmem:[#allocation157_spill] sm:$0xff] %v16408_v15  ;;  %v16433_v50 = vrot.slane %v16231_v46, %v14363_v8  ;;  %v2348_v48 = vrot.slane %v16359_v16, %v14363_v8  ;;  %v2352_v25 = vrot.slane %v16369_v44, %v14363_v8  ;;  %v21161_v46 = vld [vmem:[#allocation45_spill] sm:$0xff]  ;;  %v842_v2 = vrot.slane %v764_v36, 7 }
 0x196   : > { %21155 = vst [vmem:[#allocation82_spill] sm:$0xff] %v16412_v51  ;;  %21156 = vst [vmem:[#allocation83_spill] sm:$0xff] %v16416_v47  ;;  %v2395_v40 = vsel %vm20827_vm1, %v16379_v22, %v16373_v10  ;;  %v2402_v43 = vsel %vm20827_vm1, %v16408_v15, %v16403_v1  ;;  %v12964_v11 = vpack.i.bf16 %v15601_v59, %v15675_v62 }
 0x197   : > { %21157 = vst [vmem:[#allocation124_spill] sm:$0xff] %v16420_v21  ;;  %21158 = vst [vmem:[#allocation125_spill] sm:$0xff] %v16429_v32  ;;  %v12959_v6 = vpack.i.bf16 %v21161_v46, %v21160_v23  ;;  %v2396_v14 = vsel %vm20826_vm2, %v16383_v37, %v2395_v40  ;;  %v2403_v27 = vsel %vm20826_vm2, %v16412_v51, %v2402_v43  ;;  %v904_v4 = vsel %vm20828_vm0, 0.0, %v842_v2 }
 0x198   : > { %21159 = vst [vmem:[#allocation132_spill] sm:$0xff] %v16433_v50  ;;  %v2397_v49 = vsel %vm20829_vm3, %v16387_v35, %v2396_v14  ;;  %v2404_v24 = vsel %vm20829_vm3, %v16416_v47, %v2403_v27  ;;  %12965 = vrot.lane.b32.xlu1 %v12964_v11, %s14006_s16  ;;  %v2460_v59 = vrot.slane %v16359_v16, %v14386_v18  ;;  %v21188_v47 = vld [vmem:[#allocation93_spill] sm:$0xff]  ;;  %v21193_v37 = vrot.slane %v16424_v3, 7 }
 0x199   : > { %v2464_v62 = vrot.slane %v16369_v44, %v14386_v18  ;;  %v2398_v57 = vsel %vm1920_vm4, %v16391_v38, %v2397_v49  ;;  %v2405_v53 = vsel %vm1920_vm4, %v16420_v21, %v2404_v24  ;;  %v844_v54 = vsel %vm20828_vm0, %v842_v2, %v20801_v30  ;;  %v21192_v38 = vld [vmem:[#allocation142_spill] sm:$0xff] }
 0x19a   : > { %v2399_v33 = vsel %vm1922_vm5, %v16395_v55, %v2398_v57  ;;  %v2406_v34 = vsel %vm1922_vm5, %v16429_v32, %v2405_v53  ;;  %v1449_v39 = vcombine.high %v904_v4, %v904_v4  ;;  %v16476_v29 = vrot.slane %v904_v4, %v14360_v7  ;;  %v21187_v32 = vld [vmem:[#allocation86_spill] sm:$0xff]  ;;  %v21191_v55 = vld [vmem:[#allocation71_spill] sm:$0xff] }
 0x19b   : > { %v2400_v16 = vsel %vm1924_vm6, %v16399_v28, %v2399_v33  ;;  %v2407_v44 = vsel %vm1924_vm6, %v16433_v50, %v2406_v34  ;;  %v1466_v13 = vcombine.high %v844_v54, %v844_v54  ;;  %v1473_v36 = vrot.slane %v844_v54, %v14360_v7 }
 0x19c   : > { %v16484_v40 = vsel %vm1926_vm7, %v2348_v48, %v2400_v16  ;;  %v16487_v43 = vsel %vm1926_vm7, %v2352_v25, %v2407_v44  ;;  %v1463_v11 = vrot.slane %v1449_v39, %v14360_v7  ;;  %v1464_v23 = vcombine.high %v16476_v29, %v16476_v29 }
 0x19d   : > { %21162 = vst [vmem:[#allocation133_spill] sm:$0xff] %v16484_v40  ;;  %21163 = vst [vmem:[#allocation84_spill] sm:$0xff] %v16487_v43  ;;  %v12949_v46 = vpack.i.bf16 %v16487_v43, %v16484_v40  ;;  %v1480_v14 = vrot.slane %v1466_v13, %v14360_v7  ;;  %v1481_v27 = vcombine.high %v1473_v36, %v1473_v36 }
 0x19e   : > { %v2708_v2 = vrot.slane %v16476_v29, %v14363_v8  ;;  %v1465_v49 = vcombine.high %v1463_v11, %v1463_v11  ;;  %v16498_v48 = vrot.slane %v1464_v23, %v14363_v8  ;;  %v16501_v25 = vrot.slane %v1463_v11, %v14363_v8 }
 0x19f   : > { %v16504_v24 = vrot.slane %v1473_v36, %v14363_v8  ;;  %12950 = vrot.lane.b32.xlu0 %v12949_v46, %s13999_s1  ;;  %v1482_v57 = vcombine.high %v1480_v14, %v1480_v14  ;;  %v16508_v53 = vrot.slane %v1481_v27, %v14363_v8  ;;  %v16511_v54 = vrot.slane %v1480_v14, %v14363_v8  ;;  %s14011_s1 = smov 32  }
 0x1a0   : > { %v2507_v4 = vsel %vm20827_vm1, %v16227_v0, %v16223_v26  ;;  %v16517_v33 = vrot.slane %v1465_v49, %v14363_v8  ;;  %v2836_v34 = vsel %vm20827_vm1, %v16498_v48, %v2708_v2  ;;  %v2514_v16 = vsel %vm20827_vm1, %v16261_v63, %v16257_v56  ;;  %v21164_v63 = vld [vmem:[#allocation73_spill] sm:$0xff] }
 0x1a1   : > { %v2508_v39 = vsel %vm20826_vm2, %v16235_v9, %v2507_v4  ;;  %v16527_v44 = vrot.slane %v1482_v57, %v14363_v8  ;;  %v2837_v13 = vsel %vm20826_vm2, %v16501_v25, %v2836_v34  ;;  %v2515_v0 = vsel %vm20826_vm2, %v16265_v12, %v2514_v16 }
 0x1a2   : > { %v2509_v26 = vsel %vm20829_vm3, %v16239_v31, %v2508_v39  ;;  %v2838_v46 = vsel %vm20829_vm3, %v16517_v33, %v2837_v13  ;;  %v2516_v56 = vsel %vm20829_vm3, %v16269_v61, %v2515_v0  ;;  %v12979_v2 = vpack.i.bf16 %v16363_v20, %v21164_v63  ;;  %v21166_v39 = vld [vmem:[#allocation39_spill] sm:$0xff]  ;;  %v21173_v63 = vld [vmem:[#allocation61_spill] sm:$0xff] }
 0x1a3   : > { %v2510_v9 = vsel %vm1920_vm4, %v16243_v58, %v2509_v26  ;;  %12960 = vrot.lane.b32.xlu0 %v12959_v6, %s14005_s27  ;;  %v2839_v31 = vsel %vm1920_vm4, %v16504_v24, %v2838_v46  ;;  %v2517_v4 = vsel %vm1920_vm4, %v16273_v41, %v2516_v56  ;;  %v21165_v58 = vld [vmem:[#allocation36_spill] sm:$0xff]  ;;  %v16560_v16 = vrot.slane %v21166_v39, %v14386_v18  ;;  %v21168_v26 = vld [vmem:[#allocation38_spill] sm:$0xff] }
 0x1a4   : > { %v2511_v12 = vsel %vm1922_vm5, %v16247_v45, %v2510_v9  ;;  %v3012_v34 = vrot.slane %v21165_v58, %v14386_v18  ;;  %v2840_v61 = vsel %vm1922_vm5, %v16508_v53, %v2839_v31  ;;  %v2518_v6 = vsel %vm1922_vm5, %v16277_v5, %v2517_v4  ;;  %v21171_v46 = vld [vmem:[#allocation42_spill] sm:$0xff]  ;;  %v21174_v4 = vld [vmem:[#allocation41_spill] sm:$0xff] }
 0x1a5   : > { %v2512_v20 = vsel %vm1924_vm6, %v16251_v17, %v2511_v12  ;;  %v2841_v45 = vsel %vm1924_vm6, %v16511_v54, %v2840_v61  ;;  %v2519_v13 = vsel %vm1924_vm6, %v16281_v19, %v2518_v6  ;;  %v16571_v17 = vrot.slane %v21168_v26, %v14386_v18  ;;  %v768_v19 = vld [vmem:[%s14357_s19 + $0xc0] sm:$0xff]  ;;  %v16614_v26 = vld [vmem:[%s14357_s19 + $0xc8] sm:$0xff] }
 0x1a6   : > { %v16565_v41 = vsel %vm1926_vm7, %v2460_v59, %v2512_v20  ;;  %v16575_v5 = vsel %vm1926_vm7, %v16527_v44, %v2841_v45  ;;  %v16578_v0 = vsel %vm1926_vm7, %v2464_v62, %v2519_v13  ;;  %v16582_v9 = vrot.slane %v21171_v46, %v14386_v18  ;;  %v21172_v59 = vld [vmem:[#allocation37_spill] sm:$0xff]  ;;  %v21175_v62 = vld [vmem:[#allocation40_spill] sm:$0xff]  ;;  %v21176_v20 = vld [vmem:[#allocation43_spill] sm:$0xff] }
 0x1a7   : > { %21167 = vst [vmem:[#allocation126_spill] sm:$0xff] %v16565_v41  ;;  %21169 = vst [vmem:[#allocation135_spill] sm:$0xff] %v16575_v5  ;;  %v16586_v56 = vrot.slane %v21172_v59, %v14386_v18  ;;  %v12974_v31 = vpack.i.bf16 %v16575_v5, %v21173_v63  ;;  %v12969_v12 = vpack.i.bf16 %v16578_v0, %v16565_v41 }
 0x1a8   : > { %21170 = vst [vmem:[#allocation127_spill] sm:$0xff] %v16578_v0  ;;  %v16595_v58 = vrot.slane %v21174_v4, %v14386_v18  ;;  %v16599_v61 = vrot.slane %v21175_v62, %v14386_v18  ;;  %v16603_v6 = vrot.slane %v21176_v20, %v14386_v18  ;;  %v3044_v39 = vrot.slane %v16476_v29, %v14386_v18  ;;  %v21177_v20 = vld [vmem:[#allocation76_spill] sm:$0xff] }
 0x1a9   : > { %v16608_v45 = vrot.slane %v1464_v23, %v14386_v18  ;;  %v16611_v13 = vrot.slane %v1463_v11, %v14386_v18  ;;  %12975 = vrot.lane.b32.xlu1 %v12974_v31, %s13996_s24  ;;  %12970 = vrot.lane.b32.xlu0 %v12969_v12, %s14000_s21  ;;  %v16619_v46 = vrot.slane %v1465_v49, %v14386_v18  ;;  %v848_v23 = vrot.slane %v768_v19, 7  ;;  %s14012_s21 = smov 64  }
 0x1aa   : > { %v16622_v59 = vrot.slane %v1473_v36, %v14386_v18  ;;  %v16625_v29 = vrot.slane %v1481_v27, %v14386_v18  ;;  %v16628_v4 = vrot.slane %v1480_v14, %v14386_v18  ;;  %v16631_v11 = vrot.slane %v1482_v57, %v14386_v18 }
 0x1ab   : > { %v3165_v31 = vsel %vm20827_vm1, %v16560_v16, %v3012_v34  ;;  %v3172_v49 = vsel %vm20827_vm1, %v16608_v45, %v3044_v39  ;;  %v20803_v19 = vrot.slane %v16614_v26, 7  ;;  %v906_v14 = vsel %vm20828_vm0, 0.0, %v848_v23  ;;  %v21178_v39 = vld [vmem:[#allocation94_spill] sm:$0xff] }
 0x1ac   : > { %v3166_v36 = vsel %vm20826_vm2, %v16571_v17, %v3165_v31  ;;  %v3173_v27 = vsel %vm20826_vm2, %v16611_v13, %v3172_v49  ;;  %v1483_v34 = vcombine.high %v906_v14, %v906_v14  ;;  %v16648_v62 = vrot.slane %v906_v14, %v14360_v7  ;;  %v21180_v14 = vld [vmem:[#allocation34_spill] sm:$0xff] }
 0x1ad   : > { %v3167_v57 = vsel %vm20829_vm3, %v16582_v9, %v3166_v36  ;;  %v3174_v12 = vsel %vm20829_vm3, %v16619_v46, %v3173_v27  ;;  %v21179_v31 = vpack.i.bf16 %v21177_v20, %v21178_v39  ;;  %12980 = vrot.lane.b32.xlu0 %v12979_v2, %s14006_s16  ;;  %v850_v27 = vsel %vm20828_vm0, %v848_v23, %v20803_v19 }
 0x1ae   : > { %v3168_v49 = vsel %vm1920_vm4, %v16586_v56, %v3167_v57  ;;  %v3175_v36 = vsel %vm1920_vm4, %v16622_v59, %v3174_v12  ;;  %v21181_v30 = vrot.slane %v21180_v14, 7  ;;  %v16670_v39 = vrot.slane %v1483_v34, %v14360_v7 }
 0x1af   : > { %12985 = vrot.lane.b32.xlu1 %v21179_v31, %s14007_s25  ;;  %v3169_v20 = vsel %vm1922_vm5, %v16595_v58, %v3168_v49  ;;  %v3176_v2 = vsel %vm1922_vm5, %v16625_v29, %v3175_v36  ;;  %v16674_v57 = vcombine.high %v16648_v62, %v16648_v62  ;;  %v16681_v31 = vrot.slane %v850_v27, %v14360_v7 }
 0x1b0   : > { %v919_v0 = vsel %vm20828_vm0, %v21181_v30, 0.0  ;;  %v3170_v23 = vsel %vm1924_vm6, %v16599_v61, %v3169_v20  ;;  %v3177_v12 = vsel %vm1924_vm6, %v16628_v4, %v3176_v2  ;;  %v1500_v30 = vcombine.high %v850_v27, %v850_v27 }
 0x1b1   : > { %v16685_v49 = vsel %vm1926_vm7, %v16603_v6, %v3170_v23  ;;  %v16689_v34 = vsel %vm1926_vm7, %v16631_v11, %v3177_v12  ;;  %v1499_v36 = vcombine.high %v16670_v39, %v16670_v39  ;;  %v2740_v14 = vrot.slane %v16648_v62, %v14363_v8 }
 0x1b2   : > { %21182 = vst [vmem:[#allocation136_spill] sm:$0xff] %v16689_v34  ;;  %v12994_v20 = vpack.i.bf16 %v16689_v34, %v16685_v49  ;;  %v16698_v27 = vrot.slane %v1500_v30, %v14360_v7  ;;  %v1515_v2 = vcombine.high %v16681_v31, %v16681_v31  ;;  %v16704_v23 = vrot.slane %v16674_v57, %v14363_v8  ;;  %v21183_v30 = vld [vmem:[#allocation85_spill] sm:$0xff] }
 0x1b3   : > { %v16708_v12 = vrot.slane %v16670_v39, %v14363_v8  ;;  %v16711_v19 = vrot.slane %v1499_v36, %v14363_v8  ;;  %v16715_v34 = vrot.slane %v16681_v31, %v14363_v8  ;;  %v2772_v5 = vrot.slane %v21183_v30, %v14363_v8 }
 0x1b4   : > { %12995 = vrot.lane.b32.xlu1 %v12994_v20, %s13998_s28  ;;  %v1516_v43 = vcombine.high %v16698_v27, %v16698_v27  ;;  %v16723_v41 = vrot.slane %v1515_v2, %v14363_v8  ;;  %v16727_v52 = vrot.slane %v16698_v27, %v14363_v8  ;;  %v16731_v40 = vrot.slane %v21184_v60, %v14363_v8  ;;  %v21186_v20 = vld [vmem:[#allocation92_spill] sm:$0xff]  ;;  %v21189_v60 = vld [vmem:[#allocation90_spill] sm:$0xff] }
 0x1b5   : > { %v16735_v50 = vrot.slane %v21185_v42, %v14363_v8  ;;  %v16739_v30 = vrot.slane %v21186_v20, %v14363_v8  ;;  %v16743_v21 = vrot.slane %v21187_v32, %v14363_v8  ;;  %v16747_v51 = vrot.slane %v21188_v47, %v14363_v8  ;;  %v21190_v42 = vld [vmem:[#allocation98_spill] sm:$0xff] }
 0x1b6   : > { %v16750_v15 = vrot.slane %v1516_v43, %v14363_v8  ;;  %v16754_v1 = vrot.slane %v21189_v60, %v14363_v8  ;;  %v16758_v28 = vrot.slane %v21190_v42, %v14363_v8  ;;  %v2843_v20 = vsel %vm20827_vm1, %v16704_v23, %v2740_v14 }
 0x1b7   : > { %v2844_v32 = vsel %vm20826_vm2, %v16708_v12, %v2843_v20  ;;  %v2850_v47 = vsel %vm20827_vm1, %v16731_v40, %v2772_v5  ;;  %v13004_v35 = vpack.i.bf16 %v21192_v38, %v21191_v55  ;;  %v921_v60 = vsel %vm20828_vm0, %v21193_v37, 0.0  ;;  %v21194_v37 = vld [vmem:[#allocation51_spill] sm:$0xff]  ;;  %v21195_v55 = vld [vmem:[#allocation52_spill] sm:$0xff] }
 0x1b8   : > { %v2845_v42 = vsel %vm20829_vm3, %v16711_v19, %v2844_v32  ;;  %v2851_v22 = vsel %vm20826_vm2, %v16735_v50, %v2850_v47  ;;  %v16776_v14 = vrot.slane %v919_v0, %v14360_v7  ;;  %v16779_v20 = vrot.slane %v921_v60, %v14360_v7 }
 0x1b9   : > { %v2846_v5 = vsel %vm1920_vm4, %v16715_v34, %v2845_v42  ;;  %v2852_v38 = vsel %vm20829_vm3, %v16739_v30, %v2851_v22  ;;  %13005 = vrot.lane.b32.xlu1 %v13004_v35, %s14008_s26  ;;  %v3277_v3 = vsel %vm20827_vm1, %v21195_v55, %v21194_v37  ;;  %v3284_v0 = vsel %vm20827_vm1, %v16501_v25, %v16498_v48  ;;  %v21196_v37 = vld [vmem:[#allocation53_spill] sm:$0xff]  ;;  %v21197_v55 = vld [vmem:[#allocation54_spill] sm:$0xff] }
 0x1ba   : > { %v2847_v32 = vsel %vm1922_vm5, %v16723_v41, %v2846_v5  ;;  %v2853_v47 = vsel %vm1920_vm4, %v16743_v21, %v2852_v38  ;;  %v3236_v22 = vrot.slane %v16776_v14, %v14363_v8  ;;  %v3240_v35 = vrot.slane %v16779_v20, %v14363_v8 }
 0x1bb   : > { %v2848_v60 = vsel %vm1924_vm6, %v16727_v52, %v2847_v32  ;;  %v2854_v42 = vsel %vm1922_vm5, %v16747_v51, %v2853_v47  ;;  %v3278_v48 = vsel %vm20826_vm2, %v21196_v37, %v3277_v3  ;;  %v3285_v25 = vsel %vm20826_vm2, %v16517_v33, %v3284_v0  ;;  %v21198_v3 = vld [vmem:[#allocation55_spill] sm:$0xff]  ;;  %v21199_v37 = vld [vmem:[#allocation56_spill] sm:$0xff] }
 0x1bc   : > { %v16810_v5 = vsel %vm1926_vm7, %v16750_v15, %v2848_v60  ;;  %v2855_v38 = vsel %vm1924_vm6, %v16754_v1, %v2854_v42  ;;  %v3279_v10 = vsel %vm20829_vm3, %v21197_v55, %v3278_v48  ;;  %v3286_v32 = vsel %vm20829_vm3, %v16504_v24, %v3285_v25 }
 0x1bd   : > { %v16820_v47 = vsel %vm1926_vm7, %v16758_v28, %v2855_v38  ;;  %v3280_v33 = vsel %vm1920_vm4, %v21198_v3, %v3279_v10  ;;  %v3287_v0 = vsel %vm1920_vm4, %v16508_v53, %v3286_v32  ;;  %v3076_v60 = vrot.slane %v16648_v62, %v14386_v18  ;;  %v21200_v10 = vld [vmem:[#allocation57_spill] sm:$0xff]  ;;  %v21201_v3 = vld [vmem:[#allocation96_spill] sm:$0xff] }
 0x1be   : > { %v12989_v42 = vpack.i.bf16 %v16820_v47, %v16810_v5  ;;  %v3281_v48 = vsel %vm1922_vm5, %v21199_v37, %v3280_v33  ;;  %v3288_v24 = vsel %vm1922_vm5, %v16511_v54, %v3287_v0  ;;  %v16836_v25 = vrot.slane %v16674_v57, %v14386_v18  ;;  %v21202_v33 = vld [vmem:[#allocation74_spill] sm:$0xff]  ;;  %v21203_v0 = vld [vmem:[#allocation143_spill] sm:$0xff] }
 0x1bf   : > { %v3282_v38 = vsel %vm1924_vm6, %v21200_v10, %v3281_v48  ;;  %v3289_v53 = vsel %vm1924_vm6, %v16527_v44, %v3288_v24  ;;  %v16844_v62 = vrot.slane %v16670_v39, %v14386_v18  ;;  %v16847_v55 = vrot.slane %v1499_v36, %v14386_v18 }
 0x1c0   : > { %12990 = vrot.lane.b32.xlu0 %v12989_v42, %s13996_s24  ;;  %v16851_v54 = vsel %vm1926_vm7, %v3236_v22, %v3282_v38  ;;  %v16854_v57 = vsel %vm1926_vm7, %v3240_v35, %v3289_v53  ;;  %v16858_v32 = vrot.slane %v16681_v31, %v14386_v18  ;;  %v16861_v44 = vrot.slane %v1515_v2, %v14386_v18  ;;  %v21207_v38 = vld [vmem:[#allocation59_spill] sm:$0xff]  ;;  %s14010_s24 = smov 15  }
 0x1c1   : > { %v13014_v39 = vpack.i.bf16 %v16854_v57, %v16851_v54  ;;  %v16867_v36 = vrot.slane %v16698_v27, %v14386_v18  ;;  %v16870_v22 = vrot.slane %v1516_v43, %v14386_v18  ;;  %v3179_v35 = vsel %vm20827_vm1, %v16836_v25, %v3076_v60 }
 0x1c2   : > { %v3180_v31 = vsel %vm20826_vm2, %v16844_v62, %v3179_v35  ;;  %v13024_v2 = vpack.i.bf16 %v21202_v33, %v21201_v3  ;;  %v13019_v42 = vpack.i.bf16 %v16685_v49, %v21203_v0  ;;  %v3348_v37 = vrot.slane %v16776_v14, %v14386_v18  ;;  %v21204_v49 = vld [vmem:[#allocation60_spill] sm:$0xff] }
 0x1c3   : > { %13015 = vrot.lane.b32.xlu1 %v13014_v39, %s14001_s23  ;;  %v3181_v43 = vsel %vm20829_vm3, %v16847_v55, %v3180_v31  ;;  %v3352_v27 = vrot.slane %v16779_v20, %v14386_v18  ;;  %v3389_v60 = vsel %vm20827_vm1, %v16571_v17, %v16560_v16  ;;  %v3396_v48 = vsel %vm20827_vm1, %v16611_v13, %v16608_v45 }
 0x1c4   : > { %v21205_v14 = vpack.i.bf16 %v21173_v63, %v21204_v49  ;;  %v3182_v24 = vsel %vm1920_vm4, %v16858_v32, %v3181_v43  ;;  %v3390_v10 = vsel %vm20826_vm2, %v16582_v9, %v3389_v60  ;;  %v3397_v20 = vsel %vm20826_vm2, %v16619_v46, %v3396_v48  ;;  %v21211_v48 = vld [vmem:[#allocation97_spill] sm:$0xff] }
 0x1c5   : > { %v21206_v16 = vrot.slane %v16614_v26, 7  ;;  %v3183_v45 = vsel %vm1922_vm5, %v16861_v44, %v3182_v24  ;;  %v3391_v63 = vsel %vm20829_vm3, %v16586_v56, %v3390_v10  ;;  %v3398_v13 = vsel %vm20829_vm3, %v16622_v59, %v3397_v20  ;;  %v21213_v10 = vld [vmem:[#allocation100_spill] sm:$0xff] }
 0x1c6   : > { %13000 = vrot.lane.b32.xlu0 %v21205_v14, %s14007_s25  ;;  %v21208_v53 = vrot.slane %v21207_v38, 7  ;;  %v3184_v46 = vsel %vm1924_vm6, %v16867_v36, %v3183_v45  ;;  %v3392_v26 = vsel %vm1920_vm4, %v16595_v58, %v3391_v63  ;;  %v3399_v39 = vsel %vm1920_vm4, %v16625_v29, %v3398_v13  ;;  %v21209_v29 = vld [vmem:[#allocation115_spill] sm:$0xff]  ;;  %v21217_v38 = vld [vmem:[#allocation49_spill] sm:$0xff] }
 0x1c7   : > { %v923_v17 = vsel %vm20828_vm0, %v21206_v16, 0.0  ;;  %v16926_v56 = vsel %vm1926_vm7, %v16870_v22, %v3184_v46  ;;  %13025 = vrot.lane.b32.xlu1 %v13024_v2, %s14009_s3  ;;  %v3393_v59 = vsel %vm1922_vm5, %v16599_v61, %v3392_v26  ;;  %v3400_v31 = vsel %vm1922_vm5, %v16628_v4, %v3399_v39  ;;  %v21216_v13 = vld [vmem:[#allocation63_spill] sm:$0xff] }
 0x1c8   : > { %v925_v9 = vsel %vm20828_vm0, %v21208_v53, 0.0  ;;  %v16922_v35 = vrot.slane %v923_v17, %v14360_v7  ;;  %v13009_v3 = vpack.i.bf16 %v21209_v29, %v16926_v56  ;;  %v3394_v33 = vsel %vm1924_vm6, %v16603_v6, %v3393_v59  ;;  %v21215_v17 = vld [vmem:[#allocation62_spill] sm:$0xff] }
 0x1c9   : > { %v16934_v58 = vrot.slane %v925_v9, %v14360_v7  ;;  %v3401_v0 = vsel %vm1924_vm6, %v16631_v11, %v3400_v31  ;;  %v16945_v61 = vsel %vm1926_vm7, %v3348_v37, %v3394_v33  ;;  %v3291_v60 = vsel %vm20827_vm1, %v16708_v12, %v16704_v23  ;;  %v21212_v12 = vld [vmem:[#allocation79_spill] sm:$0xff]  ;;  %v21221_v31 = vld [vmem:[#allocation78_spill] sm:$0xff] }
 0x1ca   : > { %v3244_v2 = vrot.slane %v16922_v35, %v14363_v8  ;;  %v16948_v4 = vsel %vm1926_vm7, %v3352_v27, %v3401_v0  ;;  %13010 = vrot.lane.b32.xlu0 %v13009_v3, %s13998_s28  ;;  %v3292_v11 = vsel %vm20826_vm2, %v16711_v19, %v3291_v60  ;;  %v3298_v37 = vsel %vm20827_vm1, %v16735_v50, %v16731_v40  ;;  %v21210_v27 = vld [vmem:[#allocation35_spill] sm:$0xff]  ;;  %v21214_v19 = vld [vmem:[#allocation46_spill] sm:$0xff]  ;;  %s21239_s28 = sld [smem:[#allocation163_spill]] }
 0x1cb   : > { %v3248_v43 = vrot.slane %v16934_v58, %v14363_v8  ;;  %v13034_v6 = vpack.i.bf16 %v16948_v4, %v16945_v61  ;;  %v13044_v49 = vpack.i.bf16 %v21211_v48, %v21210_v27  ;;  %v3293_v14 = vsel %vm20829_vm3, %v16715_v34, %v3292_v11  ;;  %v21222_v33 = vld [vmem:[#allocation106_spill] sm:$0xff]  ;;  %v21225_v27 = vld [vmem:[#allocation156_spill] sm:$0xff] }
 0x1cc   : > { %v3299_v23 = vsel %vm20826_vm2, %v16739_v30, %v3298_v37  ;;  %v13039_v24 = vpack.i.bf16 %v16851_v54, %v21212_v12  ;;  %v1821_v20 = vrot.slane %v21213_v10, %v14363_v8  ;;  %v3294_v50 = vsel %vm1920_vm4, %v16723_v41, %v3293_v14  ;;  %v21224_v11 = vld [vmem:[#allocation122_spill] sm:$0xff]  ;;  %v21229_v10 = vld [vmem:[#allocation80_spill] sm:$0xff] }
 0x1cd   : > { %13035 = vrot.lane.b32.xlu1 %v13034_v6, %s14002_s18  ;;  %v3300_v40 = vsel %vm20829_vm3, %v16743_v21, %v3299_v23  ;;  %v1853_v34 = vrot.slane %v21214_v19, %v14363_v8  ;;  %v3356_v30 = vrot.slane %v16922_v35, %v14386_v18  ;;  %v3295_v54 = vsel %vm1922_vm5, %v16727_v52, %v3294_v50  ;;  %v21220_v35 = vld [vmem:[#allocation64_spill] sm:$0xff]  ;;  %v774_v6 = vld [vmem:[%s14357_s19 + $0xf0] sm:$0xff]  ;;  %v775_v23 = vld [vmem:[%s14357_s19 + $0xf8] sm:$0xff]  ;;  %s21411_s19 = sld [smem:[#allocation162_spill]] }
 0x1ce   : > { %v3301_v16 = vsel %vm1920_vm4, %v16747_v51, %v3300_v40  ;;  %v1956_v45 = vsel %vm20827_vm1, %v21215_v17, %v1821_v20  ;;  %v3360_v41 = vrot.slane %v16934_v58, %v14386_v18  ;;  %13020 = vrot.lane.b32.xlu0 %v13019_v42, %s14008_s26  ;;  %v3296_v21 = vsel %vm1924_vm6, %v16750_v15, %v3295_v54  ;;  %v21218_v42 = vld [vmem:[#allocation102_spill] sm:$0xff]  ;;  %v21219_v15 = vld [vmem:[#allocation75_spill] sm:$0xff]  ;;  %v21230_v40 = vld [vmem:[#allocation105_spill] sm:$0xff] }
 0x1cf   : > { %v3302_v63 = vsel %vm1922_vm5, %v16754_v1, %v3301_v16  ;;  %v1957_v52 = vsel %vm20826_vm2, %v21216_v13, %v1956_v45  ;;  %v1963_v51 = vsel %vm20827_vm1, %v21217_v38, %v1853_v34  ;;  %v17000_v53 = vsel %vm1926_vm7, %v3244_v2, %v3296_v21  ;;  %v17008_v1 = vpop.permute.xlu1 %12855  ;;  %v21223_v2 = vld [vmem:[#allocation50_spill] sm:$0xff]  ;;  %v21232_v16 = vld [vmem:[#allocation108_spill] sm:$0xff] }
 0x1d0   : > { %v3303_v9 = vsel %vm1924_vm6, %v16758_v28, %v3302_v63  ;;  %v1958_v46 = vsel %vm20829_vm3, %v21218_v42, %v1957_v52  ;;  %v1964_v26 = vsel %vm20826_vm2, %v21219_v15, %v1963_v51  ;;  %v3403_v58 = vsel %vm20827_vm1, %v16844_v62, %v16836_v25  ;;  %v21226_v62 = vld [vmem:[#allocation103_spill] sm:$0xff]  ;;  %v21228_v12 = vld [vmem:[#allocation66_spill] sm:$0xff]  ;;  %v21233_v63 = vld [vmem:[#allocation109_spill] sm:$0xff] }
 0x1d1   : > { %v17011_v39 = vsel %vm1926_vm7, %v3248_v43, %v3303_v9  ;;  %13045 = vrot.lane.b32.xlu1 %v13044_v49, %s14010_s24  ;;  %v1959_v59 = vsel %vm1920_vm4, %v21220_v35, %v1958_v46  ;;  %v1965_v28 = vsel %vm20829_vm3, %v21221_v31, %v1964_v26  ;;  %v3404_v60 = vsel %vm20826_vm2, %v16847_v55, %v3403_v58  ;;  %v21227_v49 = vld [vmem:[#allocation104_spill] sm:$0xff]  ;;  %v21231_v19 = vld [vmem:[#allocation158_spill] sm:$0xff]  ;;  %v21235_v46 = vld [vmem:[#allocation69_spill] sm:$0xff] }
 0x1d2   : > { %v13029_v3 = vpack.i.bf16 %v17011_v39, %v17000_v53  ;;  %v1960_v0 = vsel %vm1922_vm5, %v21222_v33, %v1959_v59  ;;  %v1966_v43 = vsel %vm1920_vm4, %v21223_v2, %v1965_v28  ;;  %v3405_v25 = vsel %vm20829_vm3, %v16858_v32, %v3404_v60 }
 0x1d3   : > { %v1961_v37 = vsel %vm1924_vm6, %v21224_v11, %v1960_v0  ;;  %v1967_v48 = vsel %vm1922_vm5, %v21225_v27, %v1966_v43  ;;  %v3410_v14 = vsel %vm20827_vm1, %v21227_v49, %v21226_v62  ;;  %v3406_v50 = vsel %vm1920_vm4, %v16861_v44, %v3405_v25  ;;  %v17065_v38 = vpop.permute.xlu1 %12865  ;;  %v21237_v0 = vld [vmem:[#allocation81_spill] sm:$0xff]  ;;  %v21238_v43 = vld [vmem:[#allocation99_spill] sm:$0xff]  ;;  %v21241_v62 = vld [vmem:[#allocation82_spill] sm:$0xff]  ;;  %s737_s0 = scalar_lea.vmem %s21411_s19, %s14346_s20  ;;  %s21553_s20 = sld [smem:[#allocation27_spill]] }
 0x1d4   : > { %13030 = vrot.lane.b32.xlu0 %v13029_v3, %s14001_s23  ;;  %v17043_v55 = vsel %vm1926_vm7, %v21228_v12, %v1961_v37  ;;  %v1968_v20 = vsel %vm1924_vm6, %v21229_v10, %v1967_v48  ;;  %v3411_v32 = vsel %vm20826_vm2, %v21230_v40, %v3410_v14  ;;  %v3407_v54 = vsel %vm1922_vm5, %v16867_v36, %v3406_v50  ;;  %v21234_v36 = vld [vmem:[#allocation110_spill] sm:$0xff]  ;;  %v17085_v3 = vpop.permute.xlu0 %12840  ;;  %v21240_v27 = vld [vmem:[#allocation157_spill] sm:$0xff]  ;;  %v21242_v10 = vld [vmem:[#allocation83_spill] sm:$0xff]  ;;  %s14013_s23 = smov 96   ;;  %s21554_s19 = sld [smem:[#allocation168_spill]] }
 0x1d5   : > { %v17053_v34 = vsel %vm1926_vm7, %v21231_v19, %v1968_v20  ;;  %v3412_v17 = vsel %vm20829_vm3, %v21232_v16, %v3411_v32  ;;  %v857_v45 = vrot.slane %v774_v6, 7  ;;  %v3408_v44 = vsel %vm1924_vm6, %v16870_v22, %v3407_v54  ;;  %v21236_v22 = vld [vmem:[#allocation111_spill] sm:$0xff]  ;;  %v21243_v32 = vld [vmem:[#allocation124_spill] sm:$0xff] }
 0x1d6   : > { %v13054_v21 = vpack.i.bf16 %v17053_v34, %v17043_v55  ;;  %v3413_v13 = vsel %vm1920_vm4, %v21233_v63, %v3412_v17  ;;  %v858_v52 = vrot.slane %v775_v23, 7  ;;  %v17068_v51 = vsel %vm1926_vm7, %v3356_v30, %v3408_v44 }
 0x1d7   : > { %v3414_v9 = vsel %vm1922_vm5, %v21234_v36, %v3413_v13  ;;  %v909_v42 = vsel %vm20828_vm0, 0.0, %v857_v45  ;;  %v1885_v15 = vrot.slane %v21235_v46, %v14363_v8  ;;  %v13059_v60 = vpack.i.bf16 %v16945_v61, %v21238_v43  ;;  %v17105_v23 = vpop.permute.xlu1 %12870 }
 0x1d8   : > { %13040 = vrot.lane.b32.xlu0 %v13039_v24, %s14009_s3  ;;  %13055 = vrot.lane.b32.xlu1 %v13054_v21, %s14003_s29  ;;  %v3415_v26 = vsel %vm1924_vm6, %v21236_v22, %v3414_v9  ;;  %v859_v35 = vsel %vm20828_vm0, %v857_v45, %v858_v52  ;;  %v1616_v59 = vcombine.high %v909_v42, %v909_v42  ;;  %v926_v40 = vsel %vm20828_vm0, %v858_v52, 0.0  ;;  %v21244_v45 = vld [vmem:[#allocation125_spill] sm:$0xff]  ;;  %v17121_v52 = vpop.permute.xlu0 %12845 }
 0x1d9   : > { %v17081_v30 = vsel %vm1926_vm7, %v3360_v41, %v3415_v26  ;;  %v1623_v31 = vrot.slane %v909_v42, %v14360_v7  ;;  %v1633_v28 = vcombine.high %v859_v35, %v859_v35  ;;  %v1640_v58 = vrot.slane %v859_v35, %v14360_v7  ;;  %v13259_v41 = vld [vmem:[%s21239_s28] sm:$0xff]   ;;  %s20847_s28 = smov 126   ;;  %p21556_p1 = scmp.ne.s32.totalorder %s21553_s20, 0 }
 0x1da   : > { %v13049_v24 = vpack.i.bf16 %v17081_v30, %v17068_v51  ;;  %v1630_v33 = vrot.slane %v1616_v59, %v14360_v7  ;;  %v1970_v2 = vsel %vm20827_vm1, %v21237_v0, %v1885_v15  ;;  %12560 = vmatprep.subr.bf16.mxu1 %v13259_v41  ;;  %v21245_v15 = vld [vmem:[#allocation132_spill] sm:$0xff]  ;;  %vm3859_vm0 = vcmask 121856  }
 0x1db   : > { %v1631_v6 = vcombine.high %v1623_v31, %v1623_v31  ;;  %v1647_v11 = vrot.slane %v1633_v28, %v14360_v7  ;;  %v1648_v37 = vcombine.high %v1640_v58, %v1640_v58  ;;  %v1971_v48 = vsel %vm20826_vm2, %v21240_v27, %v1970_v2  ;;  %12561 = vmatpush3.bf16.msra.mxu1 %v13259_v41  ;;  %v17139_v2 = vpop.permute.xlu1 %12875  ;;  %v21247_v41 = vld [vmem:[#allocation47_spill] sm:$0xff] }
 0x1dc   : > { %13050 = vrot.lane.b32.xlu0 %v13049_v24, %s14002_s18  ;;  %v1632_v25 = vcombine.high %v1630_v33, %v1630_v33  ;;  %v1972_v49 = vsel %vm20829_vm3, %v21241_v62, %v1971_v48  ;;  %v3444_v14 = vrot.slane %v1623_v31, %v14363_v8  ;;  %v3452_v61 = vrot.slane %v1630_v33, %v14363_v8  ;;  %s18408_s18 = sand.u32 1, %s13974_s22  }
 0x1dd   : > { %v1649_v12 = vcombine.high %v1647_v11, %v1647_v11  ;;  %v1973_v20 = vsel %vm1920_vm4, %v21242_v10, %v1972_v49  ;;  %v3448_v50 = vrot.slane %v1631_v6, %v14363_v8  ;;  %v3460_v16 = vrot.slane %v1640_v58, %v14363_v8  ;;  %v21249_v10 = vld [vmem:[#allocation133_spill] sm:$0xff] }
 0x1de   : > { %v1974_v19 = vsel %vm1922_vm5, %v21243_v32, %v1973_v20  ;;  %v3456_v54 = vrot.slane %v1632_v25, %v14363_v8  ;;  %v3464_v17 = vrot.slane %v1648_v37, %v14363_v8  ;;  %v3468_v44 = vrot.slane %v1647_v11, %v14363_v8 }
 0x1df   : > { %v1975_v21 = vsel %vm1924_vm6, %v21244_v45, %v1974_v19  ;;  %v3473_v63 = vsel %vm20827_vm1, %v3448_v50, %v3444_v14  ;;  %v3507_v13 = vrot.slane %v1623_v31, %v14386_v18  ;;  %v3472_v36 = vrot.slane %v1649_v12, %v14363_v8  ;;  %v21248_v14 = vld [vmem:[#allocation67_spill] sm:$0xff] }
 0x1e0   : > { %v3474_v9 = vsel %vm20826_vm2, %v3452_v61, %v3473_v63  ;;  %13060 = vrot.lane.b32.xlu0 %v13059_v60, %s14010_s24  ;;  %v3511_v42 = vrot.slane %v1631_v6, %v14386_v18  ;;  %v3515_v46 = vrot.slane %v1630_v33, %v14386_v18  ;;  %v17130_v22 = vsel %vm1926_vm7, %v21245_v15, %v1975_v21  ;;  %v21246_v60 = vld [vmem:[#allocation32_spill] sm:$0xff]  ;;  %v21250_v15 = vld [vmem:[#allocation33_spill] sm:$0xff] }
 0x1e1   : > { %v3475_v26 = vsel %vm20829_vm3, %v3456_v54, %v3474_v9  ;;  %v3519_v35 = vrot.slane %v1632_v25, %v14386_v18  ;;  %v3523_v59 = vrot.slane %v1640_v58, %v14386_v18  ;;  %v3527_v28 = vrot.slane %v1648_v37, %v14386_v18 }
 0x1e2   : > { %v3476_v31 = vsel %vm1920_vm4, %v3460_v16, %v3475_v26  ;;  %v3531_v24 = vrot.slane %v1647_v11, %v14386_v18  ;;  %v3536_v0 = vsel %vm20827_vm1, %v3511_v42, %v3507_v13  ;;  %v13069_v6 = vpack.i.bf16 %v21247_v41, %v21246_v60  ;;  %v21254_v60 = vld [vmem:[#allocation140_spill] sm:$0xff] }
 0x1e3   : > { %v3477_v33 = vsel %vm1922_vm5, %v3464_v17, %v3476_v31  ;;  %v3537_v43 = vsel %vm20826_vm2, %v3515_v46, %v3536_v0  ;;  %v1657_v27 = vrot.slane %v926_v40, %v14360_v7  ;;  %v3535_v48 = vrot.slane %v1649_v12, %v14386_v18  ;;  %v17156_v40 = vpop.permute.xlu0 %12850  ;;  %v21251_v31 = vld [vmem:[#allocation58_spill] sm:$0xff] }
 0x1e4   : > { %v3478_v58 = vsel %vm1924_vm6, %v3468_v44, %v3477_v33  ;;  %v3538_v37 = vsel %vm20829_vm3, %v3519_v35, %v3537_v43  ;;  %v3571_v11 = vsel %vm20827_vm1, %v3452_v61, %v3448_v50  ;;  %13070 = vrot.lane.b32.xlu0 %v13069_v6, %s14004_s4  ;;  %v13079_v20 = vpack.i.bf16 %v21249_v10, %v21248_v14  ;;  %v21253_v33 = vld [vmem:[#allocation126_spill] sm:$0xff]  ;;  %v21259_v14 = vld [vmem:[#allocation135_spill] sm:$0xff] }
 0x1e5   : > { %v3479_v25 = vsel %vm1926_vm7, %v3472_v36, %v3478_v58  ;;  %v3539_v62 = vsel %vm1920_vm4, %v3523_v59, %v3538_v37  ;;  %v3572_v49 = vsel %vm20826_vm2, %v3456_v54, %v3571_v11  ;;  %v3570_v19 = vrot.slane %v1657_v27, %v14363_v8 }
 0x1e6   : > { %v13064_v32 = vpack.i.bf16 %v3479_v25, %v17130_v22  ;;  %v3540_v12 = vsel %vm1922_vm5, %v3527_v28, %v3539_v62  ;;  %v3573_v61 = vsel %vm20829_vm3, %v3460_v16, %v3572_v49  ;;  %v3605_v21 = vrot.slane %v1657_v27, %v14386_v18  ;;  %v17172_v16 = vpop.permute.xlu1 %12885  ;;  %v21255_v27 = vld [vmem:[#allocation144_spill] sm:$0xff] }
 0x1e7   : > { %v3541_v50 = vsel %vm1924_vm6, %v3531_v24, %v3540_v12  ;;  %v3574_v45 = vsel %vm1920_vm4, %v3464_v17, %v3573_v61  ;;  %v3606_v54 = vsel %vm20827_vm1, %v3515_v46, %v3511_v42  ;;  %v1661_v26 = vrot.slane %v21250_v15, %v14363_v8  ;;  %v21252_v46 = vld [vmem:[#allocation48_spill] sm:$0xff]  ;;  %v21262_v61 = vld [vmem:[#allocation127_spill] sm:$0xff] }
 0x1e8   : > { %13065 = vrot.lane.b32.xlu1 %v13064_v32, %s14003_s29  ;;  %v3542_v63 = vsel %vm1926_vm7, %v3535_v48, %v3541_v50  ;;  %v3575_v13 = vsel %vm1922_vm5, %v3468_v44, %v3574_v45  ;;  %v3607_v9 = vsel %vm20826_vm2, %v3519_v35, %v3606_v54  ;;  %13080 = vrot.lane.b32.xlu0 %v13079_v20, %s14005_s27  ;;  %v21257_v25 = vld [vmem:[#allocation88_spill] sm:$0xff]  ;;  %v21260_v20 = vld [vmem:[#allocation91_spill] sm:$0xff]  ;;  %s11674_s29 = scalar_lea.sflag [#allocation4], %s18408_s18 }
 0x1e9   : > { %v13074_v0 = vpack.i.bf16 %v3542_v63, %v21251_v31  ;;  %v3576_v17 = vsel %vm1924_vm6, %v3472_v36, %v3575_v13  ;;  %v3608_v42 = vsel %vm20829_vm3, %v3523_v59, %v3607_v9  ;;  %v13089_v43 = vpack.i.bf16 %v21253_v33, %v21252_v46  ;;  %v17187_v36 = vpop.permute.xlu0 %12860  ;;  %v21256_v59 = vld [vmem:[#allocation84_spill] sm:$0xff]  ;;  %v21263_v45 = vld [vmem:[#allocation95_spill] sm:$0xff]  ;;  %v21265_v31 = vld [vmem:[#allocation113_spill] sm:$0xff] }
 0x1ea   : > { %v3577_v44 = vsel %vm1926_vm7, %v3570_v19, %v3576_v17  ;;  %v3609_v35 = vsel %vm1920_vm4, %v3527_v28, %v3608_v42  ;;  %v1915_v41 = vsel %vm20827_vm1, %v21254_v60, %v1661_v26  ;;  %v13099_v10 = vpack.i.bf16 %v16810_v5, %v21259_v14  ;;  %v17205_v12 = vpop.permute.xlu1 %12895  ;;  %v21264_v54 = vld [vmem:[#allocation136_spill] sm:$0xff]  ;;  %v21266_v17 = vld [vmem:[#allocation154_spill] sm:$0xff] }
 0x1eb   : > { %v3610_v6 = vsel %vm1922_vm5, %v3531_v24, %v3609_v35  ;;  %v1917_v58 = vsel %vm20826_vm2, %v21255_v27, %v1915_v41  ;;  %v13084_v37 = vpack.i.bf16 %v3577_v44, %v21256_v59  ;;  %v21258_v24 = vld [vmem:[#allocation145_spill] sm:$0xff]  ;;  %v13109_v5 = vpack.i.bf16 %v16926_v56, %v21264_v54 }
 0x1ec   : > { %13075 = vrot.lane.b32.xlu1 %v13074_v0, %s14004_s4  ;;  %v3611_v11 = vsel %vm1924_vm6, %v3535_v48, %v3610_v6  ;;  %v17194_v62 = vsel %vm20829_vm3, %v21257_v25, %v1917_v58  ;;  %13090 = vrot.lane.b32.xlu0 %v13089_v43, %s14006_s16  ;;  %v21261_v48 = vld [vmem:[#allocation146_spill] sm:$0xff]  ;;  %v13119_v15 = vpack.i.bf16 %v17000_v53, %v16854_v57  ;;  %v12873_v25 = vunpack.i.h.bf16 %v17105_v23  ;;  %s21309_s4 = sld [smem:[#allocation165_spill]] }
 0x1ed   : > { %v3612_v28 = vsel %vm1926_vm7, %v3605_v21, %v3611_v11  ;;  %v1921_v49 = vsel %vm1920_vm4, %v21258_v24, %v17194_v62  ;;  %v12881_v63 = vpop.permute.xlu0 %12880  ;;  %v13114_v0 = vpack.i.bf16 %v21265_v31, %v21209_v29  ;;  %v13129_v56 = vpack.i.bf16 %v17068_v51, %v16948_v4  ;;  %v21267_v29 = vld [vmem:[#allocation77_spill] sm:$0xff] }
 0x1ee   : > { %v1923_v32 = vsel %vm1922_vm5, %v21260_v20, %v1921_v49  ;;  %v13094_v50 = vpack.i.bf16 %v3612_v28, %v21262_v61  ;;  %v17218_v9 = vpop.permute.xlu1 %12910  ;;  %v13124_v42 = vpack.i.bf16 %v21266_v17, %v17011_v39  ;;  %v13134_v53 = vpack.i.bf16 %v21267_v29, %v17081_v30  ;;  %v21268_v20 = vld [vmem:[#allocation101_spill] sm:$0xff] }
 0x1ef   : > { %v1925_v19 = vsel %vm1924_vm6, %v21261_v48, %v1923_v32  ;;  %v12842_v11 = vunpack.i.l.bf16 %v17085_v3  ;;  %v12872_v28 = vunpack.i.l.bf16 %v17105_v23  ;;  %v12883_v49 = vunpack.i.h.bf16 %v12881_v63  ;;  %v21269_v29 = vld [vmem:[#allocation65_spill] sm:$0xff] }
 0x1f0   : > { %13085 = vrot.lane.b32.xlu1 %v13084_v37, %s14005_s27  ;;  %v1927_v21 = vsel %vm1926_vm7, %v21263_v45, %v1925_v19  ;;  %13100 = vrot.lane.b32.xlu0 %v13099_v10, %s14007_s25  ;;  %v12843_v37 = vunpack.i.h.bf16 %v17085_v3  ;;  %v12882_v14 = vunpack.i.l.bf16 %v12881_v63  ;;  %v12853_v45 = vunpack.i.h.bf16 %v17156_v40 }
 0x1f1   : > { %v13104_v13 = vpack.i.bf16 %v1927_v21, %v16820_v47  ;;  %v17223_v26 = vpop.permute.xlu0 %12890  ;;  %v3734_v10 = vsel %vm3733_vm8, %v1927_v21, %v12842_v11  ;;  %v12852_v21 = vunpack.i.l.bf16 %v17156_v40  ;;  %v12857_v63 = vunpack.i.l.bf16 %v17008_v1 }
 0x1f2   : > { %v17231_v47 = vpop.permute.xlu1 %12915  ;;  %v3735_v32 = vsel %vm3733_vm8, %v21268_v20, %v12843_v37  ;;  %v3743_v3 = vsel %vm3742_vm9, %v3734_v10, %v12872_v28  ;;  %v12863_v17 = vunpack.i.h.bf16 %v17187_v36  ;;  %v12862_v40 = vunpack.i.l.bf16 %v17187_v36 }
 0x1f3   : > { %v3744_v19 = vsel %vm3742_vm9, %v3735_v32, %v12873_v25  ;;  %v3752_v61 = vsel %vm3751_vm10, %v3743_v3, %v12882_v14  ;;  %v12892_v37 = vunpack.i.l.bf16 %v17223_v26  ;;  %vm3805_vm4 = vcmask 72704  }
 0x1f4   : > { %13095 = vrot.lane.b32.xlu1 %v13094_v50, %s14006_s16  ;;  %13110 = vrot.lane.b32.xlu0 %v13109_v5, %s14008_s26  ;;  %v3753_v23 = vsel %vm3751_vm10, %v3744_v19, %v12883_v49  ;;  %v12848_v50 = vunpack.i.h.bf16 %v17121_v52  ;;  %v12858_v5 = vunpack.i.h.bf16 %v17008_v1  ;;  %v21270_v49 = vld [vmem:[#allocation120_spill] sm:$0xff]  ;;  %vm3814_vm5 = vcmask 80896   ;;  %s20830_s16 = scalar_lea.vmem [#allocation13], %s18408_s18 }
 0x1f5   : > { %v17237_v57 = vpop.permute.xlu0 %12900  ;;  %v3762_v31 = vsel %vm3760_vm11, %v3753_v23, %v12853_v45  ;;  %v12887_v45 = vunpack.i.l.bf16 %v17172_v16  ;;  %vm3823_vm6 = vcmask 89088   ;;  %vm3832_vm7 = vcmask 97280  }
 0x1f6   : > { %v17242_v46 = vpop.permute.xlu1 %12925  ;;  %v12903_v28 = vunpack.i.h.bf16 %v17237_v57  ;;  %v12902_v36 = vunpack.i.l.bf16 %v17237_v57  ;;  %vm3841_vm2 = vcmask 105472   ;;  %vm3850_vm1 = vcmask 113664  }
 0x1f7   : > { %v12927_v3 = vunpack.i.l.bf16 %v17242_v46  ;;  %vm3887_vm3 = vcmask 130048  }
 0x1f8   : > { %13105 = vrot.lane.b32.xlu1 %v13104_v13, %s14007_s25  ;;  %13120 = vrot.lane.b32.xlu0 %v13119_v15, %s14009_s3  ;;  %v12847_v13 = vunpack.i.l.bf16 %v17121_v52  ;;  %v3761_v15 = vsel %vm3760_vm11, %v3752_v61, %v12852_v21  ;;  %v12893_v52 = vunpack.i.h.bf16 %v17223_v26  ;;  %v12928_v61 = vunpack.i.h.bf16 %v17242_v46  ;;  %s21480_s25 = sld [smem:[#allocation167_spill]] }
 0x1f9   : > { %v17244_v33 = vpop.permute.xlu0 %12905  ;;  %v3770_v25 = vsel %vm3769_vm12, %v3761_v15, %v12862_v40 }
 0x1fa   : > { %v17247_v4 = vpop.permute.xlu1 %12935  ;;  %v3736_v14 = vsel %vm3733_vm8, %v21270_v49, %v12847_v13  ;;  %v12908_v10 = vunpack.i.h.bf16 %v17244_v33  ;;  %v12907_v20 = vunpack.i.l.bf16 %v17244_v33  ;;  %v3779_v23 = vsel %vm3778_vm13, %v3770_v25, %v12892_v37 }
 0x1fb   : > { %v3788_v33 = vsel %vm3787_vm14, %v3779_v23, %v12902_v36 }
 0x1fc   : > { %13115 = vrot.lane.b32.xlu1 %v13114_v0, %s14008_s26  ;;  %13130 = vrot.lane.b32.xlu0 %v13129_v56, %s14010_s24  ;;  %v12878_v0 = vunpack.i.h.bf16 %v17139_v2  ;;  %v12877_v56 = vunpack.i.l.bf16 %v17139_v2  ;;  %v3771_v2 = vsel %vm3769_vm12, %v3762_v31, %v12863_v17  ;;  %v3797_v13 = vsel %vm3796_vm15, %v3788_v33, %v12907_v20 }
 0x1fd   : > { %v17249_v51 = vpop.permute.xlu0 %12920  ;;  %v3780_v57 = vsel %vm3778_vm13, %v3771_v2, %v12893_v52  ;;  %v3806_v46 = vsel %vm3805_vm4, %v3797_v13, %v12927_v3 }
 0x1fe   : > { %v17251_v39 = vpop.permute.xlu1 %12945  ;;  %v3745_v32 = vsel %vm3742_vm9, %v3736_v14, %v12877_v56  ;;  %v3789_v21 = vsel %vm3787_vm14, %v3780_v57, %v12903_v28  ;;  %s20162_s26 = scalar_lea.vmem %s21480_s25, %s12290_s30  ;;  %s20850_s30 = sshll.u32 %s14147_s2, 4 }
 0x1ff   : > { %v3798_v15 = vsel %vm3796_vm15, %v3789_v21, %v12908_v10  ;;  %v12948_v31 = vunpack.i.h.bf16 %v17251_v39  ;;  %v3754_v49 = vsel %vm3751_vm10, %v3745_v32, %v12887_v45  ;;  %s14019_s25 = smov [#allocation13]  }
 0x200   : > { %13125 = vrot.lane.b32.xlu1 %v13124_v42, %s14009_s3  ;;  %v3807_v40 = vsel %vm3805_vm4, %v3798_v15, %v12928_v61  ;;  %v3763_v32 = vsel %vm3760_vm11, %v3754_v49, %v12857_v63  ;;  %v12868_v15 = vunpack.i.h.bf16 %v17065_v38  ;;  %s13876_s3 = sshll.u32 %s14019_s25, 4  ;;  %s13877_s3 = int_to_ptr.vmem [resolvable:$false] %s13876_s3 }
 0x201   : > { %v3816_v2 = vsel %vm3814_vm5, %v3807_v40, %v12948_v31  ;;  %v12867_v31 = vunpack.i.l.bf16 %v17065_v38  ;;  %v12923_v40 = vunpack.i.h.bf16 %v17249_v51 }
 0x202   : > { %v17253_v43 = vpop.permute.xlu0 %12930 }
 0x203   : > { %v3772_v1 = vsel %vm3769_vm12, %v3763_v32, %v12867_v31 }
 0x204   : > { %13135 = vrot.lane.b32.xlu1 %v13134_v53, %s14010_s24  ;;  %v17255_v44 = vpop.permute.xlu1 %12955  ;;  %v3737_v53 = vsel %vm3733_vm8, %v21269_v29, %v12848_v50  ;;  %v12888_v50 = vunpack.i.h.bf16 %v17172_v16  ;;  %s13878_s24 = scalar_lea.vmem %s13877_s3, 32 }
 0x205   : > { %v3746_v26 = vsel %vm3742_vm9, %v3737_v53, %v12878_v0  ;;  %v12947_v0 = vunpack.i.l.bf16 %v17251_v39 }
 0x206   : > { %v17257_v35 = vpop.permute.xlu0 %12940  ;;  %v3755_v10 = vsel %vm3751_vm10, %v3746_v26, %v12888_v50 }
 0x207   : > { %v3815_v25 = vsel %vm3814_vm5, %v3806_v46, %v12947_v0  ;;  %v3764_v50 = vsel %vm3760_vm11, %v3755_v10, %v12858_v5  ;;  %v12898_v0 = vunpack.i.h.bf16 %v17205_v12  ;;  %v12897_v46 = vunpack.i.l.bf16 %v17205_v12 }
 0x208   : > { %v3773_v5 = vsel %vm3769_vm12, %v3764_v50, %v12868_v15 }
 0x209   : > { %v3781_v12 = vsel %vm3778_vm13, %v3772_v1, %v12897_v46 }
 0x20a   : > { %v17259_v60 = vpop.permute.xlu1 %12965 }
 0x20b   : > { %v12968_v17 = vunpack.i.h.bf16 %v17259_v60  ;;  %v12967_v16 = vunpack.i.l.bf16 %v17259_v60 }
 0x20d   : > { %v3825_v14 = vsel %vm3823_vm6, %v3816_v2, %v12968_v17  ;;  %v12913_v17 = vunpack.i.h.bf16 %v17218_v9 }
 0x211   : > { %v17261_v30 = vpop.permute.xlu0 %12950 }
 0x215   : > { %v17265_v6 = vpop.permute.xlu0 %12960 }
 0x216   : > { %v12962_v2 = vunpack.i.l.bf16 %v17265_v6 }
 0x21b   : > { %v17263_v41 = vpop.permute.xlu1 %12975  ;;  %v17269_v58 = vpop.permute.xlu0 %12970 }
 0x21f   : > { %v17277_v24 = vpop.permute.xlu0 %12980 }
 0x221   : > { %v17267_v27 = vpop.permute.xlu1 %12985 }
 0x222   : > { %v12988_v29 = vunpack.i.h.bf16 %v17267_v27  ;;  %v12987_v53 = vunpack.i.l.bf16 %v17267_v27  ;;  %v3824_v27 = vsel %vm3823_vm6, %v3815_v25, %v12967_v16  ;;  %v12912_v16 = vunpack.i.l.bf16 %v17218_v9 }
 0x223   : > { %v12963_v25 = vunpack.i.h.bf16 %v17265_v6 }
 0x224   : > { %v3834_v20 = vsel %vm3832_vm7, %v3825_v14, %v12988_v29  ;;  %v12922_v29 = vunpack.i.l.bf16 %v17249_v51  ;;  %v3790_v9 = vsel %vm3787_vm14, %v3781_v12, %v12912_v16  ;;  %v12982_v51 = vunpack.i.l.bf16 %v17277_v24 }
 0x225   : > { %v12917_v16 = vunpack.i.l.bf16 %v17231_v47 }
 0x226   : > { %v17271_v59 = vpop.permute.xlu1 %12995 }
 0x22b   : > { %v17282_v48 = vpop.permute.xlu1 %13005 }
 0x22c   : > { %v13008_v39 = vunpack.i.h.bf16 %v17282_v48  ;;  %v13007_v37 = vunpack.i.l.bf16 %v17282_v48  ;;  %v3833_v48 = vsel %vm3832_vm7, %v3824_v27, %v12987_v53  ;;  %v12943_v53 = vunpack.i.h.bf16 %v17257_v35 }
 0x22e   : > { %v3843_v61 = vsel %vm3841_vm2, %v3834_v20, %v13008_v39  ;;  %v12942_v39 = vunpack.i.l.bf16 %v17257_v35  ;;  %v3799_v35 = vsel %vm3796_vm15, %v3790_v9, %v12922_v29  ;;  %v12937_v29 = vunpack.i.l.bf16 %v17247_v4  ;;  %v21271_v9 = vld [vmem:[#allocation44_spill] sm:$0xff] }
 0x230   : > { %v3808_v6 = vsel %vm3805_vm4, %v3799_v35, %v12942_v39  ;;  %v12957_v39 = vunpack.i.l.bf16 %v17255_v44 }
 0x232   : > { %v17291_v54 = vpop.permute.xlu0 %12990 }
 0x235   : > { %v17302_v42 = vpop.permute.xlu1 %13015 }
 0x238   : > { %v17308_v11 = vpop.permute.xlu0 %13000 }
 0x239   : > { %v13026_v19 = vpop.permute.xlu1 %13025  ;;  %v13003_v27 = vunpack.i.h.bf16 %v17308_v11  ;;  %v13002_v14 = vunpack.i.l.bf16 %v17308_v11 }
 0x23a   : > { %v13028_v60 = vunpack.i.h.bf16 %v13026_v19  ;;  %v13027_v28 = vunpack.i.l.bf16 %v13026_v19  ;;  %v3842_v19 = vsel %vm3841_vm2, %v3833_v48, %v13007_v37  ;;  %v3782_v37 = vsel %vm3778_vm13, %v3773_v5, %v12898_v0 }
 0x23c   : > { %v17332_v56 = vpop.permute.xlu0 %13010  ;;  %v3851_v45 = vsel %vm3850_vm1, %v3842_v19, %v13027_v28  ;;  %v3852_v26 = vsel %vm3850_vm1, %v3843_v61, %v13028_v60  ;;  %v3791_v60 = vsel %vm3787_vm14, %v3782_v37, %v12913_v17  ;;  %v12983_v28 = vunpack.i.h.bf16 %v17277_v24 }
 0x23d   : > { %v3800_v49 = vsel %vm3796_vm15, %v3791_v60, %v12923_v40  ;;  %v3817_v24 = vsel %vm3814_vm5, %v3808_v6, %v12962_v2  ;;  %v12918_v17 = vunpack.i.h.bf16 %v17231_v47  ;;  %v12938_v40 = vunpack.i.h.bf16 %v17247_v4 }
 0x23e   : > { %v3809_v48 = vsel %vm3805_vm4, %v3800_v49, %v12943_v53  ;;  %v3826_v61 = vsel %vm3823_vm6, %v3817_v24, %v12982_v51  ;;  %v12932_v53 = vunpack.i.l.bf16 %v17253_v43  ;;  %v12958_v37 = vunpack.i.h.bf16 %v17255_v44 }
 0x23f   : > { %v17340_v52 = vpop.permute.xlu1 %13035  ;;  %v3835_v32 = vsel %vm3832_vm7, %v3826_v61, %v13002_v14  ;;  %v3739_v47 = vsel %vm3733_vm8, %v17043_v55, %v12918_v17  ;;  %v3738_v4 = vsel %vm3733_vm8, %v21271_v9, %v12917_v16  ;;  %v12953_v60 = vunpack.i.h.bf16 %v17261_v30 }
 0x240   : > { %v17346_v36 = vpop.permute.xlu0 %13020  ;;  %v3748_v51 = vsel %vm3742_vm9, %v3739_v47, %v12938_v40  ;;  %v12978_v44 = vunpack.i.h.bf16 %v17263_v41  ;;  %v12972_v49 = vunpack.i.l.bf16 %v17269_v58  ;;  %v3740_v55 = vsel %vm3733_vm8, %v17053_v34, %v12932_v53 }
 0x241   : > { %v13023_v20 = vunpack.i.h.bf16 %v17346_v36  ;;  %v3757_v6 = vsel %vm3751_vm10, %v3748_v51, %v12958_v37  ;;  %v12993_v24 = vunpack.i.h.bf16 %v17291_v54  ;;  %v13017_v61 = vunpack.i.l.bf16 %v17302_v42 }
 0x243   : > { %v13046_v3 = vpop.permute.xlu1 %13045 }
 0x244   : > { %v13048_v23 = vunpack.i.h.bf16 %v13046_v3  ;;  %v13047_v57 = vunpack.i.l.bf16 %v13046_v3  ;;  %v13022_v3 = vunpack.i.l.bf16 %v17346_v36 }
 0x246   : > { %v17364_v33 = vpop.permute.xlu0 %13030  ;;  %v3860_v21 = vsel %vm3859_vm0, %v3851_v45, %v13047_v57  ;;  %v3861_v13 = vsel %vm3859_vm0, %v3852_v26, %v13048_v23  ;;  %v3818_v23 = vsel %vm3814_vm5, %v3809_v48, %v12963_v25  ;;  %v3844_v50 = vsel %vm3841_vm2, %v3835_v32, %v13022_v3 }
 0x247   : > { %v3868_v63 = vpack.c.bf16 %v3861_v13, %v3860_v21  ;;  %v3827_v11 = vsel %vm3823_vm6, %v3818_v23, %v12983_v28  ;;  %v12952_v25 = vunpack.i.l.bf16 %v17261_v30  ;;  %v3747_v28 = vsel %vm3742_vm9, %v3738_v4, %v12937_v29 }
 0x248   : > { %v3836_v45 = vsel %vm3832_vm7, %v3827_v11, %v13003_v27  ;;  %v3756_v27 = vsel %vm3751_vm10, %v3747_v28, %v12957_v39  ;;  %v12973_v30 = vunpack.i.h.bf16 %v17269_v58  ;;  %v12992_v58 = vunpack.i.l.bf16 %v17291_v54 }
 0x249   : > { %12562 = vmatprep.mubr.msk.bf16.mxu1 %vm3887_vm3, %v3868_v63  ;;  %v3845_v21 = vsel %vm3841_vm2, %v3836_v45, %v13023_v20  ;;  %v3749_v48 = vsel %vm3742_vm9, %v3740_v55, %v12952_v25  ;;  %v12997_v20 = vunpack.i.l.bf16 %v17271_v59  ;;  %v3766_v23 = vsel %vm3760_vm11, %v3757_v6, %v12978_v44 }
 0x24a   : > { %v13041_v38 = vpop.permute.xlu0 %13040  ;;  %v17409_v63 = vpop.permute.xlu1 %13055  ;;  %v13013_v11 = vunpack.i.h.bf16 %v17332_v56  ;;  %v13012_v32 = vunpack.i.l.bf16 %v17332_v56  ;;  %v13037_v45 = vunpack.i.l.bf16 %v17340_v52 }
 0x24b   : > { %v13043_v57 = vunpack.i.h.bf16 %v13041_v38  ;;  %v13042_v19 = vunpack.i.l.bf16 %v13041_v38  ;;  %v12933_v38 = vunpack.i.h.bf16 %v17253_v43  ;;  %v12977_v43 = vunpack.i.l.bf16 %v17263_v41 }
 0x24c   : > { %v12998_v41 = vunpack.i.h.bf16 %v17271_v59  ;;  %v13057_v56 = vunpack.i.l.bf16 %v17409_v63 }
 0x24d   : > { %v3853_v15 = vsel %vm3850_vm1, %v3844_v50, %v13042_v19  ;;  %v3854_v31 = vsel %vm3850_vm1, %v3845_v21, %v13043_v57  ;;  %v3741_v35 = vsel %vm3733_vm8, %v17130_v22, %v12933_v38  ;;  %v3765_v34 = vsel %vm3760_vm11, %v3756_v27, %v12977_v43 }
 0x24e   : > { %v17393_v10 = vpop.permute.xlu0 %13050  ;;  %v3750_v22 = vsel %vm3742_vm9, %v3741_v35, %v12953_v60  ;;  %v3758_v57 = vsel %vm3751_vm10, %v3749_v48, %v12972_v49  ;;  %v13018_v19 = vunpack.i.h.bf16 %v17302_v42  ;;  %v3774_v54 = vsel %vm3769_vm12, %v3765_v34, %v12997_v20 }
 0x24f   : > { %v3759_v59 = vsel %vm3751_vm10, %v3750_v22, %v12973_v30  ;;  %v3775_v50 = vsel %vm3769_vm12, %v3766_v23, %v12998_v41  ;;  %v13038_v21 = vunpack.i.h.bf16 %v17340_v52  ;;  %v3767_v42 = vsel %vm3760_vm11, %v3758_v57, %v12992_v58 }
 0x250   : > { %v13052_v17 = vunpack.i.l.bf16 %v17393_v10  ;;  %v3776_v52 = vsel %vm3769_vm12, %v3767_v42, %v13012_v32  ;;  %v13053_v29 = vunpack.i.h.bf16 %v17393_v10 }
 0x252   : > { %v13061_v26 = vpop.permute.xlu0 %13060 }
 0x253   : > { %v13063_v36 = vunpack.i.h.bf16 %v13061_v26  ;;  %v13062_v13 = vunpack.i.l.bf16 %v13061_v26 }
 0x255   : > { %v3862_v0 = vsel %vm3859_vm0, %v3853_v15, %v13062_v13  ;;  %v3863_v46 = vsel %vm3859_vm0, %v3854_v31, %v13063_v36  ;;  %v13032_v36 = vunpack.i.l.bf16 %v17364_v33  ;;  %v3768_v15 = vsel %vm3760_vm11, %v3759_v59, %v12993_v24 }
 0x256   : > { %v3869_v1 = vpack.c.bf16 %v3863_v46, %v3862_v0  ;;  %v17413_v5 = vpop.permute.xlu0 %13070  ;;  %v13033_v31 = vunpack.i.h.bf16 %v17364_v33  ;;  %v3783_v0 = vsel %vm3778_vm13, %v3774_v54, %v13017_v61  ;;  %v3784_v46 = vsel %vm3778_vm13, %v3775_v50, %v13018_v19 }
 0x257   : > { %v3777_v16 = vsel %vm3769_vm12, %v3768_v15, %v13013_v11  ;;  %v3792_v40 = vsel %vm3787_vm14, %v3783_v0, %v13037_v45  ;;  %v3793_v33 = vsel %vm3787_vm14, %v3784_v46, %v13038_v21  ;;  %v3785_v53 = vsel %vm3778_vm13, %v3776_v52, %v13032_v36 }
 0x258   : > { %12563 = vmatmul.mubr.msk.bf16.vlgmr.msra.gmra.mrb[0].mxu1 %vm3887_vm3, %v3869_v1  ;;  %v13058_v1 = vunpack.i.h.bf16 %v17409_v63  ;;  %v13073_v39 = vunpack.i.h.bf16 %v17413_v5  ;;  %v13072_v63 = vunpack.i.l.bf16 %v17413_v5  ;;  %v3786_v25 = vsel %vm3778_vm13, %v3777_v16, %v13033_v31 }
 0x259   : > { %v3801_v47 = vsel %vm3796_vm15, %v3792_v40, %v13057_v56  ;;  %v3794_v60 = vsel %vm3787_vm14, %v3785_v53, %v13052_v17  ;;  %v3795_v51 = vsel %vm3787_vm14, %v3786_v25, %v13053_v29  ;;  %vm21286_vm14 = vcmask 1041409  }
 0x25a   : > { %v17423_v12 = vpop.permute.xlu1 %13065  ;;  %v17427_v2 = vpop.permute.xlu0 %13080  ;;  %v3802_v10 = vsel %vm3796_vm15, %v3793_v33, %v13058_v1 }
 0x25b   : > { %v13068_v9 = vunpack.i.h.bf16 %v17423_v12  ;;  %v13067_v4 = vunpack.i.l.bf16 %v17423_v12  ;;  %v13083_v43 = vunpack.i.h.bf16 %v17427_v2  ;;  %v13082_v28 = vunpack.i.l.bf16 %v17427_v2 }
 0x25c   : > { %v3811_v55 = vsel %vm3805_vm4, %v3802_v10, %v13073_v39  ;;  %v3810_v12 = vsel %vm3805_vm4, %v3801_v47, %v13072_v63 }
 0x25d   : > { %v3803_v48 = vsel %vm3796_vm15, %v3794_v60, %v13067_v4  ;;  %v3804_v2 = vsel %vm3796_vm15, %v3795_v51, %v13068_v9  ;;  %v3819_v22 = vsel %vm3814_vm5, %v3810_v12, %v13082_v28  ;;  %v3820_v34 = vsel %vm3814_vm5, %v3811_v55, %v13083_v43  ;;  %v21274_v55 = vld [vmem:[#allocation151_spill] sm:$0xff] }
 0x25e   : > { %v17445_v14 = vpop.permute.xlu1 %13075  ;;  %v17451_v3 = vpop.permute.xlu0 %13090  ;;  %vm21287_vm15 = vcmask 1042434  }
 0x25f   : > { %v13077_v5 = vunpack.i.l.bf16 %v17445_v14  ;;  %v13093_v44 = vunpack.i.h.bf16 %v17451_v3  ;;  %v13092_v49 = vunpack.i.l.bf16 %v17451_v3  ;;  %v13078_v58 = vunpack.i.h.bf16 %v17445_v14 }
 0x261   : > { %v3812_v23 = vsel %vm3805_vm4, %v3803_v48, %v13077_v5  ;;  %v3828_v57 = vsel %vm3823_vm6, %v3819_v22, %v13092_v49  ;;  %v3829_v19 = vsel %vm3823_vm6, %v3820_v34, %v13093_v44  ;;  %v3813_v17 = vsel %vm3805_vm4, %v3804_v2, %v13078_v58  ;;  %v21272_v49 = vld [vmem:[#allocation107_spill] sm:$0xff] }
 0x262   : > { %v17465_v26 = vpop.permute.xlu1 %13085  ;;  %v13101_v13 = vpop.permute.xlu0 %13100  ;;  %4339 = vrot.lane.b32.xlu0 %v21272_v49, %s14011_s1  ;;  %v17548_v48 = vld [vmem:[#allocation2] ss:$0 sm:$0xff] }
 0x263   : > { %v13103_v27 = vunpack.i.h.bf16 %v13101_v13  ;;  %v13102_v30 = vunpack.i.l.bf16 %v13101_v13  ;;  %v13088_v59 = vunpack.i.h.bf16 %v17465_v26  ;;  %v13087_v11 = vunpack.i.l.bf16 %v17465_v26 }
 0x265   : > { %v3837_v32 = vsel %vm3832_vm7, %v3828_v57, %v13102_v30  ;;  %v3838_v45 = vsel %vm3832_vm7, %v3829_v19, %v13103_v27  ;;  %v3821_v29 = vsel %vm3814_vm5, %v3812_v23, %v13087_v11  ;;  %v21276_v27 = vld [vmem:[#allocation72_spill] sm:$0xff]  ;;  %v21277_v30 = vld [vmem:[#allocation70_spill] sm:$0xff] }
 0x266   : > { %v17483_v38 = vpop.permute.xlu1 %13095  ;;  %v13111_v37 = vpop.permute.xlu0 %13110 }
 0x267   : > { %v13113_v41 = vunpack.i.h.bf16 %v13111_v37  ;;  %v13112_v20 = vunpack.i.l.bf16 %v13111_v37  ;;  %v13098_v13 = vunpack.i.h.bf16 %v17483_v38  ;;  %v13097_v42 = vunpack.i.l.bf16 %v17483_v38 }
 0x268   : > { %v3822_v38 = vsel %vm3814_vm5, %v3813_v17, %v13088_v59 }
 0x269   : > { %v3846_v50 = vsel %vm3841_vm2, %v3837_v32, %v13112_v20  ;;  %v3847_v14 = vsel %vm3841_vm2, %v3838_v45, %v13113_v41  ;;  %v3830_v39 = vsel %vm3823_vm6, %v3821_v29, %v13097_v42  ;;  %v3831_v63 = vsel %vm3823_vm6, %v3822_v38, %v13098_v13  ;;  %vm21290_vm6 = vmmov %vm21286_vm14 }
 0x26a   : > { %v13106_v35 = vpop.permute.xlu1 %13105  ;;  %v13121_v6 = vpop.permute.xlu0 %13120 }
 0x26b   : > { %v13123_v24 = vunpack.i.h.bf16 %v13121_v6  ;;  %v13122_v3 = vunpack.i.l.bf16 %v13121_v6  ;;  %v13108_v26 = vunpack.i.h.bf16 %v13106_v35  ;;  %v13107_v56 = vunpack.i.l.bf16 %v13106_v35  ;;  %v21273_v35 = vld [vmem:[#allocation152_spill] sm:$0xff] }
 0x26d   : > { %v3855_v15 = vsel %vm3850_vm1, %v3846_v50, %v13122_v3  ;;  %v3856_v31 = vsel %vm3850_vm1, %v3847_v14, %v13123_v24  ;;  %v3839_v37 = vsel %vm3832_vm7, %v3830_v39, %v13107_v56  ;;  %v3840_v25 = vsel %vm3832_vm7, %v3831_v63, %v13108_v26  ;;  %vm21291_vm7 = vmmov %vm21287_vm15 }
 0x26e   : > { %v13116_v61 = vpop.permute.xlu1 %13115  ;;  %v13131_v54 = vpop.permute.xlu0 %13130 }
 0x26f   : > { %v13133_v21 = vunpack.i.h.bf16 %v13131_v54  ;;  %v13132_v36 = vunpack.i.l.bf16 %v13131_v54  ;;  %v13118_v52 = vunpack.i.h.bf16 %v13116_v61  ;;  %v13117_v16 = vunpack.i.l.bf16 %v13116_v61 }
 0x271   : > { %v3864_v46 = vsel %vm3859_vm0, %v3855_v15, %v13132_v36  ;;  %v3865_v1 = vsel %vm3859_vm0, %v3856_v31, %v13133_v21  ;;  %v3848_v9 = vsel %vm3841_vm2, %v3839_v37, %v13117_v16  ;;  %v3849_v4 = vsel %vm3841_vm2, %v3840_v25, %v13118_v52 }
 0x272   : > { %v13126_v0 = vpop.permute.xlu1 %13125  ;;  %v3870_v40 = vpack.c.bf16 %v3865_v1, %v3864_v46  ;;  %vm21275_vm2 = vcmask 1043459  }
 0x273   : > { %v13128_v33 = vunpack.i.h.bf16 %v13126_v0  ;;  %v13127_v53 = vunpack.i.l.bf16 %v13126_v0  ;;  %v4363_v12 = vsel %vm21275_vm2, %v21274_v55, %v21273_v35 }
 0x274   : > { %12566 = vmatprep.mubr.msk.bf16.mxu1 %vm3887_vm3, %v3870_v40  ;;  %4373 = vrot.lane.b32.xlu0 %v4363_v12, %s14012_s21 }
 0x275   : > { %v3857_v43 = vsel %vm3850_vm1, %v3848_v9, %v13127_v53  ;;  %v3858_v28 = vsel %vm3850_vm1, %v3849_v4, %v13128_v33  ;;  %vm21278_vm1 = vmmov %vm21275_vm2 }
 0x276   : > { %v13136_v47 = vpop.permute.xlu1 %13135  ;;  %v4397_v6 = vsel %vm21278_vm1, %v21277_v30, %v21276_v27  ;;  %vm21289_vm5 = vmmov %vm21278_vm1 }
 0x277   : > { %v13138_v10 = vunpack.i.h.bf16 %v13136_v47  ;;  %v13137_v60 = vunpack.i.l.bf16 %v13136_v47  ;;  %vm21292_vm2 = vmmov %vm21278_vm1 }
 0x278   : > { %4407 = vrot.lane.b32.xlu0 %v4397_v6, %s14013_s23  ;;  %vm21293_vm1 = vmmov %vm21290_vm6 }
 0x279   : > { %v3866_v51 = vsel %vm3859_vm0, %v3857_v43, %v13137_v60  ;;  %v3867_v5 = vsel %vm3859_vm0, %v3858_v28, %v13138_v10  ;;  %vm21279_vm0 = vcmask 1040384  }
 0x27a   : > { %v3871_v44 = vpack.c.bf16 %v3867_v5, %v3866_v51  ;;  %vm21281_vm9 = vmmov %vm21279_vm0 }
 0x27b   : > { %vm21282_vm10 = vmmov %vm21279_vm0 }
 0x27c   : > { %12567 = vmatmul.mubr.msk.bf16.gmra.mrb[4].mxu1 %vm3887_vm3, %v3871_v44  ;;  %vm21280_vm3 = vmmov %vm21279_vm0 }
 0x27d   : > { %vm21283_vm11 = vmmov %vm21279_vm0 }
 0x27e   : > { %vm21284_vm12 = vmmov %vm21279_vm0 }
 0x27f   : > { %vm21285_vm13 = vmmov %vm21279_vm0 }
 0x280   : > { %vm21288_vm4 = vmmov %vm21279_vm0 }
 0x32b   : > { %v12564_v2 = vpop.f32.mrb[0].mxu1 }
 0x32c   : > { %v3943_v41 = vadd.f32 %v12564_v2, %v17548_v48  ;;  %v3934_v20 = vpop.f32.mrb[1].mxu1 }
 0x32d   : > { %v3935_v22 = vadd.f32 %v17548_v48, %v3934_v20  ;;  %v12565_v34 = vpop.f32.mrb[2].mxu1 }
 0x32e   : > { %v3967_v24 = vmax.f32 %v3943_v41, 0.0  ;;  %v3946_v3 = vadd.f32 %v12565_v34, %v17548_v48  ;;  %v3937_v58 = vpop.f32.mrb[3].mxu1 }
 0x32f   : > { %v3965_v23 = vmax.f32 %v3935_v22, 0.0  ;;  %v3938_v61 = vadd.f32 %v17548_v48, %v3937_v58 }
 0x330   : > { %v3983_v57 = vrot.slane %v3967_v24, 7  ;;  %v3968_v19 = vmax.f32 %v3946_v3, 0.0 }
 0x331   : > { %v3981_v59 = vrot.slane %v3965_v23, 7  ;;  %v3966_v42 = vmax.f32 %v3938_v61, 0.0 }
 0x332   : > { %v3999_v11 = vsel %vm21279_vm0, 0.0, %v3983_v57  ;;  %v3984_v32 = vrot.slane %v3968_v19, 7  ;;  %v4007_v45 = vsel %vm21280_vm3, %v3983_v57, 0.0  ;;  %vm21294_vm0 = vmmov %vm21293_vm1 }
 0x333   : > { %v4112_v54 = vcombine.high %v3999_v11, %v3999_v11  ;;  %v17557_v50 = vrot.slane %v3999_v11, %v14360_v7  ;;  %v3997_v14 = vsel %vm21281_vm9, 0.0, %v3981_v59  ;;  %v17568_v26 = vrot.slane %v4007_v45, %v14360_v7  ;;  %vm21295_vm3 = vmmov %vm21291_vm7 }
 0x334   : > { %v4095_v21 = vcombine.high %v3997_v14, %v3997_v14  ;;  %v17561_v36 = vrot.slane %v3997_v14, %v14360_v7  ;;  %v4000_v13 = vsel %vm21282_vm10, 0.0, %v3984_v32  ;;  %v4005_v0 = vsel %vm21283_vm11, %v3981_v59, 0.0  ;;  %vm21296_vm9 = vmmov %vm21294_vm0 }
 0x335   : > { %v4126_v15 = vrot.slane %v4112_v54, %v14360_v7  ;;  %v4127_v31 = vcombine.high %v17557_v50, %v17557_v50  ;;  %v4438_v56 = vrot.slane %v17557_v50, %v14363_v8  ;;  %v4518_v46 = vrot.slane %v17557_v50, %v14386_v18  ;;  %vm21297_vm10 = vmmov %vm21292_vm2 }
 0x336   : > { %v4109_v1 = vrot.slane %v4095_v21, %v14360_v7  ;;  %v4033_v17 = vcombine.high %v4000_v13, %v4000_v13  ;;  %v17577_v52 = vrot.slane %v4000_v13, %v14360_v7  ;;  %v4110_v16 = vcombine.high %v17561_v36, %v17561_v36  ;;  %vm21298_vm11 = vmmov %vm21295_vm3 }
 0x337   : > { %v3982_v40 = vrot.slane %v3966_v42, 7  ;;  %v4128_v29 = vcombine.high %v4126_v15, %v4126_v15  ;;  %v4522_v38 = vrot.slane %v4127_v31, %v14386_v18  ;;  %v17583_v33 = vrot.slane %v4005_v0, %v14360_v7 }
 0x338   : > { %v4422_v53 = vrot.slane %v17561_v36, %v14363_v8  ;;  %v4502_v39 = vrot.slane %v17561_v36, %v14386_v18  ;;  %v4008_v63 = vsel %vm21284_vm12, %v3984_v32, 0.0  ;;  %v17591_v37 = vrot.slane %v4033_v17, %v14360_v7  ;;  %vm21299_vm12 = vmmov %vm21292_vm2 }
 0x339   : > { %v3998_v25 = vsel %vm21285_vm13, 0.0, %v3982_v40  ;;  %v4526_v47 = vrot.slane %v4126_v15, %v14386_v18  ;;  %v4530_v9 = vrot.slane %v4128_v29, %v14386_v18  ;;  %v17598_v4 = vcombine.high %v17577_v52, %v17577_v52  ;;  %vm21300_vm13 = vmmov %vm21295_vm3 }
 0x33a   : > { %v4016_v10 = vcombine.high %v3998_v25, %v3998_v25  ;;  %v17601_v60 = vrot.slane %v3998_v25, %v14360_v7  ;;  %v4566_v43 = vsel %vm21286_vm14, %v4522_v38, %v4518_v46  ;;  %v4111_v51 = vcombine.high %v4109_v1, %v4109_v1  ;;  %vm21301_vm14 = vmmov %vm21294_vm0 }
 0x33b   : > { %v4567_v28 = vsel %vm21287_vm15, %v4526_v47, %v4566_v43  ;;  %v4506_v5 = vrot.slane %v4110_v16, %v14386_v18  ;;  %v4510_v44 = vrot.slane %v4109_v1, %v14386_v18  ;;  %v17608_v49 = vrot.slane %v4008_v63, %v14360_v7  ;;  %vm21302_vm15 = vmmov %vm21295_vm3 }
 0x33c   : > { %v4301_v35 = vrot.slane %v17577_v52, %v14386_v18  ;;  %v4006_v55 = vsel %vm21288_vm4, %v3982_v40, 0.0  ;;  %v4030_v12 = vrot.slane %v4016_v10, %v14360_v7  ;;  %v4568_v27 = vsel %vm21289_vm5, %v4530_v9, %v4567_v28  ;;  %vm21303_vm4 = vmmov %vm21294_vm0 }
 0x33d   : > { %v4514_v30 = vrot.slane %v4111_v51, %v14386_v18  ;;  %v4563_v6 = vsel %vm21290_vm6, %v4506_v5, %v4502_v39  ;;  %v17618_v2 = vrot.slane %v4127_v31, %v14363_v8  ;;  %v4031_v41 = vcombine.high %v17601_v60, %v17601_v60  ;;  %4577 = vrot.lane.b32.xlu1 %v4568_v27, %s14011_s1  ;;  %vm21304_vm5 = vmmov %vm21292_vm2 }
 0x33e   : > { %v4564_v20 = vsel %vm21291_vm7, %v4510_v44, %v4563_v6  ;;  %v17625_v22 = vrot.slane %v4126_v15, %v14363_v8  ;;  %v17628_v34 = vrot.slane %v4128_v29, %v14363_v8  ;;  %v4049_v3 = vcombine.high %v17591_v37, %v17591_v37  ;;  %vm21305_vm6 = vmmov %vm21294_vm0 }
 0x33f   : > { %v4565_v24 = vsel %vm21292_vm2, %v4514_v30, %v4564_v20  ;;  %v17635_v58 = vrot.slane %v17598_v4, %v14386_v18  ;;  %v17639_v23 = vrot.slane %v17591_v37, %v14386_v18  ;;  %v4594_v57 = vrot.slane %v17568_v26, %v14363_v8  ;;  %vm21306_vm7 = vmmov %vm21292_vm2 }
 0x340   : > { %4575 = vrot.lane.b32.xlu0 %v4565_v24, %s14011_s1  ;;  %v4606_v19 = vsel %vm21293_vm1, %v17625_v22, %v17618_v2  ;;  %v4646_v61 = vsel %vm21294_vm0, %v4526_v47, %v4522_v38  ;;  %v17649_v59 = vrot.slane %v4110_v16, %v14363_v8  ;;  %v17652_v11 = vrot.slane %v4006_v55, %v14360_v7  ;;  %vm21307_vm2 = vmmov %vm21295_vm3  ;;  %v13260_v55 = vld [vmem:[%s21309_s4 + $0x40] sm:$0xff]  }
 0x341   : > { %v4607_v32 = vsel %vm21295_vm3, %v17628_v34, %v4606_v19  ;;  %v17657_v45 = vrot.slane %v4049_v3, %v14386_v18  ;;  %v4333_v54 = vsel %vm21296_vm9, %v17635_v58, %v4301_v35  ;;  %v4285_v14 = vrot.slane %v17601_v60, %v14386_v18  ;;  %vm21308_vm1 = vmmov %vm21307_vm2  ;;  %12297 = vmatprep.subr.bf16.mxu1 %v13260_v55 }
 0x342   : > { %v4608_v21 = vsel %vm21297_vm10, %v4594_v57, %v4607_v32  ;;  %v4334_v13 = vsel %vm21298_vm11, %v17639_v23, %v4333_v54  ;;  %v4430_v42 = vrot.slane %v4109_v1, %v14363_v8  ;;  %v4647_v31 = vsel %vm21300_vm13, %v4530_v9, %v4646_v61  ;;  %vm21310_vm3 = vmmov %vm21308_vm1 }
 0x343   : > { %4617 = vrot.lane.b32.xlu1 %v4608_v21, %s14012_s21  ;;  %v4335_v15 = vsel %vm21299_vm12, %v17657_v45, %v4334_v13  ;;  %v17672_v0 = vrot.slane %v4111_v51, %v14363_v8  ;;  %v4032_v46 = vcombine.high %v4030_v12, %v4030_v12  ;;  %v4634_v17 = vrot.slane %v17568_v26, %v14386_v18  ;;  %vm21311_vm9 = vmmov %vm21304_vm5 }
 0x344   : > { %4343 = vrot.lane.b32.xlu0 %v4335_v15, %s14011_s1  ;;  %v4603_v16 = vsel %vm21301_vm14, %v4430_v42, %v17649_v59  ;;  %v4289_v1 = vrot.slane %v4031_v41, %v14386_v18  ;;  %v4293_v40 = vrot.slane %v4030_v12, %v14386_v18  ;;  %v4590_v29 = vrot.slane %v17583_v33, %v14363_v8  ;;  %vm21312_vm10 = vmmov %vm21294_vm0 }
 0x345   : > { %v4604_v38 = vsel %vm21302_vm15, %v17672_v0, %v4603_v16  ;;  %v4643_v39 = vsel %vm21303_vm4, %v4510_v44, %v4506_v5  ;;  %v4228_v63 = vrot.slane %v4031_v41, %v14363_v8  ;;  %v4648_v25 = vsel %vm21304_vm5, %v4634_v17, %v4647_v31  ;;  %vm21313_vm11 = vmmov %vm21294_vm0 }
 0x346   : > { %v4297_v26 = vrot.slane %v4032_v46, %v14386_v18  ;;  %v4330_v47 = vsel %vm21305_vm6, %v4289_v1, %v4285_v14  ;;  %v4232_v9 = vrot.slane %v4030_v12, %v14363_v8  ;;  %v4240_v10 = vrot.slane %v17577_v52, %v14363_v8  ;;  %vm21314_vm12 = vmmov %vm21304_vm5 }
 0x347   : > { %4657 = vrot.lane.b32.xlu1 %v4648_v25, %s14013_s23  ;;  %v4605_v43 = vsel %vm21306_vm7, %v4590_v29, %v4604_v38  ;;  %v4331_v28 = vsel %vm21307_vm2, %v4293_v40, %v4330_v47  ;;  %v4236_v51 = vrot.slane %v4032_v46, %v14363_v8  ;;  %v4644_v5 = vsel %vm21308_vm1, %v4514_v30, %v4643_v39  ;;  %vm21315_vm13 = vmmov %vm21308_vm1 }
 0x348   : > { %4615 = vrot.lane.b32.xlu0 %v4605_v43, %s14012_s21  ;;  %v4364_v44 = vsel %vm21294_vm0, %v4232_v9, %v4228_v63  ;;  %v4244_v35 = vrot.slane %v17598_v4, %v14363_v8  ;;  %v4248_v52 = vrot.slane %v17591_v37, %v14363_v8  ;;  %v4224_v12 = vrot.slane %v17601_v60, %v14363_v8  ;;  %v13261_v4 = vld [vmem:[%s21309_s4] sm:$0xff]   ;;  %vm21316_vm14 = vmmov %vm21304_vm5 }
 0x349   : > { %v4630_v27 = vrot.slane %v17583_v33, %v14386_v18  ;;  %v4365_v30 = vsel %vm21310_vm3, %v4236_v51, %v4364_v44  ;;  %v4252_v6 = vrot.slane %v4049_v3, %v14363_v8  ;;  %v4332_v37 = vsel %vm21311_vm9, %v4297_v26, %v4331_v28  ;;  %v13262_v33 = vld [vmem:[%s21309_s4 + $0x48] sm:$0xff]   ;;  %vm21317_vm15 = vmmov %vm21308_vm1  ;;  %12298 = vmatpush3.bf16.msra.mxu1 %v13261_v4 }
 0x34a   : > { %v4354_v41 = vrot.slane %v17652_v11, %v14363_v8  ;;  %v4367_v20 = vsel %vm21312_vm10, %v4248_v52, %v4244_v35  ;;  %v4398_v60 = vsel %vm21313_vm11, %v4293_v40, %v4289_v1  ;;  %v4358_v3 = vrot.slane %v17608_v49, %v14363_v8  ;;  %vm21318_vm4 = vmmov %vm21294_vm0  ;;  %12299 = vmatprep.subr.bf16.mxu1 %v13262_v33 }
 0x34b   : > { %4341 = vrot.lane.b32.xlu1 %v4332_v37, %s14011_s1  ;;  %v4645_v24 = vsel %vm21314_vm12, %v4630_v27, %v4644_v5  ;;  %v4368_v57 = vsel %vm21315_vm13, %v4252_v6, %v4367_v20  ;;  %v4388_v19 = vrot.slane %v17652_v11, %v14386_v18  ;;  %v4399_v32 = vsel %vm21317_vm15, %v4297_v26, %v4398_v60  ;;  %vm21319_vm5 = vmmov %vm21294_vm0  ;;  %v13264_v11 = vld [vmem:[%s21309_s4 + $0xc0] sm:$0xff]   ;;  %v13267_v27 = vld [vmem:[%s21309_s4 + $0x10] sm:$0xff]  }
 0x34c   : > { %4655 = vrot.lane.b32.xlu0 %v4645_v24, %s14013_s23  ;;  %v4366_v61 = vsel %vm21316_vm14, %v4354_v41, %v4365_v30  ;;  %v4401_v54 = vsel %vm21318_vm4, %v17639_v23, %v17635_v58  ;;  %v4486_v14 = vsel %vm21319_vm5, %v17618_v2, %v4438_v56  ;;  %vm21320_vm6 = vmmov %vm21306_vm7  ;;  %v13263_v56 = vld [vmem:[%s21309_s4 + $0x8] sm:$0xff]   ;;  %v13265_v2 = vld [vmem:[%s21309_s4 + $0x80] sm:$0xff]   ;;  %12319 = vmatprep.subr.bf16.mxu0 %v13264_v11 }
 0x34d   : > { %v4369_v21 = vsel %vm21320_vm6, %v4358_v3, %v4368_v57  ;;  %vm21321_vm7 = vmmov %vm21308_vm1  ;;  %v4392_v39 = vrot.slane %v17608_v49, %v14386_v18  ;;  %12300 = vmatpush3.bf16.msra.mxu1 %v13263_v56  ;;  %12320 = vmatpush3.bf16.msra.mxu0 %v13265_v2  ;;  %v13268_v30 = vld [vmem:[%s21309_s4 + $0xc8] sm:$0xff]   ;;  %v13272_v11 = vld [vmem:[%s21309_s4 + $0xd0] sm:$0xff]  }
 0x34e   : > { %v4487_v13 = vsel %vm21321_vm7, %v17625_v22, %v4486_v14  ;;  %vm21322_vm2 = vmmov %vm21294_vm0  ;;  %v13269_v37 = vld [vmem:[%s21309_s4 + $0x88] sm:$0xff]   ;;  %12321 = vmatprep.subr.bf16.mxu0 %v13268_v30  ;;  %v13271_v14 = vld [vmem:[%s21309_s4 + $0x18] sm:$0xff]  }
 0x34f   : > { %v4483_v58 = vsel %vm21322_vm2, %v17649_v59, %v4422_v53  ;;  %vm21323_vm1 = vmmov %vm21294_vm0  ;;  %v12568_v23 = vpop.f32.mrb[4].mxu1  ;;  %4375 = vrot.lane.b32.xlu1 %v4366_v61, %s14012_s21  ;;  %v13273_v56 = vld [vmem:[%s21309_s4 + $0x90] sm:$0xff]  }
 0x350   : > { %v4272_v50 = vsel %vm21323_vm1, %v4244_v35, %v4240_v10  ;;  %vm21324_vm0 = vmmov %vm21320_vm6  ;;  %v4484_v36 = vsel %vm21310_vm3, %v4430_v42, %v4483_v58  ;;  %v3959_v15 = vadd.f32 %v12568_v23, %v17548_v48  ;;  %v3950_v31 = vpop.f32.mrb[5].mxu1  ;;  %4377 = vrot.lane.b32.xlu0 %v4369_v21, %s14012_s21  ;;  %vm21334_vm6 = vcmask 1040384  }
 0x351   : > { %v17762_v22 = vsel %vm21324_vm0, %v17628_v34, %v4487_v13  ;;  %vm21325_vm9 = vmmov %vm21310_vm3  ;;  %v3951_v42 = vadd.f32 %v17548_v48, %v3950_v31  ;;  %v12569_v16 = vpop.f32.mrb[6].mxu1  ;;  %12322 = vmatpush3.bf16.msra.mxu0 %v13269_v37 }
 0x352   : > { %v4273_v53 = vsel %vm21325_vm9, %v4248_v52, %v4272_v50  ;;  %vm21326_vm10 = vmmov %vm21323_vm1  ;;  %v3971_v29 = vmax.f32 %v3959_v15, 0.0  ;;  %v3953_v38 = vpop.f32.mrb[7].mxu1  ;;  %12323 = vmatprep.subr.bf16.mxu0 %v13272_v11 }
 0x353   : > { %v4269_v59 = vsel %vm21326_vm10, %v4228_v63, %v4224_v12  ;;  %vm21327_vm11 = vmmov %vm21324_vm0  ;;  %v3969_v63 = vmax.f32 %v3951_v42, 0.0  ;;  %v13266_v12 = vld [vmem:[%s21309_s4 + $0x50] sm:$0xff]  }
 0x354   : > { %v17771_v46 = vsel %vm21327_vm11, %v17672_v0, %v4484_v36  ;;  %vm21328_vm12 = vmmov %vm21324_vm0  ;;  %v3962_v0 = vadd.f32 %v12569_v16, %v17548_v48  ;;  %v3987_v26 = vrot.slane %v3971_v29, 7  ;;  %12301 = vmatprep.subr.bf16.mxu1 %v13266_v12  ;;  %vm21342_vm11 = vcmask 1041409  }
 0x355   : > { %v17774_v17 = vsel %vm21328_vm12, %v4252_v6, %v4273_v53  ;;  %vm21329_vm13 = vmmov %vm21310_vm3  ;;  %v3985_v10 = vrot.slane %v3969_v63, 7  ;;  %12302 = vmatpush3.bf16.msra.mxu1 %v13267_v27  ;;  %12324 = vmatpush3.bf16.msra.mxu0 %v13273_v56 }
 0x356   : > { %v4270_v34 = vsel %vm21329_vm13, %v4232_v9, %v4269_v59  ;;  %vm21330_vm14 = vmmov %vm21310_vm3  ;;  %v3972_v47 = vmax.f32 %v3962_v0, 0.0  ;;  %v4003_v43 = vsel %vm21334_vm6, 0.0, %v3987_v26 }
 0x357   : > { %v4402_v1 = vsel %vm21330_vm14, %v17657_v45, %v4401_v54  ;;  %vm21331_vm15 = vmmov %vm21324_vm0  ;;  %v3954_v45 = vadd.f32 %v17548_v48, %v3953_v38  ;;  %v17795_v5 = vrot.slane %v4003_v43, %v14360_v7  ;;  %v13270_v54 = vld [vmem:[%s21309_s4 + $0x58] sm:$0xff]  }
 0x358   : > { %v17782_v40 = vsel %vm21331_vm15, %v4236_v51, %v4270_v34  ;;  %vm21332_vm4 = vmmov %vm21324_vm0  ;;  %v3988_v28 = vrot.slane %v3972_v47, 7  ;;  %v4146_v51 = vcombine.high %v4003_v43, %v4003_v43  ;;  %12303 = vmatprep.subr.bf16.mxu1 %v13270_v54 }
 0x359   : > { %v4400_v25 = vsel %vm21332_vm4, %v4388_v19, %v4399_v32  ;;  %vm21333_vm5 = vmmov %vm21324_vm0  ;;  %v3970_v55 = vmax.f32 %v3954_v45, 0.0  ;;  %v4161_v4 = vcombine.high %v17795_v5, %v17795_v5  ;;  %v4550_v20 = vrot.slane %v17795_v5, %v14386_v18  ;;  %12304 = vmatpush3.bf16.msra.mxu1 %v13271_v14 }
 0x35a   : > { %4409 = vrot.lane.b32.xlu1 %v4400_v25, %s14013_s23  ;;  %v4403_v9 = vsel %vm21333_vm5, %v4392_v39, %v4402_v1  ;;  %vm21335_vm7 = vmmov %vm21334_vm6  ;;  %v4160_v6 = vrot.slane %v4146_v51, %v14360_v7  ;;  %v13274_v25 = vld [vmem:[%s21309_s4 + $0x60] sm:$0xff]  }
 0x35b   : > { %4411 = vrot.lane.b32.xlu0 %v4403_v9, %s14013_s23  ;;  %v4011_v49 = vsel %vm21335_vm7, %v3987_v26, 0.0  ;;  %vm21336_vm2 = vmmov %vm21334_vm6  ;;  %v3986_v19 = vrot.slane %v3970_v55, 7  ;;  %v4554_v32 = vrot.slane %v4161_v4, %v14386_v18  ;;  %v17883_v9 = vrot.slane %v4161_v4, %v14363_v8  ;;  %12305 = vmatprep.subr.bf16.mxu1 %v13274_v25 }
 0x35c   : > { %v4001_v44 = vsel %vm21336_vm2, 0.0, %v3985_v10  ;;  %vm21337_vm1 = vmmov %vm21336_vm2  ;;  %v17818_v41 = vrot.slane %v4011_v49, %v14360_v7  ;;  %v4162_v61 = vcombine.high %v4160_v6, %v4160_v6  ;;  %v4558_v36 = vrot.slane %v4160_v6, %v14386_v18 }
 0x35d   : > { %v4129_v35 = vcombine.high %v4001_v44, %v4001_v44  ;;  %v17799_v48 = vrot.slane %v4001_v44, %v14360_v7  ;;  %v4004_v52 = vsel %vm21337_vm1, 0.0, %v3988_v28  ;;  %vm21338_vm0 = vmmov %vm21337_vm1  ;;  %v4572_v34 = vsel %vm21342_vm11, %v4554_v32, %v4550_v20  ;;  %v13276_v44 = vld [vmem:[%s21309_s4 + $0xd8] sm:$0xff]  }
 0x35e   : > { %v4009_v60 = vsel %vm21338_vm0, %v3985_v10, 0.0  ;;  %v4196_v24 = vcombine.high %v4004_v52, %v4004_v52  ;;  %v17825_v3 = vrot.slane %v4004_v52, %v14360_v7  ;;  %vm21339_vm3 = vmmov %vm21338_vm0  ;;  %v4562_v53 = vrot.slane %v4162_v61, %v14386_v18  ;;  %v13275_v10 = vld [vmem:[%s21309_s4 + $0x20] sm:$0xff]   ;;  %12325 = vmatprep.subr.bf16.mxu0 %v13276_v44 }
 0x35f   : > { %v4143_v33 = vrot.slane %v4129_v35, %v14360_v7  ;;  %v4144_v57 = vcombine.high %v17799_v48, %v17799_v48  ;;  %v17840_v21 = vrot.slane %v4009_v60, %v14360_v7  ;;  %v4534_v13 = vrot.slane %v17799_v48, %v14386_v18  ;;  %vm21340_vm9 = vmmov %vm21338_vm0  ;;  %12306 = vmatpush3.bf16.msra.mxu1 %v13275_v10 }
 0x360   : > { %v17845_v58 = vsel %vm21339_vm3, %v3988_v28, 0.0  ;;  %v17848_v50 = vrot.slane %v4196_v24, %v14360_v7  ;;  %v4002_v2 = vsel %vm21340_vm9, 0.0, %v3986_v19  ;;  %vm21341_vm10 = vmmov %vm21338_vm0  ;;  %v17859_v59 = vcombine.high %v17825_v3, %v17825_v3  ;;  %v13277_v24 = vld [vmem:[%s21309_s4 + $0x98] sm:$0xff]  }
 0x361   : > { %v4010_v23 = vsel %vm21341_vm10, %v3986_v19, 0.0  ;;  %v4050_v15 = vcombine.high %v4002_v2, %v4002_v2  ;;  %v17862_v31 = vrot.slane %v4002_v2, %v14360_v7  ;;  %vm21343_vm12 = vmmov %vm21329_vm13  ;;  %v4145_v16 = vcombine.high %v4143_v33, %v4143_v33  ;;  %12326 = vmatpush3.bf16.msra.mxu0 %v13277_v24 }
 0x362   : > { %v4573_v42 = vsel %vm21343_vm12, %v4558_v36, %v4572_v34  ;;  %v4538_v1 = vrot.slane %v4144_v57, %v14386_v18  ;;  %v4542_v29 = vrot.slane %v4143_v33, %v14386_v18  ;;  %v4690_v0 = vrot.slane %v17825_v3, %v14386_v18  ;;  %vm21344_vm13 = vmmov %vm21332_vm4 }
 0x363   : > { %v4064_v38 = vrot.slane %v4050_v15, %v14360_v7  ;;  %v4065_v39 = vcombine.high %v17862_v31, %v17862_v31  ;;  %v17874_v63 = vrot.slane %v4010_v23, %v14360_v7  ;;  %v4574_v26 = vsel %vm21344_vm13, %v4562_v53, %v4573_v42  ;;  %vm21345_vm14 = vmmov %vm21342_vm11  ;;  %v13279_v42 = vld [vmem:[%s21309_s4 + $0x28] sm:$0xff]  }
 0x364   : > { %v4546_v47 = vrot.slane %v4145_v16, %v14386_v18  ;;  %v4569_v45 = vsel %vm21345_vm14, %v4538_v1, %v4534_v13  ;;  %v4317_v43 = vrot.slane %v17862_v31, %v14386_v18  ;;  %4581 = vrot.lane.b32.xlu1 %v4574_v26, %s14011_s1  ;;  %vm21346_vm15 = vmmov %vm21343_vm12  ;;  %v17893_v49 = vrot.slane %v4160_v6, %v14363_v8  ;;  %v13280_v26 = vld [vmem:[%s21309_s4 + $0xe0] sm:$0xff]  }
 0x365   : > { %v4570_v28 = vsel %vm21346_vm15, %v4542_v29, %v4569_v45  ;;  %v17896_v51 = vrot.slane %v4162_v61, %v14363_v8  ;;  %v17903_v52 = vrot.slane %v4144_v57, %v14363_v8  ;;  %v17906_v55 = vrot.slane %v4143_v33, %v14363_v8  ;;  %vm21347_vm5 = vmmov %vm21342_vm11  ;;  %12327 = vmatprep.subr.bf16.mxu0 %v13280_v26 }
 0x366   : > { %v4571_v35 = vsel %vm21332_vm4, %v4546_v47, %v4570_v28  ;;  %v17909_v12 = vrot.slane %v4145_v16, %v14363_v8  ;;  %v4602_v27 = vrot.slane %v17818_v41, %v14363_v8  ;;  %v4612_v30 = vsel %vm21347_vm5, %v17893_v49, %v17883_v9  ;;  %vm21348_vm6 = vmmov %vm21347_vm5 }
 0x367   : > { %4579 = vrot.lane.b32.xlu0 %v4571_v35, %s14011_s1  ;;  %v4598_v6 = vrot.slane %v17840_v21, %v14363_v8  ;;  %v4652_v4 = vsel %vm21348_vm6, %v4558_v36, %v4554_v32  ;;  %vm21349_vm7 = vmmov %vm21343_vm12  ;;  %v4642_v60 = vrot.slane %v17818_v41, %v14386_v18  ;;  %v4638_v61 = vrot.slane %v17840_v21, %v14386_v18  ;;  %v13278_v41 = vld [vmem:[%s21309_s4 + $0x68] sm:$0xff]  }
 0x368   : > { %v4613_v37 = vsel %vm21349_vm7, %v17896_v51, %v4612_v30  ;;  %vm21350_vm2 = vmmov %vm21347_vm5  ;;  %v4066_v11 = vcombine.high %v4064_v38, %v4064_v38  ;;  %v4321_v13 = vrot.slane %v4065_v39, %v14386_v18  ;;  %v4325_v56 = vrot.slane %v4064_v38, %v14386_v18  ;;  %12307 = vmatprep.subr.bf16.mxu1 %v13278_v41  ;;  %v13286_v41 = vld [vmem:[%s21309_s4 + $0x78] sm:$0xff]  }
 0x369   : > { %v4609_v20 = vsel %vm21350_vm2, %v17906_v55, %v17903_v52  ;;  %vm21351_vm1 = vmmov %vm21349_vm7  ;;  %v4212_v2 = vcombine.high %v17848_v50, %v17848_v50  ;;  %v4694_v23 = vrot.slane %v17859_v59, %v14386_v18  ;;  %v4698_v15 = vrot.slane %v17848_v50, %v14386_v18  ;;  %12308 = vmatpush3.bf16.msra.mxu1 %v13279_v42  ;;  %v13291_v42 = vld [vmem:[%s21309_s4 + $0xb8] sm:$0xff]  }
 0x36a   : > { %v4653_v33 = vsel %vm21351_vm1, %v4562_v53, %v4652_v4  ;;  %vm21352_vm0 = vmmov %vm21332_vm4  ;;  %v4329_v36 = vrot.slane %v4066_v11, %v14386_v18  ;;  %v4260_v34 = vrot.slane %v4065_v39, %v14363_v8  ;;  %v4264_v25 = vrot.slane %v4064_v38, %v14363_v8 }
 0x36b   : > { %v4614_v57 = vsel %vm21352_vm0, %v4602_v27, %v4613_v37  ;;  %vm21353_vm3 = vmmov %vm21351_vm1  ;;  %v4268_v45 = vrot.slane %v4066_v11, %v14363_v8  ;;  %v4470_v10 = vrot.slane %v17795_v5, %v14363_v8  ;;  %v4220_v28 = vrot.slane %v17845_v58, %v14360_v7  ;;  %v13288_v11 = vld [vmem:[%s21309_s4 + $0xf0] sm:$0xff]  }
 0x36c   : > { %v4610_v19 = vsel %vm21353_vm3, %v17909_v12, %v4609_v20  ;;  %vm21354_vm9 = vmmov %vm21350_vm2  ;;  %4621 = vrot.lane.b32.xlu1 %v4614_v57, %s14012_s21  ;;  %v4670_v44 = vrot.slane %v17825_v3, %v14363_v8  ;;  %v4256_v35 = vrot.slane %v17862_v31, %v14363_v8  ;;  %v4362_v30 = vrot.slane %v17874_v63, %v14363_v8  ;;  %v13282_v31 = vld [vmem:[%s21309_s4 + $0x70] sm:$0xff]  }
 0x36d   : > { %v4649_v32 = vsel %vm21354_vm9, %v4542_v29, %v4538_v1  ;;  %vm21355_vm10 = vmmov %vm21352_vm0  ;;  %v4702_v1 = vrot.slane %v4212_v2, %v14386_v18  ;;  %v4674_v3 = vrot.slane %v17859_v59, %v14363_v8  ;;  %v4678_v37 = vrot.slane %v17848_v50, %v14363_v8  ;;  %v13283_v59 = vld [vmem:[%s21309_s4 + $0x30] sm:$0xff]   ;;  %v13284_v50 = vld [vmem:[%s21309_s4 + $0xe8] sm:$0xff]   ;;  %12309 = vmatprep.subr.bf16.mxu1 %v13282_v31 }
 0x36e   : > { %v4611_v54 = vsel %vm21355_vm10, %v4598_v6, %v4610_v19  ;;  %vm21356_vm11 = vmmov %vm21352_vm0  ;;  %v4682_v20 = vrot.slane %v4212_v2, %v14363_v8  ;;  %v4722_v19 = vrot.slane %v4220_v28, %v14386_v18  ;;  %12310 = vmatpush3.bf16.msra.mxu1 %v13283_v59 }
 0x36f   : > { %v4654_v14 = vsel %vm21356_vm11, %v4642_v60, %v4653_v33  ;;  %4619 = vrot.lane.b32.xlu0 %v4611_v54, %s14012_s21  ;;  %vm21357_vm12 = vmmov %vm21351_vm1  ;;  %12311 = vmatprep.subr.bf16.mxu1 %v13286_v41 }
 0x370   : > { %v4650_v21 = vsel %vm21357_vm12, %v4546_v47, %v4649_v32  ;;  %vm21358_vm13 = vmmov %vm21350_vm2  ;;  %4661 = vrot.lane.b32.xlu1 %v4654_v14, %s14013_s23 }
 0x371   : > { %v4336_v53 = vsel %vm21358_vm13, %v4321_v13, %v4317_v43  ;;  %vm21359_vm14 = vmmov %vm21351_vm1 }
 0x372   : > { %v4337_v16 = vsel %vm21359_vm14, %v4325_v56, %v4336_v53  ;;  %vm21360_vm15 = vmmov %vm21350_vm2 }
 0x373   : > { %v4703_v29 = vsel %vm21360_vm15, %v4694_v23, %v4690_v0  ;;  %vm21361_vm4 = vmmov %vm21352_vm0  ;;  %v4454_v0 = vrot.slane %v17799_v48, %v14363_v8  ;;  %v13281_v48 = vld [vmem:[%s21309_s4 + $0xa0] sm:$0xff]  }
 0x374   : > { %v4651_v39 = vsel %vm21361_vm4, %v4638_v61, %v4650_v21  ;;  %vm21362_vm5 = vmmov %vm21351_vm1  ;;  %12328 = vmatpush3.bf16.msra.mxu0 %v13281_v48 }
 0x375   : > { %v4704_v47 = vsel %vm21362_vm5, %v4698_v15, %v4703_v29  ;;  %4659 = vrot.lane.b32.xlu0 %v4651_v39, %s14013_s23  ;;  %vm21363_vm6 = vmmov %vm21350_vm2  ;;  %12329 = vmatprep.subr.bf16.mxu0 %v13284_v50 }
 0x376   : > { %v4370_v38 = vsel %vm21363_vm6, %v4264_v25, %v4260_v34  ;;  %vm21364_vm7 = vmmov %vm21350_vm2 }
 0x377   : > { %v4723_v43 = vsel %vm21364_vm7, %v4698_v15, %v4694_v23  ;;  %vm21365_vm2 = vmmov %vm21352_vm0  ;;  %v13290_v15 = vld [vmem:[%s21309_s4 + $0xf8] sm:$0xff]  }
 0x378   : > { %v4338_v5 = vsel %vm21365_vm2, %v4329_v36, %v4337_v16  ;;  %vm21366_vm1 = vmmov %vm21352_vm0 }
 0x379   : > { %v4705_v27 = vsel %vm21366_vm1, %v4702_v1, %v4704_v47  ;;  %vm21367_vm0 = vmmov %vm21353_vm3  ;;  %4345 = vrot.lane.b32.xlu1 %v4338_v5, %s14011_s1 }
 0x37a   : > { %v4371_v58 = vsel %vm21367_vm0, %v4268_v45, %v4370_v38  ;;  %vm21368_vm3 = vmmov %vm21367_vm0  ;;  %4706 = vrot.lane.b32.xlu0 %v4705_v27, %s14011_s1 }
 0x37b   : > { %v4724_v6 = vsel %vm21368_vm3, %v4702_v1, %v4723_v43  ;;  %vm21369_vm9 = vmmov %vm21363_vm6  ;;  %v4340_v1 = vpop.permute.xlu0 %4339 }
 0x37c   : > { %v4404_v4 = vsel %vm21369_vm9, %v4325_v56, %v4321_v13  ;;  %vm21370_vm10 = vmmov %vm21363_vm6  ;;  %v4725_v13 = vsel %vm21366_vm1, %v4722_v19, %v4724_v6  ;;  %v4396_v56 = vrot.slane %v17874_v63, %v14386_v18  ;;  %v4713_v2 = vsel %vm21369_vm9, %v4678_v37, %v4674_v3 }
 0x37d   : > { %v4492_v60 = vsel %vm21370_vm10, %v17883_v9, %v4470_v10  ;;  %vm21371_vm11 = vmmov %vm21363_vm6  ;;  %v4405_v21 = vsel %vm21367_vm0, %v4329_v36, %v4404_v4  ;;  %v13289_v36 = vld [vmem:[%s21309_s4 + $0xb0] sm:$0xff]  }
 0x37e   : > { %v4489_v33 = vsel %vm21371_vm11, %v17903_v52, %v4454_v0  ;;  %vm21372_vm12 = vmmov %vm21363_vm6  ;;  %v13285_v52 = vld [vmem:[%s21309_s4 + $0xa8] sm:$0xff]   ;;  %4726 = vrot.lane.b32.xlu0 %v4725_v13, %s14013_s23 }
 0x37f   : > { %v4275_v24 = vsel %vm21372_vm12, %v4260_v34, %v4256_v35  ;;  %vm21373_vm13 = vmmov %vm21363_vm6  ;;  %12330 = vmatpush3.bf16.msra.mxu0 %v13285_v52  ;;  %v4712_v34 = vrot.slane %v4220_v28, %v14363_v8  ;;  %v4374_v29 = vpop.permute.xlu0 %4373 }
 0x380   : > { %v4683_v57 = vsel %vm21373_vm13, %v4674_v3, %v4670_v44  ;;  %vm21374_vm14 = vmmov %vm21367_vm0  ;;  %12331 = vmatprep.subr.bf16.mxu0 %v13288_v11 }
 0x381   : > { %v4493_v61 = vsel %vm21374_vm14, %v17893_v49, %v4492_v60  ;;  %vm21375_vm15 = vmmov %vm21367_vm0  ;;  %vm4729_vm14 = vcmask 261120  }
 0x382   : > { %v4490_v32 = vsel %vm21375_vm15, %v17906_v55, %v4489_v33  ;;  %vm21376_vm4 = vmmov %vm21367_vm0  ;;  %vm4734_vm15 = vcmask 523264  }
 0x383   : > { %v4276_v9 = vsel %vm21376_vm4, %v4264_v25, %v4275_v24  ;;  %vm21377_vm5 = vmmov %vm21366_vm1  ;;  %12332 = vmatpush3.bf16.msra.mxu0 %v13289_v36  ;;  %v4408_v25 = vpop.permute.xlu0 %4407  ;;  %vm4739_vm4 = vcmask 785408  }
 0x384   : > { %v4372_v54 = vsel %vm21377_vm5, %v4362_v30, %v4371_v58  ;;  %vm21378_vm6 = vmmov %vm21366_vm1  ;;  %12333 = vmatprep.subr.bf16.mxu0 %v13290_v15  ;;  %vm5156_vm5 = vcmask 1044480  }
 0x385   : > { %v18030_v14 = vsel %vm21378_vm6, %v17896_v51, %v4493_v61  ;;  %vm21379_vm7 = vmmov %vm21366_vm1  ;;  %4379 = vrot.lane.b32.xlu1 %v4372_v54, %s14012_s21 }
 0x386   : > { %v18034_v49 = vsel %vm21379_vm7, %v17909_v12, %v4490_v32  ;;  %vm21380_vm2 = vmmov %vm21366_vm1  ;;  %v13287_v12 = vld [vmem:[%s21309_s4 + $0x38] sm:$0xff]  }
 0x387   : > { %v18037_v55 = vsel %vm21380_vm2, %v4268_v45, %v4276_v9  ;;  %vm21381_vm3 = vmmov %vm21367_vm0  ;;  %12312 = vmatpush3.bf16.msra.mxu1 %v13287_v12  ;;  %12334 = vmatpush3.bf16.msra.mxu0 %v13291_v42 }
 0x388   : > { %v4684_v51 = vsel %vm21381_vm3, %v4678_v37, %v4683_v57  ;;  %vm21382_vm10 = vmmov %vm21366_vm1  ;;  %v4730_v57 = vsel %vm4729_vm14, %v17194_v62, %v4340_v1 }
 0x389   : > { %v18054_v23 = vsel %vm21382_vm10, %v4682_v20, %v4684_v51  ;;  %vm21383_vm11 = vmmov %vm21366_vm1 }
 0x38a   : > { %v4406_v53 = vsel %vm21383_vm11, %v4396_v56, %v4405_v21  ;;  %vm21384_vm12 = vmmov %vm21367_vm0  ;;  %vm21391_vm0 = vcmask 1040384  }
 0x38b   : > { %4413 = vrot.lane.b32.xlu1 %v4406_v53, %s14013_s23  ;;  %v4714_v63 = vsel %vm21384_vm12, %v4682_v20, %v4713_v2  ;;  %vm21385_vm13 = vmmov %vm21366_vm1 }
 0x38c   : > { %v4715_v16 = vsel %vm21385_vm13, %v4712_v34, %v4714_v63  ;;  %vm21387_vm6 = vmmov %vm21369_vm9 }
 0x38d   : > { %vm21388_vm7 = vmmov %vm21387_vm6 }
 0x38e   : > { %vm21389_vm2 = vmmov %vm21387_vm6 }
 0x38f   : > { %4716 = vrot.lane.b32.xlu1 %v4715_v16, %s14012_s21  ;;  %vm21390_vm1 = vmmov %vm21389_vm2 }
 0x390   : > { %vm21392_vm3 = vmmov %vm21391_vm0 }
 0x391   : > { %vm21393_vm9 = vmmov %vm21391_vm0 }
 0x392   : > { %vm21394_vm10 = vmmov %vm21391_vm0 }
 0x393   : > { %vm21395_vm11 = vmmov %vm21390_vm1 }
 0x394   : > { %vm21396_vm12 = vmmov %vm21390_vm1 }
 0x395   : > { %vm21397_vm13 = vmmov %vm21390_vm1 }
 0x3af   : > { %v4578_v26 = vpop.permute.xlu1 %4577 }
 0x3b0   : > { %v4745_v38 = vsel %vm4729_vm14, %v17762_v22, %v4578_v26 }
 0x3b2   : > { %v4576_v39 = vpop.permute.xlu0 %4575 }
 0x3b3   : > { %v4744_v43 = vsel %vm4729_vm14, %v17771_v46, %v4576_v39 }
 0x3b5   : > { %v4618_v47 = vpop.permute.xlu1 %4617 }
 0x3b6   : > { %v4344_v45 = vpop.permute.xlu0 %4343  ;;  %v4749_v44 = vsel %vm4734_vm15, %v4745_v38, %v4618_v47 }
 0x3b7   : > { %v4732_v46 = vsel %vm4729_vm14, %v17774_v17, %v4344_v45  ;;  %v4735_v17 = vsel %vm4734_vm15, %v4730_v57, %v4374_v29  ;;  %v21386_v45 = vld [vmem:[#allocation30_spill] sm:$0xff] }
 0x3b8   : > { %v4740_v52 = vsel %vm4739_vm4, %v4735_v17, %v4408_v25 }
 0x3b9   : > { %v4658_v10 = vpop.permute.xlu1 %4657 }
 0x3ba   : > { %v4616_v0 = vpop.permute.xlu0 %4615  ;;  %v4753_v48 = vsel %vm4739_vm4, %v4749_v44, %v4658_v10  ;;  %v18109_v10 = vsel %vm5156_vm5, %v21386_v45, 0.0 }
 0x3bb   : > { %v4748_v35 = vsel %vm4734_vm15, %v4744_v43, %v4616_v0  ;;  %v5170_v0 = vrot.slane %v18109_v10, %v14360_v7 }
 0x3bd   : > { %v4342_v28 = vpop.permute.xlu1 %4341  ;;  %v5171_v38 = vcombine.high %v5170_v0, %v5170_v0  ;;  %v5270_v43 = vrot.slane %v5170_v0, %v14386_v18 }
 0x3be   : > { %v4656_v5 = vpop.permute.xlu0 %4655  ;;  %v4731_v22 = vsel %vm4729_vm14, %v17782_v40, %v4342_v28 }
 0x3bf   : > { %v4752_v27 = vsel %vm4739_vm4, %v4748_v35, %v4656_v5  ;;  %v5274_v44 = vrot.slane %v5171_v38, %v14386_v18 }
 0x3c0   : > { %v11910_v30 = vcombine.low %v4752_v27, %v4753_v48  ;;  %v13292_v27 = vld [vmem:[#allocation5 + $0x40] sm:$0xff]  }
 0x3c1   : > { %v4376_v58 = vpop.permute.xlu1 %4375  ;;  %v5283_v5 = vsel %vm21387_vm6, %v5274_v44, %v5270_v43  ;;  %12341 = vmatprep.subr.bf16.mxu1 %v13292_v27  ;;  %vm21398_vm6 = vmmov %vm21390_vm1 }
 0x3c2   : > { %v4378_v3 = vpop.permute.xlu0 %4377  ;;  %v4736_v31 = vsel %vm4734_vm15, %v4731_v22, %v4376_v58  ;;  %5285 = vrot.lane.b32.xlu1 %v5283_v5, %s14012_s21  ;;  %v5250_v58 = vrot.slane %v5170_v0, %v14363_v8  ;;  %v13294_v22 = vld [vmem:[#allocation5 + $0x48] sm:$0xff]   ;;  %v13307_v5 = vld [vmem:[#allocation5 + $0x90] sm:$0xff]  }
 0x3c3   : > { %v4737_v4 = vsel %vm4734_vm15, %v4732_v46, %v4378_v3  ;;  %v5254_v3 = vrot.slane %v5171_v38, %v14363_v8 }
 0x3cc   : > { %v4410_v6 = vpop.permute.xlu1 %4409 }
 0x3cd   : > { %v4741_v37 = vsel %vm4739_vm4, %v4736_v31, %v4410_v6  ;;  %v4412_v20 = vpop.permute.xlu0 %4411  ;;  %v13296_v31 = vld [vmem:[#allocation5 + $0xc0] sm:$0xff]   ;;  %v18127_v6 = vsel %vm21389_vm2, %v5254_v3, %v5250_v58  ;;  %vm21400_vm2 = vmmov %vm21390_vm1 }
 0x3ce   : > { %v4742_v59 = vsel %vm4739_vm4, %v4737_v4, %v4412_v20  ;;  %v11909_v34 = vcombine.low %v4740_v52, %v4741_v37  ;;  %v13295_v20 = vld [vmem:[#allocation5 + $0x8] sm:$0xff]   ;;  %12363 = vmatprep.subr.bf16.mxu0 %v13296_v31 }
 0x3cf   : > { %v11911_v60 = vcombine.low %v4741_v37, %v4742_v59  ;;  %v13299_v37 = vld [vmem:[#allocation5 + $0x80] sm:$0xff]  }
 0x3d6   : > { %v4582_v33 = vpop.permute.xlu1 %4581 }
 0x3d7   : > { %v4747_v19 = vsel %vm4729_vm14, %v18030_v14, %v4582_v33  ;;  %v13298_v33 = vld [vmem:[#allocation5 + $0x10] sm:$0xff]  }
 0x3d9   : > { %v4580_v24 = vpop.permute.xlu0 %4579 }
 0x3da   : > { %v4746_v61 = vsel %vm4729_vm14, %v18034_v49, %v4580_v24  ;;  %v13300_v24 = vld [vmem:[#allocation5 + $0x58] sm:$0xff]  }
 0x3de   : > { %v4622_v40 = vpop.permute.xlu1 %4621 }
 0x3df   : > { %v4751_v32 = vsel %vm4734_vm15, %v4747_v19, %v4622_v40 }
 0x3e1   : > { %v4620_v50 = vpop.permute.xlu0 %4619 }
 0x3e2   : > { %v4662_v9 = vpop.permute.xlu1 %4661  ;;  %v4750_v41 = vsel %vm4734_vm15, %v4746_v61, %v4620_v50  ;;  %v11917_v61 = vld [vmem:[%s20585_s5] ss:$0 sm:$0xff] }
 0x3e3   : > { %v4755_v54 = vsel %vm4739_vm4, %v4751_v32, %v4662_v9 }
 0x3e4   : > { %v11916_v13 = vcombine.low %v4755_v54, %v4740_v52 }
 0x3e7   : > { %v4660_v62 = vpop.permute.xlu0 %4659 }
 0x3e8   : > { %v4754_v11 = vsel %vm4739_vm4, %v4750_v41, %v4660_v62 }
 0x3e9   : > { %v11914_v21 = vcombine.low %v4754_v11, %v4755_v54  ;;  %v11912_v51 = vcombine.low %v4753_v48, %v4754_v11 }
 0x3eb   : > { %v4346_v12 = vpop.permute.xlu1 %4345  ;;  %v4790_v14 = vpack.c.bf16 %v11914_v21, %v11910_v30  ;;  %v4792_v56 = vpack.c.bf16 %v11916_v13, %v11912_v51  ;;  %v13293_v30 = vld [vmem:[#allocation5] sm:$0xff]  }
 0x3ec   : > { %v4733_v2 = vsel %vm4729_vm14, %v18037_v55, %v4346_v12  ;;  %v4707_v36 = vpop.permute.xlu0 %4706 }
 0x3ed   : > { %5088 = vmatprep.mubr.bf16.mxu1 %v4790_v14  ;;  %5129 = vmatprep.mubr.bf16.mxu0 %v4792_v56  ;;  %v4756_v16 = vsel %vm4729_vm14, %v18054_v23, %v4707_v36  ;;  %v5180_v23 = vcombine.high %v18109_v10, %v18109_v10  ;;  %v13302_v56 = vld [vmem:[#allocation5 + $0x18] sm:$0xff]  }
 0x3ef   : > { %v5187_v28 = vrot.slane %v5180_v23, %v14360_v7 }
 0x3f0   : > { %v4727_v25 = vpop.permute.xlu0 %4726 }
 0x3f1   : > { %v5306_v35 = vrot.slane %v5187_v28, %v14386_v18  ;;  %v5294_v46 = vrot.slane %v5187_v28, %v14363_v8 }
 0x3f3   : > { %v5311_v48 = vsel %vm21388_vm7, %v5306_v35, %v5274_v44  ;;  %v18130_v4 = vsel %vm21390_vm1, %v5294_v46, %v5254_v3  ;;  %v13306_v35 = vld [vmem:[#allocation5 + $0x20] sm:$0xff]   ;;  %vm21399_vm7 = vmmov %vm21390_vm1 }
 0x3f4   : > { %5313 = vrot.lane.b32.xlu1 %v5311_v48, %s14012_s21 }
 0x3f7   : > { %v4380_v49 = vpop.permute.xlu1 %4379 }
 0x3f8   : > { %v4738_v53 = vsel %vm4734_vm15, %v4733_v2, %v4380_v49  ;;  %v13303_v49 = vld [vmem:[#allocation5 + $0x88] sm:$0xff]  }
 0x3fd   : > { %v4414_v15 = vpop.permute.xlu1 %4413 }
 0x3fe   : > { %v4743_v63 = vsel %vm4739_vm4, %v4738_v53, %v4414_v15  ;;  %v13304_v15 = vld [vmem:[#allocation5 + $0x60] sm:$0xff]  }
 0x3ff   : > { %v11913_v42 = vcombine.low %v4742_v59, %v4743_v63  ;;  %v13301_v59 = vld [vmem:[#allocation5 + $0xc8] sm:$0xff]  }
 0x401   : > { %v4789_v1 = vpack.c.bf16 %v11913_v42, %v11909_v34  ;;  %v4717_v29 = vpop.permute.xlu1 %4716 }
 0x402   : > { %v4757_v26 = vsel %vm4734_vm15, %v4756_v16, %v4717_v29 }
 0x403   : > { %v4758_v39 = vsel %vm4739_vm4, %v4757_v26, %v4727_v25  ;;  %5089 = vmatmul.mubr.bf16.vlgmr.msra.gmra.mrb[8].mxu1 %v4789_v1 }
 0x404   : > { %v11915_v55 = vcombine.low %v4743_v63, %v4758_v39  ;;  %12342 = vmatpush3.bf16.msra.mxu1 %v13293_v30  ;;  %v13305_v63 = vld [vmem:[#allocation5 + $0xd0] sm:$0xff]  }
 0x405   : > { %12343 = vmatprep.subr.bf16.mxu1 %v13294_v22 }
 0x406   : > { %v4791_v47 = vpack.c.bf16 %v11915_v55, %v11911_v60  ;;  %v13297_v60 = vld [vmem:[#allocation5 + $0x50] sm:$0xff]  }
 0x408   : > { %5130 = vmatmul.mubr.bf16.vlgmr.msra.gmra.mrb[0].mxu0 %v4791_v47  ;;  %12344 = vmatpush3.bf16.msra.mxu1 %v13295_v20 }
 0x409   : > { %12364 = vmatpush3.bf16.msra.mxu0 %v13299_v37  ;;  %12345 = vmatprep.subr.bf16.mxu1 %v13297_v60  ;;  %v13308_v60 = vld [vmem:[#allocation5 + $0x68] sm:$0xff]  }
 0x40a   : > { %12365 = vmatprep.subr.bf16.mxu0 %v13301_v59 }
 0x40c   : > { %12346 = vmatpush3.bf16.msra.mxu1 %v13298_v33 }
 0x40d   : > { %12347 = vmatprep.subr.bf16.mxu1 %v13300_v24  ;;  %12366 = vmatpush3.bf16.msra.mxu0 %v13303_v49 }
 0x40e   : > { %12367 = vmatprep.subr.bf16.mxu0 %v13305_v63 }
 0x410   : > { %12348 = vmatpush3.bf16.msra.mxu1 %v13302_v56 }
 0x411   : > { %12349 = vmatprep.subr.bf16.mxu1 %v13304_v15  ;;  %12368 = vmatpush3.bf16.msra.mxu0 %v13307_v5 }
 0x414   : > { %12350 = vmatpush3.bf16.msra.mxu1 %v13306_v35  ;;  %v13317_v35 = vld [vmem:[#allocation5 + $0xe8] sm:$0xff]  }
 0x415   : > { %12351 = vmatprep.subr.bf16.mxu1 %v13308_v60 }
 0x434   : > { %v5286_v44 = vpop.permute.xlu1 %5285 }
 0x435   : > { %v18161_v46 = vsel %vm4734_vm15, %v18127_v6, %v5286_v44 }
 0x4d6   : > { %v12313_v57 = vpop.f32.mrb[8].mxu1 }
 0x4d7   : > { %v12314_v40 = vpop.f32.mrb[9].mxu1 }
 0x4d8   : > { %v12315_v50 = vadd.f32 %v12314_v40, %v12313_v57  ;;  %v12316_v17 = vpop.f32.mrb[10].mxu1  ;;  %v13309_v40 = vld [vmem:[#allocation5 + $0xd8] sm:$0xff]  }
 0x4d9   : > { %v12317_v19 = vpop.f32.mrb[11].mxu1  ;;  %12369 = vmatprep.subr.bf16.mxu0 %v13309_v40  ;;  %v13329_v40 = vld [vmem:[#allocation5 + $0x1c0] sm:$0xff]  }
 0x4da   : > { %v12318_v32 = vadd.f32 %v12317_v19, %v12316_v17  ;;  %v5091_v41 = vadd.f32 %v12315_v50, %v11917_v61 }
 0x4db   : > { %v12335_v9 = vpop.f32.mrb[0].mxu0 }
 0x4dc   : > { %v12336_v52 = vpop.f32.mrb[1].mxu0  ;;  %v5094_v13 = vadd.f32 %v12318_v32, %v11917_v61  ;;  %v13310_v32 = vld [vmem:[#allocation5 + $0x28] sm:$0xff]  }
 0x4dd   : > { %v12337_v54 = vadd.f32 %v12336_v52, %v12335_v9  ;;  %v12338_v62 = vpop.f32.mrb[2].mxu0  ;;  %12352 = vmatpush3.bf16.msra.mxu1 %v13310_v32 }
 0x4de   : > { %v12339_v11 = vpop.f32.mrb[3].mxu0 }
 0x4df   : > { %v5132_v21 = vadd.f32 %v12337_v54, %v5091_v41  ;;  %v12340_v51 = vadd.f32 %v12339_v11, %v12338_v62  ;;  %v5314_v41 = vpop.permute.xlu1 %5313 }
 0x4e0   : > { %v18189_v11 = vsel %vm4734_vm15, %v18130_v4, %v5314_v41 }
 0x4e1   : > { %v5138_v12 = vmax.f32 %v5132_v21, 0.0  ;;  %v5135_v14 = vadd.f32 %v12340_v51, %v5094_v13 }
 0x4e3   : > { %v5142_v2 = vcombine.high %v5138_v12, %v5138_v12  ;;  %v5144_v36 = vrot.slane %v5138_v12, 7  ;;  %v5139_v53 = vmax.f32 %v5135_v14, 0.0  ;;  %v5447_v12 = vcombine.low %v18161_v46, %v18189_v11  ;;  %v13311_v14 = vld [vmem:[#allocation5 + $0x98] sm:$0xff]  }
 0x4e4   : > { %12370 = vmatpush3.bf16.msra.mxu0 %v13311_v14 }
 0x4e5   : > { %v5145_v34 = vrot.slane %v5142_v2, 7  ;;  %v5152_v42 = vsel %vm21391_vm0, 0.0, %v5144_v36  ;;  %v5143_v16 = vcombine.high %v5139_v53, %v5139_v53  ;;  %v5146_v1 = vrot.slane %v5139_v53, 7  ;;  %v13312_v36 = vld [vmem:[#allocation5 + $0x70] sm:$0xff]   ;;  %v13313_v53 = vld [vmem:[#allocation5 + $0xe0] sm:$0xff]   ;;  %vm21401_vm0 = vmmov %vm21390_vm1 }
 0x4e6   : > { %v5158_v29 = vsel %vm5156_vm5, %v5152_v42, 0.0  ;;  %12353 = vmatprep.subr.bf16.mxu1 %v13312_v36  ;;  %12371 = vmatprep.subr.bf16.mxu0 %v13313_v53 }
 0x4e7   : > { %v5153_v25 = vsel %vm21392_vm3, 0.0, %v5145_v34  ;;  %v18139_v26 = vrot.slane %v5158_v29, %v14360_v7  ;;  %v5147_v39 = vrot.slane %v5143_v16, 7  ;;  %v5214_v47 = vcombine.high %v5158_v29, %v5158_v29  ;;  %v13314_v16 = vld [vmem:[#allocation5 + $0x30] sm:$0xff]   ;;  %vm21402_vm3 = vmmov %vm21401_vm0 }
 0x4e8   : > { %v5159_v55 = vsel %vm5156_vm5, %v5153_v25, 0.0  ;;  %v5154_v0 = vsel %vm21393_vm9, 0.0, %v5146_v1  ;;  %vm21403_vm9 = vmmov %vm21401_vm0  ;;  %12354 = vmatpush3.bf16.msra.mxu1 %v13314_v16 }
 0x4e9   : > { %v18144_v23 = vrot.slane %v5159_v55, %v14360_v7  ;;  %v5188_v38 = vcombine.high %v5159_v55, %v5159_v55  ;;  %v5155_v43 = vsel %vm21394_vm10, 0.0, %v5147_v39  ;;  %v5160_v28 = vsel %vm5156_vm5, %v5154_v0, 0.0  ;;  %v13316_v39 = vld [vmem:[#allocation5 + $0x78] sm:$0xff]   ;;  %vm21404_vm10 = vmmov %vm21401_vm0 }
 0x4ea   : > { %v5161_v48 = vsel %vm5156_vm5, %v5155_v43, 0.0  ;;  %v18150_v27 = vrot.slane %v5160_v28, %v14360_v7  ;;  %v5205_v30 = vcombine.high %v18139_v26, %v18139_v26  ;;  %v5222_v58 = vcombine.high %v5160_v28, %v5160_v28  ;;  %12355 = vmatprep.subr.bf16.mxu1 %v13316_v39 }
 0x4eb   : > { %v18155_v3 = vrot.slane %v5161_v48, %v14360_v7  ;;  %v5179_v22 = vcombine.high %v18144_v23, %v18144_v23  ;;  %v5342_v31 = vrot.slane %v18139_v26, %v14386_v18  ;;  %v5221_v20 = vrot.slane %v5214_v47, %v14360_v7 }
 0x4ec   : > { %v5346_v37 = vrot.slane %v5205_v30, %v14386_v18  ;;  %v5195_v59 = vrot.slane %v5188_v38, %v14360_v7  ;;  %v5278_v33 = vrot.slane %v18144_v23, %v14386_v18  ;;  %v5213_v57 = vcombine.high %v18150_v27, %v18150_v27  ;;  %v13315_v38 = vld [vmem:[#allocation5 + $0xa0] sm:$0xff]  }
 0x4ed   : > { %v5282_v24 = vrot.slane %v5179_v22, %v14386_v18  ;;  %v5238_v6 = vcombine.high %v18155_v3, %v18155_v3  ;;  %v5239_v50 = vcombine.high %v5161_v48, %v5161_v48  ;;  %v5378_v19 = vrot.slane %v5221_v20, %v14386_v18  ;;  %12372 = vmatpush3.bf16.msra.mxu0 %v13315_v38  ;;  %v13328_v38 = vld [vmem:[#allocation5 + $0x150] sm:$0xff]  }
 0x4ee   : > { %v5355_v17 = vsel %vm21395_vm11, %v5346_v37, %v5342_v31  ;;  %v5310_v61 = vrot.slane %v5195_v59, %v14386_v18  ;;  %v5404_v54 = vrot.slane %v18155_v3, %v14386_v18  ;;  %v5354_v62 = vrot.slane %v5213_v57, %v14386_v18  ;;  %vm21405_vm11 = vmmov %vm21401_vm0  ;;  %v13319_v31 = vld [vmem:[#allocation5 + $0xa8] sm:$0xff]   ;;  %12373 = vmatprep.subr.bf16.mxu0 %v13317_v35 }
 0x4ef   : > { %5357 = vrot.lane.b32.xlu1 %v5355_v17, %s14012_s21  ;;  %v5284_v9 = vsel %vm21396_vm12, %v5282_v24, %v5278_v33  ;;  %v18181_v52 = vrot.slane %v5238_v6, %v14386_v18  ;;  %v5383_v13 = vsel %vm21397_vm13, %v5378_v19, %v5346_v37  ;;  %v5350_v21 = vrot.slane %v18150_v27, %v14386_v18  ;;  %vm21406_vm12 = vmmov %vm21401_vm0  ;;  %v13322_v33 = vld [vmem:[#allocation5 + $0xb0] sm:$0xff]  }
 0x4f0   : > { %5287 = vrot.lane.b32.xlu0 %v5284_v9, %s14012_s21  ;;  %v5229_v51 = vrot.slane %v5222_v58, %v14360_v7  ;;  %v5312_v56 = vsel %vm21398_vm6, %v5310_v61, %v5282_v24  ;;  %v5246_v49 = vrot.slane %v5239_v50, %v14360_v7  ;;  %v5322_v4 = vrot.slane %v18139_v26, %v14363_v8  ;;  %vm21407_vm13 = vmmov %vm21401_vm0  ;;  %v13324_v24 = vld [vmem:[#allocation5 + $0xf8] sm:$0xff]  }
 0x4f1   : > { %v5326_v2 = vrot.slane %v5205_v30, %v14363_v8  ;;  %v5409_v15 = vsel %vm21399_vm7, %v18181_v52, %v5404_v54  ;;  %v5258_v63 = vrot.slane %v18144_v23, %v14363_v8  ;;  %v5262_v34 = vrot.slane %v5179_v22, %v14363_v8  ;;  %v13318_v30 = vld [vmem:[#allocation5 + $0x38] sm:$0xff]   ;;  %v13321_v22 = vld [vmem:[#allocation5 + $0x140] sm:$0xff]   ;;  %vm21408_vm6 = vmmov %vm21401_vm0  ;;  %12374 = vmatpush3.bf16.msra.mxu0 %v13319_v31 }
 0x4f2   : > { %v5366_v42 = vrot.slane %v5221_v20, %v14363_v8  ;;  %v5356_v1 = vsel %vm21400_vm2, %v5354_v62, %v5350_v21  ;;  %v5298_v25 = vrot.slane %v5195_v59, %v14363_v8  ;;  %v5394_v26 = vrot.slane %v18155_v3, %v14363_v8  ;;  %v13320_v20 = vld [vmem:[#allocation5 + $0xf0] sm:$0xff]   ;;  %12356 = vmatpush3.bf16.msra.mxu1 %v13318_v30  ;;  %vm21409_vm7 = vmmov %vm21401_vm0 }
 0x4f3   : > { %5385 = vrot.lane.b32.xlu1 %v5383_v13, %s14012_s21  ;;  %v5335_v29 = vsel %vm21390_vm1, %v5326_v2, %v5322_v4  ;;  %v5264_v55 = vsel %vm21401_vm0, %v5262_v34, %v5258_v63  ;;  %v5398_v0 = vrot.slane %v5238_v6, %v14363_v8  ;;  %v5330_v23 = vrot.slane %v18150_v27, %v14363_v8 }
 0x4f4   : > { %5315 = vrot.lane.b32.xlu0 %v5312_v56, %s14012_s21  ;;  %v5371_v47 = vsel %vm21402_vm3, %v5366_v42, %v5326_v2  ;;  %v5300_v43 = vsel %vm21403_vm9, %v5298_v25, %v5262_v34  ;;  %v5334_v28 = vrot.slane %v5213_v57, %v14363_v8  ;;  %v5370_v44 = vrot.slane %v5229_v51, %v14363_v8  ;;  %v13326_v57 = vld [vmem:[#allocation5 + $0xb8] sm:$0xff]  }
 0x4f5   : > { %v5382_v5 = vrot.slane %v5229_v51, %v14386_v18  ;;  %v5399_v48 = vsel %vm21404_vm10, %v5398_v0, %v5394_v26  ;;  %v5416_v27 = vrot.slane %v5246_v49, %v14363_v8  ;;  %v5422_v60 = vrot.slane %v5246_v49, %v14386_v18  ;;  %12385 = vmatprep.subr.bf16.mxu1 %v13321_v22  ;;  %v13333_v22 = vld [vmem:[#allocation5 + $0x1c8] sm:$0xff]  }
 0x4f6   : > { %v5336_v58 = vsel %vm21405_vm11, %v5334_v28, %v5330_v23  ;;  %v5372_v3 = vsel %vm21406_vm12, %v5370_v44, %v5334_v28  ;;  %12375 = vmatprep.subr.bf16.mxu0 %v13320_v20  ;;  %v5455_v13 = vrot.slane %v5447_v12, %v14360_v7  ;;  %v13323_v12 = vld [vmem:[#allocation5 + $0x100] sm:$0xff]   ;;  %v13334_v20 = vld [vmem:[#allocation5 + $0x118] sm:$0xff]   ;;  %vm14014_vm2 = vmmov 0  }
 0x4f7   : > { %5410 = vrot.lane.b32.xlu1 %v5409_v15, %s14012_s21  ;;  %v5417_v37 = vsel %vm21407_vm13, %v5416_v27, %v5398_v0  ;;  %v5384_v59 = vsel %vm21408_vm6, %v5382_v5, %v5354_v62  ;;  %v5423_v6 = vsel %vm21409_vm7, %v5422_v60, %v18181_v52  ;;  %12376 = vmatpush3.bf16.msra.mxu0 %v13322_v33  ;;  %v13330_v5 = vld [vmem:[#allocation5 + $0x110] sm:$0xff]   ;;  %v13336_v60 = vld [vmem:[#allocation5 + $0x160] sm:$0xff]   ;;  %vm6653_vm1 = vcmask 253952  }
 0x4f8   : > { %5359 = vrot.lane.b32.xlu0 %v5356_v1, %s14012_s21  ;;  %12377 = vmatprep.subr.bf16.mxu0 %v13324_v24  ;;  %v13337_v33 = vld [vmem:[#allocation5 + $0x1d0] sm:$0xff]   ;;  %v13338_v24 = vld [vmem:[#allocation5 + $0x120] sm:$0xff]   ;;  %vm6846_vm0 = vcmask 1042432   ;;  %vm21413_vm3 = vcmask 1040384  }
 0x4f9   : > { %vm21414_vm9 = vmmov %vm21413_vm3 }
 0x4fa   : > { %vm21415_vm10 = vmmov %vm21413_vm3 }
 0x4fb   : > { %12378 = vmatpush3.bf16.msra.mxu0 %v13326_v57  ;;  %v13340_v57 = vld [vmem:[#allocation5 + $0x168] sm:$0xff]   ;;  %vm21416_vm11 = vmmov %vm21413_vm3 }
 0x4fc   : > { %5387 = vrot.lane.b32.xlu0 %v5384_v59, %s14012_s21  ;;  %12407 = vmatprep.subr.bf16.mxu0 %v13329_v40  ;;  %v13335_v59 = vld [vmem:[#allocation5 + $0x188] sm:$0xff]   ;;  %v13341_v40 = vld [vmem:[#allocation5 + $0x1d8] sm:$0xff]   ;;  %vm21417_vm12 = vmmov %vm21413_vm3 }
 0x4fd   : > { %vm21418_vm13 = vmmov %vm21413_vm3 }
 0x4fe   : > { %vm21419_vm6 = vmmov %vm21413_vm3 }
 0x4ff   : > { %vm21420_vm7 = vmmov %vm21413_vm3 }
 0x500   : > { %5424 = vrot.lane.b32.xlu0 %v5423_v6, %s14012_s21  ;;  %v13339_v6 = vld [vmem:[#allocation5 + $0x190] sm:$0xff]  }
 0x561   : > { %v5358_v50 = vpop.permute.xlu1 %5357 }
 0x562   : > { %v5288_v17 = vpop.permute.xlu0 %5287  ;;  %v5431_v61 = vsel %vm4734_vm15, %v5335_v29, %v5358_v50  ;;  %v13325_v29 = vld [vmem:[#allocation5 + $0x148] sm:$0xff]  }
 0x563   : > { %v5428_v41 = vsel %vm4734_vm15, %v5264_v55, %v5288_v17  ;;  %v13342_v50 = vld [vmem:[#allocation5 + $0x128] sm:$0xff]   ;;  %v13343_v17 = vld [vmem:[#allocation5 + $0x198] sm:$0xff]  }
 0x565   : > { %v5386_v19 = vpop.permute.xlu1 %5385 }
 0x566   : > { %v5433_v32 = vsel %vm4734_vm15, %v5371_v47, %v5386_v19  ;;  %v5316_v9 = vpop.permute.xlu0 %5315  ;;  %v13327_v47 = vld [vmem:[#allocation5 + $0x108] sm:$0xff]   ;;  %v13344_v19 = vld [vmem:[#allocation5 + $0x170] sm:$0xff]  }
 0x567   : > { %v5448_v54 = vcombine.low %v5431_v61, %v5433_v32  ;;  %v5430_v52 = vsel %vm4734_vm15, %v5300_v43, %v5316_v9  ;;  %v13345_v61 = vld [vmem:[#allocation5 + $0x1e0] sm:$0xff]   ;;  %v13346_v32 = vld [vmem:[#allocation5 + $0x130] sm:$0xff]  }
 0x568   : > { %v5464_v62 = vcombine.low %v5428_v41, %v5430_v52  ;;  %v13347_v9 = vld [vmem:[#allocation5 + $0x1a0] sm:$0xff]   ;;  %v13348_v41 = vld [vmem:[#allocation5 + $0x178] sm:$0xff]  }
 0x569   : > { %v5411_v36 = vpop.permute.xlu1 %5410  ;;  %v5462_v63 = vrot.slane %v5448_v54, %v14360_v7  ;;  %v13349_v54 = vld [vmem:[#allocation5 + $0x1e8] sm:$0xff]   ;;  %v13350_v52 = vld [vmem:[#allocation5 + $0x138] sm:$0xff]  }
 0x56a   : > { %v5472_v21 = vrot.slane %v5464_v62, %v14360_v7  ;;  %v5360_v51 = vpop.permute.xlu0 %5359  ;;  %v5435_v42 = vsel %vm4734_vm15, %v5399_v48, %v5411_v36  ;;  %v13331_v48 = vld [vmem:[#allocation5 + $0x180] sm:$0xff]   ;;  %v13351_v62 = vld [vmem:[#allocation5 + $0x1a8] sm:$0xff]  }
 0x56b   : > { %v5432_v4 = vsel %vm4734_vm15, %v5336_v58, %v5360_v51  ;;  %v13332_v58 = vld [vmem:[#allocation5 + $0x158] sm:$0xff]   ;;  %v13357_v36 = vld [vmem:[%s20588_s8 + $0x8] sm:$0xff]  }
 0x56c   : > { %v11950_v14 = vcombine.low %v5455_v13, %v5472_v21 }
 0x56e   : > { %v5388_v56 = vpop.permute.xlu0 %5387  ;;  %v5498_v49 = vrot.slane %v11950_v14, %v14360_v7  ;;  %v13354_v14 = vld [vmem:[#allocation5 + $0x1f8] sm:$0xff]  }
 0x56f   : > { %v5434_v2 = vsel %vm4734_vm15, %v5372_v3, %v5388_v56  ;;  %v21410_v56 = vmov 0.0  }
 0x570   : > { %v5465_v53 = vcombine.low %v5432_v4, %v5434_v2  ;;  %v5506_v15 = vcombine.high %v5498_v49, %v5498_v49  ;;  %v5534_v1 = vpack.c.bf16 %v5498_v49, %v5498_v49  ;;  %v13355_v49 = vld [vmem:[#allocation5 + $0x1b8] sm:$0xff]  }
 0x571   : > { %v13356_v2 = vld [vmem:[%s20588_s8] sm:$0xff]  }
 0x572   : > { %v5479_v34 = vrot.slane %v5465_v53, %v14360_v7  ;;  %v5425_v46 = vpop.permute.xlu0 %5424  ;;  %v5535_v11 = vpack.c.bf16 %v5506_v15, %v5506_v15  ;;  %v13358_v53 = vld [vmem:[%s20588_s8 + $0x10] sm:$0xff]   ;;  %v13359_v15 = vld [vmem:[%s20588_s8 + $0x18] sm:$0xff]  }
 0x573   : > { %v5436_v16 = vsel %vm4734_vm15, %v5417_v37, %v5425_v46  ;;  %v13362_v46 = vld [vmem:[%s20588_s8 + $0x30] sm:$0xff]  }
 0x574   : > { %v11951_v25 = vcombine.low %v5462_v63, %v5479_v34  ;;  %v11953_v26 = vcombine.low %v5479_v34, %v5455_v13  ;;  %v5481_v39 = vcombine.low %v5435_v42, %v5436_v16  ;;  %6093 = vmatprep.mubr.bf16.mxu1 %v5535_v11  ;;  %v13352_v13 = vld [vmem:[#allocation5 + $0x1f0] sm:$0xff]   ;;  %v13360_v63 = vld [vmem:[%s20588_s8 + $0x20] sm:$0xff]   ;;  %v13361_v34 = vld [vmem:[%s20588_s8 + $0x28] sm:$0xff]  }
 0x575   : > { %6094 = vmatmul.mubr.bf16.vlgmr.msra.gmra.mrb[12].mxu1 %v5534_v1  ;;  %v13363_v11 = vld [vmem:[%s20588_s8 + $0x38] sm:$0xff]  }
 0x576   : > { %v5488_v55 = vrot.slane %v5481_v39, %v14360_v7  ;;  %12386 = vmatpush3.bf16.msra.mxu1 %v13323_v12  ;;  %v5505_v0 = vrot.slane %v11951_v25, %v14360_v7  ;;  %v18256_v23 = vrot.slane %v11953_v26, %v14360_v7  ;;  %v11954_v25 = vld [vmem:[%s20587_s7] ss:$0 sm:$0xff] }
 0x577   : > { %12387 = vmatprep.subr.bf16.mxu1 %v13325_v29 }
 0x578   : > { %v11952_v43 = vcombine.low %v5472_v21, %v5488_v55  ;;  %v5507_v28 = vcombine.high %v5505_v0, %v5505_v0  ;;  %v5525_v44 = vcombine.high %v18256_v23, %v18256_v23  ;;  %v5536_v27 = vpack.c.bf16 %v5505_v0, %v5505_v0  ;;  %v13353_v21 = vld [vmem:[#allocation5 + $0x1b0] sm:$0xff]  }
 0x579   : > { %v5540_v4 = vpack.c.bf16 %v18256_v23, %v18256_v23 }
 0x57a   : > { %12388 = vmatpush3.bf16.msra.mxu1 %v13327_v47  ;;  %v5537_v35 = vpack.c.bf16 %v5507_v28, %v5507_v28  ;;  %v5516_v30 = vrot.slane %v11952_v43, %v14360_v7  ;;  %v5541_v31 = vpack.c.bf16 %v5525_v44, %v5525_v44 }
 0x57b   : > { %12389 = vmatprep.subr.bf16.mxu1 %v13328_v38 }
 0x57c   : > { %6133 = vmatprep.mubr.bf16.mxu0 %v5537_v35  ;;  %v5524_v3 = vcombine.high %v5516_v30, %v5516_v30  ;;  %v5538_v51 = vpack.c.bf16 %v5516_v30, %v5516_v30 }
 0x57d   : > { %6134 = vmatmul.mubr.bf16.vlgmr.msra.gmra.mrb[4].mxu0 %v5536_v27 }
 0x57e   : > { %12390 = vmatpush3.bf16.msra.mxu1 %v13330_v5  ;;  %12408 = vmatpush3.bf16.msra.mxu0 %v13331_v48  ;;  %v5539_v37 = vpack.c.bf16 %v5524_v3, %v5524_v3 }
 0x57f   : > { %6213 = vmatprep.mubr.bf16.mxu0 %v5541_v31  ;;  %12391 = vmatprep.subr.bf16.mxu1 %v13332_v58 }
 0x580   : > { %6173 = vmatprep.mubr.bf16.mxu1 %v5539_v37  ;;  %12409 = vmatprep.subr.bf16.mxu0 %v13333_v22 }
 0x582   : > { %12392 = vmatpush3.bf16.msra.mxu1 %v13334_v20  ;;  %12410 = vmatpush3.bf16.msra.mxu0 %v13335_v59  ;;  %v13364_v20 = vld [vmem:[%s20588_s8 + $0x40] sm:$0xff]  }
 0x583   : > { %12393 = vmatprep.subr.bf16.mxu1 %v13336_v60  ;;  %12411 = vmatprep.subr.bf16.mxu0 %v13337_v33  ;;  %v13365_v60 = vld [vmem:[%s20588_s8 + $0x48] sm:$0xff]   ;;  %v13366_v33 = vld [vmem:[%s20588_s8 + $0x50] sm:$0xff]  }
 0x586   : > { %12394 = vmatpush3.bf16.msra.mxu1 %v13338_v24  ;;  %12412 = vmatpush3.bf16.msra.mxu0 %v13339_v6  ;;  %v13367_v24 = vld [vmem:[%s20588_s8 + $0x58] sm:$0xff]   ;;  %v13368_v6 = vld [vmem:[%s20588_s8 + $0x60] sm:$0xff]  }
 0x587   : > { %12395 = vmatprep.subr.bf16.mxu1 %v13340_v57  ;;  %12413 = vmatprep.subr.bf16.mxu0 %v13341_v40  ;;  %v13369_v57 = vld [vmem:[%s20588_s8 + $0x68] sm:$0xff]   ;;  %v13370_v40 = vld [vmem:[%s20588_s8 + $0x70] sm:$0xff]  }
 0x58a   : > { %12396 = vmatpush3.bf16.msra.mxu1 %v13342_v50  ;;  %12414 = vmatpush3.bf16.msra.mxu0 %v13343_v17  ;;  %v13371_v50 = vld [vmem:[%s20588_s8 + $0x78] sm:$0xff]   ;;  %v13372_v17 = vld [vmem:[%s20588_s8 + $0x80] sm:$0xff]  }
 0x58b   : > { %12397 = vmatprep.subr.bf16.mxu1 %v13344_v19  ;;  %12415 = vmatprep.subr.bf16.mxu0 %v13345_v61  ;;  %v13373_v61 = vld [vmem:[%s20588_s8 + $0x88] sm:$0xff]  }
 0x58e   : > { %12398 = vmatpush3.bf16.msra.mxu1 %v13346_v32  ;;  %12416 = vmatpush3.bf16.msra.mxu0 %v13347_v9  ;;  %v13374_v32 = vld [vmem:[%s20588_s8 + $0x90] sm:$0xff]   ;;  %v13375_v9 = vld [vmem:[%s20588_s8 + $0x98] sm:$0xff]  }
 0x58f   : > { %12399 = vmatprep.subr.bf16.mxu1 %v13348_v41  ;;  %12417 = vmatprep.subr.bf16.mxu0 %v13349_v54  ;;  %v13376_v41 = vld [vmem:[%s20588_s8 + $0xa0] sm:$0xff]   ;;  %v13377_v54 = vld [vmem:[%s20588_s8 + $0xa8] sm:$0xff]  }
 0x592   : > { %12400 = vmatpush3.bf16.msra.mxu1 %v13350_v52  ;;  %12418 = vmatpush3.bf16.msra.mxu0 %v13351_v62  ;;  %v13378_v52 = vld [vmem:[%s20588_s8 + $0xb0] sm:$0xff]   ;;  %v13379_v62 = vld [vmem:[%s20588_s8 + $0xb8] sm:$0xff]  }
 0x593   : > { %12419 = vmatprep.subr.bf16.mxu0 %v13352_v13  ;;  %12570 = vmatprep.subr.bf16.mxu1 %v21410_v56  ;;  %v13380_v13 = vld [vmem:[%s20588_s8 + $0xc0] sm:$0xff]  }
 0x595   : > { %6174 = vmatmul.mubr.bf16.vlgmr.msra.gmra.mrb[16].mxu1 %v5538_v51  ;;  %v13381_v51 = vld [vmem:[%s20588_s8 + $0xc8] sm:$0xff]  }
 0x596   : > { %12420 = vmatpush3.bf16.msra.mxu0 %v13353_v21  ;;  %12571 = vmatpush3.bf16.msra.mxu1 %v13356_v2  ;;  %v13385_v2 = vld [vmem:[%s20588_s8 + $0xe8] sm:$0xff]  }
 0x597   : > { %12421 = vmatprep.subr.bf16.mxu0 %v13354_v14  ;;  %12572 = vmatprep.subr.bf16.mxu1 %v21410_v56  ;;  %v13382_v14 = vld [vmem:[%s20588_s8 + $0xd0] sm:$0xff]  }
 0x598   : > { %12586 = vmatprep.mubr.msk.bf16.mxu1 %vm14014_vm2, %v21410_v56 }
 0x59a   : > { %12422 = vmatpush3.bf16.msra.mxu0 %v13355_v49  ;;  %12573 = vmatpush3.bf16.msra.mxu1 %v13357_v36  ;;  %v13383_v49 = vld [vmem:[%s20588_s8 + $0xd8] sm:$0xff]   ;;  %v13386_v36 = vld [vmem:[%s20588_s8 + $0xf0] sm:$0xff]  }
 0x59b   : > { %12574 = vmatprep.subr.bf16.mxu1 %v21410_v56 }
 0x59d   : > { %6214 = vmatmul.mubr.bf16.vlgmr.msra.gmra.mrb[8].mxu0 %v5540_v4  ;;  %v13384_v4 = vld [vmem:[%s20588_s8 + $0xe0] sm:$0xff]  }
 0x59e   : > { %12575 = vmatpush3.bf16.msra.mxu1 %v13358_v53  ;;  %v13387_v53 = vld [vmem:[%s20588_s8 + $0xf8] sm:$0xff]  }
 0x59f   : > { %12576 = vmatprep.subr.bf16.mxu1 %v21410_v56 }
 0x5a2   : > { %12577 = vmatpush3.bf16.msra.mxu1 %v13359_v15 }
 0x5a3   : > { %12578 = vmatprep.subr.bf16.mxu1 %v21410_v56 }
 0x5a6   : > { %12579 = vmatpush3.bf16.msra.mxu1 %v13360_v63  ;;  %v13388_v63 = vld [vmem:[#allocation7] ss:$16 sps:$4 sm:$0xff]  }
 0x5a7   : > { %12580 = vmatprep.subr.bf16.mxu1 %v21410_v56 }
 0x5aa   : > { %12581 = vmatpush3.bf16.msra.mxu1 %v13361_v34  ;;  %v13390_v34 = vld [vmem:[#allocation7 + $0x4] ss:$16 sps:$4 sm:$0xff]  }
 0x5ab   : > { %12582 = vmatprep.subr.bf16.mxu1 %v21410_v56 }
 0x5ae   : > { %12583 = vmatpush3.bf16.msra.mxu1 %v13362_v46  ;;  %v13391_v46 = vld [vmem:[#allocation7 + $0x8] ss:$16 sps:$4 sm:$0xff]  }
 0x5af   : > { %12584 = vmatprep.subr.bf16.mxu1 %v21410_v56 }
 0x5b2   : > { %12585 = vmatpush3.bf16.msra.mxu1 %v13363_v11  ;;  %v13393_v11 = vld [vmem:[#allocation7 + $0xc] ss:$16 sps:$4 sm:$0xff]  }
 0x5b3   : > { %12590 = vmatprep.subr.bf16.mxu1 %v21410_v56  ;;  %6789 = vmatprep.subr.bf16.mxu0 %v13393_v11 }
 0x5b4   : > { %6790 = vmatpush1.bf16.msra.mxu0 %v13391_v46 }
 0x648   : > { %v12357_v12 = vpop.f32.mrb[12].mxu1 }
 0x649   : > { %v12358_v42 = vpop.f32.mrb[13].mxu1 }
 0x64a   : > { %v12359_v16 = vadd.f32 %v12358_v42, %v12357_v12  ;;  %v12360_v1 = vpop.f32.mrb[14].mxu1  ;;  %v6287_v12 = vld [vmem:[%s20589_s9] sm:$0x1] }
 0x64b   : > { %v12361_v29 = vpop.f32.mrb[15].mxu1 }
 0x64c   : > { %v6096_v55 = vadd.f32 %v12359_v16, %v11954_v25 }
 0x650   : > { %v12379_v26 = vpop.f32.mrb[4].mxu0 }
 0x651   : > { %v12380_v39 = vpop.f32.mrb[5].mxu0 }
 0x652   : > { %v12381_v47 = vadd.f32 %v12380_v39, %v12379_v26  ;;  %v12382_v0 = vpop.f32.mrb[6].mxu0 }
 0x653   : > { %v12383_v23 = vpop.f32.mrb[7].mxu0  ;;  %v13397_v0 = vld [vmem:[#allocation7 + $0x28] ss:$16 sps:$4 sm:$0xff]  }
 0x654   : > { %v6136_v38 = vadd.f32 %v12381_v47, %v6096_v55  ;;  %v13394_v55 = vld [vmem:[#allocation7 + $0x20] ss:$16 sps:$4 sm:$0xff]   ;;  %v13396_v47 = vld [vmem:[#allocation7 + $0x24] ss:$16 sps:$4 sm:$0xff]   ;;  %v13399_v23 = vld [vmem:[#allocation7 + $0x2c] ss:$16 sps:$4 sm:$0xff]  }
 0x655   : > { %6791 = vmatprep.subr.bf16.mxu0 %v13399_v23 }
 0x656   : > { %6792 = vmatpush1.bf16.msra.mxu0 %v13397_v0 }
 0x668   : > { %v12401_v43 = vpop.f32.mrb[16].mxu1 }
 0x669   : > { %v12402_v28 = vpop.f32.mrb[17].mxu1 }
 0x66a   : > { %v12403_v44 = vadd.f32 %v12402_v28, %v12401_v43  ;;  %v12404_v35 = vpop.f32.mrb[18].mxu1  ;;  %v13402_v43 = vld [vmem:[%s20592_s12 + $0x4] ss:$8 sps:$4 sm:$0xff]  }
 0x66b   : > { %v12405_v5 = vpop.f32.mrb[19].mxu1  ;;  %7871 = vmatprep.subr.bf16.mxu0 %v13402_v43 }
 0x66c   : > { %v6176_v48 = vadd.f32 %v12403_v44, %v6136_v38  ;;  %v14015_v38 = vmov 0   ;;  %v6664_v44 = vld [vmem:[%s737_s0] sm:$0x1]  ;;  %s14017_s0 = smov 127  }
 0x66d   : > { %6821 = vmatprep.mubr.bf16.mxu0 %v14015_v38 }
 0x670   : > { %v12423_v30 = vpop.f32.mrb[8].mxu0 }
 0x671   : > { %v12424_v27 = vpop.f32.mrb[9].mxu0 }
 0x672   : > { %v12425_v58 = vadd.f32 %v12424_v27, %v12423_v30  ;;  %v12426_v3 = vpop.f32.mrb[10].mxu0  ;;  %v13400_v30 = vld [vmem:[%s20592_s12] ss:$8 sps:$4 sm:$0xff]  }
 0x673   : > { %v12427_v22 = vpop.f32.mrb[11].mxu0  ;;  %v13403_v3 = vld [vmem:[%s20592_s12 + $0x10] ss:$8 sps:$4 sm:$0xff]  }
 0x674   : > { %v6216_v31 = vadd.f32 %v12425_v58, %v6176_v48  ;;  %v13405_v58 = vld [vmem:[%s20592_s12 + $0x14] ss:$8 sps:$4 sm:$0xff]   ;;  %v13408_v22 = vld [vmem:[%s20592_s12 + $0x24] ss:$8 sps:$4 sm:$0xff]  }
 0x676   : > { %v6221_v37 = vmax.f32 %v6216_v31, 0.0  ;;  %v13406_v31 = vld [vmem:[%s20592_s12 + $0x20] ss:$8 sps:$4 sm:$0xff]  }
 0x678   : > { %v18304_v59 = vpack.c.bf16 %v6221_v37, %v6221_v37  ;;  %v13411_v37 = vld [vmem:[%s20592_s12 + $0x34] ss:$8 sps:$4 sm:$0xff]  }
 0x67a   : > { %12587 = vmatmul.mubr.bf16.vlgmr.msra.gmra.mrb[20].mxu1 %v18304_v59  ;;  %v6378_v19 = vshrl.u32 %v18304_v59, 16  ;;  %v6471_v21 = vrot.slane %v18304_v59, 1  ;;  %v13414_v59 = vld [vmem:[%s20592_s12 + $0x44] ss:$8 sps:$4 sm:$0xff]  }
 0x67b   : > { %12591 = vmatpush3.bf16.msra.mxu1 %v13364_v20  ;;  %12606 = vmatprep.mubr.msk.bf16.mxu1 %vm14014_vm2, %v21410_v56  ;;  %v13409_v20 = vld [vmem:[%s20592_s12 + $0x30] ss:$8 sps:$4 sm:$0xff]  }
 0x67c   : > { %12592 = vmatprep.subr.bf16.mxu1 %v21410_v56  ;;  %v6562_v15 = vrot.slane %v6378_v19, 1 }
 0x67f   : > { %12593 = vmatpush3.bf16.msra.mxu1 %v13365_v60  ;;  %v13412_v60 = vld [vmem:[%s20592_s12 + $0x40] ss:$8 sps:$4 sm:$0xff]  }
 0x680   : > { %12594 = vmatprep.subr.bf16.mxu1 %v21410_v56 }
 0x683   : > { %12595 = vmatpush3.bf16.msra.mxu1 %v13366_v33  ;;  %v13417_v33 = vld [vmem:[%s20592_s12 + $0x54] ss:$8 sps:$4 sm:$0xff]  }
 0x684   : > { %12596 = vmatprep.subr.bf16.mxu1 %v21410_v56 }
 0x687   : > { %12597 = vmatpush3.bf16.msra.mxu1 %v13367_v24  ;;  %v13415_v24 = vld [vmem:[%s20592_s12 + $0x50] ss:$8 sps:$4 sm:$0xff]  }
 0x688   : > { %12598 = vmatprep.subr.bf16.mxu1 %v21410_v56 }
 0x68b   : > { %12599 = vmatpush3.bf16.msra.mxu1 %v13368_v6  ;;  %v13420_v6 = vld [vmem:[%s20592_s12 + $0x64] ss:$8 sps:$4 sm:$0xff]  }
 0x68c   : > { %12600 = vmatprep.subr.bf16.mxu1 %v21410_v56 }
 0x68f   : > { %12601 = vmatpush3.bf16.msra.mxu1 %v13369_v57  ;;  %v13418_v57 = vld [vmem:[%s20592_s12 + $0x60] ss:$8 sps:$4 sm:$0xff]  }
 0x690   : > { %12602 = vmatprep.subr.bf16.mxu1 %v21410_v56 }
 0x693   : > { %12603 = vmatpush3.bf16.msra.mxu1 %v13370_v40  ;;  %v13423_v40 = vld [vmem:[%s20592_s12 + $0x74] ss:$8 sps:$4 sm:$0xff]  }
 0x694   : > { %12604 = vmatprep.subr.bf16.mxu1 %v21410_v56 }
 0x697   : > { %12605 = vmatpush3.bf16.msra.mxu1 %v13371_v50  ;;  %v13421_v50 = vld [vmem:[%s20592_s12 + $0x70] ss:$8 sps:$4 sm:$0xff]  }
 0x698   : > { %12610 = vmatprep.subr.bf16.mxu1 %v21410_v56 }
 0x69a   : > { %12607 = vmatmul.mubr.bf16.vlgmr.msra.gmra.mrb[20].mxu1 %v6378_v19  ;;  %v13424_v19 = vld [vmem:[%s20592_s12 + $0x80] ss:$8 sps:$4 sm:$0xff]  }
 0x69b   : > { %12611 = vmatpush3.bf16.msra.mxu1 %v13372_v17  ;;  %12626 = vmatprep.mubr.msk.bf16.mxu1 %vm14014_vm2, %v21410_v56  ;;  %v13426_v17 = vld [vmem:[%s20592_s12 + $0x84] ss:$8 sps:$4 sm:$0xff]  }
 0x69c   : > { %12612 = vmatprep.subr.bf16.mxu1 %v21410_v56 }
 0x69f   : > { %12613 = vmatpush3.bf16.msra.mxu1 %v13373_v61  ;;  %v13429_v61 = vld [vmem:[%s20592_s12 + $0x94] ss:$8 sps:$4 sm:$0xff]  }
 0x6a0   : > { %12614 = vmatprep.subr.bf16.mxu1 %v21410_v56 }
 0x6a3   : > { %12615 = vmatpush3.bf16.msra.mxu1 %v13374_v32  ;;  %v13427_v32 = vld [vmem:[%s20592_s12 + $0x90] ss:$8 sps:$4 sm:$0xff]  }
 0x6a4   : > { %12616 = vmatprep.subr.bf16.mxu1 %v21410_v56 }
 0x6a7   : > { %12617 = vmatpush3.bf16.msra.mxu1 %v13375_v9  ;;  %v13430_v9 = vld [vmem:[%s20592_s12 + $0xa0] ss:$8 sps:$4 sm:$0xff]  }
 0x6a8   : > { %12618 = vmatprep.subr.bf16.mxu1 %v21410_v56 }
 0x6ab   : > { %12619 = vmatpush3.bf16.msra.mxu1 %v13376_v41  ;;  %v13432_v41 = vld [vmem:[%s20592_s12 + $0xa4] ss:$8 sps:$4 sm:$0xff]  }
 0x6ac   : > { %12620 = vmatprep.subr.bf16.mxu1 %v21410_v56 }
 0x6af   : > { %12621 = vmatpush3.bf16.msra.mxu1 %v13377_v54  ;;  %v13435_v54 = vld [vmem:[%s20592_s12 + $0xb4] ss:$8 sps:$4 sm:$0xff]  }
 0x6b0   : > { %12622 = vmatprep.subr.bf16.mxu1 %v21410_v56 }
 0x6b3   : > { %12623 = vmatpush3.bf16.msra.mxu1 %v13378_v52  ;;  %v13433_v52 = vld [vmem:[%s20592_s12 + $0xb0] ss:$8 sps:$4 sm:$0xff]  }
 0x6b4   : > { %12624 = vmatprep.subr.bf16.mxu1 %v21410_v56 }
 0x6b7   : > { %12625 = vmatpush3.bf16.msra.mxu1 %v13379_v62  ;;  %v13438_v62 = vld [vmem:[%s20592_s12 + $0xc4] ss:$8 sps:$4 sm:$0xff]  }
 0x6b8   : > { %12630 = vmatprep.subr.bf16.mxu1 %v21410_v56 }
 0x6ba   : > { %12627 = vmatmul.mubr.bf16.vlgmr.msra.gmra.mrb[20].mxu1 %v6471_v21  ;;  %v13441_v21 = vld [vmem:[%s20592_s12 + $0xd4] ss:$8 sps:$4 sm:$0xff]  }
 0x6bb   : > { %12631 = vmatpush3.bf16.msra.mxu1 %v13380_v13  ;;  %12646 = vmatprep.mubr.msk.bf16.mxu1 %vm14014_vm2, %v21410_v56  ;;  %v13436_v13 = vld [vmem:[%s20592_s12 + $0xc0] ss:$8 sps:$4 sm:$0xff]  }
 0x6bc   : > { %12632 = vmatprep.subr.bf16.mxu1 %v21410_v56 }
 0x6bf   : > { %12633 = vmatpush3.bf16.msra.mxu1 %v13381_v51  ;;  %v13439_v51 = vld [vmem:[%s20592_s12 + $0xd0] ss:$8 sps:$4 sm:$0xff]  }
 0x6c0   : > { %12634 = vmatprep.subr.bf16.mxu1 %v21410_v56 }
 0x6c3   : > { %12635 = vmatpush3.bf16.msra.mxu1 %v13382_v14  ;;  %v13444_v14 = vld [vmem:[%s20592_s12 + $0xe4] ss:$8 sps:$4 sm:$0xff]  }
 0x6c4   : > { %12636 = vmatprep.subr.bf16.mxu1 %v21410_v56 }
 0x6c7   : > { %12637 = vmatpush3.bf16.msra.mxu1 %v13383_v49  ;;  %v13442_v49 = vld [vmem:[%s20592_s12 + $0xe0] ss:$8 sps:$4 sm:$0xff]  }
 0x6c8   : > { %12638 = vmatprep.subr.bf16.mxu1 %v21410_v56 }
 0x6cb   : > { %12639 = vmatpush3.bf16.msra.mxu1 %v13384_v4  ;;  %v13447_v4 = vld [vmem:[%s20592_s12 + $0xf4] ss:$8 sps:$4 sm:$0xff]  }
 0x6cc   : > { %12640 = vmatprep.subr.bf16.mxu1 %v21410_v56 }
 0x6cf   : > { %12641 = vmatpush3.bf16.msra.mxu1 %v13385_v2  ;;  %v13445_v2 = vld [vmem:[%s20592_s12 + $0xf0] ss:$8 sps:$4 sm:$0xff]  }
 0x6d0   : > { %12642 = vmatprep.subr.bf16.mxu1 %v21410_v56 }
 0x6d3   : > { %12643 = vmatpush3.bf16.msra.mxu1 %v13386_v36  ;;  %v13450_v36 = vld [vmem:[%s20592_s12 + $0x104] ss:$8 sps:$4 sm:$0xff]  }
 0x6d4   : > { %12644 = vmatprep.subr.bf16.mxu1 %v21410_v56 }
 0x6d7   : > { %12645 = vmatpush3.bf16.msra.mxu1 %v13387_v53  ;;  %v21412_v53 = vld [vmem:[#allocation29_spill] sm:$0xff] }
 0x6d8   : > { %6748 = vmatprep.subr.bf16.mxu1 %v13390_v34  ;;  %v6735_v34 = vsub.s32 2, %v21412_v53 }
 0x6da   : > { %12647 = vmatmul.mubr.bf16.vlgmr.msra.gmra.mrb[20].mxu1 %v6562_v15  ;;  %v6739_v15 = vsub.s32 3, %v21412_v53 }
 0x6db   : > { %6749 = vmatpush1.bf16.msra.mxu1 %v13388_v63  ;;  %6780 = vmatprep.mubr.bf16.mxu1 %v14015_v38  ;;  %v6683_v63 = vld [vmem:[%s20591_s11] sm:$0xf] }
 0x6dc   : > { %6750 = vmatprep.subr.bf16.mxu1 %v13396_v47  ;;  %v6732_v46 = vrot.slane %v6683_v63, %v14386_v18  ;;  %v6740_v11 = vrot.slane %v6683_v63, %v6739_v15 }
 0x6df   : > { %6751 = vmatpush1.bf16.msra.mxu1 %v13394_v55  ;;  %v18539_v55 = vsel %vm6846_vm0, %v21386_v45, 0.0 }
 0x7ad   : > { %v6646_v42 = vpop.f32.mrb[20].mxu1 }
 0x7ae   : > { %v18413_v16 = vadd.f32 %v6646_v42, %v6287_v12  ;;  %v12648_v1 = vpop.f32.mrb[21].mxu1  ;;  %v6728_v12 = vrot.slane %v6683_v63, %v14363_v8 }
 0x7af   : > { %v6649_v29 = vpop.f32.mrb[22].mxu1  ;;  %v6736_v1 = vrot.slane %v6683_v63, %v6735_v34 }
 0x7b0   : > { %v6665_v25 = vmul.f32 0.5, %v18413_v16  ;;  %v12649_v26 = vpop.f32.mrb[23].mxu1  ;;  %6654 = vst.msk [vmem:[%s20830_s16] sm:$0x1] %vm6653_vm1, %v18413_v16  ;;  %s21446_s16 = sld [smem:[#allocation166_spill]] }
 0x7b2   : > { %v6666_v39 = vmul.f32 1.442695, %v6665_v25 }
 0x7b4   : > { %13670 = vpow2.f32 %v6666_v39 }
 0x7be   : > { %v13671_v28 = vpop.eup %13670 }
 0x7bf   : > { %6669 = vrot.lane.b32.xlu1 %v13671_v28, %s14013_s23 }
 0x831   : > { %v6670_v35 = vpop.permute.xlu1 %6669 }
 0x832   : > { %v6672_v5 = vmul.f32 %v6670_v35, %v6664_v44  ;;  %v6852_v44 = vrot.slane %v18539_v55, 1 }
 0x834   : > { %v6673_v48 = vadd.f32 %v18413_v16, %v6672_v5 }
 0x836   : > { %v6674_v27 = vpack.c.bf16 %v6673_v48, %v6673_v48 }
 0x838   : > { %12059 = vmatmul.mubr.msk.bf16.vlgmr.msra.gmra.mrb[24].mxu1 %vm4729_vm14, %v6674_v27  ;;  %12060 = vmatmul.mubr.msk.bf16.vlgmr.msra.gmra.mrb[12].mxu0 %vm4729_vm14, %v6674_v27 }
 0x839   : > { %7872 = vmatpush1.bf16.msra.mxu0 %v13400_v30 }
 0x83a   : > { %7873 = vmatprep.subr.bf16.mxu0 %v13405_v58 }
 0x83d   : > { %7874 = vmatpush1.bf16.msra.mxu0 %v13403_v3 }
 0x83e   : > { %7875 = vmatprep.subr.bf16.mxu0 %v13408_v22 }
 0x841   : > { %7876 = vmatpush1.bf16.msra.mxu0 %v13406_v31  ;;  %v6859_v31 = vcombine.low %v18539_v55, %v6852_v44  ;;  %v13468_v44 = vld [vmem:[%s20592_s12 + $0x164] ss:$8 sps:$4 sm:$0xff]  }
 0x842   : > { %7877 = vmatprep.subr.bf16.mxu0 %v13411_v37  ;;  %v6854_v37 = vrot.slane %v18539_v55, 2 }
 0x845   : > { %7878 = vmatpush1.bf16.msra.mxu0 %v13409_v20 }
 0x846   : > { %7879 = vmatprep.subr.bf16.mxu0 %v13414_v59 }
 0x849   : > { %7880 = vmatpush1.bf16.msra.mxu0 %v13412_v60 }
 0x84a   : > { %7881 = vmatprep.subr.bf16.mxu0 %v13417_v33 }
 0x84d   : > { %7882 = vmatpush1.bf16.msra.mxu0 %v13415_v24 }
 0x84e   : > { %7883 = vmatprep.subr.bf16.mxu0 %v13420_v6 }
 0x851   : > { %7884 = vmatpush1.bf16.msra.mxu0 %v13418_v57 }
 0x852   : > { %7885 = vmatprep.subr.bf16.mxu0 %v13423_v40 }
 0x855   : > { %7886 = vmatpush1.bf16.msra.mxu0 %v13421_v50  ;;  %v6867_v50 = vrot.slane %v6859_v31, %v14360_v7  ;;  %v13478_v31 = vld [vmem:[%s20592_s12 + $0x1a0] ss:$8 sps:$4 sm:$0xff]  }
 0x856   : > { %7887 = vmatprep.subr.bf16.mxu0 %v13426_v17 }
 0x859   : > { %7888 = vmatpush1.bf16.msra.mxu0 %v13424_v19 }
 0x85a   : > { %7889 = vmatprep.subr.bf16.mxu0 %v13429_v61 }
 0x85d   : > { %7890 = vmatpush1.bf16.msra.mxu0 %v13427_v32 }
 0x85e   : > { %7891 = vmatprep.subr.bf16.mxu0 %v13432_v41 }
 0x861   : > { %7892 = vmatpush1.bf16.msra.mxu0 %v13430_v9 }
 0x862   : > { %7893 = vmatprep.subr.bf16.mxu0 %v13435_v54 }
 0x865   : > { %7894 = vmatpush1.bf16.msra.mxu0 %v13433_v52 }
 0x866   : > { %7895 = vmatprep.subr.bf16.mxu0 %v13438_v62 }
 0x869   : > { %7896 = vmatpush1.bf16.msra.mxu0 %v13436_v13 }
 0x86a   : > { %7897 = vmatprep.subr.bf16.mxu0 %v13441_v21 }
 0x86d   : > { %7898 = vmatpush1.bf16.msra.mxu0 %v13439_v51 }
 0x86e   : > { %7899 = vmatprep.subr.bf16.mxu0 %v13444_v14 }
 0x871   : > { %7900 = vmatpush1.bf16.msra.mxu0 %v13442_v49 }
 0x872   : > { %7901 = vmatprep.subr.bf16.mxu0 %v13447_v4 }
 0x875   : > { %7902 = vmatpush1.bf16.msra.mxu0 %v13445_v2 }
 0x876   : > { %7912 = vmatprep.subr.bf16.mxu0 %v13450_v36 }
 0x90b   : > { %v6782_v42 = vpop.f32.mrb[24].mxu1  ;;  %v6823_v29 = vpop.f32.mrb[12].mxu0 }
 0x90c   : > { %v6784_v25 = vpop.f32.mrb[25].mxu1  ;;  %v6825_v26 = vpop.f32.mrb[13].mxu0  ;;  %v6783_v35 = vadd.f32 %v6782_v42, %v6728_v12  ;;  %v6824_v5 = vadd.f32 %v6823_v29, %v6736_v1  ;;  %v13453_v42 = vld [vmem:[%s20592_s12 + $0x114] ss:$8 sps:$4 sm:$0xff]   ;;  %v13451_v29 = vld [vmem:[%s20592_s12 + $0x110] ss:$8 sps:$4 sm:$0xff]  }
 0x90d   : > { %v6785_v39 = vadd.f32 %v6784_v25, %v6732_v46  ;;  %v6826_v47 = vadd.f32 %v6825_v26, %v6740_v11  ;;  %v6786_v0 = vpop.f32.mrb[26].mxu1  ;;  %v6827_v23 = vpop.f32.mrb[14].mxu0  ;;  %v13448_v11 = vld [vmem:[%s20592_s12 + $0x100] ss:$8 sps:$4 sm:$0xff]   ;;  %v13456_v25 = vld [vmem:[%s20592_s12 + $0x124] ss:$8 sps:$4 sm:$0xff]  }
 0x90e   : > { %v6787_v43 = vpop.f32.mrb[27].mxu1  ;;  %v6828_v28 = vpop.f32.mrb[15].mxu0  ;;  %v13454_v26 = vld [vmem:[%s20592_s12 + $0x120] ss:$8 sps:$4 sm:$0xff]   ;;  %v13462_v0 = vld [vmem:[%s20592_s12 + $0x144] ss:$8 sps:$4 sm:$0xff]  }
 0x90f   : > { %v6831_v48 = vrot.slane %v6785_v39, 7  ;;  %v6835_v30 = vrot.slane %v6826_v47, 7  ;;  %v13459_v39 = vld [vmem:[%s20592_s12 + $0x134] ss:$8 sps:$4 sm:$0xff]   ;;  %v13457_v47 = vld [vmem:[%s20592_s12 + $0x130] ss:$8 sps:$4 sm:$0xff]  }
 0x910   : > { %v13460_v23 = vld [vmem:[%s20592_s12 + $0x140] ss:$8 sps:$4 sm:$0xff]   ;;  %v13465_v43 = vld [vmem:[%s20592_s12 + $0x154] ss:$8 sps:$4 sm:$0xff]   ;;  %v13463_v28 = vld [vmem:[%s20592_s12 + $0x150] ss:$8 sps:$4 sm:$0xff]  }
 0x911   : > { %v6833_v27 = vsel %vm21413_vm3, %v6783_v35, %v6831_v48  ;;  %v6837_v58 = vsel %vm21414_vm9, %v6824_v5, %v6835_v30  ;;  %v13466_v35 = vld [vmem:[%s20592_s12 + $0x160] ss:$8 sps:$4 sm:$0xff]   ;;  %v13471_v5 = vld [vmem:[%s20592_s12 + $0x174] ss:$8 sps:$4 sm:$0xff]   ;;  %v13469_v48 = vld [vmem:[%s20592_s12 + $0x170] ss:$8 sps:$4 sm:$0xff]  }
 0x912   : > { %v6840_v3 = vrot.slane %v6833_v27, 7  ;;  %v6841_v22 = vrot.slane %v6837_v58, 7  ;;  %v13474_v30 = vld [vmem:[%s20592_s12 + $0x184] ss:$8 sps:$4 sm:$0xff]   ;;  %v13472_v27 = vld [vmem:[%s20592_s12 + $0x180] ss:$8 sps:$4 sm:$0xff]  }
 0x913   : > { %v13477_v58 = vld [vmem:[%s20592_s12 + $0x194] ss:$8 sps:$4 sm:$0xff]  }
 0x914   : > { %v6844_v20 = vsel %vm21415_vm10, 0.0, %v6840_v3  ;;  %v6845_v59 = vsel %vm21416_vm11, 0.0, %v6841_v22  ;;  %v13475_v3 = vld [vmem:[%s20592_s12 + $0x190] ss:$8 sps:$4 sm:$0xff]   ;;  %v13480_v22 = vld [vmem:[%s20592_s12 + $0x1a4] ss:$8 sps:$4 sm:$0xff]  }
 0x915   : > { %v6848_v60 = vsel %vm6846_vm0, %v6844_v20, 0.0  ;;  %v18550_v33 = vsel %vm6846_vm0, %v6845_v59, 0.0  ;;  %v13483_v20 = vld [vmem:[%s20592_s12 + $0x1b4] ss:$8 sps:$4 sm:$0xff]   ;;  %v13481_v59 = vld [vmem:[%s20592_s12 + $0x1b0] ss:$8 sps:$4 sm:$0xff]   ;;  %vm21421_vm0 = vmmov %vm21413_vm3 }
 0x916   : > { %v6853_v24 = vrot.slane %v6848_v60, 1  ;;  %v6855_v6 = vrot.slane %v6848_v60, 2  ;;  %v6857_v57 = vrot.slane %v18550_v33, 1  ;;  %v6858_v40 = vrot.slane %v18550_v33, 2  ;;  %vm21422_vm3 = vmmov %vm21421_vm0 }
 0x917   : > { %v6860_v17 = vcombine.low %v6854_v37, %v6848_v60  ;;  %vm21423_vm9 = vmmov %vm21421_vm0 }
 0x918   : > { %v6900_v19 = vcombine.low %v6848_v60, %v6853_v24  ;;  %v6901_v61 = vcombine.low %v6855_v6, %v18550_v33  ;;  %v6876_v32 = vcombine.low %v6853_v24, %v6855_v6  ;;  %v6917_v9 = vcombine.low %v6857_v57, %v6858_v40  ;;  %v13486_v60 = vld [vmem:[%s20592_s12 + $0x1c4] ss:$8 sps:$4 sm:$0xff]   ;;  %v13484_v24 = vld [vmem:[%s20592_s12 + $0x1c0] ss:$8 sps:$4 sm:$0xff]   ;;  %v13489_v6 = vld [vmem:[%s20592_s12 + $0x1d4] ss:$8 sps:$4 sm:$0xff]  }
 0x919   : > { %v6874_v41 = vrot.slane %v6860_v17, %v14360_v7  ;;  %v6877_v54 = vcombine.low %v18550_v33, %v6857_v57  ;;  %v13487_v57 = vld [vmem:[%s20592_s12 + $0x1d0] ss:$8 sps:$4 sm:$0xff]   ;;  %v13490_v17 = vld [vmem:[%s20592_s12 + $0x1e0] ss:$8 sps:$4 sm:$0xff]   ;;  %vm21424_vm10 = vmmov %vm21421_vm0 }
 0x91a   : > { %v6908_v52 = vrot.slane %v6900_v19, %v14360_v7  ;;  %v6915_v62 = vrot.slane %v6901_v61, %v14360_v7  ;;  %v6884_v13 = vrot.slane %v6876_v32, %v14360_v7  ;;  %v6924_v21 = vrot.slane %v6917_v9, %v14360_v7  ;;  %v13495_v19 = vld [vmem:[%s20592_s12 + $0x1f4] ss:$8 sps:$4 sm:$0xff]   ;;  %v13493_v32 = vld [vmem:[%s20592_s12 + $0x1f0] ss:$8 sps:$4 sm:$0xff]   ;;  %v13498_v9 = vld [vmem:[%s20592_s12 + $0x204] ss:$8 sps:$4 sm:$0xff]  }
 0x91b   : > { %v6891_v51 = vrot.slane %v6877_v54, %v14360_v7  ;;  %v13496_v54 = vld [vmem:[%s20592_s12 + $0x200] ss:$8 sps:$4 sm:$0xff]   ;;  %v13613_v33 = vld [vmem:[%s20592_s12 + $0x470] ss:$8 sps:$4 sm:$0xff]   ;;  %vm21425_vm11 = vmmov %vm21421_vm0 }
 0x91c   : > { %v12061_v14 = vcombine.low %v6867_v50, %v6908_v52  ;;  %v12062_v49 = vcombine.low %v6874_v41, %v6915_v62  ;;  %v18567_v4 = vcombine.low %v6884_v13, %v6924_v21  ;;  %v13501_v62 = vld [vmem:[%s20592_s12 + $0x214] ss:$8 sps:$4 sm:$0xff]   ;;  %v13499_v21 = vld [vmem:[%s20592_s12 + $0x210] ss:$8 sps:$4 sm:$0xff]  }
 0x91d   : > { %v18569_v2 = vcombine.low %v6891_v51, %v6867_v50  ;;  %v13492_v50 = vld [vmem:[%s20592_s12 + $0x1e4] ss:$8 sps:$4 sm:$0xff]  }
 0x91e   : > { %v6941_v36 = vrot.slane %v12061_v14, %v14360_v7  ;;  %v18573_v15 = vrot.slane %v12062_v49, %v14360_v7  ;;  %v18669_v61 = vrot.slane %v18567_v4, %v14360_v7  ;;  %v13504_v51 = vld [vmem:[%s20592_s12 + $0x224] ss:$8 sps:$4 sm:$0xff]   ;;  %v13502_v14 = vld [vmem:[%s20592_s12 + $0x220] ss:$8 sps:$4 sm:$0xff]   ;;  %v13507_v49 = vld [vmem:[%s20592_s12 + $0x234] ss:$8 sps:$4 sm:$0xff]  }
 0x91f   : > { %v13505_v4 = vld [vmem:[%s20592_s12 + $0x230] ss:$8 sps:$4 sm:$0xff]  }
 0x920   : > { %v6949_v63 = vcombine.high %v6941_v36, %v6941_v36  ;;  %v6950_v34 = vcombine.high %v18573_v15, %v18573_v15  ;;  %v6986_v12 = vpack.c.bf16 %v6941_v36, %v6941_v36  ;;  %v6967_v41 = vcombine.high %v18669_v61, %v18669_v61  ;;  %v13510_v36 = vld [vmem:[%s20592_s12 + $0x244] ss:$8 sps:$4 sm:$0xff]  }
 0x921   : > { %v6988_v52 = vpack.c.bf16 %v18573_v15, %v18573_v15  ;;  %v13508_v15 = vld [vmem:[%s20592_s12 + $0x240] ss:$8 sps:$4 sm:$0xff]  }
 0x922   : > { %v6987_v46 = vpack.c.bf16 %v6949_v63, %v6949_v63  ;;  %v6989_v1 = vpack.c.bf16 %v6950_v34, %v6950_v34  ;;  %v6991_v13 = vpack.c.bf16 %v6967_v41, %v6967_v41  ;;  %v13513_v63 = vld [vmem:[%s20592_s12 + $0x254] ss:$8 sps:$4 sm:$0xff]   ;;  %v13511_v34 = vld [vmem:[%s20592_s12 + $0x250] ss:$8 sps:$4 sm:$0xff]   ;;  %v13562_v41 = vld [vmem:[%s20592_s12 + $0x360] ss:$8 sps:$4 sm:$0xff]  }
 0x924   : > { %7903 = vmatprep.mubr.bf16.mxu0 %v6987_v46  ;;  %v13516_v46 = vld [vmem:[%s20592_s12 + $0x264] ss:$8 sps:$4 sm:$0xff]  }
 0x925   : > { %7904 = vmatmul.mubr.bf16.vlgmr.msra.gmra.mrb[16].mxu0 %v6986_v12  ;;  %v13519_v12 = vld [vmem:[%s20592_s12 + $0x274] ss:$8 sps:$4 sm:$0xff]  }
 0x926   : > { %7913 = vmatpush1.bf16.msra.mxu0 %v13448_v11  ;;  %7944 = vmatprep.mubr.bf16.mxu0 %v6989_v1  ;;  %v13514_v11 = vld [vmem:[%s20592_s12 + $0x260] ss:$8 sps:$4 sm:$0xff]   ;;  %v13522_v1 = vld [vmem:[%s20592_s12 + $0x284] ss:$8 sps:$4 sm:$0xff]  }
 0x927   : > { %7914 = vmatprep.subr.bf16.mxu0 %v13453_v42  ;;  %v13517_v42 = vld [vmem:[%s20592_s12 + $0x270] ss:$8 sps:$4 sm:$0xff]  }
 0x92a   : > { %7915 = vmatpush1.bf16.msra.mxu0 %v13451_v29  ;;  %v13520_v29 = vld [vmem:[%s20592_s12 + $0x280] ss:$8 sps:$4 sm:$0xff]  }
 0x92b   : > { %7916 = vmatprep.subr.bf16.mxu0 %v13456_v25  ;;  %v13525_v25 = vld [vmem:[%s20592_s12 + $0x294] ss:$8 sps:$4 sm:$0xff]  }
 0x92e   : > { %7917 = vmatpush1.bf16.msra.mxu0 %v13454_v26  ;;  %v13523_v26 = vld [vmem:[%s20592_s12 + $0x290] ss:$8 sps:$4 sm:$0xff]  }
 0x92f   : > { %7918 = vmatprep.subr.bf16.mxu0 %v13459_v39  ;;  %v13528_v39 = vld [vmem:[%s20592_s12 + $0x2a4] ss:$8 sps:$4 sm:$0xff]  }
 0x932   : > { %7919 = vmatpush1.bf16.msra.mxu0 %v13457_v47  ;;  %v13526_v47 = vld [vmem:[%s20592_s12 + $0x2a0] ss:$8 sps:$4 sm:$0xff]  }
 0x933   : > { %7920 = vmatprep.subr.bf16.mxu0 %v13462_v0  ;;  %v13531_v0 = vld [vmem:[%s20592_s12 + $0x2b4] ss:$8 sps:$4 sm:$0xff]  }
 0x936   : > { %7921 = vmatpush1.bf16.msra.mxu0 %v13460_v23  ;;  %v13529_v23 = vld [vmem:[%s20592_s12 + $0x2b0] ss:$8 sps:$4 sm:$0xff]  }
 0x937   : > { %7922 = vmatprep.subr.bf16.mxu0 %v13465_v43  ;;  %v13534_v43 = vld [vmem:[%s20592_s12 + $0x2c4] ss:$8 sps:$4 sm:$0xff]  }
 0x93a   : > { %7923 = vmatpush1.bf16.msra.mxu0 %v13463_v28  ;;  %v13532_v28 = vld [vmem:[%s20592_s12 + $0x2c0] ss:$8 sps:$4 sm:$0xff]  }
 0x93b   : > { %7924 = vmatprep.subr.bf16.mxu0 %v13468_v44  ;;  %v13537_v44 = vld [vmem:[%s20592_s12 + $0x2d4] ss:$8 sps:$4 sm:$0xff]  }
 0x93e   : > { %7925 = vmatpush1.bf16.msra.mxu0 %v13466_v35  ;;  %v13535_v35 = vld [vmem:[%s20592_s12 + $0x2d0] ss:$8 sps:$4 sm:$0xff]  }
 0x93f   : > { %7926 = vmatprep.subr.bf16.mxu0 %v13471_v5  ;;  %v13540_v5 = vld [vmem:[%s20592_s12 + $0x2e4] ss:$8 sps:$4 sm:$0xff]  }
 0x942   : > { %7927 = vmatpush1.bf16.msra.mxu0 %v13469_v48  ;;  %v13538_v48 = vld [vmem:[%s20592_s12 + $0x2e0] ss:$8 sps:$4 sm:$0xff]  }
 0x943   : > { %7928 = vmatprep.subr.bf16.mxu0 %v13474_v30  ;;  %v13543_v30 = vld [vmem:[%s20592_s12 + $0x2f4] ss:$8 sps:$4 sm:$0xff]  }
 0x946   : > { %7929 = vmatpush1.bf16.msra.mxu0 %v13472_v27  ;;  %v18773_v27 = vrot.slane %v18569_v2, %v14360_v7  ;;  %v6990_v2 = vpack.c.bf16 %v18669_v61, %v18669_v61  ;;  %v13561_v61 = vld [vmem:[%s20592_s12 + $0x354] ss:$8 sps:$4 sm:$0xff]  }
 0x947   : > { %7930 = vmatprep.subr.bf16.mxu0 %v13477_v58  ;;  %v13541_v58 = vld [vmem:[%s20592_s12 + $0x2f0] ss:$8 sps:$4 sm:$0xff]  }
 0x94a   : > { %7931 = vmatpush1.bf16.msra.mxu0 %v13475_v3  ;;  %v13546_v3 = vld [vmem:[%s20592_s12 + $0x304] ss:$8 sps:$4 sm:$0xff]  }
 0x94b   : > { %7932 = vmatprep.subr.bf16.mxu0 %v13480_v22  ;;  %v6968_v22 = vcombine.high %v18773_v27, %v18773_v27 }
 0x94e   : > { %7933 = vmatpush1.bf16.msra.mxu0 %v13478_v31  ;;  %v13544_v31 = vld [vmem:[%s20592_s12 + $0x300] ss:$8 sps:$4 sm:$0xff]  }
 0x94f   : > { %7934 = vmatprep.subr.bf16.mxu0 %v13483_v20  ;;  %v13549_v20 = vld [vmem:[%s20592_s12 + $0x314] ss:$8 sps:$4 sm:$0xff]  }
 0x952   : > { %7935 = vmatpush1.bf16.msra.mxu0 %v13481_v59  ;;  %v6993_v59 = vpack.c.bf16 %v6968_v22, %v6968_v22 }
 0x953   : > { %7936 = vmatprep.subr.bf16.mxu0 %v13486_v60  ;;  %v13547_v60 = vld [vmem:[%s20592_s12 + $0x310] ss:$8 sps:$4 sm:$0xff]  }
 0x956   : > { %7937 = vmatpush1.bf16.msra.mxu0 %v13484_v24  ;;  %v13552_v24 = vld [vmem:[%s20592_s12 + $0x324] ss:$8 sps:$4 sm:$0xff]  }
 0x957   : > { %7938 = vmatprep.subr.bf16.mxu0 %v13489_v6  ;;  %v13550_v6 = vld [vmem:[%s20592_s12 + $0x320] ss:$8 sps:$4 sm:$0xff]  }
 0x95a   : > { %7939 = vmatpush1.bf16.msra.mxu0 %v13487_v57  ;;  %v13555_v57 = vld [vmem:[%s20592_s12 + $0x334] ss:$8 sps:$4 sm:$0xff]  }
 0x95b   : > { %7940 = vmatprep.subr.bf16.mxu0 %v13492_v50  ;;  %v13553_v50 = vld [vmem:[%s20592_s12 + $0x330] ss:$8 sps:$4 sm:$0xff]  }
 0x95e   : > { %7941 = vmatpush1.bf16.msra.mxu0 %v13490_v17  ;;  %v13558_v17 = vld [vmem:[%s20592_s12 + $0x344] ss:$8 sps:$4 sm:$0xff]  }
 0x95f   : > { %7942 = vmatprep.subr.bf16.mxu0 %v13495_v19  ;;  %v13556_v19 = vld [vmem:[%s20592_s12 + $0x340] ss:$8 sps:$4 sm:$0xff]  }
 0x962   : > { %7943 = vmatpush1.bf16.msra.mxu0 %v13493_v32  ;;  %v13559_v32 = vld [vmem:[%s20592_s12 + $0x350] ss:$8 sps:$4 sm:$0xff]  }
 0x963   : > { %7953 = vmatprep.subr.bf16.mxu0 %v13498_v9  ;;  %v13564_v9 = vld [vmem:[%s20592_s12 + $0x364] ss:$8 sps:$4 sm:$0xff]  }
 0x965   : > { %7945 = vmatmul.mubr.bf16.vlgmr.msra.gmra.mrb[16].mxu0 %v6988_v52  ;;  %v13565_v52 = vld [vmem:[%s20592_s12 + $0x370] ss:$8 sps:$4 sm:$0xff]  }
 0x966   : > { %7954 = vmatpush1.bf16.msra.mxu0 %v13496_v54  ;;  %7985 = vmatprep.mubr.bf16.mxu0 %v6991_v13  ;;  %v13567_v54 = vld [vmem:[%s20592_s12 + $0x374] ss:$8 sps:$4 sm:$0xff]   ;;  %v13568_v13 = vld [vmem:[%s20592_s12 + $0x380] ss:$8 sps:$4 sm:$0xff]  }
 0x967   : > { %7955 = vmatprep.subr.bf16.mxu0 %v13501_v62  ;;  %v13570_v62 = vld [vmem:[%s20592_s12 + $0x384] ss:$8 sps:$4 sm:$0xff]  }
 0x96a   : > { %7956 = vmatpush1.bf16.msra.mxu0 %v13499_v21  ;;  %v13573_v21 = vld [vmem:[%s20592_s12 + $0x394] ss:$8 sps:$4 sm:$0xff]  }
 0x96b   : > { %7957 = vmatprep.subr.bf16.mxu0 %v13504_v51  ;;  %v13571_v51 = vld [vmem:[%s20592_s12 + $0x390] ss:$8 sps:$4 sm:$0xff]  }
 0x96e   : > { %7958 = vmatpush1.bf16.msra.mxu0 %v13502_v14  ;;  %v13576_v14 = vld [vmem:[%s20592_s12 + $0x3a4] ss:$8 sps:$4 sm:$0xff]  }
 0x96f   : > { %7959 = vmatprep.subr.bf16.mxu0 %v13507_v49  ;;  %v13574_v49 = vld [vmem:[%s20592_s12 + $0x3a0] ss:$8 sps:$4 sm:$0xff]  }
 0x972   : > { %7960 = vmatpush1.bf16.msra.mxu0 %v13505_v4  ;;  %v13579_v4 = vld [vmem:[%s20592_s12 + $0x3b4] ss:$8 sps:$4 sm:$0xff]  }
 0x973   : > { %7961 = vmatprep.subr.bf16.mxu0 %v13510_v36  ;;  %v13577_v36 = vld [vmem:[%s20592_s12 + $0x3b0] ss:$8 sps:$4 sm:$0xff]  }
 0x976   : > { %7962 = vmatpush1.bf16.msra.mxu0 %v13508_v15  ;;  %v13582_v15 = vld [vmem:[%s20592_s12 + $0x3c4] ss:$8 sps:$4 sm:$0xff]  }
 0x977   : > { %7963 = vmatprep.subr.bf16.mxu0 %v13513_v63  ;;  %v13580_v63 = vld [vmem:[%s20592_s12 + $0x3c0] ss:$8 sps:$4 sm:$0xff]  }
 0x97a   : > { %7964 = vmatpush1.bf16.msra.mxu0 %v13511_v34  ;;  %v13585_v34 = vld [vmem:[%s20592_s12 + $0x3d4] ss:$8 sps:$4 sm:$0xff]  }
 0x97b   : > { %7965 = vmatprep.subr.bf16.mxu0 %v13516_v46  ;;  %v13583_v46 = vld [vmem:[%s20592_s12 + $0x3d0] ss:$8 sps:$4 sm:$0xff]  }
 0x97e   : > { %7966 = vmatpush1.bf16.msra.mxu0 %v13514_v11  ;;  %v13588_v11 = vld [vmem:[%s20592_s12 + $0x3e4] ss:$8 sps:$4 sm:$0xff]  }
 0x97f   : > { %7967 = vmatprep.subr.bf16.mxu0 %v13519_v12  ;;  %v13586_v12 = vld [vmem:[%s20592_s12 + $0x3e0] ss:$8 sps:$4 sm:$0xff]  }
 0x982   : > { %7968 = vmatpush1.bf16.msra.mxu0 %v13517_v42  ;;  %v13591_v42 = vld [vmem:[%s20592_s12 + $0x3f4] ss:$8 sps:$4 sm:$0xff]  }
 0x983   : > { %7969 = vmatprep.subr.bf16.mxu0 %v13522_v1  ;;  %v13589_v1 = vld [vmem:[%s20592_s12 + $0x3f0] ss:$8 sps:$4 sm:$0xff]  }
 0x986   : > { %7970 = vmatpush1.bf16.msra.mxu0 %v13520_v29  ;;  %v13594_v29 = vld [vmem:[%s20592_s12 + $0x404] ss:$8 sps:$4 sm:$0xff]  }
 0x987   : > { %7971 = vmatprep.subr.bf16.mxu0 %v13525_v25  ;;  %v13592_v25 = vld [vmem:[%s20592_s12 + $0x400] ss:$8 sps:$4 sm:$0xff]  }
 0x98a   : > { %7972 = vmatpush1.bf16.msra.mxu0 %v13523_v26  ;;  %v6992_v26 = vpack.c.bf16 %v18773_v27, %v18773_v27  ;;  %v6932_v27 = vrot.slane %v6854_v37, %v14360_v7 }
 0x98b   : > { %7973 = vmatprep.subr.bf16.mxu0 %v13528_v39  ;;  %v13597_v39 = vld [vmem:[%s20592_s12 + $0x414] ss:$8 sps:$4 sm:$0xff]  }
 0x98e   : > { %7974 = vmatpush1.bf16.msra.mxu0 %v13526_v47  ;;  %v13595_v47 = vld [vmem:[%s20592_s12 + $0x410] ss:$8 sps:$4 sm:$0xff]  }
 0x98f   : > { %7975 = vmatprep.subr.bf16.mxu0 %v13531_v0  ;;  %v13600_v0 = vld [vmem:[%s20592_s12 + $0x424] ss:$8 sps:$4 sm:$0xff]  }
 0x992   : > { %7976 = vmatpush1.bf16.msra.mxu0 %v13529_v23  ;;  %v13598_v23 = vld [vmem:[%s20592_s12 + $0x420] ss:$8 sps:$4 sm:$0xff]  }
 0x993   : > { %7977 = vmatprep.subr.bf16.mxu0 %v13534_v43  ;;  %v13603_v43 = vld [vmem:[%s20592_s12 + $0x434] ss:$8 sps:$4 sm:$0xff]  }
 0x996   : > { %7978 = vmatpush1.bf16.msra.mxu0 %v13532_v28  ;;  %v13606_v28 = vld [vmem:[%s20592_s12 + $0x444] ss:$8 sps:$4 sm:$0xff]  }
 0x997   : > { %7979 = vmatprep.subr.bf16.mxu0 %v13537_v44  ;;  %v13604_v44 = vld [vmem:[%s20592_s12 + $0x440] ss:$8 sps:$4 sm:$0xff]  }
 0x99a   : > { %7980 = vmatpush1.bf16.msra.mxu0 %v13535_v35  ;;  %v13609_v35 = vld [vmem:[%s20592_s12 + $0x454] ss:$8 sps:$4 sm:$0xff]  }
 0x99b   : > { %7981 = vmatprep.subr.bf16.mxu0 %v13540_v5  ;;  %v13607_v5 = vld [vmem:[%s20592_s12 + $0x450] ss:$8 sps:$4 sm:$0xff]  }
 0x99e   : > { %7982 = vmatpush1.bf16.msra.mxu0 %v13538_v48  ;;  %v13612_v48 = vld [vmem:[%s20592_s12 + $0x464] ss:$8 sps:$4 sm:$0xff]  }
 0x99f   : > { %7983 = vmatprep.subr.bf16.mxu0 %v13543_v30  ;;  %v6899_v30 = vrot.slane %v6858_v40, %v14360_v7  ;;  %v14016_v40 = vmov 1966171168  }
 0x9a1   : > { %v6969_v22 = vcombine.low %v6899_v30, %v6932_v27  ;;  %v13624_v30 = vld [vmem:[%s20594_s14 + $0x60] sm:$0xff]  }
 0x9a2   : > { %7984 = vmatpush1.bf16.msra.mxu0 %v13541_v58  ;;  %v13610_v58 = vld [vmem:[%s20592_s12 + $0x460] ss:$8 sps:$4 sm:$0xff]  }
 0x9a3   : > { %7994 = vmatprep.subr.bf16.mxu0 %v13546_v3  ;;  %v13615_v3 = vld [vmem:[%s20592_s12 + $0x474] ss:$8 sps:$4 sm:$0xff]   ;;  %v6976_v55 = vrot.slane %v6969_v22, %v14360_v7  ;;  %v13625_v27 = vld [vmem:[%s20594_s14 + $0x20] sm:$0xff]  }
 0x9a5   : > { %7986 = vmatmul.mubr.bf16.vlgmr.msra.gmra.mrb[16].mxu0 %v6990_v2  ;;  %v6994_v37 = vpack.c.bf16 %v6976_v55, %v6976_v55  ;;  %v7139_v2 = vld [vmem:[#allocation8] sm:$0x3] }
 0x9a6   : > { %7995 = vmatpush1.bf16.msra.mxu0 %v13544_v31  ;;  %8026 = vmatprep.mubr.bf16.mxu0 %v6993_v59  ;;  %v8080_v31 = vunpack.c.l.s4 %v14016_v40 }
 0x9a7   : > { %7996 = vmatprep.subr.bf16.mxu0 %v13549_v20  ;;  %v7144_v20 = vrot.slane %v7139_v2, %v14363_v8 }
 0x9a8   : > { %v8081_v59 = vunpack.c.0.s8 %v8080_v31  ;;  %v13626_v31 = vld [vmem:[%s20594_s14 + $0x68] sm:$0xff]  }
 0x9aa   : > { %7997 = vmatpush1.bf16.msra.mxu0 %v13547_v60  ;;  %v7148_v60 = vrot.slane %v7139_v2, %v14386_v18  ;;  %v13627_v2 = vld [vmem:[%s20594_s14 + $0x28] sm:$0xff]  }
 0x9ab   : > { %7998 = vmatprep.subr.bf16.mxu0 %v13552_v24 }
 0x9ae   : > { %7999 = vmatpush1.bf16.msra.mxu0 %v13550_v6 }
 0x9af   : > { %8000 = vmatprep.subr.bf16.mxu0 %v13555_v57  ;;  %v18939_v57 = vsub.s32 %v8081_v59, %v21412_v53 }
 0x9b2   : > { %8001 = vmatpush1.bf16.msra.mxu0 %v13553_v50 }
 0x9b3   : > { %8002 = vmatprep.subr.bf16.mxu0 %v13558_v17 }
 0x9b6   : > { %8003 = vmatpush1.bf16.msra.mxu0 %v13556_v19 }
 0x9b7   : > { %8004 = vmatprep.subr.bf16.mxu0 %v13561_v61 }
 0x9ba   : > { %8005 = vmatpush1.bf16.msra.mxu0 %v13559_v32 }
 0x9bb   : > { %8006 = vmatprep.subr.bf16.mxu0 %v13564_v9 }
 0x9be   : > { %8007 = vmatpush1.bf16.msra.mxu0 %v13562_v41 }
 0x9bf   : > { %8008 = vmatprep.subr.bf16.mxu0 %v13567_v54 }
 0x9c2   : > { %8009 = vmatpush1.bf16.msra.mxu0 %v13565_v52 }
 0x9c3   : > { %8010 = vmatprep.subr.bf16.mxu0 %v13570_v62 }
 0x9c6   : > { %8011 = vmatpush1.bf16.msra.mxu0 %v13568_v13 }
 0x9c7   : > { %8012 = vmatprep.subr.bf16.mxu0 %v13573_v21 }
 0x9ca   : > { %8013 = vmatpush1.bf16.msra.mxu0 %v13571_v51 }
 0x9cb   : > { %8014 = vmatprep.subr.bf16.mxu0 %v13576_v14 }
 0x9ce   : > { %8015 = vmatpush1.bf16.msra.mxu0 %v13574_v49 }
 0x9cf   : > { %8016 = vmatprep.subr.bf16.mxu0 %v13579_v4 }
 0x9d2   : > { %8017 = vmatpush1.bf16.msra.mxu0 %v13577_v36 }
 0x9d3   : > { %8018 = vmatprep.subr.bf16.mxu0 %v13582_v15 }
 0x9d6   : > { %8019 = vmatpush1.bf16.msra.mxu0 %v13580_v63 }
 0x9d7   : > { %8020 = vmatprep.subr.bf16.mxu0 %v13585_v34 }
 0x9da   : > { %8021 = vmatpush1.bf16.msra.mxu0 %v13583_v46 }
 0x9db   : > { %8022 = vmatprep.subr.bf16.mxu0 %v13588_v11 }
 0x9de   : > { %8023 = vmatpush1.bf16.msra.mxu0 %v13586_v12 }
 0x9df   : > { %8024 = vmatprep.subr.bf16.mxu0 %v13591_v42 }
 0x9e2   : > { %8025 = vmatpush1.bf16.msra.mxu0 %v13589_v1  ;;  %v8259_v1 = vrot.slane %v18109_v10, 1 }
 0x9e3   : > { %8035 = vmatprep.subr.bf16.mxu0 %v13594_v29  ;;  %v13616_v29 = vld [vmem:[%s20594_s14 + $0x40] sm:$0xff]  }
 0x9e4   : > { %12465 = vmatprep.subr.bf16.mxu1 %v13616_v29 }
 0x9e5   : > { %8027 = vmatmul.mubr.bf16.vlgmr.msra.gmra.mrb[16].mxu0 %v6992_v26  ;;  %v13618_v26 = vld [vmem:[%s20594_s14 + $0x48] sm:$0xff]  }
 0x9e6   : > { %8036 = vmatpush1.bf16.msra.mxu0 %v13592_v25  ;;  %8067 = vmatprep.mubr.bf16.mxu0 %v14015_v38  ;;  %v13601_v38 = vld [vmem:[%s20592_s12 + $0x430] ss:$8 sps:$4 sm:$0xff]   ;;  %v13617_v25 = vld [vmem:[%s20594_s14] sm:$0xff]  }
 0x9e7   : > { %8037 = vmatprep.subr.bf16.mxu0 %v13597_v39  ;;  %12466 = vmatpush3.bf16.msra.mxu1 %v13617_v25  ;;  %v13619_v39 = vld [vmem:[%s20594_s14 + $0x8] sm:$0xff]  }
 0x9e8   : > { %12467 = vmatprep.subr.bf16.mxu1 %v13618_v26 }
 0x9ea   : > { %8038 = vmatpush1.bf16.msra.mxu0 %v13595_v47  ;;  %v13620_v47 = vld [vmem:[%s20594_s14 + $0x50] sm:$0xff]  }
 0x9eb   : > { %8039 = vmatprep.subr.bf16.mxu0 %v13600_v0  ;;  %12468 = vmatpush3.bf16.msra.mxu1 %v13619_v39  ;;  %v13621_v0 = vld [vmem:[%s20594_s14 + $0x10] sm:$0xff]  }
 0x9ec   : > { %12469 = vmatprep.subr.bf16.mxu1 %v13620_v47 }
 0x9ee   : > { %8040 = vmatpush1.bf16.msra.mxu0 %v13598_v23  ;;  %v13622_v23 = vld [vmem:[%s20594_s14 + $0x58] sm:$0xff]  }
 0x9ef   : > { %8041 = vmatprep.subr.bf16.mxu0 %v13603_v43  ;;  %12470 = vmatpush3.bf16.msra.mxu1 %v13621_v0  ;;  %v13623_v43 = vld [vmem:[%s20594_s14 + $0x18] sm:$0xff]  }
 0x9f0   : > { %12471 = vmatprep.subr.bf16.mxu1 %v13622_v23 }
 0x9f2   : > { %8042 = vmatpush1.bf16.msra.mxu0 %v13601_v38 }
 0x9f3   : > { %8043 = vmatprep.subr.bf16.mxu0 %v13606_v28  ;;  %12472 = vmatpush3.bf16.msra.mxu1 %v13623_v43 }
 0x9f4   : > { %12473 = vmatprep.subr.bf16.mxu1 %v13624_v30 }
 0x9f6   : > { %8044 = vmatpush1.bf16.msra.mxu0 %v13604_v44 }
 0x9f7   : > { %8045 = vmatprep.subr.bf16.mxu0 %v13609_v35  ;;  %12474 = vmatpush3.bf16.msra.mxu1 %v13625_v27 }
 0x9f8   : > { %12475 = vmatprep.subr.bf16.mxu1 %v13626_v31 }
 0x9fa   : > { %8046 = vmatpush1.bf16.msra.mxu0 %v13607_v5 }
 0x9fb   : > { %8047 = vmatprep.subr.bf16.mxu0 %v13612_v48  ;;  %12476 = vmatpush3.bf16.msra.mxu1 %v13627_v2 }
 0x9fe   : > { %8048 = vmatpush1.bf16.msra.mxu0 %v13610_v58 }
 0x9ff   : > { %8049 = vmatprep.subr.bf16.mxu0 %v13615_v3 }
 0xa02   : > { %8050 = vmatpush1.bf16.msra.mxu0 %v13613_v33 }
 0xa05   : > { %8068 = vmatmul.mubr.bf16.vlgmr.msra.gmra.mrb[16].mxu0 %v6994_v37 }
 0xad8   : > { %v8069_v24 = vpop.f32.mrb[16].mxu0 }
 0xad9   : > { %v12675_v6 = vadd.f32 %v8069_v24, %v7144_v20  ;;  %v8071_v50 = vpop.f32.mrb[17].mxu0 }
 0xada   : > { %v12676_v17 = vadd.f32 %v8071_v50, %v7148_v60  ;;  %v8073_v19 = vpop.f32.mrb[18].mxu0 }
 0xadb   : > { %v8076_v61 = vmax.f32 %v12675_v6, 0.0  ;;  %v8074_v32 = vpop.f32.mrb[19].mxu0 }
 0xadc   : > { %v8077_v9 = vmax.f32 %v12676_v17, 0.0  ;;  %v13628_v32 = vld [vmem:[%s20594_s14 + $0x70] sm:$0xff]  }
 0xadd   : > { %v8085_v41 = vrot.slane %v8076_v61, %v18939_v57  ;;  %12477 = vmatprep.subr.bf16.mxu1 %v13628_v32  ;;  %v13635_v32 = vld [vmem:[%s20594_s14 + $0x88] sm:$0xff]  }
 0xade   : > { %v8114_v54 = vrot.slane %v8077_v9, %v18939_v57  ;;  %v13629_v9 = vld [vmem:[%s20594_s14 + $0x30] sm:$0xff]  }
 0xadf   : > { %v8086_v52 = vcombine.high %v8085_v41, %v8085_v41  ;;  %v8093_v62 = vrot.slane %v8085_v41, %v18939_v57  ;;  %12478 = vmatpush3.bf16.msra.mxu1 %v13629_v9 }
 0xae0   : > { %v8115_v13 = vcombine.high %v8114_v54, %v8114_v54  ;;  %v8122_v21 = vrot.slane %v8114_v54, %v18939_v57 }
 0xae1   : > { %v8100_v18 = vrot.slane %v8086_v52, %v18939_v57  ;;  %v8139_v53 = vrot.slane %v8093_v62, %v14363_v8  ;;  %v8101_v4 = vcombine.high %v8093_v62, %v8093_v62 }
 0xae2   : > { %v8129_v51 = vrot.slane %v8115_v13, %v18939_v57  ;;  %v8171_v49 = vrot.slane %v8122_v21, %v14363_v8  ;;  %v18956_v34 = vcombine.high %v8122_v21, %v8122_v21 }
 0xae3   : > { %8152 = vrot.lane.b32.xlu0 %v8139_v53, %s14012_s21  ;;  %v8143_v14 = vrot.slane %v8100_v18, %v14363_v8  ;;  %v8102_v15 = vcombine.high %v8100_v18, %v8100_v18  ;;  %v8147_v63 = vrot.slane %v8101_v4, %v14363_v8 }
 0xae4   : > { %v8175_v36 = vrot.slane %v8129_v51, %v14363_v8  ;;  %v18960_v11 = vcombine.high %v8129_v51, %v8129_v51  ;;  %v8179_v12 = vrot.slane %v18956_v34, %v14363_v8 }
 0xae5   : > { %8154 = vrot.lane.b32.xlu1 %v8143_v14, %s14012_s21  ;;  %v8151_v46 = vrot.slane %v8102_v15, %v14363_v8 }
 0xae6   : > { %v8183_v42 = vrot.slane %v18960_v11, %v14363_v8 }
 0xae7   : > { %8184 = vrot.lane.b32.xlu0 %v8171_v49, %s14012_s21 }
 0xae9   : > { %8186 = vrot.lane.b32.xlu1 %v8175_v36, %s14012_s21  ;;  %v13631_v36 = vld [vmem:[%s20594_s14 + $0x38] sm:$0xff]  }
 0xaeb   : > { %8156 = vrot.lane.b32.xlu0 %v8147_v63, %s14012_s21 }
 0xaed   : > { %8158 = vrot.lane.b32.xlu1 %v8151_v46, %s14012_s21 }
 0xaef   : > { %8188 = vrot.lane.b32.xlu0 %v8179_v12, %s14012_s21 }
 0xaf1   : > { %8190 = vrot.lane.b32.xlu1 %v8183_v42, %s14012_s21 }
 0xaf3   : > { %8263 = vrot.lane.b32.xlu0 %v8259_v1, %s14012_s21 }
 0xb55   : > { %v8153_v38 = vpop.permute.xlu0 %8152 }
 0xb56   : > { %v8164_v44 = vsel %vm21417_vm12, %v8093_v62, %v8153_v38  ;;  %vm21426_vm12 = vmmov %vm21421_vm0 }
 0xb57   : > { %v8155_v28 = vpop.permute.xlu1 %8154 }
 0xb58   : > { %v8165_v35 = vsel %vm21418_vm13, %v8100_v18, %v8155_v28  ;;  %vm21427_vm13 = vmmov %vm21421_vm0  ;;  %v8275_v28 = vrot.slane %v18109_v10, 2 }
 0xb59   : > { %v8208_v5 = vcombine.low %v8164_v44, %v8165_v35  ;;  %v8185_v48 = vpop.permute.xlu0 %8184 }
 0xb5a   : > { %v8196_v22 = vsel %vm21419_vm6, %v8122_v21, %v8185_v48  ;;  %vm21428_vm6 = vmmov %vm21421_vm0 }
 0xb5b   : > { %v8215_v58 = vrot.slane %v8208_v5, %v14360_v7  ;;  %v8187_v3 = vpop.permute.xlu1 %8186 }
 0xb5c   : > { %v8197_v33 = vsel %vm21420_vm7, %v8129_v51, %v8187_v3  ;;  %vm21431_vm7 = vmmov %vm21421_vm0 }
 0xb5d   : > { %v8240_v55 = vrot.slane %v8215_v58, 7  ;;  %v8216_v37 = vcombine.low %v8196_v22, %v8197_v33  ;;  %v8157_v40 = vpop.permute.xlu0 %8156 }
 0xb5e   : > { %v8166_v24 = vsel %vm21422_vm3, %v8101_v4, %v8157_v40  ;;  %v13630_v4 = vld [vmem:[%s20594_s14 + $0x78] sm:$0xff]   ;;  %vm21432_vm3 = vmmov %vm21421_vm0 }
 0xb5f   : > { %v8223_v20 = vrot.slane %v8216_v37, %v14360_v7  ;;  %v8159_v59 = vpop.permute.xlu1 %8158  ;;  %v8248_v60 = vsel %vm21421_vm0, 0.0, %v8240_v55  ;;  %12479 = vmatprep.subr.bf16.mxu1 %v13630_v4  ;;  %v13644_v4 = vld [vmem:[%s20594_s14 + $0xf0] sm:$0xff]  }
 0xb60   : > { %v8167_v6 = vsel %vm21423_vm9, %v8102_v15, %v8159_v59  ;;  %v19017_v50 = vsel %vm5156_vm5, %v8248_v60, 0.0  ;;  %12480 = vmatpush3.bf16.msra.mxu1 %v13631_v36  ;;  %v13633_v60 = vld [vmem:[%s20594_s14 + $0x80] sm:$0xff]   ;;  %vm21433_vm9 = vmmov %vm21421_vm0 }
 0xb61   : > { %v8241_v17 = vrot.slane %v8223_v20, 7  ;;  %v8224_v19 = vcombine.low %v8166_v24, %v8167_v6  ;;  %v8189_v61 = vpop.permute.xlu0 %8188  ;;  %8284 = vrot.lane.b32.xlu0 %v19017_v50, %s14012_s21  ;;  %v8260_v14 = vrot.slane %v19017_v50, 1  ;;  %v8276_v29 = vrot.slane %v19017_v50, 2 }
 0xb62   : > { %v8198_v62 = vsel %vm21425_vm11, %v18956_v34, %v8189_v61  ;;  %v13632_v34 = vld [vmem:[%s20594_s14 + $0xc0] sm:$0xff]   ;;  %vm21435_vm11 = vmmov %vm21421_vm0 }
 0xb63   : > { %v8231_v41 = vrot.slane %v8224_v19, %v14360_v7  ;;  %v8191_v54 = vpop.permute.xlu1 %8190  ;;  %v8249_v52 = vsel %vm21424_vm10, 0.0, %v8241_v17  ;;  %12487 = vmatprep.subr.bf16.mxu1 %v13632_v34  ;;  %v13634_v17 = vld [vmem:[%s20594_s14 + $0xc8] sm:$0xff]   ;;  %v13645_v34 = vld [vmem:[%s20594_s14 + $0xb0] sm:$0xff]   ;;  %vm21434_vm10 = vmmov %vm21421_vm0 }
 0xb64   : > { %v8199_v13 = vsel %vm21426_vm12, %v18960_v11, %v8191_v54  ;;  %v19034_v18 = vsel %vm5156_vm5, %v8249_v52, 0.0  ;;  %v13637_v54 = vld [vmem:[%s20594_s14 + $0x90] sm:$0xff]   ;;  %v13638_v52 = vld [vmem:[%s20594_s14 + $0xd8] sm:$0xff]   ;;  %vm21436_vm12 = vmmov %vm21421_vm0 }
 0xb65   : > { %v8242_v21 = vrot.slane %v8231_v41, 7  ;;  %v8232_v53 = vcombine.low %v8198_v62, %v8199_v13  ;;  %8286 = vrot.lane.b32.xlu1 %v19034_v18, %s14012_s21  ;;  %v8261_v46 = vrot.slane %v19034_v18, 1  ;;  %v19069_v42 = vrot.slane %v19034_v18, 2  ;;  %v8264_v47 = vpop.permute.xlu0 %8263  ;;  %v13636_v41 = vld [vmem:[%s20594_s14 + $0xd0] sm:$0xff]   ;;  %v13639_v62 = vld [vmem:[%s20594_s14 + $0x98] sm:$0xff]   ;;  %v13640_v13 = vld [vmem:[%s20594_s14 + $0xe0] sm:$0xff]  }
 0xb66   : > { %v8317_v40 = vsel %vm4734_vm15, %v18109_v10, %v8264_v47 }
 0xb67   : > { %v8239_v51 = vrot.slane %v8232_v53, %v14360_v7  ;;  %v8250_v49 = vsel %vm21427_vm13, 0.0, %v8242_v21  ;;  %v13641_v21 = vld [vmem:[%s20594_s14 + $0xa0] sm:$0xff]   ;;  %vm21437_vm13 = vmmov %vm21421_vm0 }
 0xb68   : > { %v19048_v15 = vsel %vm5156_vm5, %v8250_v49, 0.0  ;;  %v13643_v49 = vld [vmem:[%s20594_s14 + $0xa8] sm:$0xff]  }
 0xb69   : > { %v8243_v63 = vrot.slane %v8239_v51, 7  ;;  %8265 = vrot.lane.b32.xlu1 %v8260_v14, %s14012_s21  ;;  %8288 = vrot.lane.b32.xlu0 %v19048_v15, %s14012_s21  ;;  %v8262_v1 = vrot.slane %v19048_v15, 1  ;;  %v19084_v26 = vrot.slane %v19048_v15, 2  ;;  %v13642_v51 = vld [vmem:[%s20594_s14 + $0xe8] sm:$0xff]  }
 0xb6b   : > { %v8251_v11 = vsel %vm21428_vm6, 0.0, %v8243_v63  ;;  %vm21438_vm6 = vmmov %vm21421_vm0 }
 0xb6c   : > { %v19061_v12 = vsel %vm5156_vm5, %v8251_v11, 0.0  ;;  %v13646_v11 = vld [vmem:[%s20594_s14 + $0xf8] sm:$0xff]   ;;  %vm21429_vm5 = vmmov %vm21421_vm0 }
 0xb6d   : > { %8267 = vrot.lane.b32.xlu0 %v8261_v46, %s14012_s21  ;;  %8290 = vrot.lane.b32.xlu1 %v19061_v12, %s14012_s21  ;;  %v8296_v25 = vrot.slane %v19061_v12, 1  ;;  %v8301_v39 = vrot.slane %v19061_v12, 2 }
 0xb71   : > { %8304 = vrot.lane.b32.xlu0 %v19069_v42, %s14012_s21  ;;  %8269 = vrot.lane.b32.xlu1 %v8262_v1, %s14012_s21 }
 0xb75   : > { %8302 = vrot.lane.b32.xlu1 %v8276_v29, %s14012_s21  ;;  %8314 = vrot.lane.b32.xlu0 %v8296_v25, %s14012_s21 }
 0xb79   : > { %8306 = vrot.lane.b32.xlu1 %v19084_v26, %s14012_s21  ;;  %8308 = vrot.lane.b32.xlu0 %v8301_v39, %s14012_s21 }
 0xbd3   : > { %v8285_v0 = vpop.permute.xlu0 %8284 }
 0xbd4   : > { %v8321_v48 = vsel %vm4734_vm15, %v8275_v28, %v8285_v0 }
 0xbd7   : > { %v8287_v23 = vpop.permute.xlu1 %8286 }
 0xbd8   : > { %v8322_v44 = vsel %vm4734_vm15, %v8276_v29, %v8287_v23  ;;  %v13647_v23 = vld [vmem:[%s20594_s14 + $0xb8] sm:$0xff]  }
 0xbd9   : > { %v12210_v58 = vcombine.low %v8321_v48, %v8322_v44  ;;  %v8355_v44 = vcombine.low %v19069_v42, %v19084_v26 }
 0xbdb   : > { %v8289_v43 = vpop.permute.xlu0 %8288  ;;  %v8266_v38 = vpop.permute.xlu1 %8265 }
 0xbdc   : > { %v8323_v30 = vsel %vm4734_vm15, %v19069_v42, %v8289_v43  ;;  %v8318_v22 = vsel %vm4734_vm15, %v19017_v50, %v8266_v38 }
 0xbdd   : > { %v12209_v20 = vcombine.low %v8317_v40, %v8318_v22  ;;  %v12217_v22 = vld [vmem:[#allocation10] ss:$0 sm:$0xff] }
 0xbdf   : > { %v8268_v35 = vpop.permute.xlu0 %8267  ;;  %v8291_v5 = vpop.permute.xlu1 %8290 }
 0xbe0   : > { %v8324_v27 = vsel %vm4734_vm15, %v19084_v26, %v8291_v5  ;;  %v8319_v31 = vsel %vm4734_vm15, %v19034_v18, %v8268_v35  ;;  %v13650_v18 = vld [vmem:[%s20594_s14 + $0x110] sm:$0xff]  }
 0xbe1   : > { %v12214_v3 = vcombine.low %v8323_v30, %v8324_v27 }
 0xbe3   : > { %v8305_v33 = vpop.permute.xlu0 %8304  ;;  %v8270_v55 = vpop.permute.xlu1 %8269  ;;  %v8372_v37 = vpack.c.bf16 %v12214_v3, %v12210_v58 }
 0xbe4   : > { %v8320_v2 = vsel %vm4734_vm15, %v19048_v15, %v8270_v55  ;;  %v8326_v38 = vsel %vm4734_vm15, %v8261_v46, %v8305_v33  ;;  %v13648_v15 = vld [vmem:[%s20594_s14 + $0x100] sm:$0xff]   ;;  %v13651_v46 = vld [vmem:[%s20594_s14 + $0x118] sm:$0xff]  }
 0xbe5   : > { %v12212_v59 = vcombine.low %v8319_v31, %v8320_v2  ;;  %8706 = vmatprep.mubr.bf16.mxu1 %v8372_v37 }
 0xbe7   : > { %v8371_v24 = vpack.c.bf16 %v12212_v59, %v12209_v20  ;;  %v8315_v6 = vpop.permute.xlu0 %8314  ;;  %v8303_v53 = vpop.permute.xlu1 %8302 }
 0xbe8   : > { %v8329_v19 = vsel %vm4734_vm15, %v19061_v12, %v8315_v6  ;;  %v8325_v0 = vsel %vm4734_vm15, %v8260_v14, %v8303_v53  ;;  %v13649_v14 = vld [vmem:[%s20594_s14 + $0x108] sm:$0xff]  }
 0xbe9   : > { %v12216_v61 = vcombine.low %v8329_v19, %v8317_v40  ;;  %8707 = vmatmul.mubr.bf16.vlgmr.msra.gmra.mrb[28].mxu1 %v8371_v24 }
 0xbea   : > { %12488 = vmatpush3.bf16.msra.mxu1 %v13633_v60 }
 0xbeb   : > { %12489 = vmatprep.subr.bf16.mxu1 %v13634_v17  ;;  %v8374_v9 = vpack.c.bf16 %v12216_v61, %v12212_v59  ;;  %v8309_v36 = vpop.permute.xlu0 %8308  ;;  %v8307_v63 = vpop.permute.xlu1 %8306 }
 0xbec   : > { %v8328_v29 = vsel %vm4734_vm15, %v8296_v25, %v8309_v36  ;;  %v8327_v47 = vsel %vm4734_vm15, %v8262_v1, %v8307_v63  ;;  %v12211_v25 = vcombine.low %v8325_v0, %v8326_v38  ;;  %v8360_v1 = vcombine.low %v8301_v39, %v8275_v28 }
 0xbed   : > { %8747 = vmatprep.mubr.bf16.mxu1 %v8374_v9  ;;  %v12215_v43 = vcombine.low %v8327_v47, %v8328_v29 }
 0xbee   : > { %12490 = vmatpush3.bf16.msra.mxu1 %v13635_v32  ;;  %v8375_v35 = vpack.c.bf16 %v8360_v1, %v8355_v44 }
 0xbef   : > { %12491 = vmatprep.subr.bf16.mxu1 %v13636_v41  ;;  %v8373_v50 = vpack.c.bf16 %v12215_v43, %v12211_v25 }
 0xbf2   : > { %12492 = vmatpush3.bf16.msra.mxu1 %v13637_v54 }
 0xbf3   : > { %12493 = vmatprep.subr.bf16.mxu1 %v13638_v52 }
 0xbf6   : > { %12494 = vmatpush3.bf16.msra.mxu1 %v13639_v62 }
 0xbf7   : > { %12495 = vmatprep.subr.bf16.mxu1 %v13640_v13 }
 0xbfa   : > { %12496 = vmatpush3.bf16.msra.mxu1 %v13641_v21 }
 0xbfb   : > { %12497 = vmatprep.subr.bf16.mxu1 %v13642_v51 }
 0xbfe   : > { %12498 = vmatpush3.bf16.msra.mxu1 %v13643_v49 }
 0xbff   : > { %12499 = vmatprep.subr.bf16.mxu1 %v13644_v4 }
 0xc02   : > { %12500 = vmatpush3.bf16.msra.mxu1 %v13645_v34 }
 0xc03   : > { %12501 = vmatprep.subr.bf16.mxu1 %v13646_v11 }
 0xc06   : > { %12502 = vmatpush3.bf16.msra.mxu1 %v13647_v23 }
 0xc07   : > { %12650 = vmatprep.subr.bf16.mxu1 %v21410_v56 }
 0xc09   : > { %8748 = vmatmul.mubr.bf16.vlgmr.msra.gmra.mrb[32].mxu1 %v8373_v50 }
 0xc0a   : > { %12651 = vmatpush3.bf16.msra.mxu1 %v13648_v15  ;;  %12658 = vmatprep.mubr.msk.bf16.mxu1 %vm14014_vm2, %v21410_v56  ;;  %vm21430_vm2 = vmmov %vm21421_vm0 }
 0xc0b   : > { %12652 = vmatprep.subr.bf16.mxu1 %v21410_v56 }
 0xc0e   : > { %12653 = vmatpush3.bf16.msra.mxu1 %v13649_v14 }
 0xc0f   : > { %12654 = vmatprep.subr.bf16.mxu1 %v21410_v56 }
 0xc12   : > { %12655 = vmatpush3.bf16.msra.mxu1 %v13650_v18 }
 0xc13   : > { %12656 = vmatprep.subr.bf16.mxu1 %v21410_v56 }
 0xc16   : > { %12657 = vmatpush3.bf16.msra.mxu1 %v13651_v46 }
 0xc19   : > { %12659 = vmatmul.mubr.msk.bf16.vlgmr.msra.gmra.mrb[36].mxu1 %vm4734_vm15, %v8375_v35 }
 0xcbc   : > { %v12481_v5 = vpop.f32.mrb[28].mxu1 }
 0xcbd   : > { %v12482_v48 = vpop.f32.mrb[29].mxu1 }
 0xcbe   : > { %v12483_v30 = vadd.f32 %v12482_v48, %v12481_v5  ;;  %v12484_v27 = vpop.f32.mrb[30].mxu1 }
 0xcbf   : > { %v12485_v58 = vpop.f32.mrb[31].mxu1 }
 0xcc0   : > { %v12486_v3 = vadd.f32 %v12485_v58, %v12484_v27  ;;  %v8709_v12 = vadd.f32 %v12483_v30, %v12217_v22 }
 0xcc2   : > { %v8712_v55 = vadd.f32 %v12486_v3, %v12217_v22 }
 0xcdc   : > { %v12503_v10 = vpop.f32.mrb[32].mxu1 }
 0xcdd   : > { %v12504_v33 = vpop.f32.mrb[33].mxu1 }
 0xcde   : > { %v12505_v39 = vadd.f32 %v12504_v33, %v12503_v10  ;;  %v12506_v28 = vpop.f32.mrb[34].mxu1 }
 0xcdf   : > { %v12507_v56 = vpop.f32.mrb[35].mxu1 }
 0xce0   : > { %v12508_v37 = vadd.f32 %v12507_v56, %v12506_v28  ;;  %v8750_v42 = vadd.f32 %v12505_v39, %v8709_v12 }
 0xce2   : > { %v8753_v26 = vadd.f32 %v12508_v37, %v8712_v55 }
 0xcec   : > { %v8790_v40 = vpop.f32.mrb[36].mxu1 }
 0xced   : > { %v8791_v31 = vadd.f32 %v8790_v40, %v8750_v42  ;;  %v12660_v2 = vpop.f32.mrb[37].mxu1 }
 0xcee   : > { %v8793_v20 = vpop.f32.mrb[38].mxu1 }
 0xcef   : > { %v8797_v59 = vmax.f32 %v8791_v31, 0.0  ;;  %v8794_v60 = vadd.f32 %v8793_v20, %v8753_v26  ;;  %v12661_v24 = vpop.f32.mrb[39].mxu1 }
 0xcf1   : > { %v8801_v6 = vcombine.high %v8797_v59, %v8797_v59  ;;  %v8808_v17 = vrot.slane %v8797_v59, %v18939_v57  ;;  %v8798_v62 = vmax.f32 %v8794_v60, 0.0 }
 0xcf3   : > { %v8815_v19 = vrot.slane %v8801_v6, %v18939_v57  ;;  %v8816_v61 = vcombine.high %v8808_v17, %v8808_v17  ;;  %v8824_v32 = vrot.slane %v8808_v17, %v18939_v57  ;;  %v8857_v4 = vrot.slane %v8798_v62, %v18939_v57 }
 0xcf4   : > { %v8850_v11 = vcombine.high %v8798_v62, %v8798_v62 }
 0xcf5   : > { %v8838_v9 = vrot.slane %v8816_v61, %v18939_v57  ;;  %v8918_v41 = vrot.slane %v8824_v32, %v14363_v8  ;;  %v8846_v54 = vcombine.high %v8824_v32, %v8824_v32  ;;  %v8817_v52 = vcombine.high %v8815_v19, %v8815_v19 }
 0xcf6   : > { %v8831_v53 = vrot.slane %v8815_v19, %v18939_v57  ;;  %v8865_v29 = vcombine.high %v8857_v4, %v8857_v4  ;;  %v19213_v23 = vrot.slane %v8857_v4, %v18939_v57  ;;  %v8864_v38 = vrot.slane %v8850_v11, %v18939_v57 }
 0xcf7   : > { %v8922_v13 = vrot.slane %v8838_v9, %v14363_v8  ;;  %8979 = vrot.lane.b32.xlu1 %v8918_v41, %s14013_s23  ;;  %v8848_v21 = vcombine.high %v8838_v9, %v8838_v9  ;;  %v8926_v51 = vrot.slane %v8846_v54, %v14363_v8  ;;  %v8845_v49 = vrot.slane %v8817_v52, %v18939_v57 }
 0xcf8   : > { %v8934_v63 = vrot.slane %v8831_v53, %v14363_v8  ;;  %v8847_v34 = vcombine.high %v8831_v53, %v8831_v53  ;;  %v19218_v25 = vrot.slane %v8865_v29, %v18939_v57  ;;  %v8950_v50 = vrot.slane %v19213_v23, %v14363_v8 }
 0xcf9   : > { %8981 = vrot.lane.b32.xlu0 %v8922_v13, %s14013_s23  ;;  %v8930_v36 = vrot.slane %v8848_v21, %v14363_v8  ;;  %v8938_v47 = vrot.slane %v8845_v49, %v14363_v8  ;;  %v8849_v0 = vcombine.high %v8845_v49, %v8845_v49  ;;  %v19227_v14 = vcombine.high %v19213_v23, %v19213_v23 }
 0xcfa   : > { %v8942_v43 = vrot.slane %v8847_v34, %v14363_v8  ;;  %v8866_v18 = vcombine.high %v8864_v38, %v8864_v38  ;;  %v8954_v46 = vrot.slane %v19218_v25, %v14363_v8  ;;  %v19233_v1 = vcombine.high %v19218_v25, %v19218_v25 }
 0xcfb   : > { %8983 = vrot.lane.b32.xlu1 %v8926_v51, %s14013_s23  ;;  %v8946_v15 = vrot.slane %v8849_v0, %v14363_v8  ;;  %v19238_v44 = vrot.slane %v8864_v38, %v18939_v57  ;;  %v8958_v35 = vrot.slane %v19227_v14, %v14363_v8 }
 0xcfc   : > { %v19243_v5 = vrot.slane %v8866_v18, %v18939_v57  ;;  %v8962_v48 = vrot.slane %v19233_v1, %v14363_v8 }
 0xcfd   : > { %8985 = vrot.lane.b32.xlu0 %v8930_v36, %s14013_s23  ;;  %v8966_v30 = vrot.slane %v19238_v44, %v14363_v8  ;;  %v19253_v27 = vcombine.high %v19238_v44, %v19238_v44 }
 0xcfe   : > { %v8970_v58 = vrot.slane %v19243_v5, %v14363_v8  ;;  %v19259_v3 = vcombine.high %v19243_v5, %v19243_v5 }
 0xcff   : > { %8987 = vrot.lane.b32.xlu1 %v8934_v63, %s14013_s23  ;;  %v8974_v22 = vrot.slane %v19253_v27, %v14363_v8 }
 0xd00   : > { %v8978_v10 = vrot.slane %v19259_v3, %v14363_v8 }
 0xd01   : > { %8989 = vrot.lane.b32.xlu0 %v8938_v47, %s14013_s23 }
 0xd03   : > { %8991 = vrot.lane.b32.xlu1 %v8942_v43, %s14013_s23  ;;  %v9274_v43 = vrot.slane %v21386_v45, 1 }
 0xd05   : > { %8993 = vrot.lane.b32.xlu0 %v8946_v15, %s14013_s23 }
 0xd07   : > { %8995 = vrot.lane.b32.xlu1 %v8950_v50, %s14013_s23 }
 0xd09   : > { %8997 = vrot.lane.b32.xlu0 %v8954_v46, %s14013_s23 }
 0xd0b   : > { %8999 = vrot.lane.b32.xlu1 %v8958_v35, %s14013_s23 }
 0xd0d   : > { %9001 = vrot.lane.b32.xlu0 %v8962_v48, %s14013_s23 }
 0xd0f   : > { %9003 = vrot.lane.b32.xlu1 %v8966_v30, %s14013_s23 }
 0xd11   : > { %9005 = vrot.lane.b32.xlu0 %v8970_v58, %s14013_s23 }
 0xd13   : > { %9007 = vrot.lane.b32.xlu1 %v8974_v22, %s14013_s23 }
 0xd15   : > { %9009 = vrot.lane.b32.xlu0 %v8978_v10, %s14013_s23 }
 0xd69   : > { %v8980_v33 = vpop.permute.xlu1 %8979 }
 0xd6a   : > { %v9027_v12 = vsel %vm21429_vm5, %v8824_v32, %v8980_v33  ;;  %vm21439_vm5 = vmmov %vm21421_vm0  ;;  %v9323_v33 = vrot.slane %v21386_v45, 2 }
 0xd6b   : > { %v8982_v39 = vpop.permute.xlu0 %8981  ;;  %9059 = vrot.lane.b32.xlu1 %v9027_v12, %s14012_s21 }
 0xd6c   : > { %v9028_v28 = vsel %vm21430_vm2, %v8838_v9, %v8982_v39  ;;  %vm21440_vm2 = vmmov %vm21421_vm0 }
 0xd6d   : > { %9061 = vrot.lane.b32.xlu0 %v9028_v28, %s14012_s21  ;;  %v8984_v56 = vpop.permute.xlu1 %8983  ;;  %v9091_v31 = vcombine.low %v9027_v12, %v9028_v28 }
 0xd6e   : > { %v9029_v55 = vsel %vm21431_vm7, %v8846_v54, %v8984_v56  ;;  %vm21441_vm7 = vmmov %vm21421_vm0 }
 0xd6f   : > { %v8986_v37 = vpop.permute.xlu0 %8985  ;;  %9063 = vrot.lane.b32.xlu1 %v9029_v55, %s14012_s21  ;;  %v9099_v17 = vrot.slane %v9091_v31, %v14360_v7 }
 0xd70   : > { %v9030_v42 = vsel %vm21421_vm0, %v8848_v21, %v8986_v37 }
 0xd71   : > { %v9092_v26 = vcombine.low %v9029_v55, %v9030_v42  ;;  %9065 = vrot.lane.b32.xlu0 %v9030_v42, %s14012_s21  ;;  %v8988_v40 = vpop.permute.xlu1 %8987 }
 0xd72   : > { %v9031_v2 = vsel %vm21432_vm3, %v8831_v53, %v8988_v40  ;;  %vm21443_vm3 = vmmov %vm21421_vm0 }
 0xd73   : > { %v8990_v20 = vpop.permute.xlu0 %8989  ;;  %9067 = vrot.lane.b32.xlu1 %v9031_v2, %s14012_s21  ;;  %v9106_v60 = vrot.slane %v9092_v26, %v14360_v7 }
 0xd74   : > { %v9032_v59 = vsel %vm21433_vm9, %v8845_v49, %v8990_v20  ;;  %vm9273_vm9 = vcmask 1046528   ;;  %v13653_v20 = vld [vmem:[%s21446_s16] sm:$0xff]  }
 0xd75   : > { %v9125_v24 = vcombine.low %v9031_v2, %v9032_v59  ;;  %9069 = vrot.lane.b32.xlu0 %v9032_v59, %s14012_s21  ;;  %v8992_v6 = vpop.permute.xlu1 %8991  ;;  %v9107_v9 = vcombine.low %v9099_v17, %v9106_v60  ;;  %v13652_v2 = vld [vmem:[%s21446_s16 + $0x40] sm:$0xff]  }
 0xd76   : > { %v9033_v19 = vsel %vm21434_vm10, %v8847_v34, %v8992_v6  ;;  %vm21444_vm10 = vmmov %vm21421_vm0  ;;  %12514 = vmatprep.subr.bf16.mxu1 %v13652_v2 }
 0xd77   : > { %v8994_v61 = vpop.permute.xlu0 %8993  ;;  %9071 = vrot.lane.b32.xlu1 %v9033_v19, %s14012_s21  ;;  %v19288_v52 = vrot.slane %v9125_v24, %v14360_v7  ;;  %v9227_v51 = vrot.slane %v9107_v9, 7  ;;  %12515 = vmatpush3.bf16.msra.mxu1 %v13653_v20  ;;  %v13655_v9 = vld [vmem:[%s21446_s16 + $0x8] sm:$0xff]  }
 0xd78   : > { %v9034_v32 = vsel %vm21435_vm11, %v8849_v0, %v8994_v61  ;;  %vm21445_vm11 = vmmov %vm21421_vm0 }
 0xd79   : > { %v9126_v41 = vcombine.low %v9033_v19, %v9034_v32  ;;  %9073 = vrot.lane.b32.xlu0 %v9034_v32, %s14012_s21  ;;  %v8996_v54 = vpop.permute.xlu1 %8995  ;;  %v19307_v29 = vsel %vm21440_vm2, 0.0, %v9227_v51  ;;  %v9251_v47 = vsel %vm21441_vm7, %v9227_v51, 0.0  ;;  %v13654_v32 = vld [vmem:[%s21446_s16 + $0x48] sm:$0xff]   ;;  %vm21450_vm2 = vmmov %vm21421_vm0 }
 0xd7a   : > { %v9035_v13 = vsel %vm21436_vm12, %v19213_v23, %v8996_v54  ;;  %v9278_v46 = vrot.slane %v9251_v47, 1  ;;  %v9277_v35 = vrot.slane %v19307_v29, 1  ;;  %v9327_v12 = vrot.slane %v9251_v47, 2  ;;  %12516 = vmatprep.subr.bf16.mxu1 %v13654_v32  ;;  %vm21451_vm7 = vmmov %vm21421_vm0 }
 0xd7b   : > { %v19291_v62 = vrot.slane %v9126_v41, %v14360_v7  ;;  %v8998_v21 = vpop.permute.xlu0 %8997  ;;  %9075 = vrot.lane.b32.xlu1 %v9035_v13, %s14012_s21  ;;  %v9326_v56 = vrot.slane %v19307_v29, 2  ;;  %vm9322_vm12 = vcmask 1045504   ;;  %v13656_v41 = vld [vmem:[%s21446_s16 + $0x50] sm:$0xff]   ;;  %12517 = vmatpush3.bf16.msra.mxu1 %v13655_v9 }
 0xd7c   : > { %v9036_v53 = vsel %vm21437_vm13, %v19218_v25, %v8998_v21  ;;  %v19339_v28 = vsel %vm9273_vm9, %v9277_v35, %v9278_v46  ;;  %v13657_v21 = vld [vmem:[%s21446_s16 + $0x10] sm:$0xff]   ;;  %vm21447_vm13 = vmmov %vm21421_vm0  ;;  %12518 = vmatprep.subr.bf16.mxu1 %v13656_v41  ;;  %v13660_v46 = vld [vmem:[%s21446_s16 + $0x60] sm:$0xff]  }
 0xd7d   : > { %v9141_v49 = vcombine.low %v19288_v52, %v19291_v62  ;;  %v9159_v4 = vcombine.low %v9035_v13, %v9036_v53  ;;  %9077 = vrot.lane.b32.xlu0 %v9036_v53, %s14012_s21  ;;  %v9000_v36 = vpop.permute.xlu1 %8999  ;;  %v19355_v26 = vsel %vm9322_vm12, %v9326_v56, %v9327_v12 }
 0xd7e   : > { %v9037_v63 = vsel %vm21438_vm6, %v19227_v14, %v9000_v36  ;;  %v21442_v14 = vld [vmem:[#allocation31_spill] sm:$0xff]  ;;  %vm21448_vm6 = vmmov %vm21421_vm0 }
 0xd7f   : > { %v9002_v34 = vpop.permute.xlu0 %9001  ;;  %9079 = vrot.lane.b32.xlu1 %v9037_v63, %s14012_s21  ;;  %v19313_v38 = vrot.slane %v9159_v4, %v14360_v7  ;;  %v9275_v18 = vrot.slane %v21442_v14, 1  ;;  %v9229_v19 = vrot.slane %v9141_v49, 7  ;;  %12519 = vmatpush3.bf16.msra.mxu1 %v13657_v21 }
 0xd80   : > { %v9038_v11 = vsel %vm21439_vm5, %v19233_v1, %v9002_v34  ;;  %v13658_v34 = vld [vmem:[%s21446_s16 + $0x58] sm:$0xff]   ;;  %vm21449_vm5 = vmmov %vm21421_vm0 }
 0xd81   : > { %v9160_v0 = vcombine.low %v9037_v63, %v9038_v11  ;;  %9081 = vrot.lane.b32.xlu0 %v9038_v11, %s14012_s21  ;;  %v9004_v23 = vpop.permute.xlu1 %9003  ;;  %v19331_v10 = vsel %vm9273_vm9, %v9274_v43, %v9275_v18  ;;  %v19384_v53 = vsel %vm21447_vm13, %v9229_v19, 0.0  ;;  %v19387_v49 = vsel %vm21448_vm6, 0.0, %v9229_v19  ;;  %12520 = vmatprep.subr.bf16.mxu1 %v13658_v34  ;;  %v13663_v19 = vld [vmem:[%s21446_s16 + $0x28] sm:$0xff]   ;;  %vm21455_vm13 = vmmov %vm21421_vm0 }
 0xd82   : > { %v9039_v15 = vsel %vm21421_vm0, %v19238_v44, %v9004_v23  ;;  %v13139_v42 = vpack.i.bf16 %v19339_v28, %v19331_v10  ;;  %v9333_v11 = vrot.slane %v19384_v53, 2  ;;  %v9332_v18 = vrot.slane %v19387_v49, 2  ;;  %vm21456_vm6 = vmmov %vm21421_vm0 }
 0xd83   : > { %v19316_v25 = vrot.slane %v9160_v0, %v14360_v7  ;;  %v9006_v50 = vpop.permute.xlu0 %9005  ;;  %9083 = vrot.lane.b32.xlu1 %v9039_v15, %s14012_s21 }
 0xd84   : > { %v9040_v1 = vsel %vm21443_vm3, %v19243_v5, %v9006_v50  ;;  %v9324_v5 = vrot.slane %v21442_v14, 2  ;;  %vm21452_vm3 = vmmov %vm21421_vm0 }
 0xd85   : > { %v9175_v48 = vcombine.low %v19313_v38, %v19316_v25  ;;  %v9193_v30 = vcombine.low %v9039_v15, %v9040_v1  ;;  %9085 = vrot.lane.b32.xlu0 %v9040_v1, %s14012_s21  ;;  %v9008_v58 = vpop.permute.xlu1 %9007  ;;  %v13659_v25 = vld [vmem:[%s21446_s16 + $0x18] sm:$0xff]  }
 0xd86   : > { %v9041_v44 = vsel %vm21444_vm10, %v19253_v27, %v9008_v58  ;;  %12521 = vmatpush3.bf16.msra.mxu1 %v13659_v25  ;;  %vm21453_vm10 = vmmov %vm21421_vm0  ;;  %v13666_v25 = vld [vmem:[%s21446_s16 + $0x78] sm:$0xff]  }
 0xd87   : > { %v9010_v22 = vpop.permute.xlu0 %9009  ;;  %9087 = vrot.lane.b32.xlu1 %v9041_v44, %s14012_s21  ;;  %v19344_v55 = vrot.slane %v9193_v30, %v14360_v7  ;;  %v9231_v0 = vrot.slane %v9175_v48, 7  ;;  %12522 = vmatprep.subr.bf16.mxu1 %v13660_v46 }
 0xd88   : > { %v9042_v39 = vsel %vm21445_vm11, %v19259_v3, %v9010_v22  ;;  %v19352_v3 = vsel %vm9322_vm12, %v9323_v33, %v9324_v5  ;;  %v13661_v5 = vld [vmem:[%s21446_s16 + $0x20] sm:$0xff]   ;;  %vm21454_vm11 = vmmov %vm21421_vm0 }
 0xd89   : > { %v9194_v27 = vcombine.low %v9041_v44, %v9042_v39  ;;  %9089 = vrot.lane.b32.xlu0 %v9042_v39, %s14012_s21  ;;  %v13144_v31 = vpack.i.bf16 %v19355_v26, %v19352_v3  ;;  %v19417_v44 = vsel %vm21451_vm7, %v9231_v0, 0.0  ;;  %v19426_v12 = vsel %vm21421_vm0, 0.0, %v9231_v0  ;;  %vm21459_vm7 = vmmov %vm21421_vm0 }
 0xd8a   : > { %v19429_v39 = vsel %vm9322_vm12, %v9332_v18, %v9333_v11  ;;  %v9339_v20 = vrot.slane %v19417_v44, 2  ;;  %12523 = vmatpush3.bf16.msra.mxu1 %v13661_v5  ;;  %v9283_v18 = vrot.slane %v19387_v49, 1 }
 0xd8b   : > { %v19347_v37 = vrot.slane %v9194_v27, %v14360_v7 }
 0xd8d   : > { %v9209_v40 = vcombine.low %v19344_v55, %v19347_v37  ;;  %13140 = vrot.lane.b32.xlu0 %v13139_v42, %s14011_s1 }
 0xd91   : > { %13145 = vrot.lane.b32.xlu0 %v13144_v31, %s14012_s21  ;;  %v13662_v31 = vld [vmem:[%s21446_s16 + $0x68] sm:$0xff]  }
 0xd92   : > { %12524 = vmatprep.subr.bf16.mxu1 %v13662_v31 }
 0xd93   : > { %12525 = vmatpush3.bf16.msra.mxu1 %v13663_v19 }
 0xddd   : > { %v9060_v59 = vpop.permute.xlu1 %9059 }
 0xddf   : > { %v9062_v60 = vpop.permute.xlu0 %9061 }
 0xde0   : > { %v9108_v24 = vcombine.low %v9060_v59, %v9062_v60 }
 0xde1   : > { %v9064_v6 = vpop.permute.xlu1 %9063 }
 0xde2   : > { %v9116_v54 = vrot.slane %v9108_v24, %v14360_v7 }
 0xde3   : > { %v9066_v17 = vpop.permute.xlu0 %9065 }
 0xde4   : > { %v9109_v61 = vcombine.low %v9064_v6, %v9066_v17  ;;  %v9338_v17 = vrot.slane %v19426_v12, 2 }
 0xde5   : > { %v9068_v62 = vpop.permute.xlu1 %9067 }
 0xde6   : > { %v9123_v52 = vrot.slane %v9109_v61, %v14360_v7  ;;  %v9233_v61 = vrot.slane %v9209_v40, 7  ;;  %v19464_v21 = vsel %vm9322_vm12, %v9338_v17, %v9339_v20 }
 0xde7   : > { %v9070_v13 = vpop.permute.xlu0 %9069 }
 0xde8   : > { %v9124_v51 = vcombine.low %v9116_v54, %v9123_v52  ;;  %v9142_v36 = vcombine.low %v9068_v62, %v9070_v13 }
 0xde9   : > { %v9072_v63 = vpop.permute.xlu1 %9071 }
 0xdea   : > { %v9228_v4 = vrot.slane %v9124_v51, 7  ;;  %v9150_v1 = vrot.slane %v9142_v36, %v14360_v7  ;;  %v13664_v51 = vld [vmem:[%s21446_s16 + $0x70] sm:$0xff]   ;;  %v19473_v36 = vsel %vm21454_vm11, 0.0, %v9233_v61  ;;  %vm21485_vm11 = vmmov %vm21421_vm0 }
 0xdeb   : > { %v9074_v47 = vpop.permute.xlu0 %9073  ;;  %12526 = vmatprep.subr.bf16.mxu1 %v13664_v51 }
 0xdec   : > { %v19394_v23 = vsel %vm21449_vm5, 0.0, %v9228_v4  ;;  %v19397_v43 = vsel %vm21450_vm2, %v9228_v4, 0.0  ;;  %v9143_v38 = vcombine.low %v9072_v63, %v9074_v47  ;;  %v13665_v4 = vld [vmem:[%s21446_s16 + $0x30] sm:$0xff]   ;;  %v19476_v63 = vsel %vm21455_vm13, %v9233_v61, 0.0  ;;  %vm21457_vm5 = vmmov %vm21421_vm0 }
 0xded   : > { %v9330_v15 = vrot.slane %v19397_v43, 2  ;;  %v13154_v50 = vpack.i.bf16 %v19394_v23, %v19307_v29  ;;  %v13149_v14 = vpack.i.bf16 %v19387_v49, %v19394_v23  ;;  %v9076_v48 = vpop.permute.xlu1 %9075  ;;  %v9329_v30 = vrot.slane %v19394_v23, 2  ;;  %12527 = vmatpush3.bf16.msra.mxu1 %v13665_v4  ;;  %vm21458_vm2 = vmmov %vm21421_vm0 }
 0xdee   : > { %v9157_v35 = vrot.slane %v9143_v38, %v14360_v7  ;;  %v9281_v11 = vrot.slane %v19397_v43, 1  ;;  %v9280_v38 = vrot.slane %v19394_v23, 1  ;;  %v9345_v46 = vrot.slane %v19476_v63, 2  ;;  %12528 = vmatprep.subr.bf16.mxu1 %v13666_v25  ;;  %vm21486_vm13 = vmmov %vm21421_vm0 }
 0xdef   : > { %13155 = vrot.lane.b32.xlu0 %v13154_v50, %s14013_s23  ;;  %13150 = vrot.lane.b32.xlu1 %v13149_v14, %s14012_s21  ;;  %v9078_v58 = vpop.permute.xlu0 %9077  ;;  %v19420_v33 = vsel %vm9322_vm12, %v9329_v30, %v9330_v15  ;;  %v9284_v15 = vrot.slane %v19384_v53, 1 }
 0xdf0   : > { %v9158_v22 = vcombine.low %v9150_v1, %v9157_v35  ;;  %v9176_v27 = vcombine.low %v9076_v48, %v9078_v58  ;;  %v9541_v2 = vpack.c.bf16 %v19429_v39, %v19420_v33  ;;  %v13667_v48 = vld [vmem:[%s21446_s16 + $0x38] sm:$0xff]  }
 0xdf1   : > { %v9080_v42 = vpop.permute.xlu1 %9079  ;;  %v19509_v20 = vsel %vm9273_vm9, %v9283_v18, %v9284_v15  ;;  %12529 = vmatpush3.bf16.msra.mxu1 %v13667_v48 }
 0xdf2   : > { %v9230_v56 = vrot.slane %v9158_v22, 7  ;;  %v9184_v54 = vrot.slane %v9176_v27, %v14360_v7  ;;  %v9344_v22 = vrot.slane %v19473_v36, 2  ;;  %v19503_v27 = vsel %vm9273_vm9, %v9280_v38, %v9281_v11 }
 0xdf3   : > { %v9082_v59 = vpop.permute.xlu0 %9081  ;;  %v9296_v11 = vrot.slane %v19476_v63, 1 }
 0xdf4   : > { %v19438_v60 = vsel %vm21452_vm3, 0.0, %v9230_v56  ;;  %v19441_v24 = vsel %vm21453_vm10, %v9230_v56, 0.0  ;;  %v9177_v6 = vcombine.low %v9080_v42, %v9082_v59  ;;  %v13189_v59 = vpack.i.bf16 %v19509_v20, %v19503_v27  ;;  %vm21483_vm3 = vmmov %vm21421_vm0 }
 0xdf5   : > { %v9336_v32 = vrot.slane %v19441_v24, 2  ;;  %v13164_v9 = vpack.i.bf16 %v19438_v60, %v19387_v49  ;;  %v13159_v41 = vpack.i.bf16 %v19426_v12, %v19438_v60  ;;  %v9084_v62 = vpop.permute.xlu1 %9083  ;;  %v9335_v13 = vrot.slane %v19438_v60, 2  ;;  %vm21484_vm10 = vmmov %vm21421_vm0 }
 0xdf6   : > { %v9191_v52 = vrot.slane %v9177_v6, %v14360_v7  ;;  %v13179_v6 = vpack.i.bf16 %v19420_v33, %v19355_v26  ;;  %v9287_v19 = vrot.slane %v19441_v24, 1  ;;  %v9290_v26 = vrot.slane %v19417_v44, 1  ;;  %v19532_v24 = vld [vmem:[%s21446_s16 + $0x80] sm:$0xff]  }
 0xdf7   : > { %13165 = vrot.lane.b32.xlu0 %v13164_v9, %s14013_s23  ;;  %13160 = vrot.lane.b32.xlu1 %v13159_v41, %s14012_s21  ;;  %v9086_v55 = vpop.permute.xlu0 %9085  ;;  %v19461_v40 = vsel %vm9322_vm12, %v9335_v13, %v9336_v32  ;;  %v9286_v32 = vrot.slane %v19438_v60, 1  ;;  %v19521_v9 = vsel %vm9322_vm12, %v9344_v22, %v9345_v46 }
 0xdf8   : > { %v9192_v37 = vcombine.low %v9184_v54, %v9191_v52  ;;  %v9544_v34 = vpack.c.bf16 %v19464_v21, %v19461_v40  ;;  %v9210_v0 = vcombine.low %v9084_v62, %v9086_v55  ;;  %v9289_v54 = vrot.slane %v19426_v12, 1  ;;  %12662 = vmatprep.subr.bf16.mxu1 %v19532_v24 }
 0xdf9   : > { %v9088_v50 = vpop.permute.xlu1 %9087  ;;  %v13194_v52 = vpack.i.bf16 %v19429_v39, %v19420_v33  ;;  %v19538_v13 = vsel %vm9273_vm9, %v9286_v32, %v9287_v19  ;;  %v13204_v38 = vpack.i.bf16 %v19461_v40, %v19429_v39 }
 0xdfa   : > { %v9232_v47 = vrot.slane %v9192_v37, 7  ;;  %v9218_v5 = vrot.slane %v9210_v0, %v14360_v7  ;;  %v19544_v44 = vsel %vm9273_vm9, %v9289_v54, %v9290_v26  ;;  %v13224_v0 = vpack.i.bf16 %v19464_v21, %v19461_v40 }
 0xdfb   : > { %v9090_v14 = vpop.permute.xlu0 %9089  ;;  %v13219_v55 = vpack.i.bf16 %v19544_v44, %v19538_v13 }
 0xdfc   : > { %v19489_v1 = vsel %vm21456_vm6, 0.0, %v9232_v47  ;;  %v9256_v43 = vsel %vm21457_vm5, %v9232_v47, 0.0  ;;  %v9211_v35 = vcombine.low %v9088_v50, %v9090_v14  ;;  %v9295_v47 = vrot.slane %v19473_v36, 1  ;;  %vm21487_vm6 = vmmov %vm21421_vm0 }
 0xdfd   : > { %v9342_v30 = vrot.slane %v9256_v43, 2  ;;  %v13174_v53 = vpack.i.bf16 %v19489_v1, %v19426_v12  ;;  %v13169_v58 = vpack.i.bf16 %v19473_v36, %v19489_v1  ;;  %v9341_v42 = vrot.slane %v19489_v1, 2  ;;  %vm21488_vm5 = vmmov %vm21421_vm0 }
 0xdfe   : > { %v9225_v56 = vrot.slane %v9211_v35, %v14360_v7  ;;  %v9293_v51 = vrot.slane %v9256_v43, 1  ;;  %v9292_v4 = vrot.slane %v19489_v1, 1  ;;  %v19564_v15 = vsel %vm9273_vm9, %v9295_v47, %v9296_v11 }
 0xdff   : > { %13175 = vrot.lane.b32.xlu0 %v13174_v53, %s14013_s23  ;;  %13170 = vrot.lane.b32.xlu1 %v13169_v58, %s14012_s21  ;;  %v19516_v17 = vsel %vm9322_vm12, %v9341_v42, %v9342_v30  ;;  %v13141_v42 = vpop.permute.xlu0 %13140 }
 0xe00   : > { %v9226_v31 = vcombine.low %v9218_v5, %v9225_v56  ;;  %v9547_v41 = vpack.c.bf16 %v19521_v9, %v19516_v17  ;;  %v19559_v25 = vsel %vm9273_vm9, %v9292_v4, %v9293_v51  ;;  %v13239_v14 = vpack.i.bf16 %v19521_v9, %v19516_v17 }
 0xe01   : > { %v13234_v63 = vpack.i.bf16 %v19564_v15, %v19559_v25  ;;  %v13214_v18 = vpack.i.bf16 %v19516_v17, %v19464_v21  ;;  %v6659_v56 = vrot.slane %v18413_v16, %v14363_v8  ;;  %v13142_v54 = vunpack.i.l.bf16 %v13141_v42 }
 0xe02   : > { %v9234_v61 = vrot.slane %v9226_v31, 7 }
 0xe03   : > { %13190 = vrot.lane.b32.xlu0 %v13189_v59, %s14011_s1  ;;  %13180 = vrot.lane.b32.xlu1 %v13179_v6, %s14011_s1  ;;  %v13146_v31 = vpop.permute.xlu0 %13145 }
 0xe04   : > { %v9250_v62 = vsel %vm21458_vm2, 0.0, %v9234_v61  ;;  %v9258_v50 = vsel %vm21459_vm7, %v9234_v61, 0.0  ;;  %v13147_v16 = vunpack.i.l.bf16 %v13146_v31  ;;  %vm21489_vm2 = vmmov %vm21421_vm0 }
 0xe05   : > { %v13199_v37 = vpack.i.bf16 %v21386_v45, %v9250_v62  ;;  %v9408_v46 = vrot.slane %v9250_v62, 2  ;;  %v9409_v43 = vrot.slane %v9258_v50, 2  ;;  %v13254_v35 = vpack.i.bf16 %v9250_v62, %v19473_v36  ;;  %vm21490_vm7 = vmmov %vm21421_vm0 }
 0xe06   : > { %v9397_v48 = vrot.slane %v9250_v62, 1  ;;  %v9398_v30 = vrot.slane %v9258_v50, 1 }
 0xe07   : > { %13195 = vrot.lane.b32.xlu0 %v13194_v52, %s14012_s21  ;;  %13185 = vrot.lane.b32.xlu1 %v13189_v59, %s14013_s23  ;;  %v19579_v53 = vsel %vm9322_vm12, %v9408_v46, %v9409_v43  ;;  %vm21482_vm12 = vmmov %vm21421_vm0 }
 0xe08   : > { %v13244_v58 = vpack.i.bf16 %v19579_v53, %v19521_v9  ;;  %v19586_v22 = vsel %vm9273_vm9, %v9397_v48, %v9398_v30  ;;  %vm21481_vm9 = vmmov %vm21421_vm0 }
 0xe09   : > { %v13249_v5 = vpack.i.bf16 %v19331_v10, %v19586_v22  ;;  %v13143_v10 = vunpack.i.h.bf16 %v13141_v42 }
 0xe0b   : > { %13220 = vrot.lane.b32.xlu0 %v13219_v55, %s14011_s1  ;;  %13200 = vrot.lane.b32.xlu1 %v13199_v37, %s14012_s21 }
 0xe0f   : > { %13225 = vrot.lane.b32.xlu0 %v13224_v0, %s14012_s21  ;;  %13205 = vrot.lane.b32.xlu1 %v13204_v38, %s14011_s1  ;;  %v9492_v38 = vsel %vm4729_vm14, %v19307_v29, %v13143_v10 }
 0xe13   : > { %13235 = vrot.lane.b32.xlu0 %v13234_v63, %s14011_s1  ;;  %13210 = vrot.lane.b32.xlu1 %v13219_v55, %s14013_s23  ;;  %v13148_v55 = vunpack.i.h.bf16 %v13146_v31 }
 0xe17   : > { %13240 = vrot.lane.b32.xlu0 %v13239_v14, %s14012_s21  ;;  %13215 = vrot.lane.b32.xlu1 %v13214_v18, %s14011_s1  ;;  %s21555_s21 = scalar_lea.vmem [#allocation13], %s18408_s18 }
 0xe1b   : > { %13255 = vrot.lane.b32.xlu0 %v13254_v35, %s14013_s23  ;;  %13230 = vrot.lane.b32.xlu1 %v13234_v63, %s14013_s23  ;;  %v9491_v63 = vsel %vm4729_vm14, %v21386_v45, %v13142_v54  ;;  %v9500_v35 = vsel %vm4734_vm15, %v9492_v38, %v13148_v55  ;;  %v13669_v55 = vld [vmem:[%s21446_s16 + $0x88] sm:$0xff]  }
 0xe1c   : > { %v9499_v43 = vsel %vm4734_vm15, %v9491_v63, %v13147_v16 }
 0xe1f   : > { %13245 = vrot.lane.b32.xlu1 %v13244_v58, %s14011_s1  ;;  %s20426_s1 = scalar_lea.hbm %s21554_s19, %s20850_s30 }
 0xe23   : > { %13250 = vrot.lane.b32.xlu1 %v13249_v5, %s14013_s23 }
 0xe27   : > { %6660 = vrot.lane.b32.xlu1 %v6659_v56, %s14013_s23  ;;  %s20849_s23 = scalar_lea.vmem [#allocation14], %s18408_s18 }
 0xe61   : > { %v13151_v59 = vpop.permute.xlu1 %13150  ;;  %v13156_v6 = vpop.permute.xlu0 %13155 }
 0xe62   : > { %v13158_v4 = vunpack.i.h.bf16 %v13156_v6  ;;  %v13157_v11 = vunpack.i.l.bf16 %v13156_v6  ;;  %v13153_v50 = vunpack.i.h.bf16 %v13151_v59  ;;  %v13152_v14 = vunpack.i.l.bf16 %v13151_v59 }
 0xe69   : > { %v19595_v19 = vpop.permute.xlu1 %13160  ;;  %v19597_v61 = vpop.permute.xlu0 %13165 }
 0xe6a   : > { %v13168_v38 = vunpack.i.h.bf16 %v19597_v61  ;;  %v13167_v63 = vunpack.i.l.bf16 %v19597_v61 }
 0xe71   : > { %v19599_v32 = vpop.permute.xlu1 %13170  ;;  %v19601_v26 = vpop.permute.xlu0 %13175 }
 0xe75   : > { %v13181_v52 = vpop.permute.xlu1 %13180  ;;  %v13191_v62 = vpop.permute.xlu0 %13190 }
 0xe76   : > { %v13183_v37 = vunpack.i.h.bf16 %v13181_v52  ;;  %v13182_v51 = vunpack.i.l.bf16 %v13181_v52  ;;  %v13193_v56 = vunpack.i.h.bf16 %v13191_v62  ;;  %v13192_v42 = vunpack.i.l.bf16 %v13191_v62 }
 0xe78   : > { %v9516_v47 = vsel %vm4729_vm14, %v19503_v27, %v13183_v37  ;;  %v9515_v0 = vsel %vm4729_vm14, %v19339_v28, %v13182_v51  ;;  %v9507_v27 = vsel %vm4739_vm4, %v9499_v43, %v13157_v11  ;;  %v9508_v28 = vsel %vm4739_vm4, %v9500_v35, %v13158_v4 }
 0xe79   : > { %v13186_v18 = vpop.permute.xlu1 %13185  ;;  %v13196_v46 = vpop.permute.xlu0 %13195  ;;  %v9523_v58 = vsel %vm4734_vm15, %v9515_v0, %v13152_v14  ;;  %v9524_v29 = vsel %vm4734_vm15, %v9516_v47, %v13153_v50  ;;  %v9539_v52 = vpack.c.bf16 %v9508_v28, %v9507_v27  ;;  %v9494_v16 = vsel %vm4729_vm14, %v19387_v49, %v13193_v56 }
 0xe7a   : > { %v13188_v48 = vunpack.i.h.bf16 %v13186_v18  ;;  %v13187_v30 = vunpack.i.l.bf16 %v13186_v18  ;;  %v13198_v10 = vunpack.i.h.bf16 %v13196_v46  ;;  %v13197_v54 = vunpack.i.l.bf16 %v13196_v46 }
 0xe7b   : > { %v9493_v37 = vsel %vm4729_vm14, %v19394_v23, %v13192_v42  ;;  %v13163_v50 = vunpack.i.h.bf16 %v19595_v19 }
 0xe7c   : > { %v9531_v45 = vsel %vm4739_vm4, %v9523_v58, %v13187_v30  ;;  %v9532_v5 = vsel %vm4739_vm4, %v9524_v29, %v13188_v48  ;;  %v9501_v47 = vsel %vm4734_vm15, %v9493_v37, %v13197_v54  ;;  %v9502_v0 = vsel %vm4734_vm15, %v9494_v16, %v13198_v10 }
 0xe7d   : > { %v19619_v31 = vpop.permute.xlu1 %13200  ;;  %v13221_v59 = vpop.permute.xlu0 %13220  ;;  %v9540_v6 = vpack.c.bf16 %v9532_v5, %v9531_v45  ;;  %v9509_v46 = vsel %vm4739_vm4, %v9501_v47, %v13167_v63  ;;  %v9510_v43 = vsel %vm4739_vm4, %v9502_v0, %v13168_v38  ;;  %v13177_v16 = vunpack.i.l.bf16 %v19601_v26 }
 0xe7e   : > { %v13223_v35 = vunpack.i.h.bf16 %v13221_v59  ;;  %v13222_v48 = vunpack.i.l.bf16 %v13221_v59  ;;  %v9542_v5 = vpack.c.bf16 %v9510_v43, %v9509_v46 }
 0xe7f   : > { %9746 = vmatprep.mubr.bf16.mxu1 %v9540_v6 }
 0xe80   : > { %9747 = vmatmul.mubr.bf16.vlgmr.msra.gmra.mrb[40].mxu1 %v9539_v52  ;;  %v9496_v56 = vsel %vm4729_vm14, %v19426_v12, %v13223_v35  ;;  %v9495_v42 = vsel %vm4729_vm14, %v19438_v60, %v13222_v48  ;;  %v13173_v60 = vunpack.i.h.bf16 %v19599_v32 }
 0xe81   : > { %v13206_v62 = vpop.permute.xlu1 %13205  ;;  %v13226_v51 = vpop.permute.xlu0 %13225  ;;  %12663 = vmatpush3.bf16.msra.mxu1 %v19532_v24  ;;  %v13162_v24 = vunpack.i.l.bf16 %v19595_v19 }
 0xe82   : > { %v13208_v4 = vunpack.i.h.bf16 %v13206_v62  ;;  %v13207_v11 = vunpack.i.l.bf16 %v13206_v62  ;;  %12664 = vmatprep.subr.bf16.mxu1 %v13669_v55  ;;  %v13228_v27 = vunpack.i.h.bf16 %v13226_v51  ;;  %v13172_v62 = vunpack.i.l.bf16 %v19599_v32 }
 0xe84   : > { %v9518_v49 = vsel %vm4729_vm14, %v19538_v13, %v13208_v4  ;;  %v9517_v23 = vsel %vm4729_vm14, %v19509_v20, %v13207_v11  ;;  %v13227_v13 = vunpack.i.l.bf16 %v13226_v51  ;;  %v9504_v52 = vsel %vm4734_vm15, %v9496_v56, %v13228_v27 }
 0xe85   : > { %v13211_v14 = vpop.permute.xlu1 %13210  ;;  %v13236_v18 = vpop.permute.xlu0 %13235  ;;  %12665 = vmatpush3.bf16.msra.mxu1 %v13669_v55  ;;  %v9525_v28 = vsel %vm4734_vm15, %v9517_v23, %v13162_v24  ;;  %v9526_v20 = vsel %vm4734_vm15, %v9518_v49, %v13163_v50  ;;  %v13178_v55 = vunpack.i.h.bf16 %v19601_v26 }
 0xe86   : > { %v13213_v61 = vunpack.i.h.bf16 %v13211_v14  ;;  %v13212_v30 = vunpack.i.l.bf16 %v13211_v14  ;;  %v9503_v54 = vsel %vm4734_vm15, %v9495_v42, %v13227_v13  ;;  %v13238_v49 = vunpack.i.h.bf16 %v13236_v18 }
 0xe87   : > { %v9511_v47 = vsel %vm4739_vm4, %v9503_v54, %v13177_v16  ;;  %v9512_v0 = vsel %vm4739_vm4, %v9504_v52, %v13178_v55  ;;  %v13237_v23 = vunpack.i.l.bf16 %v13236_v18  ;;  %v13203_v13 = vunpack.i.h.bf16 %v19619_v31 }
 0xe88   : > { %v9533_v58 = vsel %vm4739_vm4, %v9525_v28, %v13212_v30  ;;  %v9534_v19 = vsel %vm4739_vm4, %v9526_v20, %v13213_v61  ;;  %v9545_v24 = vpack.c.bf16 %v9512_v0, %v9511_v47  ;;  %v13202_v18 = vunpack.i.l.bf16 %v19619_v31 }
 0xe89   : > { %v13216_v29 = vpop.permute.xlu1 %13215  ;;  %v9543_v45 = vpack.c.bf16 %v9534_v19, %v9533_v58  ;;  %v13241_v10 = vpop.permute.xlu0 %13240  ;;  %v9498_v28 = vsel %vm4729_vm14, %v19473_v36, %v13238_v49  ;;  %v9497_v20 = vsel %vm4729_vm14, %v19489_v1, %v13237_v23 }
 0xe8a   : > { %v13218_v59 = vunpack.i.h.bf16 %v13216_v29  ;;  %v13217_v6 = vunpack.i.l.bf16 %v13216_v29  ;;  %v13243_v14 = vunpack.i.h.bf16 %v13241_v10  ;;  %v13242_v46 = vunpack.i.l.bf16 %v13241_v10 }
 0xe8b   : > { %9754 = vmatprep.mubr.bf16.mxu1 %v9543_v45  ;;  %v9550_v10 = vpack.c.bf16 %v19352_v3, %v19579_v53  ;;  %v12255_v3 = vld [vmem:[#allocation11] ss:$0 sm:$0xff] }
 0xe8c   : > { %v9520_v37 = vsel %vm4729_vm14, %v19559_v25, %v13218_v59  ;;  %v9519_v12 = vsel %vm4729_vm14, %v19544_v44, %v13217_v6  ;;  %9755 = vmatmul.mubr.bf16.gmra.mrb[44].mxu1 %v9542_v5 }
 0xe8d   : > { %v13231_v51 = vpop.permute.xlu1 %13230  ;;  %v9527_v26 = vsel %vm4734_vm15, %v9519_v12, %v13172_v62  ;;  %v9528_v38 = vsel %vm4734_vm15, %v9520_v37, %v13173_v60  ;;  %v13256_v25 = vpop.permute.xlu0 %13255 }
 0xe8e   : > { %v13233_v4 = vunpack.i.h.bf16 %v13231_v51  ;;  %v13232_v11 = vunpack.i.l.bf16 %v13231_v51  ;;  %v13258_v48 = vunpack.i.h.bf16 %v13256_v25  ;;  %v13257_v61 = vunpack.i.l.bf16 %v13256_v25 }
 0xe90   : > { %v9535_v63 = vsel %vm4739_vm4, %v9527_v26, %v13232_v11  ;;  %v9536_v44 = vsel %vm4739_vm4, %v9528_v38, %v13233_v4 }
 0xe91   : > { %v13246_v50 = vpop.permute.xlu1 %13245  ;;  %v9546_v32 = vpack.c.bf16 %v9536_v44, %v9535_v63 }
 0xe92   : > { %v13248_v43 = vunpack.i.h.bf16 %v13246_v50  ;;  %v13247_v35 = vunpack.i.l.bf16 %v13246_v50 }
 0xe93   : > { %9762 = vmatprep.mubr.bf16.mxu1 %v9546_v32 }
 0xe94   : > { %v9521_v30 = vsel %vm4729_vm14, %v19564_v15, %v13247_v35  ;;  %v9522_v27 = vsel %vm4729_vm14, %v19586_v22, %v13248_v43  ;;  %9763 = vmatmul.mubr.bf16.gmra.mrb[48].mxu1 %v9545_v24  ;;  %v9505_v15 = vsel %vm4734_vm15, %v9497_v20, %v13242_v46  ;;  %v9506_v22 = vsel %vm4734_vm15, %v9498_v28, %v13243_v14 }
 0xe95   : > { %v13251_v58 = vpop.permute.xlu1 %13250  ;;  %v9529_v45 = vsel %vm4734_vm15, %v9521_v30, %v13202_v18  ;;  %v9530_v5 = vsel %vm4734_vm15, %v9522_v27, %v13203_v13  ;;  %v9513_v31 = vsel %vm4739_vm4, %v9505_v15, %v13257_v61  ;;  %v9514_v56 = vsel %vm4739_vm4, %v9506_v22, %v13258_v48  ;;  %vm21477_vm15 = vmmov %vm21421_vm0 }
 0xe96   : > { %v13253_v19 = vunpack.i.h.bf16 %v13251_v58  ;;  %v13252_v29 = vunpack.i.l.bf16 %v13251_v58  ;;  %v9548_v6 = vpack.c.bf16 %v9514_v56, %v9513_v31 }
 0xe98   : > { %v9537_v36 = vsel %vm4739_vm4, %v9529_v45, %v13252_v29  ;;  %v9538_v42 = vsel %vm4739_vm4, %v9530_v5, %v13253_v19  ;;  %vm21478_vm4 = vmmov %vm21421_vm0 }
 0xe99   : > { %v6661_v1 = vpop.permute.xlu1 %6660  ;;  %v9549_v59 = vpack.c.bf16 %v9538_v42, %v9537_v36 }
 0xe9a   : > { %6663 = vst.msk [vmem:[%s20849_s23] sm:$0x1] %vm6653_vm1, %v6661_v1  ;;  %vm21479_vm1 = vmmov %vm21421_vm0 }
 0xe9b   : > { %9770 = vmatprep.mubr.bf16.mxu1 %v9549_v59 }
 0xe9c   : > { %9771 = vmatmul.mubr.bf16.gmra.mrb[52].mxu1 %v9548_v6 }
 0xe9d   : > { %12666 = vmatprep.mubr.msk.bf16.mxu1 %vm4729_vm14, %v9541_v2 }
 0xea4   : > { %12667 = vmatmul.mubr.msk.bf16.vlgmr.msra.gmra.mrb[56].mxu1 %vm4729_vm14, %v9544_v34 }
 0xea5   : > { %12670 = vmatprep.mubr.msk.bf16.mxu1 %vm4729_vm14, %v9547_v41 }
 0xeac   : > { %12671 = vmatmul.mubr.msk.bf16.gmra.mrb[60].mxu1 %vm4729_vm14, %v9550_v10  ;;  %vm21476_vm14 = vmmov %vm21421_vm0 }
 0xf53   : > { %v12530_v54 = vpop.f32.mrb[40].mxu1 }
 0xf54   : > { %v12531_v52 = vpop.f32.mrb[41].mxu1 }
 0xf55   : > { %v12532_v33 = vadd.f32 %v12531_v52, %v12530_v54  ;;  %v12533_v39 = vpop.f32.mrb[42].mxu1 }
 0xf56   : > { %v12534_v2 = vpop.f32.mrb[43].mxu1 }
 0xf57   : > { %v12535_v55 = vadd.f32 %v12534_v2, %v12533_v39  ;;  %v9749_v50 = vadd.f32 %v12532_v33, %v12255_v3 }
 0xf59   : > { %v9752_v35 = vadd.f32 %v12535_v55, %v12255_v3 }
 0xf5f   : > { %v12536_v16 = vpop.f32.mrb[44].mxu1 }
 0xf60   : > { %v12537_v40 = vpop.f32.mrb[45].mxu1 }
 0xf61   : > { %v12538_v21 = vadd.f32 %v12537_v40, %v12536_v16  ;;  %v12539_v34 = vpop.f32.mrb[46].mxu1 }
 0xf62   : > { %v12540_v37 = vpop.f32.mrb[47].mxu1 }
 0xf63   : > { %v12541_v12 = vadd.f32 %v12540_v37, %v12539_v34  ;;  %v9757_v49 = vadd.f32 %v12538_v21, %v12255_v3 }
 0xf65   : > { %v9760_v14 = vadd.f32 %v12541_v12, %v12255_v3 }
 0xf67   : > { %v12542_v17 = vpop.f32.mrb[48].mxu1 }
 0xf68   : > { %v12543_v9 = vpop.f32.mrb[49].mxu1 }
 0xf69   : > { %v12544_v41 = vadd.f32 %v12543_v9, %v12542_v17  ;;  %v12545_v60 = vpop.f32.mrb[50].mxu1 }
 0xf6a   : > { %v12546_v62 = vpop.f32.mrb[51].mxu1 }
 0xf6b   : > { %v12547_v53 = vadd.f32 %v12546_v62, %v12545_v60  ;;  %v9765_v51 = vadd.f32 %v12544_v41, %v12255_v3 }
 0xf6d   : > { %v9768_v4 = vadd.f32 %v12547_v53, %v12255_v3 }
 0xf6f   : > { %v12548_v11 = vpop.f32.mrb[52].mxu1 }
 0xf70   : > { %v12549_v47 = vpop.f32.mrb[53].mxu1 }
 0xf71   : > { %v12550_v0 = vadd.f32 %v12549_v47, %v12548_v11  ;;  %v12551_v26 = vpop.f32.mrb[54].mxu1 }
 0xf72   : > { %v12552_v38 = vpop.f32.mrb[55].mxu1 }
 0xf73   : > { %v12553_v25 = vadd.f32 %v12552_v38, %v12551_v26  ;;  %v9773_v63 = vadd.f32 %v12550_v0, %v12255_v3 }
 0xf75   : > { %v9776_v44 = vadd.f32 %v12553_v25, %v12255_v3 }
 0xf77   : > { %v12668_v23 = vpop.f32.mrb[56].mxu1 }
 0xf78   : > { %v9822_v32 = vadd.f32 %v12668_v23, %v9757_v49  ;;  %v9813_v24 = vpop.f32.mrb[57].mxu1 }
 0xf79   : > { %v9814_v46 = vadd.f32 %v9813_v24, %v9749_v50  ;;  %v12669_v43 = vpop.f32.mrb[58].mxu1 }
 0xf7a   : > { %v12280_v48 = vmul.f32 -1.442695, %v9822_v32  ;;  %v9825_v61 = vadd.f32 %v12669_v43, %v9760_v14  ;;  %v9816_v30 = vpop.f32.mrb[59].mxu1 }
 0xf7b   : > { %v12278_v27 = vmul.f32 -1.442695, %v9814_v46  ;;  %v9817_v13 = vadd.f32 %v9816_v30, %v9752_v35 }
 0xf7c   : > { %13672 = vpow2.f32 %v12280_v48  ;;  %v12281_v18 = vmul.f32 -1.442695, %v9825_v61 }
 0xf7d   : > { %13674 = vpow2.f32 %v12278_v27  ;;  %v12279_v42 = vmul.f32 -1.442695, %v9817_v13 }
 0xf7e   : > { %13676 = vpow2.f32 %v12281_v18 }
 0xf7f   : > { %v12672_v28 = vpop.f32.mrb[60].mxu1 }
 0xf80   : > { %v19702_v20 = vadd.f32 %v12672_v28, %v9773_v63  ;;  %v9829_v58 = vpop.f32.mrb[61].mxu1 }
 0xf81   : > { %v19704_v19 = vadd.f32 %v9829_v58, %v9765_v51  ;;  %v12673_v29 = vpop.f32.mrb[62].mxu1 }
 0xf82   : > { %v19706_v15 = vadd.f32 %v12673_v29, %v9776_v44  ;;  %v9832_v22 = vpop.f32.mrb[63].mxu1  ;;  %v12284_v61 = vmul.f32 -1.442695, %v19702_v20 }
 0xf83   : > { %v19708_v45 = vadd.f32 %v9832_v22, %v9768_v4  ;;  %v12282_v20 = vmul.f32 -1.442695, %v19704_v19 }
 0xf86   : > { %v13673_v5 = vpop.eup %13672 }
 0xf87   : > { %v13675_v31 = vpop.eup %13674  ;;  %v9870_v56 = vadd.f32 1.0, %v13673_v5 }
 0xf88   : > { %v9868_v36 = vadd.f32 1.0, %v13675_v31  ;;  %v13677_v1 = vpop.eup %13676 }
 0xf89   : > { %13678 = vrcp.f32 %v9870_v56  ;;  %v9871_v59 = vadd.f32 1.0, %v13677_v1 }
 0xf8a   : > { %13680 = vrcp.f32 %v9868_v36 }
 0xf8b   : > { %13682 = vpow2.f32 %v12279_v42 }
 0xf8c   : > { %13684 = vrcp.f32 %v9871_v59 }
 0xf93   : > { %v13679_v6 = vpop.eup %13678 }
 0xf94   : > { %v13681_v10 = vpop.eup %13680  ;;  %v10005_v54 = vrot.slane %v13679_v6, %v18939_v57  ;;  %v9998_v39 = vcombine.high %v13679_v6, %v13679_v6 }
 0xf95   : > { %v9907_v52 = vrot.slane %v13681_v10, %v18939_v57  ;;  %v13683_v33 = vpop.eup %13682  ;;  %v9900_v0 = vcombine.high %v13681_v10, %v13681_v10 }
 0xf96   : > { %v19713_v2 = vrot.slane %v10005_v54, %v18939_v57  ;;  %v10013_v55 = vcombine.high %v10005_v54, %v10005_v54  ;;  %v9869_v37 = vadd.f32 1.0, %v13683_v33  ;;  %v10012_v9 = vrot.slane %v9998_v39, %v18939_v57  ;;  %v13685_v41 = vpop.eup %13684 }
 0xf97   : > { %v9915_v16 = vcombine.high %v9907_v52, %v9907_v52  ;;  %v19721_v34 = vrot.slane %v9907_v52, %v18939_v57  ;;  %v10054_v4 = vrot.slane %v13685_v41, %v18939_v57  ;;  %v9914_v50 = vrot.slane %v9900_v0, %v18939_v57 }
 0xf98   : > { %v10423_v40 = vrot.slane %v19713_v2, %v14363_v8  ;;  %v19718_v21 = vrot.slane %v10013_v55, %v18939_v57  ;;  %v19735_v62 = vcombine.high %v19713_v2, %v19713_v2  ;;  %13686 = vrcp.f32 %v9869_v37 }
 0xf99   : > { %v19727_v17 = vrot.slane %v9915_v16, %v18939_v57  ;;  %v10359_v60 = vrot.slane %v19721_v34, %v14363_v8  ;;  %v10014_v51 = vcombine.high %v10012_v9, %v10012_v9  ;;  %v19749_v47 = vrot.slane %v10012_v9, %v18939_v57 }
 0xf9a   : > { %10644 = vrot.lane.b32.xlu0 %v10423_v40, %s14017_s0  ;;  %v10427_v12 = vrot.slane %v19718_v21, %v14363_v8  ;;  %v19742_v53 = vcombine.high %v19718_v21, %v19718_v21  ;;  %v10431_v11 = vrot.slane %v19735_v62, %v14363_v8  ;;  %v10062_v25 = vcombine.high %v10054_v4, %v10054_v4 }
 0xf9b   : > { %v10363_v3 = vrot.slane %v19727_v17, %v14363_v8  ;;  %v19755_v38 = vrot.slane %v10014_v51, %v18939_v57  ;;  %v10439_v63 = vrot.slane %v19749_v47, %v14363_v8  ;;  %v19761_v44 = vrot.slane %v10054_v4, %v18939_v57 }
 0xf9c   : > { %10646 = vrot.lane.b32.xlu1 %v10427_v12, %s14017_s0  ;;  %v10435_v26 = vrot.slane %v19742_v53, %v14363_v8  ;;  %v19767_v23 = vrot.slane %v10062_v25, %v18939_v57  ;;  %v19775_v14 = vcombine.high %v19721_v34, %v19721_v34  ;;  %v19782_v43 = vcombine.high %v19727_v17, %v19727_v17 }
 0xf9d   : > { %v10443_v49 = vrot.slane %v19755_v38, %v14363_v8  ;;  %v10455_v24 = vrot.slane %v19761_v44, %v14363_v8  ;;  %v9916_v35 = vcombine.high %v9914_v50, %v9914_v50  ;;  %v19790_v27 = vrot.slane %v9914_v50, %v18939_v57 }
 0xf9e   : > { %10612 = vrot.lane.b32.xlu0 %v10359_v60, %s14017_s0  ;;  %v10459_v46 = vrot.slane %v19767_v23, %v14363_v8  ;;  %v10367_v30 = vrot.slane %v19775_v14, %v14363_v8  ;;  %v10371_v13 = vrot.slane %v19782_v43, %v14363_v8  ;;  %13688 = vpow2.f32 %v12284_v61 }
 0xf9f   : > { %v19796_v18 = vrot.slane %v9916_v35, %v18939_v57  ;;  %v10375_v58 = vrot.slane %v19790_v27, %v14363_v8  ;;  %v10047_v22 = vcombine.high %v13685_v41, %v13685_v41  ;;  %13690 = vpow2.f32 %v12282_v20 }
 0xfa0   : > { %10614 = vrot.lane.b32.xlu1 %v10363_v3, %s14017_s0  ;;  %v19816_v56 = vcombine.high %v19749_v47, %v19749_v47  ;;  %v19823_v42 = vcombine.high %v19755_v38, %v19755_v38  ;;  %v19831_v6 = vcombine.high %v19761_v44, %v19761_v44  ;;  %v19838_v52 = vcombine.high %v19767_v23, %v19767_v23 }
 0xfa1   : > { %v10379_v5 = vrot.slane %v19796_v18, %v14363_v8  ;;  %v10061_v1 = vrot.slane %v10047_v22, %v18939_v57  ;;  %v12285_v39 = vmul.f32 -1.442695, %v19706_v15  ;;  %v19858_v60 = vcombine.high %v19790_v27, %v19790_v27 }
 0xfa2   : > { %10648 = vrot.lane.b32.xlu0 %v10431_v11, %s14017_s0  ;;  %v13687_v32 = vpop.eup %13686  ;;  %v10447_v59 = vrot.slane %v19816_v56, %v14363_v8  ;;  %v10451_v54 = vrot.slane %v19823_v42, %v14363_v8  ;;  %v10463_v55 = vrot.slane %v19831_v6, %v14363_v8  ;;  %v10467_v9 = vrot.slane %v19838_v52, %v14363_v8 }
 0xfa3   : > { %v9956_v48 = vrot.slane %v13687_v32, %v18939_v57  ;;  %v10063_v33 = vcombine.high %v10061_v1, %v10061_v1  ;;  %v19845_v16 = vrot.slane %v10061_v1, %v18939_v57  ;;  %v9949_v12 = vcombine.high %v13687_v32, %v13687_v32 }
 0xfa4   : > { %10650 = vrot.lane.b32.xlu1 %v10435_v26, %s14017_s0  ;;  %13692 = vpow2.f32 %v12285_v39  ;;  %v19865_v4 = vcombine.high %v19796_v18, %v19796_v18  ;;  %v10383_v0 = vrot.slane %v19858_v60, %v14363_v8  ;;  %v12283_v50 = vmul.f32 -1.442695, %v19708_v45 }
 0xfa5   : > { %v9964_v28 = vcombine.high %v9956_v48, %v9956_v48  ;;  %v19803_v29 = vrot.slane %v9956_v48, %v18939_v57  ;;  %v19851_v41 = vrot.slane %v10063_v33, %v18939_v57  ;;  %v10471_v15 = vrot.slane %v19845_v16, %v14363_v8 }
 0xfa6   : > { %10652 = vrot.lane.b32.xlu0 %v10439_v63, %s14017_s0  ;;  %v9963_v11 = vrot.slane %v9949_v12, %v18939_v57  ;;  %v10387_v25 = vrot.slane %v19865_v4, %v14363_v8 }
 0xfa7   : > { %v19809_v31 = vrot.slane %v9964_v28, %v18939_v57  ;;  %v10391_v19 = vrot.slane %v19803_v29, %v14363_v8  ;;  %v10475_v51 = vrot.slane %v19851_v41, %v14363_v8  ;;  %v19873_v26 = vcombine.high %v19803_v29, %v19803_v29 }
 0xfa8   : > { %10654 = vrot.lane.b32.xlu1 %v10443_v49, %s14017_s0  ;;  %v13689_v10 = vpop.eup %13688  ;;  %v9965_v49 = vcombine.high %v9963_v11, %v9963_v11  ;;  %v19907_v20 = vcombine.high %v19851_v41, %v19851_v41 }
 0xfa9   : > { %v10395_v36 = vrot.slane %v19809_v31, %v14363_v8  ;;  %v9874_v40 = vadd.f32 1.0, %v13689_v10  ;;  %v13691_v37 = vpop.eup %13690  ;;  %v19880_v63 = vcombine.high %v19809_v31, %v19809_v31  ;;  %v10399_v32 = vrot.slane %v19873_v26, %v14363_v8 }
 0xfaa   : > { %10660 = vrot.lane.b32.xlu0 %v10455_v24, %s14017_s0  ;;  %v9872_v3 = vadd.f32 1.0, %v13691_v37  ;;  %v19887_v24 = vrot.slane %v9963_v11, %v18939_v57  ;;  %v19893_v48 = vrot.slane %v9965_v49, %v18939_v57 }
 0xfab   : > { %13694 = vrcp.f32 %v9874_v40  ;;  %v10403_v35 = vrot.slane %v19880_v63, %v14363_v8 }
 0xfac   : > { %10662 = vrot.lane.b32.xlu1 %v10459_v46, %s14017_s0  ;;  %13696 = vrcp.f32 %v9872_v3  ;;  %v10407_v45 = vrot.slane %v19887_v24, %v14363_v8  ;;  %v10411_v28 = vrot.slane %v19893_v48, %v14363_v8  ;;  %v19922_v1 = vcombine.high %v19893_v48, %v19893_v48 }
 0xfad   : > { %13698 = vpow2.f32 %v12283_v50 }
 0xfae   : > { %10616 = vrot.lane.b32.xlu0 %v10367_v30, %s14017_s0  ;;  %v13693_v46 = vpop.eup %13692  ;;  %v19900_v30 = vcombine.high %v19845_v16, %v19845_v16  ;;  %v10419_v40 = vrot.slane %v19922_v1, %v14363_v8 }
 0xfb0   : > { %10618 = vrot.lane.b32.xlu1 %v10371_v13, %s14017_s0  ;;  %v9875_v13 = vadd.f32 1.0, %v13693_v46 }
 0xfb2   : > { %10620 = vrot.lane.b32.xlu0 %v10375_v58, %s14017_s0  ;;  %13700 = vrcp.f32 %v9875_v13 }
 0xfb4   : > { %10622 = vrot.lane.b32.xlu1 %v10379_v5, %s14017_s0  ;;  %v10479_v5 = vrot.slane %v19900_v30, %v14363_v8 }
 0xfb5   : > { %v13695_v61 = vpop.eup %13694 }
 0xfb6   : > { %10628 = vrot.lane.b32.xlu0 %v10391_v19, %s14017_s0  ;;  %v10201_v58 = vrot.slane %v13695_v61, %v18939_v57  ;;  %v13697_v22 = vpop.eup %13696  ;;  %v19915_v19 = vcombine.high %v19887_v24, %v19887_v24 }
 0xfb7   : > { %v10103_v10 = vrot.slane %v13697_v22, %v18939_v57  ;;  %v13699_v39 = vpop.eup %13698 }
 0xfb8   : > { %10630 = vrot.lane.b32.xlu1 %v10395_v36, %s14017_s0  ;;  %v10483_v36 = vrot.slane %v19907_v20, %v14363_v8  ;;  %v19929_v33 = vrot.slane %v10201_v58, %v18939_v57  ;;  %v9873_v3 = vadd.f32 1.0, %v13699_v39 }
 0xfb9   : > { %v10111_v12 = vcombine.high %v10103_v10, %v10103_v10 }
 0xfba   : > { %10656 = vrot.lane.b32.xlu0 %v10447_v59, %s14017_s0  ;;  %v10209_v59 = vcombine.high %v10201_v58, %v10201_v58  ;;  %v19955_v50 = vcombine.high %v19929_v33, %v19929_v33  ;;  %13702 = vrcp.f32 %v9873_v3 }
 0xfbb   : > { %v19947_v11 = vrot.slane %v10111_v12, %v18939_v57 }
 0xfbc   : > { %10658 = vrot.lane.b32.xlu1 %v10451_v54, %s14017_s0  ;;  %v10415_v54 = vrot.slane %v19915_v19, %v14363_v8  ;;  %v19935_v37 = vrot.slane %v10209_v59, %v18939_v57 }
 0xfbd   : > { %v20002_v3 = vcombine.high %v19947_v11, %v19947_v11 }
 0xfbe   : > { %10664 = vrot.lane.b32.xlu0 %v10463_v55, %s14017_s0  ;;  %v10194_v55 = vcombine.high %v13695_v61, %v13695_v61  ;;  %v19962_v46 = vcombine.high %v19935_v37, %v19935_v37 }
 0xfc0   : > { %10666 = vrot.lane.b32.xlu1 %v10467_v9, %s14017_s0  ;;  %v10551_v9 = vrot.slane %v19929_v33, %v14363_v8  ;;  %v10563_v58 = vrot.slane %v19962_v46, %v14363_v8 }
 0xfc2   : > { %10668 = vrot.lane.b32.xlu0 %v10471_v15, %s14017_s0  ;;  %v19941_v15 = vrot.slane %v10103_v10, %v18939_v57 }
 0xfc4   : > { %10670 = vrot.lane.b32.xlu1 %v10475_v51, %s14017_s0  ;;  %v10555_v51 = vrot.slane %v19935_v37, %v14363_v8  ;;  %v10487_v49 = vrot.slane %v19941_v15, %v14363_v8  ;;  %v19995_v12 = vcombine.high %v19941_v15, %v19941_v15 }
 0xfc6   : > { %10624 = vrot.lane.b32.xlu0 %v10383_v0, %s14017_s0  ;;  %v10208_v0 = vrot.slane %v10194_v55, %v18939_v57 }
 0xfc8   : > { %10626 = vrot.lane.b32.xlu1 %v10387_v25, %s14017_s0  ;;  %v13701_v25 = vpop.eup %13700  ;;  %v19969_v13 = vrot.slane %v10208_v0, %v18939_v57 }
 0xfc9   : > { %v10250_v61 = vrot.slane %v13701_v25, %v18939_v57  ;;  %v13703_v55 = vpop.eup %13702 }
 0xfca   : > { %10632 = vrot.lane.b32.xlu0 %v10399_v32, %s14017_s0  ;;  %v10491_v32 = vrot.slane %v19947_v11, %v14363_v8  ;;  %v10567_v59 = vrot.slane %v19969_v13, %v14363_v8 }
 0xfcb   : > { %v19981_v10 = vrot.slane %v10250_v61, %v18939_v57 }
 0xfcc   : > { %10634 = vrot.lane.b32.xlu1 %v10403_v35, %s14017_s0  ;;  %v10210_v35 = vcombine.high %v10208_v0, %v10208_v0  ;;  %v10152_v0 = vrot.slane %v13703_v55, %v18939_v57 }
 0xfce   : > { %10636 = vrot.lane.b32.xlu0 %v10407_v45, %s14017_s0  ;;  %v10559_v45 = vrot.slane %v19955_v50, %v14363_v8 }
 0xfd0   : > { %10638 = vrot.lane.b32.xlu1 %v10411_v28, %s14017_s0  ;;  %v10096_v28 = vcombine.high %v13697_v22, %v13697_v22 }
 0xfd2   : > { %10672 = vrot.lane.b32.xlu0 %v10479_v5, %s14017_s0  ;;  %v19975_v5 = vrot.slane %v10210_v35, %v18939_v57  ;;  %v10110_v39 = vrot.slane %v10096_v28, %v18939_v57  ;;  %v10499_v35 = vrot.slane %v20002_v3, %v14363_v8 }
 0xfd4   : > { %10674 = vrot.lane.b32.xlu1 %v10483_v36, %s14017_s0  ;;  %v10258_v36 = vcombine.high %v10250_v61, %v10250_v61  ;;  %v10571_v22 = vrot.slane %v19975_v5, %v14363_v8 }
 0xfd6   : > { %10640 = vrot.lane.b32.xlu0 %v10415_v54, %s14017_s0  ;;  %v19987_v54 = vrot.slane %v10258_v36, %v18939_v57  ;;  %v10243_v36 = vcombine.high %v13701_v25, %v13701_v25 }
 0xfd8   : > { %10642 = vrot.lane.b32.xlu1 %v10419_v40, %s14017_s0  ;;  %v10583_v40 = vrot.slane %v19981_v10, %v14363_v8 }
 0xfda   : > { %10708 = vrot.lane.b32.xlu0 %v10551_v9, %s14017_s0  ;;  %v10587_v9 = vrot.slane %v19987_v54, %v14363_v8 }
 0xfdc   : > { %10710 = vrot.lane.b32.xlu1 %v10555_v51, %s14017_s0  ;;  %v10112_v51 = vcombine.high %v10110_v39, %v10110_v39 }
 0xfde   : > { %10676 = vrot.lane.b32.xlu0 %v10487_v49, %s14017_s0  ;;  %v10495_v49 = vrot.slane %v19995_v12, %v14363_v8  ;;  %v20015_v61 = vrot.slane %v10112_v51, %v18939_v57  ;;  %v10257_v51 = vrot.slane %v10243_v36, %v18939_v57 }
 0xfe0   : > { %10678 = vrot.lane.b32.xlu1 %v10491_v32, %s14017_s0  ;;  %v20009_v32 = vrot.slane %v10110_v39, %v18939_v57  ;;  %21460 = vst [vmem:[#allocation128_spill] sm:$0xff] %v20015_v61 }
 0xfe2   : > { %10712 = vrot.lane.b32.xlu0 %v10559_v45, %s14017_s0  ;;  %v10160_v45 = vcombine.high %v10152_v0, %v10152_v0  ;;  %v10503_v28 = vrot.slane %v20009_v32, %v14363_v8 }
 0xfe4   : > { %10714 = vrot.lane.b32.xlu1 %v10563_v58, %s14017_s0  ;;  %v20021_v58 = vrot.slane %v10152_v0, %v18939_v57 }
 0xfe6   : > { %10716 = vrot.lane.b32.xlu0 %v10567_v59, %s14017_s0  ;;  %21461 = vst [vmem:[#allocation137_spill] sm:$0xff] %v20021_v58  ;;  %v10507_v59 = vrot.slane %v20015_v61, %v14363_v8  ;;  %v10519_v39 = vrot.slane %v20021_v58, %v14363_v8 }
 0xfe8   : > { %10718 = vrot.lane.b32.xlu1 %v10571_v22, %s14017_s0  ;;  %v20027_v22 = vrot.slane %v10160_v45, %v18939_v57  ;;  %v20056_v45 = vcombine.high %v19987_v54, %v19987_v54 }
 0xfea   : > { %10724 = vrot.lane.b32.xlu0 %v10583_v40, %s14017_s0  ;;  %21462 = vst [vmem:[#allocation129_spill] sm:$0xff] %v20027_v22  ;;  %v20034_v40 = vcombine.high %v19969_v13, %v19969_v13  ;;  %v10523_v25 = vrot.slane %v20027_v22, %v14363_v8  ;;  %21464 = vst [vmem:[#allocation130_spill] sm:$0xff] %v20056_v45 }
 0xfec   : > { %10726 = vrot.lane.b32.xlu1 %v10587_v9, %s14017_s0  ;;  %v20041_v9 = vcombine.high %v19975_v5, %v19975_v5  ;;  %v10575_v0 = vrot.slane %v20034_v40, %v14363_v8 }
 0xfee   : > { %10680 = vrot.lane.b32.xlu0 %v10495_v49, %s14017_s0  ;;  %v20049_v49 = vcombine.high %v19981_v10, %v19981_v10 }
 0xff0   : > { %10682 = vrot.lane.b32.xlu1 %v10499_v35, %s14017_s0  ;;  %21463 = vst [vmem:[#allocation138_spill] sm:$0xff] %v20049_v49  ;;  %v10579_v35 = vrot.slane %v20041_v9, %v14363_v8  ;;  %v10591_v36 = vrot.slane %v20049_v49, %v14363_v8  ;;  %v20075_v49 = vcombine.high %v20009_v32, %v20009_v32 }
 0xff2   : > { %10684 = vrot.lane.b32.xlu0 %v10503_v28, %s14017_s0  ;;  %v10259_v28 = vcombine.high %v10257_v51, %v10257_v51  ;;  %21467 = vst [vmem:[#allocation114_spill] sm:$0xff] %v20075_v49 }
 0xff4   : > { %10686 = vrot.lane.b32.xlu1 %v10507_v59, %s14017_s0  ;;  %v20062_v59 = vrot.slane %v10257_v51, %v18939_v57  ;;  %v20082_v51 = vcombine.high %v20015_v61, %v20015_v61 }
 0xff6   : > { %10692 = vrot.lane.b32.xlu0 %v10519_v39, %s14017_s0  ;;  %21465 = vst [vmem:[#allocation139_spill] sm:$0xff] %v20062_v59  ;;  %v10145_v39 = vcombine.high %v13703_v55, %v13703_v55  ;;  %21468 = vst [vmem:[#allocation141_spill] sm:$0xff] %v20082_v51 }
 0xff8   : > { %10694 = vrot.lane.b32.xlu1 %v10523_v25, %s14017_s0  ;;  %v10595_v25 = vrot.slane %v20056_v45, %v14363_v8  ;;  %v20097_v45 = vcombine.high %v20027_v22, %v20027_v22 }
 0xffa   : > { %10720 = vrot.lane.b32.xlu0 %v10575_v0, %s14017_s0  ;;  %v20068_v0 = vrot.slane %v10259_v28, %v18939_v57  ;;  %v10159_v28 = vrot.slane %v10145_v39, %v18939_v57  ;;  %21470 = vst [vmem:[#allocation148_spill] sm:$0xff] %v20097_v45 }
 0xffc   : > { %10722 = vrot.lane.b32.xlu1 %v10579_v35, %s14017_s0  ;;  %21466 = vst [vmem:[#allocation112_spill] sm:$0xff] %v20068_v0  ;;  %v10599_v35 = vrot.slane %v20062_v59, %v14363_v8  ;;  %v10603_v55 = vrot.slane %v20068_v0, %v14363_v8  ;;  %v10161_v61 = vcombine.high %v10159_v28, %v10159_v28 }
 0xffe   : > { %10728 = vrot.lane.b32.xlu0 %v10591_v36, %s14017_s0  ;;  %v10511_v36 = vrot.slane %v20075_v49, %v14363_v8 }
0x1000   : > { %10730 = vrot.lane.b32.xlu1 %v10595_v25, %s14017_s0  ;;  %v20090_v25 = vcombine.high %v20021_v58, %v20021_v58 }
0x1002   : > { %10732 = vrot.lane.b32.xlu0 %v10599_v35, %s14017_s0  ;;  %21469 = vst [vmem:[#allocation147_spill] sm:$0xff] %v20090_v25  ;;  %v10515_v35 = vrot.slane %v20082_v51, %v14363_v8  ;;  %v10527_v39 = vrot.slane %v20090_v25, %v14363_v8  ;;  %v20109_v51 = vrot.slane %v10161_v61, %v18939_v57 }
0x1003   : > { %v20116_v25 = vcombine.high %v20062_v59, %v20062_v59 }
0x1004   : > { %10734 = vrot.lane.b32.xlu1 %v10603_v55, %s14017_s0  ;;  %v20103_v55 = vrot.slane %v10159_v28, %v18939_v57  ;;  %21472 = vst [vmem:[#allocation119_spill] sm:$0xff] %v20109_v51  ;;  %v20123_v57 = vcombine.high %v20068_v0, %v20068_v0  ;;  %v20137_v0 = vcombine.high %v20109_v51, %v20109_v51 }
0x1005   : > { %21473 = vst [vmem:[#allocation149_spill] sm:$0xff] %v20116_v25 }
0x1006   : > { %10688 = vrot.lane.b32.xlu0 %v10511_v36, %s14017_s0  ;;  %21471 = vst [vmem:[#allocation159_spill] sm:$0xff] %v20103_v55  ;;  %v10531_v36 = vrot.slane %v20097_v45, %v14363_v8  ;;  %21474 = vst [vmem:[#allocation116_spill] sm:$0xff] %v20123_v57  ;;  %v20130_v59 = vcombine.high %v20103_v55, %v20103_v55 }
0x1008   : > { %10690 = vrot.lane.b32.xlu1 %v10515_v35, %s14017_s0  ;;  %v10535_v35 = vrot.slane %v20103_v55, %v14363_v8  ;;  %21475 = vst [vmem:[#allocation150_spill] sm:$0xff] %v20130_v59  ;;  %v10543_v55 = vrot.slane %v20130_v59, %v14363_v8 }
0x100a   : > { %10696 = vrot.lane.b32.xlu0 %v10527_v39, %s14017_s0  ;;  %v10539_v39 = vrot.slane %v20109_v51, %v14363_v8 }
0x100c   : > { %v10645_v49 = vpop.permute.xlu0 %10644  ;;  %10698 = vrot.lane.b32.xlu1 %v10531_v36, %s14017_s0  ;;  %v10607_v36 = vrot.slane %v20116_v25, %v14363_v8 }
0x100e   : > { %v10647_v28 = vpop.permute.xlu1 %10646  ;;  %10700 = vrot.lane.b32.xlu0 %v10535_v35, %s14017_s0  ;;  %v10611_v35 = vrot.slane %v20123_v57, %v14363_v8  ;;  %v10547_v57 = vrot.slane %v20137_v0, %v14363_v8 }
0x1010   : > { %v10613_v61 = vpop.permute.xlu0 %10612  ;;  %10702 = vrot.lane.b32.xlu1 %v10539_v39, %s14017_s0  ;;  %v10821_v39 = vsel %vm21476_vm14, %v19718_v21, %v10647_v28  ;;  %vm21491_vm14 = vmmov %vm21421_vm0 }
0x1012   : > { %v10615_v45 = vpop.permute.xlu1 %10614  ;;  %10736 = vrot.lane.b32.xlu0 %v10607_v36, %s14017_s0  ;;  %v10820_v36 = vsel %vm21477_vm15, %v19713_v2, %v10645_v49  ;;  %vm21492_vm15 = vmmov %vm21421_vm0 }
0x1013   : > { %v11196_v25 = vcombine.low %v10820_v36, %v10821_v39 }
0x1014   : > { %v10649_v22 = vpop.permute.xlu0 %10648  ;;  %10738 = vrot.lane.b32.xlu1 %v10611_v35, %s14017_s0 }
0x1015   : > { %v10822_v21 = vsel %vm21478_vm4, %v19735_v62, %v10649_v22  ;;  %v11204_v59 = vrot.slane %v11196_v25, %v14360_v7  ;;  %v10805_v22 = vsel %vm21482_vm12, %v19727_v17, %v10615_v45  ;;  %vm21493_vm4 = vmmov %vm21421_vm0 }
0x1016   : > { %v10651_v58 = vpop.permute.xlu1 %10650  ;;  %10704 = vrot.lane.b32.xlu0 %v10543_v55, %s14017_s0  ;;  %vm21496_vm12 = vmmov %vm21421_vm0 }
0x1017   : > { %v10823_v28 = vsel %vm21479_vm1, %v19742_v53, %v10651_v58  ;;  %v10804_v53 = vsel %vm21481_vm9, %v19721_v34, %v10613_v61  ;;  %vm21494_vm1 = vmmov %vm21421_vm0 }
0x1018   : > { %v11197_v35 = vcombine.low %v10822_v21, %v10823_v28  ;;  %v10653_v51 = vpop.permute.xlu0 %10652  ;;  %10706 = vrot.lane.b32.xlu1 %v10547_v57, %s14017_s0  ;;  %v11060_v55 = vcombine.low %v10804_v53, %v10805_v22  ;;  %vm21495_vm9 = vmmov %vm21421_vm0  ;;  %s11693_s0 = sshll.u32 %s21555_s21, 4  ;;  %s20430_s0 = int_to_ptr.vmem [resolvable:$true] %s11693_s0 }
0x1019   : > { %v10824_v17 = vsel %vm21484_vm10, %v19749_v47, %v10653_v51  ;;  %vm21498_vm10 = vmmov %vm21421_vm0  ;;  %s13872_s27 = scalar_lea.vmem %s20430_s0, 16  ;;  %p13879_p2 = scmp.lt.s32.totalorder %s20430_s0, %s13877_s3 }
0x101a   : > { %v11211_v2 = vrot.slane %v11197_v35, %v14360_v7  ;;  %v10655_v49 = vpop.permute.xlu1 %10654  ;;  %10964 = vrot.lane.b32.xlu0 %v10820_v36, %s20847_s28  ;;  %v11068_v45 = vrot.slane %v11060_v55, %v14360_v7  ;;  %p13873_p13 = scmp.ne.s32.totalorder %s20430_s0, %s13872_s27  ;;  %p13880_p0 = scmp.lt.s32.totalorder %s13878_s24, %s13872_s27 }
0x101c   : > { %v11212_v8 = vcombine.low %v11204_v59, %v11211_v2  ;;  %v10661_v62 = vpop.permute.xlu0 %10660  ;;  %10966 = vrot.lane.b32.xlu1 %v10821_v39, %s20847_s28  ;;  %p13874_p6 = pnand %p13873_p13, %p21556_p1  ;;  %p13881_p5 = por %p13880_p0, %p13879_p2 }
0x101e   : > { %11644 = vst.msk [vmem:[%s20162_s26 + $0x40] sm:$0xff] %vm3733_vm8, %v11212_v8  ;;  %v10663_v58 = vpop.permute.xlu1 %10662  ;;  %10932 = vrot.lane.b32.xlu0 %v10804_v53, %s20847_s28  ;;  %p13875_p9 = pneg %p13874_p6 }
0x101f   : > { %v10829_v51 = vsel %vm21487_vm6, %v19767_v23, %v10663_v58  ;;  %vm21501_vm6 = vmmov %vm21421_vm0 }
0x1020   : > { %v10617_v25 = vpop.permute.xlu0 %10616  ;;  %10934 = vrot.lane.b32.xlu1 %v10805_v22, %s20847_s28  ;;  %p13882_p10 = pnand %p13881_p5, %p13875_p9 }
0x1021   : > { %v10806_v59 = vsel %vm21421_vm0, %v19775_v14, %v10617_v25  ;;  %v10825_v14 = vsel %vm21485_vm11, %v19755_v38, %v10655_v49  ;;  %vm21499_vm11 = vmmov %vm21421_vm0 }
0x1022   : > { %v10619_v57 = vpop.permute.xlu1 %10618  ;;  %10968 = vrot.lane.b32.xlu0 %v10822_v21, %s20847_s28  ;;  %v11213_v8 = vcombine.low %v10824_v17, %v10825_v14 }
0x1023   : > { %v10807_v34 = vsel %vm21483_vm3, %v19782_v43, %v10619_v57  ;;  %v10828_v43 = vsel %vm21486_vm13, %v19761_v44, %v10661_v62  ;;  %vm21497_vm3 = vmmov %vm21421_vm0 }
0x1024   : > { %v11061_v61 = vcombine.low %v10806_v59, %v10807_v34  ;;  %v10621_v39 = vpop.permute.xlu0 %10620  ;;  %10970 = vrot.lane.b32.xlu1 %v10823_v28, %s20847_s28  ;;  %v11221_v58 = vrot.slane %v11213_v8, %v14360_v7  ;;  %v11264_v22 = vcombine.low %v10828_v43, %v10829_v51  ;;  %vm21500_vm13 = vmmov %vm21421_vm0 }
0x1025   : > { %v10808_v23 = vsel %vm21490_vm7, %v19790_v27, %v10621_v39  ;;  %vm21504_vm7 = vmmov %vm21421_vm0 }
0x1026   : > { %v11075_v36 = vrot.slane %v11061_v61, %v14360_v7  ;;  %10972 = vrot.lane.b32.xlu0 %v10824_v17, %s20847_s28  ;;  %v10623_v21 = vpop.permute.xlu1 %10622  ;;  %v11272_v39 = vrot.slane %v11264_v22, %v14360_v7 }
0x1028   : > { %v11076_v35 = vcombine.low %v11068_v45, %v11075_v36  ;;  %v10629_v2 = vpop.permute.xlu0 %10628  ;;  %10974 = vrot.lane.b32.xlu1 %v10825_v14, %s20847_s28 }
0x1029   : > { %v10812_v61 = vsel %vm21494_vm1, %v19803_v29, %v10629_v2  ;;  %vm21508_vm1 = vmmov %vm21421_vm0 }
0x102a   : > { %11636 = vst.msk [vmem:[%s20162_s26] sm:$0xff] %vm3733_vm8, %v11076_v35  ;;  %10980 = vrot.lane.b32.xlu0 %v10828_v43, %s20847_s28  ;;  %v10631_v47 = vpop.permute.xlu1 %10630 }
0x102c   : > { %v10657_v28 = vpop.permute.xlu0 %10656  ;;  %10982 = vrot.lane.b32.xlu1 %v10829_v51, %s20847_s28 }
0x102d   : > { %v10826_v49 = vsel %vm21488_vm5, %v19816_v56, %v10657_v28  ;;  %v10809_v56 = vsel %vm21491_vm14, %v19796_v18, %v10623_v21  ;;  %vm21502_vm5 = vmmov %vm21421_vm0 }
0x102e   : > { %10936 = vrot.lane.b32.xlu0 %v10806_v59, %s20847_s28  ;;  %v10659_v38 = vpop.permute.xlu1 %10658  ;;  %v11077_v36 = vcombine.low %v10808_v23, %v10809_v56  ;;  %vm21505_vm14 = vmmov %vm21421_vm0 }
0x102f   : > { %v10827_v44 = vsel %vm21489_vm2, %v19823_v42, %v10659_v38  ;;  %vm21503_vm2 = vmmov %vm21421_vm0 }
0x1030   : > { %v11214_v62 = vcombine.low %v10826_v49, %v10827_v44  ;;  %v10665_v53 = vpop.permute.xlu0 %10664  ;;  %10938 = vrot.lane.b32.xlu1 %v10807_v34, %s20847_s28 }
0x1031   : > { %v10830_v42 = vsel %vm21492_vm15, %v19831_v6, %v10665_v53  ;;  %vm21506_vm15 = vmmov %vm21421_vm0 }
0x1032   : > { %v11228_v25 = vrot.slane %v11214_v62, %v14360_v7  ;;  %10940 = vrot.lane.b32.xlu0 %v10808_v23, %s20847_s28  ;;  %v10667_v55 = vpop.permute.xlu1 %10666 }
0x1033   : > { %v10831_v57 = vsel %vm21493_vm4, %v19838_v52, %v10667_v55  ;;  %v10813_v52 = vsel %vm21495_vm9, %v19809_v31, %v10631_v47  ;;  %v11085_v31 = vrot.slane %v11077_v36, %v14360_v7  ;;  %vm21507_vm4 = vmmov %vm21421_vm0 }
0x1034   : > { %v11229_v59 = vcombine.low %v11221_v58, %v11228_v25  ;;  %v11265_v27 = vcombine.low %v10830_v42, %v10831_v57  ;;  %v10669_v34 = vpop.permute.xlu0 %10668  ;;  %10942 = vrot.lane.b32.xlu1 %v10809_v56, %s20847_s28  ;;  %v11128_v43 = vcombine.low %v10812_v61, %v10813_v52  ;;  %vm21509_vm9 = vmmov %vm21421_vm0 }
0x1036   : > { %11645 = vst.msk [vmem:[%s20162_s26 + $0x48] sm:$0xff] %vm3733_vm8, %v11229_v59  ;;  %v11279_v18 = vrot.slane %v11265_v27, %v14360_v7  ;;  %10948 = vrot.lane.b32.xlu0 %v10812_v61, %s20847_s28  ;;  %v10671_v6 = vpop.permute.xlu1 %10670 }
0x1038   : > { %v11280_v17 = vcombine.low %v11272_v39, %v11279_v18  ;;  %v10625_v45 = vpop.permute.xlu0 %10624  ;;  %10950 = vrot.lane.b32.xlu1 %v10813_v52, %s20847_s28 }
0x1039   : > { %v10810_v21 = vsel %vm21496_vm12, %v19858_v60, %v10625_v45  ;;  %vm21510_vm12 = vmmov %vm21421_vm0 }
0x103a   : > { %11648 = vst.msk [vmem:[%s20162_s26 + $0x60] sm:$0xff] %vm3733_vm8, %v11280_v17  ;;  %10976 = vrot.lane.b32.xlu0 %v10826_v49, %s20847_s28  ;;  %v10627_v29 = vpop.permute.xlu1 %10626  ;;  %v10832_v49 = vsel %vm21499_vm11, %v19845_v16, %v10669_v34  ;;  %vm21513_vm11 = vmmov %vm21421_vm0 }
0x103b   : > { %v10811_v14 = vsel %vm21421_vm0, %v19865_v4, %v10627_v29 }
0x103c   : > { %v11078_v35 = vcombine.low %v10810_v21, %v10811_v14  ;;  %v10633_v2 = vpop.permute.xlu0 %10632  ;;  %10978 = vrot.lane.b32.xlu1 %v10827_v44, %s20847_s28  ;;  %v11136_v44 = vrot.slane %v11128_v43, %v14360_v7 }
0x103d   : > { %v10814_v28 = vsel %vm21497_vm3, %v19873_v26, %v10633_v2  ;;  %vm21511_vm3 = vmmov %vm21421_vm0 }
0x103e   : > { %v11092_v47 = vrot.slane %v11078_v35, %v14360_v7  ;;  %10984 = vrot.lane.b32.xlu0 %v10830_v42, %s20847_s28  ;;  %v10635_v51 = vpop.permute.xlu1 %10634 }
0x103f   : > { %v10815_v60 = vsel %vm21498_vm10, %v19880_v63, %v10635_v51  ;;  %v10833_v63 = vsel %vm21500_vm13, %v19851_v41, %v10671_v6  ;;  %vm21512_vm10 = vmmov %vm21421_vm0 }
0x1040   : > { %v11093_v4 = vcombine.low %v11085_v31, %v11092_v47  ;;  %v11129_v8 = vcombine.low %v10814_v28, %v10815_v60  ;;  %v10637_v38 = vpop.permute.xlu0 %10636  ;;  %10986 = vrot.lane.b32.xlu1 %v10831_v57, %s20847_s28  ;;  %v11281_v58 = vcombine.low %v10832_v49, %v10833_v63  ;;  %vm21514_vm13 = vmmov %vm21421_vm0 }
0x1041   : > { %v10816_v42 = vsel %vm21504_vm7, %v19887_v24, %v10637_v38  ;;  %vm21518_vm7 = vmmov %vm21421_vm0 }
0x1042   : > { %11637 = vst.msk [vmem:[%s20162_s26 + $0x8] sm:$0xff] %vm3733_vm8, %v11093_v4  ;;  %v11143_v62 = vrot.slane %v11129_v8, %v14360_v7  ;;  %10988 = vrot.lane.b32.xlu0 %v10832_v49, %s20847_s28  ;;  %v10639_v26 = vpop.permute.xlu1 %10638  ;;  %v11289_v57 = vrot.slane %v11281_v58, %v14360_v7 }
0x1043   : > { %v10817_v22 = vsel %vm21501_vm6, %v19893_v48, %v10639_v26  ;;  %vm21515_vm6 = vmmov %vm21421_vm0 }
0x1044   : > { %v11144_v53 = vcombine.low %v11136_v44, %v11143_v62  ;;  %v10673_v23 = vpop.permute.xlu0 %10672  ;;  %10990 = vrot.lane.b32.xlu1 %v10833_v63, %s20847_s28  ;;  %v11145_v59 = vcombine.low %v10816_v42, %v10817_v22 }
0x1045   : > { %v10834_v25 = vsel %vm21502_vm5, %v19900_v30, %v10673_v23  ;;  %vm21516_vm5 = vmmov %vm21421_vm0 }
0x1046   : > { %11640 = vst.msk [vmem:[%s20162_s26 + $0x20] sm:$0xff] %vm3733_vm8, %v11144_v53  ;;  %10944 = vrot.lane.b32.xlu0 %v10810_v21, %s20847_s28  ;;  %v10675_v16 = vpop.permute.xlu1 %10674  ;;  %v11153_v24 = vrot.slane %v11145_v59, %v14360_v7 }
0x1047   : > { %v10835_v55 = vsel %vm21503_vm2, %v19907_v20, %v10675_v16  ;;  %vm21517_vm2 = vmmov %vm21421_vm0 }
0x1048   : > { %v11282_v41 = vcombine.low %v10834_v25, %v10835_v55  ;;  %v10641_v56 = vpop.permute.xlu0 %10640  ;;  %10946 = vrot.lane.b32.xlu1 %v10811_v14, %s20847_s28 }
0x1049   : > { %v10818_v30 = vsel %vm21505_vm14, %v19915_v19, %v10641_v56  ;;  %vm21519_vm14 = vmmov %vm21421_vm0 }
0x104a   : > { %v11296_v27 = vrot.slane %v11282_v41, %v14360_v7  ;;  %10952 = vrot.lane.b32.xlu0 %v10814_v28, %s20847_s28  ;;  %v10643_v48 = vpop.permute.xlu1 %10642 }
0x104b   : > { %v10819_v20 = vsel %vm21506_vm15, %v19922_v1, %v10643_v48  ;;  %vm21520_vm15 = vmmov %vm21421_vm0 }
0x104c   : > { %v11297_v34 = vcombine.low %v11289_v57, %v11296_v27  ;;  %v11146_v61 = vcombine.low %v10818_v30, %v10819_v20  ;;  %v10709_v39 = vpop.permute.xlu0 %10708  ;;  %10954 = vrot.lane.b32.xlu1 %v10815_v60, %s20847_s28 }
0x104d   : > { %v10852_v36 = vsel %vm21508_vm1, %v19929_v33, %v10709_v39  ;;  %vm21524_vm1 = vmmov %vm21421_vm0  ;;  %v21527_v39 = vld [vmem:[#allocation137_spill] sm:$0xff] }
0x104e   : > { %11649 = vst.msk [vmem:[%s20162_s26 + $0x68] sm:$0xff] %vm3733_vm8, %v11297_v34  ;;  %v11160_v18 = vrot.slane %v11146_v61, %v14360_v7  ;;  %10956 = vrot.lane.b32.xlu0 %v10816_v42, %s20847_s28  ;;  %v10711_v6 = vpop.permute.xlu1 %10710 }
0x104f   : > { %v10853_v1 = vsel %vm21507_vm4, %v19935_v37, %v10711_v6  ;;  %vm21522_vm4 = vmmov %vm21421_vm0 }
0x1050   : > { %v11161_v52 = vcombine.low %v11153_v24, %v11160_v18  ;;  %v10677_v17 = vpop.permute.xlu0 %10676  ;;  %10958 = vrot.lane.b32.xlu1 %v10817_v22, %s20847_s28  ;;  %v11468_v29 = vcombine.low %v10852_v36, %v10853_v1 }
0x1052   : > { %11641 = vst.msk [vmem:[%s20162_s26 + $0x28] sm:$0xff] %vm3733_vm8, %v11161_v52  ;;  %10992 = vrot.lane.b32.xlu0 %v10834_v25, %s20847_s28  ;;  %v10679_v19 = vpop.permute.xlu1 %10678  ;;  %v11476_v37 = vrot.slane %v11468_v29, %v14360_v7 }
0x1053   : > { %v10837_v28 = vsel %vm21511_vm3, %v19947_v11, %v10679_v19  ;;  %vm21531_vm3 = vmmov %vm21421_vm0 }
0x1054   : > { %v10713_v45 = vpop.permute.xlu0 %10712  ;;  %10994 = vrot.lane.b32.xlu1 %v10835_v55, %s20847_s28 }
0x1055   : > { %v10854_v14 = vsel %vm21509_vm9, %v19955_v50, %v10713_v45  ;;  %v10836_v50 = vsel %vm21421_vm0, %v19941_v15, %v10677_v17  ;;  %vm21526_vm9 = vmmov %vm21421_vm0  ;;  %v21529_v17 = vld [vmem:[#allocation129_spill] sm:$0xff] }
0x1056   : > { %10960 = vrot.lane.b32.xlu0 %v10818_v30, %s20847_s28  ;;  %v10715_v21 = vpop.permute.xlu1 %10714  ;;  %v11332_v4 = vcombine.low %v10836_v50, %v10837_v28  ;;  %v21525_v30 = vld [vmem:[#allocation130_spill] sm:$0xff] }
0x1057   : > { %v10855_v35 = vsel %vm21510_vm12, %v19962_v46, %v10715_v21  ;;  %vm21528_vm12 = vmmov %vm21421_vm0  ;;  %v21530_v21 = vld [vmem:[#allocation114_spill] sm:$0xff] }
0x1058   : > { %v11469_v2 = vcombine.low %v10854_v14, %v10855_v35  ;;  %v10717_v31 = vpop.permute.xlu0 %10716  ;;  %10962 = vrot.lane.b32.xlu1 %v10819_v20, %s20847_s28  ;;  %v11340_v62 = vrot.slane %v11332_v4, %v14360_v7 }
0x1059   : > { %v10856_v11 = vsel %vm21514_vm13, %v19969_v13, %v10717_v31  ;;  %vm21537_vm13 = vmmov %vm21421_vm0 }
0x105a   : > { %v11483_v43 = vrot.slane %v11469_v2, %v14360_v7  ;;  %11028 = vrot.lane.b32.xlu0 %v10852_v36, %s20847_s28  ;;  %v10719_v33 = vpop.permute.xlu1 %10718 }
0x105c   : > { %v11484_v47 = vcombine.low %v11476_v37, %v11483_v43  ;;  %v10725_v51 = vpop.permute.xlu0 %10724  ;;  %11030 = vrot.lane.b32.xlu1 %v10853_v1, %s20847_s28 }
0x105e   : > { %11660 = vst.msk [vmem:[%s20162_s26 + $0xc0] sm:$0xff] %vm3733_vm8, %v11484_v47  ;;  %10996 = vrot.lane.b32.xlu0 %v10836_v50, %s20847_s28  ;;  %v10727_v46 = vpop.permute.xlu1 %10726  ;;  %v21534_v50 = vld [vmem:[#allocation147_spill] sm:$0xff] }
0x105f   : > { %v10861_v58 = vsel %vm21517_vm2, %v19987_v54, %v10727_v46  ;;  %vm21543_vm2 = vmmov %vm21421_vm0 }
0x1060   : > { %v10681_v60 = vpop.permute.xlu0 %10680  ;;  %10998 = vrot.lane.b32.xlu1 %v10837_v28, %s20847_s28  ;;  %v21536_v28 = vld [vmem:[#allocation148_spill] sm:$0xff] }
0x1061   : > { %v10838_v38 = vsel %vm21512_vm10, %v19995_v12, %v10681_v60  ;;  %v10857_v12 = vsel %vm21515_vm6, %v19975_v5, %v10719_v33  ;;  %vm21533_vm10 = vmmov %vm21421_vm0 }
0x1062   : > { %11032 = vrot.lane.b32.xlu0 %v10854_v14, %s20847_s28  ;;  %v10683_v8 = vpop.permute.xlu1 %10682  ;;  %v11485_v22 = vcombine.low %v10856_v11, %v10857_v12  ;;  %vm21539_vm6 = vmmov %vm21421_vm0 }
0x1063   : > { %v10839_v15 = vsel %vm21513_vm11, %v20002_v3, %v10683_v8  ;;  %v10860_v3 = vsel %vm21516_vm5, %v19981_v10, %v10725_v51  ;;  %vm21535_vm11 = vmmov %vm21421_vm0 }
0x1064   : > { %v11333_v49 = vcombine.low %v10838_v38, %v10839_v15  ;;  %v10685_v44 = vpop.permute.xlu0 %10684  ;;  %11034 = vrot.lane.b32.xlu1 %v10855_v35, %s20847_s28  ;;  %v11493_v56 = vrot.slane %v11485_v22, %v14360_v7  ;;  %v11536_v42 = vcombine.low %v10860_v3, %v10861_v58  ;;  %v21532_v35 = vld [vmem:[#allocation141_spill] sm:$0xff]  ;;  %vm21541_vm5 = vmmov %vm21421_vm0 }
0x1065   : > { %v10840_v54 = vsel %vm21520_vm15, %v20009_v32, %v10685_v44  ;;  %vm21549_vm15 = vmmov %vm21421_vm0 }
0x1066   : > { %v11347_v26 = vrot.slane %v11333_v49, %v14360_v7  ;;  %11036 = vrot.lane.b32.xlu0 %v10856_v11, %s20847_s28  ;;  %v10687_v63 = vpop.permute.xlu1 %10686  ;;  %v11544_v18 = vrot.slane %v11536_v42, %v14360_v7 }
0x1068   : > { %v11348_v53 = vcombine.low %v11340_v62, %v11347_v26  ;;  %v10693_v23 = vpop.permute.xlu0 %10692  ;;  %11038 = vrot.lane.b32.xlu1 %v10857_v12, %s20847_s28  ;;  %v21540_v26 = vld [vmem:[#allocation112_spill] sm:$0xff] }
0x1069   : > { %v10844_v24 = vsel %vm21528_vm12, %v21527_v39, %v10693_v23 }
0x106a   : > { %11652 = vst.msk [vmem:[%s20162_s26 + $0x80] sm:$0xff] %vm3733_vm8, %v11348_v53  ;;  %11044 = vrot.lane.b32.xlu0 %v10860_v3, %s20847_s28  ;;  %v10695_v13 = vpop.permute.xlu1 %10694 }
0x106b   : > { %v10845_v19 = vsel %vm21421_vm0, %v21529_v17, %v10695_v13  ;;  %v21542_v13 = vld [vmem:[#allocation119_spill] sm:$0xff] }
0x106c   : > { %v10721_v16 = vpop.permute.xlu0 %10720  ;;  %11046 = vrot.lane.b32.xlu1 %v10861_v58, %s20847_s28  ;;  %v11400_v33 = vcombine.low %v10844_v24, %v10845_v19 }
0x106d   : > { %v10858_v25 = vsel %vm21518_vm7, %v20034_v40, %v10721_v16  ;;  %v21521_v40 = vld [vmem:[#allocation128_spill] sm:$0xff]  ;;  %v21544_v16 = vld [vmem:[#allocation149_spill] sm:$0xff]  ;;  %vm21545_vm7 = vmmov %vm21421_vm0 }
0x106e   : > { %11000 = vrot.lane.b32.xlu0 %v10838_v38, %s20847_s28  ;;  %v10723_v5 = vpop.permute.xlu1 %10722  ;;  %v10841_v27 = vsel %vm21522_vm4, %v21521_v40, %v10687_v63  ;;  %v11408_v44 = vrot.slane %v11400_v33, %v14360_v7  ;;  %v21550_v40 = vld [vmem:[#allocation150_spill] sm:$0xff]  ;;  %vm21551_vm4 = vmmov %vm21421_vm0 }
0x106f   : > { %v10859_v10 = vsel %vm21519_vm14, %v20041_v9, %v10723_v5  ;;  %v21523_v9 = vld [vmem:[#allocation138_spill] sm:$0xff]  ;;  %v11349_v36 = vcombine.low %v10840_v54, %v10841_v27  ;;  %v21546_v5 = vld [vmem:[#allocation116_spill] sm:$0xff]  ;;  %vm21547_vm14 = vmmov %vm21421_vm0 }
0x1070   : > { %v11486_v55 = vcombine.low %v10858_v25, %v10859_v10  ;;  %v10729_v41 = vpop.permute.xlu0 %10728  ;;  %11002 = vrot.lane.b32.xlu1 %v10839_v15, %s20847_s28  ;;  %v21538_v15 = vld [vmem:[#allocation139_spill] sm:$0xff] }
0x1071   : > { %v10862_v48 = vsel %vm21524_vm1, %v21523_v9, %v10729_v41  ;;  %v11357_v43 = vrot.slane %v11349_v36, %v14360_v7  ;;  %v21548_v41 = vld [vmem:[#allocation159_spill] sm:$0xff]  ;;  %vm21552_vm1 = vmmov %vm21421_vm0 }
0x1072   : > { %v11500_v57 = vrot.slane %v11486_v55, %v14360_v7  ;;  %11004 = vrot.lane.b32.xlu0 %v10840_v54, %s20847_s28  ;;  %v10731_v59 = vpop.permute.xlu1 %10730 }
0x1073   : > { %v10863_v20 = vsel %vm21526_vm9, %v21525_v30, %v10731_v59 }
0x1074   : > { %v11501_v34 = vcombine.low %v11493_v56, %v11500_v57  ;;  %v11537_v32 = vcombine.low %v10862_v48, %v10863_v20  ;;  %v10733_v61 = vpop.permute.xlu0 %10732  ;;  %11006 = vrot.lane.b32.xlu1 %v10841_v27, %s20847_s28 }
0x1075   : > { %v10864_v49 = vsel %vm21539_vm6, %v21538_v15, %v10733_v61 }
0x1076   : > { %11661 = vst.msk [vmem:[%s20162_s26 + $0xc8] sm:$0xff] %vm3733_vm8, %v11501_v34  ;;  %v11551_v6 = vrot.slane %v11537_v32, %v14360_v7  ;;  %11012 = vrot.lane.b32.xlu0 %v10844_v24, %s20847_s28  ;;  %v10735_v52 = vpop.permute.xlu1 %10734 }
0x1077   : > { %v10865_v63 = vsel %vm21541_vm5, %v21540_v26, %v10735_v52 }
0x1078   : > { %v11552_v1 = vcombine.low %v11544_v18, %v11551_v6  ;;  %v10689_v45 = vpop.permute.xlu0 %10688  ;;  %11014 = vrot.lane.b32.xlu1 %v10845_v19, %s20847_s28  ;;  %v11553_v23 = vcombine.low %v10864_v49, %v10865_v63 }
0x1079   : > { %v10842_v14 = vsel %vm21531_vm3, %v21530_v21, %v10689_v45 }
0x107a   : > { %11664 = vst.msk [vmem:[%s20162_s26 + $0xe0] sm:$0xff] %vm3733_vm8, %v11552_v1  ;;  %11040 = vrot.lane.b32.xlu0 %v10858_v25, %s20847_s28  ;;  %v10691_v29 = vpop.permute.xlu1 %10690  ;;  %v11561_v56 = vrot.slane %v11553_v23, %v14360_v7 }
0x107b   : > { %v10843_v2 = vsel %vm21533_vm10, %v21532_v35, %v10691_v29 }
0x107c   : > { %v11350_v31 = vcombine.low %v10842_v14, %v10843_v2  ;;  %v10697_v37 = vpop.permute.xlu0 %10696  ;;  %11042 = vrot.lane.b32.xlu1 %v10859_v10, %s20847_s28 }
0x107d   : > { %v10846_v46 = vsel %vm21535_vm11, %v21534_v50, %v10697_v37 }
0x107e   : > { %v11364_v47 = vrot.slane %v11350_v31, %v14360_v7  ;;  %11048 = vrot.lane.b32.xlu0 %v10862_v48, %s20847_s28  ;;  %v10699_v51 = vpop.permute.xlu1 %10698 }
0x107f   : > { %v10847_v60 = vsel %vm21537_vm13, %v21536_v28, %v10699_v51 }
0x1080   : > { %v11365_v4 = vcombine.low %v11357_v43, %v11364_v47  ;;  %v11401_v8 = vcombine.low %v10846_v46, %v10847_v60  ;;  %v10701_v38 = vpop.permute.xlu0 %10700  ;;  %11050 = vrot.lane.b32.xlu1 %v10863_v20, %s20847_s28 }
0x1081   : > { %v10848_v54 = vsel %vm21549_vm15, %v21548_v41, %v10701_v38 }
0x1082   : > { %11653 = vst.msk [vmem:[%s20162_s26 + $0x88] sm:$0xff] %vm3733_vm8, %v11365_v4  ;;  %v11415_v11 = vrot.slane %v11401_v8, %v14360_v7  ;;  %11052 = vrot.lane.b32.xlu0 %v10864_v49, %s20847_s28  ;;  %v10703_v62 = vpop.permute.xlu1 %10702 }
0x1083   : > { %v10849_v58 = vsel %vm21543_vm2, %v21542_v13, %v10703_v62 }
0x1084   : > { %v11416_v12 = vcombine.low %v11408_v44, %v11415_v11  ;;  %v10737_v53 = vpop.permute.xlu0 %10736  ;;  %11054 = vrot.lane.b32.xlu1 %v10865_v63, %s20847_s28  ;;  %v11417_v42 = vcombine.low %v10848_v54, %v10849_v58 }
0x1085   : > { %v20384_v22 = vsel %vm21545_vm7, %v21544_v16, %v10737_v53 }
0x1086   : > { %11656 = vst.msk [vmem:[%s20162_s26 + $0xa0] sm:$0xff] %vm3733_vm8, %v11416_v12  ;;  %11008 = vrot.lane.b32.xlu0 %v10842_v14, %s20847_s28  ;;  %v10739_v3 = vpop.permute.xlu1 %10738  ;;  %v11425_v34 = vrot.slane %v11417_v42, %v14360_v7 }
0x1087   : > { %v20388_v25 = vsel %vm21547_vm14, %v21546_v5, %v10739_v3 }
0x1088   : > { %v11554_v10 = vcombine.low %v20384_v22, %v20388_v25  ;;  %v10705_v55 = vpop.permute.xlu0 %10704  ;;  %11010 = vrot.lane.b32.xlu1 %v10843_v2, %s20847_s28 }
0x1089   : > { %v10850_v27 = vsel %vm21551_vm4, %v21550_v40, %v10705_v55 }
0x108a   : > { %v11568_v57 = vrot.slane %v11554_v10, %v14360_v7  ;;  %11016 = vrot.lane.b32.xlu0 %v10846_v46, %s20847_s28  ;;  %v10707_v59 = vpop.permute.xlu1 %10706 }
0x108b   : > { %v10851_v9 = vsel %vm21552_vm1, %v20137_v0, %v10707_v59 }
0x108c   : > { %v11569_v48 = vcombine.low %v11561_v56, %v11568_v57  ;;  %v11418_v30 = vcombine.low %v10850_v27, %v10851_v9  ;;  %v20402_v20 = vpop.permute.xlu0 %10964  ;;  %11018 = vrot.lane.b32.xlu1 %v10847_v60, %s20847_s28 }
0x108e   : > { %11665 = vst.msk [vmem:[%s20162_s26 + $0xe8] sm:$0xff] %vm3733_vm8, %v11569_v48  ;;  %v11432_v32 = vrot.slane %v11418_v30, %v14360_v7  ;;  %11020 = vrot.lane.b32.xlu0 %v10848_v54, %s20847_s28  ;;  %v20410_v61 = vpop.permute.xlu1 %10966 }
0x1090   : > { %v11433_v0 = vcombine.low %v11425_v34, %v11432_v32  ;;  %v20412_v39 = vpop.permute.xlu0 %10932  ;;  %11022 = vrot.lane.b32.xlu1 %v10849_v58, %s20847_s28 }
0x1092   : > { %11657 = vst.msk [vmem:[%s20162_s26 + $0xa8] sm:$0xff] %vm3733_vm8, %v11433_v0  ;;  %11024 = vrot.lane.b32.xlu0 %v10850_v27, %s20847_s28  ;;  %v20419_v24 = vpop.permute.xlu1 %10934 }
0x1094   : > { %v20432_v18 = vpop.permute.xlu0 %10968  ;;  %11026 = vrot.lane.b32.xlu1 %v10851_v9, %s20847_s28 }
0x1095   : > { %13885 = shalt.err (!%p13882_p10)
}
0x1096   : > { %s13886_s21 = scalar_lea.hbm %s20426_s1, 16  ;;  %s13890_s25 = scalar_lea.hbm %s21554_s19, 32 }
0x1097   : > { %p13887_p3 = scmp.ne.s32.totalorder %s20426_s1, %s13886_s21  ;;  %p13891_p7 = scmp.lt.u32.totalorder %s20426_s1, %s21554_s19 }
0x1098   : > { %p13892_p8 = scmp.lt.u32.totalorder %s13890_s25, %s13886_s21  ;;  %p13894_p13 = scmp.lt.u32.totalorder %s13886_s21, %s20426_s1 }
0x1099   : > { %p13888_p4 = pnand %p13887_p3, %p21556_p1 }
0x109a   : > { %p13893_p11 = por %p13892_p8, %p13891_p7 }
0x109b   : > { %p13889_p12 = pneg %p13888_p4 }
0x109c   : > { %p13895_p6 = por %p13894_p13, %p13893_p11 }
0x109e   : > { %p13896_p9 = pnand %p13895_p6, %p13889_p12 }
0x10a0   : > { %13899 = shalt.err (!%p13896_p9)
}
0x10a1   : > { %12729 = dma.vmem_to_hbm [thread:$0]  (%p21556_p1), %s20430_s0, 16, %s20426_s1, %s11674_s29   ;;  %v11230_v6 = vcombine.low %v20402_v20, %v20410_v61  ;;  %v10971_v52 = vpop.permute.xlu1 %10970 }
0x10a2   : > { %s21557_s23 = sshll.u32 %s14147_s2, 4  ;;  %s21558_s27 = sld [smem:[#allocation169_spill]]  ;;  %v11231_v17 = vcombine.low %v20432_v18, %v10971_v52 }
0x10a3   : > { %s21559_s21 = scalar_lea.vmem [#allocation14], %s18408_s18  ;;  %s21560_s3 = smov 126  }
0x10a4   : > { %s11706_s25 = sshll.u32 %s21559_s21, 4  ;;  %11056 = vrot.lane.b32.xlu0 %v20384_v22, %s21560_s3  ;;  %s11678_s1 = scalar_lea.sflag [#allocation15], %s18408_s18  ;;  %s20470_s25 = int_to_ptr.vmem [resolvable:$true] %s11706_s25 }
0x10a5   : > { %s13900_s2 = scalar_lea.vmem %s20470_s25, 16  ;;  %s14020_s0 = smov [#allocation14]  }
0x10a6   : > { %p13901_p2 = scmp.ne.s32.totalorder %s20470_s25, %s13900_s2  ;;  %s13904_s29 = sshll.u32 %s14020_s0, 4  ;;  %s13905_s29 = int_to_ptr.vmem [resolvable:$false] %s13904_s29 }
0x10a7   : > { %p13907_p10 = scmp.lt.s32.totalorder %s20470_s25, %s13905_s29 }
0x10a8   : > { %s20464_s24 = scalar_lea.hbm %s21558_s27, %s21557_s23  ;;  %p13902_p0 = pnand %p13901_p2, %p21556_p1 }
0x10a9   : > { %s13906_s23 = scalar_lea.vmem %s13905_s29, 32 }
0x10aa   : > { %p13903_p5 = pneg %p13902_p0  ;;  %p13908_p3 = scmp.lt.s32.totalorder %s13906_s23, %s13900_s2 }
0x10ac   : > { %p13909_p4 = por %p13908_p3, %p13907_p10 }
0x10ae   : > { %p13910_p12 = pnand %p13909_p4, %p13903_p5 }
0x10b0   : > { %13913 = shalt.err (!%p13910_p12)
}
0x10b1   : > { %s13914_s18 = scalar_lea.hbm %s20464_s24, 16  ;;  %s13918_s21 = scalar_lea.hbm %s21558_s27, 32 }
0x10b2   : > { %p13915_p7 = scmp.ne.s32.totalorder %s20464_s24, %s13914_s18  ;;  %p13919_p13 = scmp.lt.u32.totalorder %s20464_s24, %s21558_s27 }
0x10b3   : > { %p13920_p6 = scmp.lt.u32.totalorder %s13918_s21, %s13914_s18  ;;  %p13922_p2 = scmp.lt.u32.totalorder %s13914_s18, %s20464_s24 }
0x10b4   : > { %p13916_p8 = pnand %p13915_p7, %p21556_p1 }
0x10b5   : > { %p13921_p9 = por %p13920_p6, %p13919_p13 }
0x10b6   : > { %p13917_p11 = pneg %p13916_p8 }
0x10b7   : > { %p13923_p0 = por %p13922_p2, %p13921_p9 }
0x10b9   : > { %p13924_p5 = pnand %p13923_p0, %p13917_p11 }
0x10bb   : > { %13927 = shalt.err (!%p13924_p5)
}
0x10bc   : > { %12730 = dma.vmem_to_hbm [thread:$0]  (%p21556_p1), %s20470_s25, 16, %s20464_s24, %s11678_s1   ;;  %v10973_v19 = vpop.permute.xlu0 %10972  ;;  %11058 = vrot.lane.b32.xlu1 %v20388_v25, %s21560_s3  ;;  %v11238_v1 = vrot.slane %v11230_v6, %v14360_v7  ;;  %v11245_v45 = vrot.slane %v11231_v17, %v14360_v7  ;;  %v10975_v36 = vpop.permute.xlu1 %10974  ;;  %v11094_v2 = vcombine.low %v20412_v39, %v20419_v24 }
0x10bd   : > { %v11247_v4 = vcombine.low %v10973_v19, %v10975_v36 }
0x10be   : > { %v11246_v29 = vcombine.low %v11238_v1, %v11245_v45  ;;  %v11102_v33 = vrot.slane %v11094_v2, %v14360_v7 }
0x10bf   : > { %v11255_v49 = vrot.slane %v11247_v4, %v14360_v7 }
0x10c0   : > { %v10981_v21 = vpop.permute.xlu0 %10980  ;;  %11646 = vst.msk [vmem:[%s20162_s26 + $0x50] sm:$0xff] %vm3733_vm8, %v11246_v29  ;;  %v10983_v14 = vpop.permute.xlu1 %10982 }
0x10c1   : > { %v11298_v44 = vcombine.low %v10981_v21, %v10983_v14 }
0x10c3   : > { %v11306_v53 = vrot.slane %v11298_v44, %v14360_v7 }
0x10c4   : > { %v10937_v35 = vpop.permute.xlu0 %10936  ;;  %v10939_v31 = vpop.permute.xlu1 %10938 }
0x10c5   : > { %v11095_v37 = vcombine.low %v10937_v35, %v10939_v31 }
0x10c7   : > { %v11109_v47 = vrot.slane %v11095_v37, %v14360_v7 }
0x10c8   : > { %v10941_v43 = vpop.permute.xlu0 %10940  ;;  %v10943_v51 = vpop.permute.xlu1 %10942 }
0x10c9   : > { %v11110_v50 = vcombine.low %v11102_v33, %v11109_v47  ;;  %v11111_v16 = vcombine.low %v10941_v43, %v10943_v51 }
0x10cb   : > { %11638 = vst.msk [vmem:[%s20162_s26 + $0x10] sm:$0xff] %vm3733_vm8, %v11110_v50  ;;  %v11119_v10 = vrot.slane %v11111_v16, %v14360_v7 }
0x10cc   : > { %v10949_v46 = vpop.permute.xlu0 %10948  ;;  %v10951_v28 = vpop.permute.xlu1 %10950 }
0x10cd   : > { %v11162_v55 = vcombine.low %v10949_v46, %v10951_v28 }
0x10cf   : > { %v11170_v59 = vrot.slane %v11162_v55, %v14360_v7 }
0x10d0   : > { %v10977_v60 = vpop.permute.xlu0 %10976  ;;  %v10979_v8 = vpop.permute.xlu1 %10978 }
0x10d1   : > { %v11248_v38 = vcombine.low %v10977_v60, %v10979_v8 }
0x10d3   : > { %v11262_v11 = vrot.slane %v11248_v38, %v14360_v7 }
0x10d4   : > { %v10985_v15 = vpop.permute.xlu0 %10984  ;;  %v10987_v62 = vpop.permute.xlu1 %10986 }
0x10d5   : > { %v11263_v26 = vcombine.low %v11255_v49, %v11262_v11  ;;  %v11299_v63 = vcombine.low %v10985_v15, %v10987_v62 }
0x10d7   : > { %11647 = vst.msk [vmem:[%s20162_s26 + $0x58] sm:$0xff] %vm3733_vm8, %v11263_v26  ;;  %v11313_v23 = vrot.slane %v11299_v63, %v14360_v7 }
0x10d8   : > { %v10989_v12 = vpop.permute.xlu0 %10988  ;;  %v10991_v3 = vpop.permute.xlu1 %10990 }
0x10d9   : > { %v11314_v13 = vcombine.low %v11306_v53, %v11313_v23  ;;  %v11315_v30 = vcombine.low %v10989_v12, %v10991_v3 }
0x10db   : > { %11650 = vst.msk [vmem:[%s20162_s26 + $0x70] sm:$0xff] %vm3733_vm8, %v11314_v13  ;;  %v11323_v61 = vrot.slane %v11315_v30, %v14360_v7 }
0x10dc   : > { %v10945_v58 = vpop.permute.xlu0 %10944  ;;  %v10947_v22 = vpop.permute.xlu1 %10946 }
0x10dd   : > { %v11112_v5 = vcombine.low %v10945_v58, %v10947_v22 }
0x10df   : > { %v11126_v41 = vrot.slane %v11112_v5, %v14360_v7 }
0x10e0   : > { %v10953_v25 = vpop.permute.xlu0 %10952  ;;  %v10955_v54 = vpop.permute.xlu1 %10954 }
0x10e1   : > { %v11127_v56 = vcombine.low %v11119_v10, %v11126_v41  ;;  %v11163_v42 = vcombine.low %v10953_v25, %v10955_v54 }
0x10e3   : > { %11639 = vst.msk [vmem:[%s20162_s26 + $0x18] sm:$0xff] %vm3733_vm8, %v11127_v56  ;;  %v11177_v40 = vrot.slane %v11163_v42, %v14360_v7 }
0x10e4   : > { %v10957_v57 = vpop.permute.xlu0 %10956  ;;  %v10959_v27 = vpop.permute.xlu1 %10958 }
0x10e5   : > { %v11178_v9 = vcombine.low %v11170_v59, %v11177_v40  ;;  %v11179_v0 = vcombine.low %v10957_v57, %v10959_v27 }
0x10e7   : > { %11642 = vst.msk [vmem:[%s20162_s26 + $0x30] sm:$0xff] %vm3733_vm8, %v11178_v9  ;;  %v11187_v17 = vrot.slane %v11179_v0, %v14360_v7 }
0x10e8   : > { %v10993_v48 = vpop.permute.xlu0 %10992  ;;  %v10995_v20 = vpop.permute.xlu1 %10994 }
0x10e9   : > { %v11316_v34 = vcombine.low %v10993_v48, %v10995_v20 }
0x10eb   : > { %v11330_v39 = vrot.slane %v11316_v34, %v14360_v7 }
0x10ec   : > { %v10961_v32 = vpop.permute.xlu0 %10960  ;;  %v10963_v24 = vpop.permute.xlu1 %10962 }
0x10ed   : > { %v11331_v18 = vcombine.low %v11323_v61, %v11330_v39  ;;  %v11180_v6 = vcombine.low %v10961_v32, %v10963_v24 }
0x10ef   : > { %11651 = vst.msk [vmem:[%s20162_s26 + $0x78] sm:$0xff] %vm3733_vm8, %v11331_v18  ;;  %v11194_v19 = vrot.slane %v11180_v6, %v14360_v7 }
0x10f0   : > { %v11029_v52 = vpop.permute.xlu0 %11028  ;;  %v11031_v1 = vpop.permute.xlu1 %11030 }
0x10f1   : > { %v11195_v45 = vcombine.low %v11187_v17, %v11194_v19  ;;  %v11502_v14 = vcombine.low %v11029_v52, %v11031_v1 }
0x10f3   : > { %11643 = vst.msk [vmem:[%s20162_s26 + $0x38] sm:$0xff] %vm3733_vm8, %v11195_v45  ;;  %v11510_v37 = vrot.slane %v11502_v14, %v14360_v7 }
0x10f4   : > { %v10997_v36 = vpop.permute.xlu0 %10996  ;;  %v10999_v29 = vpop.permute.xlu1 %10998 }
0x10f5   : > { %v11366_v28 = vcombine.low %v10997_v36, %v10999_v29 }
0x10f7   : > { %v11374_v38 = vrot.slane %v11366_v28, %v14360_v7 }
0x10f8   : > { %v11033_v21 = vpop.permute.xlu0 %11032  ;;  %v11035_v35 = vpop.permute.xlu1 %11034 }
0x10f9   : > { %v11503_v2 = vcombine.low %v11033_v21, %v11035_v35 }
0x10fb   : > { %v11517_v43 = vrot.slane %v11503_v2, %v14360_v7 }
0x10fc   : > { %v11037_v31 = vpop.permute.xlu0 %11036  ;;  %v11039_v33 = vpop.permute.xlu1 %11038 }
0x10fd   : > { %v11518_v47 = vcombine.low %v11510_v37, %v11517_v43  ;;  %v11519_v63 = vcombine.low %v11037_v31, %v11039_v33 }
0x10ff   : > { %11662 = vst.msk [vmem:[%s20162_s26 + $0xd0] sm:$0xff] %vm3733_vm8, %v11518_v47  ;;  %v11527_v3 = vrot.slane %v11519_v63, %v14360_v7 }
0x1100   : > { %v11045_v51 = vpop.permute.xlu0 %11044  ;;  %v11047_v50 = vpop.permute.xlu1 %11046 }
0x1101   : > { %v11570_v13 = vcombine.low %v11045_v51, %v11047_v50 }
0x1103   : > { %v11578_v10 = vrot.slane %v11570_v13, %v14360_v7 }
0x1104   : > { %v11001_v46 = vpop.permute.xlu0 %11000  ;;  %v11003_v60 = vpop.permute.xlu1 %11002 }
0x1105   : > { %v11367_v4 = vcombine.low %v11001_v46, %v11003_v60 }
0x1107   : > { %v11381_v15 = vrot.slane %v11367_v4, %v14360_v7 }
0x1108   : > { %v11005_v8 = vpop.permute.xlu0 %11004  ;;  %v11007_v49 = vpop.permute.xlu1 %11006 }
0x1109   : > { %v11382_v44 = vcombine.low %v11374_v38, %v11381_v15  ;;  %v11383_v42 = vcombine.low %v11005_v8, %v11007_v49 }
0x110b   : > { %11654 = vst.msk [vmem:[%s20162_s26 + $0x90] sm:$0xff] %vm3733_vm8, %v11382_v44  ;;  %v11391_v27 = vrot.slane %v11383_v42, %v14360_v7 }
0x110c   : > { %v11013_v11 = vpop.permute.xlu0 %11012  ;;  %v11015_v62 = vpop.permute.xlu1 %11014 }
0x110d   : > { %v11434_v9 = vcombine.low %v11013_v11, %v11015_v62 }
0x110f   : > { %v11442_v61 = vrot.slane %v11434_v9, %v14360_v7 }
0x1110   : > { %v11041_v26 = vpop.permute.xlu0 %11040  ;;  %v11043_v12 = vpop.permute.xlu1 %11042 }
0x1111   : > { %v11520_v53 = vcombine.low %v11041_v26, %v11043_v12 }
0x1113   : > { %v11534_v58 = vrot.slane %v11520_v53, %v14360_v7 }
0x1114   : > { %v11049_v23 = vpop.permute.xlu0 %11048  ;;  %v11051_v16 = vpop.permute.xlu1 %11050 }
0x1115   : > { %v11535_v22 = vcombine.low %v11527_v3, %v11534_v58  ;;  %v11571_v5 = vcombine.low %v11049_v23, %v11051_v16 }
0x1117   : > { %11663 = vst.msk [vmem:[%s20162_s26 + $0xd8] sm:$0xff] %vm3733_vm8, %v11535_v22  ;;  %v11585_v55 = vrot.slane %v11571_v5, %v14360_v7 }
0x1118   : > { %v11053_v25 = vpop.permute.xlu0 %11052  ;;  %v11055_v41 = vpop.permute.xlu1 %11054 }
0x1119   : > { %v11586_v54 = vcombine.low %v11578_v10, %v11585_v55  ;;  %v11587_v19 = vcombine.low %v11053_v25, %v11055_v41 }
0x111b   : > { %11666 = vst.msk [vmem:[%s20162_s26 + $0xf0] sm:$0xff] %vm3733_vm8, %v11586_v54  ;;  %v11595_v35 = vrot.slane %v11587_v19, %v14360_v7 }
0x111c   : > { %v11009_v56 = vpop.permute.xlu0 %11008  ;;  %v11011_v57 = vpop.permute.xlu1 %11010 }
0x111d   : > { %v11384_v59 = vcombine.low %v11009_v56, %v11011_v57 }
0x111f   : > { %v11398_v48 = vrot.slane %v11384_v59, %v14360_v7 }
0x1120   : > { %v11017_v40 = vpop.permute.xlu0 %11016  ;;  %v11019_v30 = vpop.permute.xlu1 %11018 }
0x1121   : > { %v11399_v20 = vcombine.low %v11391_v27, %v11398_v48  ;;  %v11435_v34 = vcombine.low %v11017_v40, %v11019_v30 }
0x1123   : > { %11655 = vst.msk [vmem:[%s20162_s26 + $0x98] sm:$0xff] %vm3733_vm8, %v11399_v20  ;;  %v11449_v0 = vrot.slane %v11435_v34, %v14360_v7 }
0x1124   : > { %v11021_v32 = vpop.permute.xlu0 %11020  ;;  %v11023_v39 = vpop.permute.xlu1 %11022 }
0x1125   : > { %v11450_v24 = vcombine.low %v11442_v61, %v11449_v0  ;;  %v11451_v6 = vcombine.low %v11021_v32, %v11023_v39 }
0x1127   : > { %11658 = vst.msk [vmem:[%s20162_s26 + $0xb0] sm:$0xff] %vm3733_vm8, %v11450_v24  ;;  %v11459_v1 = vrot.slane %v11451_v6, %v14360_v7 }
0x1128   : > { %v11025_v18 = vpop.permute.xlu0 %11024  ;;  %v11027_v52 = vpop.permute.xlu1 %11026 }
0x1129   : > { %v11452_v17 = vcombine.low %v11025_v18, %v11027_v52 }
0x112b   : > { %v11466_v45 = vrot.slane %v11452_v17, %v14360_v7 }
0x112c   : > { %v11057_v36 = vpop.permute.xlu0 %11056 }
0x112d   : > { %v11467_v21 = vcombine.low %v11459_v1, %v11466_v45 }
0x112e   : > { %v11059_v29 = vpop.permute.xlu1 %11058 }
0x112f   : > { %v11588_v14 = vcombine.low %v11057_v36, %v11059_v29  ;;  %11659 = vst.msk [vmem:[%s20162_s26 + $0xb8] sm:$0xff] %vm3733_vm8, %v11467_v21 }
0x1131   : > { %v11602_v2 = vrot.slane %v11588_v14, %v14360_v7 }
0x1133   : > { %v11603_v31 = vcombine.low %v11595_v35, %v11602_v2 }
0x1135   : > { %11667 = vst.msk [vmem:[%s20162_s26 + $0xf8] sm:$0xff] %vm3733_vm8, %v11603_v31 }
0x1136 PF: > { %s21561_s20 = sld [smem:[#allocation24_spill]]  ;;  %s21562_s24 = sld [smem:[#allocation22_spill]] }
0x1137   : > { %s21563_s25 = sld [smem:[#allocation28_spill]] }
0x113c   : > { %p12771_p1 = scmp.ge.s32.totalorder %s21561_s20, 2  ;;  %s11726_s3 = sand.u32 1, %s21562_s24  }
0x113d   : > { %p21564_p10 = scmp.ne.s32.totalorder %s21563_s25, 0  ;;  %s11727_s1 = scalar_lea.sflag [#allocation4], %s11726_s3 }
0x113f   : > { %p12753_p3 = pnand %p12771_p1, %p21564_p10 }
0x1141   : > { %13961 = dma.done.wait (!%p12753_p3), %s11727_s1, 16  }
0x1142   : > { %13963 = vsyncadd (!%p12753_p3), %s11727_s1, 4294967280  ;;  %s11735_s2 = scalar_lea.sflag [#allocation15], %s11726_s3 }
0x1143   : > { %13965 = dma.done.wait (!%p12753_p3), %s11735_s2, 16  }
0x1144   : > { %13967 = vsyncadd (!%p12753_p3), %s11735_s2, 4294967280  ;;  %s21565_s24 = sld [smem:[#allocation25_spill]]  ;;  %s21566_s23 = sld [smem:[#allocation23_spill]] }
0x1145   : > { %s21567_s18 = sld [smem:[#allocation26_spill]]  ;;  %s21568_s1 = smov %s13974_s22 }
0x114a   : > { %p38_p4 = scmp.ge.s32.totalorder %s21565_s24, 4   ;;  %s21569_s22 = smov %s21566_s23 }
0x114b   : > { %s21570_s23 = smov %s21567_s18 }
0x114c   :  { %40 = sbr.rel (!%p38_p4) target bundleno = 19 (0x13), region = 184 }
0x1153   :  { %11739 = vsyncpa [#allocation3], 1 }
0x1154   :  { %11741 = vsyncpa [#allocation3 + $0x1], 1 }
0x1155   :  { %11742 = vsyncpa [#allocation6], 1 }
0x1156   :  { %11743 = vsyncpa [#allocation9], 1 }
0x1157   :  { %11744 = vsyncpa [#allocation12], 1 }
0x1158   :  { %11745 = vsyncpa [#allocation4], 1 }
0x1159   :  { %11747 = vsyncpa [#allocation4 + $0x1], 1 }
0x115a   :  { %11748 = vsyncpa [#allocation15], 1 }
0x115b   :  { %11750 = vsyncpa [#allocation15 + $0x1], 1 }

</bundles_post_ra>
